<compile_context>
chip_gen: v5e
topology: v5e:2x2
jax: 0.10.0
libtpu: 0.0.40
codegen_flags: <defaults>
</compile_context>

<pallas_src>
import functools
import math

import jax
import jax.numpy as jnp
from jax.experimental import pallas as pl
from jax.experimental.pallas import tpu as pltpu

# ----------------------- model config (small, forward-consistent) ------------
EMBED = 32
HEADS = 4
HEAD_DIM = EMBED // HEADS
NUM_LAYERS = 2
FWD_EXP = 4
HIDDEN = FWD_EXP * EMBED
MAX_LEN = 16
SRC_VOCAB = 11
TRG_VOCAB = 13
VOCAB_PAD = 128          # lane-dense padded vocab for the final projection
SRC_PAD = 0
TRG_PAD = 0
LN_EPS = 1e-5
SCALE = 1.0 / math.sqrt(EMBED)   # reference divides scores by sqrt(embed_size)
# dropout=0 in the reference config -> identity, omitted.


# --------------------------- in-kernel helpers --------------------------------
def _layernorm(y, g, b):
    mean = jnp.mean(y, axis=-1, keepdims=True)
    var = jnp.mean((y - mean) ** 2, axis=-1, keepdims=True)
    return (y - mean) * jax.lax.rsqrt(var + LN_EPS) * g + b


def _attention(q_s, k_s, v_s, out_s, key_mask_rows, *, n_batch, q_len, k_len,
               q_col0, k_col0, v_col0):
    """Per-(batch, head) attention on already-projected VMEM scratch buffers.

    q_s/k_s/v_s: scratch refs holding projected q / k / v; head h lives in lanes
        [col0 + h*HEAD_DIM : col0 + (h+1)*HEAD_DIM].
    out_s: (n_batch*q_len, EMBED) scratch receiving the concatenated head outputs.
    key_mask_rows(n): (1 or q_len, k_len) mask for batch n; 0 => mask out.
    Loops are unrolled at trace time (n_batch*HEADS tiny tiles, launch-bound).
    """
    for n in range(n_batch):
        rq = n * q_len
        rk = n * k_len
        m = key_mask_rows(n)
        for h in range(HEADS):
            qc = q_col0 + h * HEAD_DIM
            kc = k_col0 + h * HEAD_DIM
            vc = v_col0 + h * HEAD_DIM
            # scale folded into q (numerically identical to scaling scores in f32)
            q = q_s[rq:rq + q_len, qc:qc + HEAD_DIM] * SCALE
            k = k_s[rk:rk + k_len, kc:kc + HEAD_DIM]
            v = v_s[rk:rk + k_len, vc:vc + HEAD_DIM]
            # QK^T without an explicit transpose: contract last axes.
            s = jax.lax.dot_general(
                q, k, dimension_numbers=(((1,), (1,)), ((), ())),
                preferred_element_type=jnp.float32)           # (q_len, k_len)
            s = jnp.where(m == 0.0, jnp.float32(-1e20), s)
            s = s - jnp.max(s, axis=-1, keepdims=True)
            p = jnp.exp(s)
            p = p * pl.reciprocal(jnp.sum(p, axis=-1, keepdims=True), approx=True)
            out_s[rq:rq + q_len, h * HEAD_DIM:(h + 1) * HEAD_DIM] = jnp.dot(
                p, v, preferred_element_type=jnp.float32)


# ----------------------------- fused block kernels ----------------------------
def _enc_block_kernel(x_ref, kmask_ref,
                      wqkv_ref, wo_ref, bo_ref,
                      ln1g_ref, ln1b_ref, w1_ref, b1_ref, w2_ref, b2_ref,
                      ln2g_ref, ln2b_ref,
                      o_ref, qkv_s, attn_s, *, n_batch, seq):
    x = x_ref[...]                                                   # (N*L, E)
    # fused, lane-dense QKV projection (block-diagonal per-head weights)
    qkv_s[...] = jnp.dot(x, wqkv_ref[...], preferred_element_type=jnp.float32)
    _attention(qkv_s, qkv_s, qkv_s, attn_s,
               key_mask_rows=lambda n: kmask_ref[n:n + 1, :],
               n_batch=n_batch, q_len=seq, k_len=seq,
               q_col0=0, k_col0=EMBED, v_col0=2 * EMBED)
    attn = jnp.dot(attn_s[...], wo_ref[...],
                   preferred_element_type=jnp.float32) + bo_ref[...]
    xn = _layernorm(attn + x, ln1g_ref[...], ln1b_ref[...])
    h = jnp.maximum(jnp.dot(xn, w1_ref[...],
                            preferred_element_type=jnp.float32) + b1_ref[...], 0.0)
    f = jnp.dot(h, w2_ref[...], preferred_element_type=jnp.float32) + b2_ref[...]
    o_ref[...] = _layernorm(f + xn, ln2g_ref[...], ln2b_ref[...])


def _dec_block_kernel(x_ref, enc_ref, trg_mask_ref, src_kmask_ref,
                      # masked self-attention + its norm
                      wqkv_s_ref, wo_s_ref, bo_s_ref, lng_ref, lnb_ref,
                      # cross-attention transformer block
                      wq_c_ref, wkv_c_ref, wo_c_ref, bo_c_ref,
                      ln1g_ref, ln1b_ref, w1_ref, b1_ref, w2_ref, b2_ref,
                      ln2g_ref, ln2b_ref,
                      o_ref,
                      qkv_s, attn_s, q_c, kv_c, attn_c,
                      *, n_batch, q_len, k_len):
    x = x_ref[...]                                                   # (N*Lt, E)
    # --- masked self-attention ---
    qkv_s[...] = jnp.dot(x, wqkv_s_ref[...], preferred_element_type=jnp.float32)
    _attention(qkv_s, qkv_s, qkv_s, attn_s,
               key_mask_rows=lambda n: trg_mask_ref[...],
               n_batch=n_batch, q_len=q_len, k_len=q_len,
               q_col0=0, k_col0=EMBED, v_col0=2 * EMBED)
    attn = jnp.dot(attn_s[...], wo_s_ref[...],
                   preferred_element_type=jnp.float32) + bo_s_ref[...]
    query = _layernorm(attn + x, lng_ref[...], lnb_ref[...])
    # --- cross-attention (value = key = enc_out, query = normed decoder state) ---
    enc = enc_ref[...]                                               # (N*Ls, E)
    q_c[...] = jnp.dot(query, wq_c_ref[...], preferred_element_type=jnp.float32)
    kv_c[...] = jnp.dot(enc, wkv_c_ref[...], preferred_element_type=jnp.float32)
    _attention(q_c, kv_c, kv_c, attn_c,
               key_mask_rows=lambda n: src_kmask_ref[n:n + 1, :],
               n_batch=n_batch, q_len=q_len, k_len=k_len,
               q_col0=0, k_col0=0, v_col0=EMBED)
    attn2 = jnp.dot(attn_c[...], wo_c_ref[...],
                    preferred_element_type=jnp.float32) + bo_c_ref[...]
    xn = _layernorm(attn2 + query, ln1g_ref[...], ln1b_ref[...])
    h = jnp.maximum(jnp.dot(xn, w1_ref[...],
                            preferred_element_type=jnp.float32) + b1_ref[...], 0.0)
    f = jnp.dot(h, w2_ref[...], preferred_element_type=jnp.float32) + b2_ref[...]
    o_ref[...] = _layernorm(f + xn, ln2g_ref[...], ln2b_ref[...])


def _out_proj_kernel(x_ref, w_ref, b_ref, o_ref):
    # lane-dense (padded to 128) vocabulary projection
    o_ref[...] = jnp.dot(x_ref[...], w_ref[...],
                         preferred_element_type=jnp.float32) + b_ref[...]


# --------------------------------- wrappers -----------------------------------
def encoder_block(x2, src_kmask, p, n_batch, seq):
    kern = functools.partial(_enc_block_kernel, n_batch=n_batch, seq=seq)
    return pl.pallas_call(
        kern,
        out_shape=jax.ShapeDtypeStruct((n_batch * seq, EMBED), jnp.float32),
        scratch_shapes=[pltpu.VMEM((n_batch * seq, 3 * EMBED), jnp.float32),
                        pltpu.VMEM((n_batch * seq, EMBED), jnp.float32)],
    )(x2, src_kmask,
      p["Wqkv"], p["Wo"], p["bo"],
      p["ln1_g"], p["ln1_b"], p["W1"], p["b1"], p["W2"], p["b2"],
      p["ln2_g"], p["ln2_b"])


def decoder_block(x2, enc2, trg_mask, src_kmask, p, n_batch, q_len, k_len):
    kern = functools.partial(_dec_block_kernel, n_batch=n_batch,
                             q_len=q_len, k_len=k_len)
    tb = p["tblock"]
    return pl.pallas_call(
        kern,
        out_shape=jax.ShapeDtypeStruct((n_batch * q_len, EMBED), jnp.float32),
        scratch_shapes=[pltpu.VMEM((n_batch * q_len, 3 * EMBED), jnp.float32),
                        pltpu.VMEM((n_batch * q_len, EMBED), jnp.float32),
                        pltpu.VMEM((n_batch * q_len, EMBED), jnp.float32),
                        pltpu.VMEM((n_batch * k_len, 2 * EMBED), jnp.float32),
                        pltpu.VMEM((n_batch * q_len, EMBED), jnp.float32)],
    )(x2, enc2, trg_mask, src_kmask,
      p["Wqkv"], p["Wo"], p["bo"], p["ln_g"], p["ln_b"],
      tb["Wq_c"], tb["Wkv_c"], tb["Wo"], tb["bo"],
      tb["ln1_g"], tb["ln1_b"], tb["W1"], tb["b1"], tb["W2"], tb["b2"],
      tb["ln2_g"], tb["ln2_b"])


def output_projection(x2, w_pad, b_pad, n_rows):
    return pl.pallas_call(
        _out_proj_kernel,
        out_shape=jax.ShapeDtypeStruct((n_rows, VOCAB_PAD), jnp.float32),
    )(x2, w_pad, b_pad)


# ------------------------------ model forward ---------------------------------
def transformer_forward(params, src, trg):
    N, Ls = src.shape
    _, Lt = trg.shape
    # masks (kept un-broadcast; broadcast happens inside the kernels)
    src_kmask = (src != SRC_PAD).astype(jnp.float32)            # (N, Ls)
    trg_mask = jnp.tril(jnp.ones((Lt, Lt), jnp.float32))        # (Lt, Lt)

    # Encoder (reference uses only the position embedding; dropout = 0).
    enc = jnp.broadcast_to(params["enc"]["pos_emb"][:Ls][None], (N, Ls, EMBED))
    enc = enc.astype(jnp.float32).reshape(N * Ls, EMBED)
    for lp in params["enc"]["layers"]:
        enc = encoder_block(enc, src_kmask, lp, N, Ls)

    # Decoder (position embedding only, matching the reference module).
    x = jnp.broadcast_to(params["dec"]["pos_emb"][:Lt][None], (N, Lt, EMBED))
    x = x.astype(jnp.float32).reshape(N * Lt, EMBED)
    for lp in params["dec"]["layers"]:
        x = decoder_block(x, enc, trg_mask, src_kmask, lp, N, Lt, Ls)

    logits_pad = output_projection(x, params["dec"]["Wout_p"],
                                   params["dec"]["bout_p"], N * Lt)
    return logits_pad[:, :TRG_VOCAB].reshape(N, Lt, TRG_VOCAB)


# ------------------------------ parameter init ---------------------------------
def init_params(key):
    keys = iter(jax.random.split(key, 256))

    def w(shape, scale=0.02):
        return (scale * jax.random.normal(next(keys), shape)).astype(jnp.float32)

    def block_diag(wh):  # per-head (Dh, Dh) weight -> block-diagonal (E, E)
        return jnp.kron(jnp.eye(HEADS, dtype=jnp.float32), wh)

    def self_attn_p():
        wq, wk, wv = (w((HEAD_DIM, HEAD_DIM)), w((HEAD_DIM, HEAD_DIM)),
                      w((HEAD_DIM, HEAD_DIM)))
        return dict(
            Wqkv=jnp.concatenate([block_diag(wq), block_diag(wk),
                                  block_diag(wv)], axis=1),     # (E, 3E)
            Wo=w((EMBED, EMBED)),
            bo=w((1, EMBED)),
        )

    def ln():
        return (jnp.ones((1, EMBED), jnp.float32),
                jnp.zeros((1, EMBED), jnp.float32))

    def tblock_enc():
        a = self_attn_p()
        g1, b1_ = ln()
        g2, b2_ = ln()
        return dict(
            Wqkv=a["Wqkv"], Wo=a["Wo"], bo=a["bo"],
            ln1_g=g1, ln1_b=b1_,
            W1=w((EMBED, HIDDEN)), b1=w((1, HIDDEN)),
            W2=w((HIDDEN, EMBED)), b2=w((1, EMBED)),
            ln2_g=g2, ln2_b=b2_,
        )

    def tblock_cross():
        wq, wk, wv = (w((HEAD_DIM, HEAD_DIM)), w((HEAD_DIM, HEAD_DIM)),
                      w((HEAD_DIM, HEAD_DIM)))
        g1, b1_ = ln()
        g2, b2_ = ln()
        return dict(
            Wq_c=block_diag(wq),                                        # (E, E)
            Wkv_c=jnp.concatenate([block_diag(wk), block_diag(wv)], axis=1),  # (E, 2E)
            Wo=w((EMBED, EMBED)), bo=w((1, EMBED)),
            ln1_g=g1, ln1_b=b1_,
            W1=w((EMBED, HIDDEN)), b1=w((1, HIDDEN)),
            W2=w((HIDDEN, EMBED)), b2=w((1, EMBED)),
            ln2_g=g2, ln2_b=b2_,
        )

    def dblock():
        a = self_attn_p()
        g, b_ = ln()
        return dict(
            Wqkv=a["Wqkv"], Wo=a["Wo"], bo=a["bo"],
            ln_g=g, ln_b=b_,
            tblock=tblock_cross(),
        )

    enc = dict(
        pos_emb=w((MAX_LEN, EMBED), 1.0),
        layers=[tblock_enc() for _ in range(NUM_LAYERS)],
    )

    wout = w((EMBED, TRG_VOCAB))
    bout = w((1, TRG_VOCAB))
    dec = dict(
        pos_emb=w((MAX_LEN, EMBED), 1.0),
        layers=[dblock() for _ in range(NUM_LAYERS)],
        # pad vocab 13 -> 128 so the final kernel has lane-dense, unmasked stores
        Wout_p=jnp.zeros((EMBED, VOCAB_PAD), jnp.float32).at[:, :TRG_VOCAB].set(wout),
        bout_p=jnp.zeros((1, VOCAB_PAD), jnp.float32).at[:, :TRG_VOCAB].set(bout),
    )
    return dict(enc=enc, dec=dec)


# ----------------------------------- main --------------------------------------
if __name__ == "__main__":
    key = jax.random.PRNGKey(0)
    pkey, skey, tkey = jax.random.split(key, 3)
    params = init_params(pkey)

    N, Ls, Lt = 2, 8, 8
    src = jax.random.randint(skey, (N, Ls), 0, SRC_VOCAB, dtype=jnp.int32)
    trg = jax.random.randint(tkey, (N, Lt), 0, TRG_VOCAB, dtype=jnp.int32)

    out = jax.jit(transformer_forward)(params, src, trg)
    out = jax.block_until_ready(out)
    assert out.shape == (N, Lt, TRG_VOCAB)
    assert bool(jnp.all(jnp.isfinite(out)))
    print("KERNEL_OK")
</pallas_src>

<mosaic_0001>
module attributes {stable_mosaic.version = 11 : i64} {
  func.func @_enc_block_kernel(%arg0: memref<16x32xf32, #tpu.memory_space<vmem>>, %arg1: memref<2x8xf32, #tpu.memory_space<vmem>>, %arg2: memref<32x96xf32, #tpu.memory_space<vmem>>, %arg3: memref<32x32xf32, #tpu.memory_space<vmem>>, %arg4: memref<1x32xf32, #tpu.memory_space<vmem>>, %arg5: memref<1x32xf32, #tpu.memory_space<vmem>>, %arg6: memref<1x32xf32, #tpu.memory_space<vmem>>, %arg7: memref<32x128xf32, #tpu.memory_space<vmem>>, %arg8: memref<1x128xf32, #tpu.memory_space<vmem>>, %arg9: memref<128x32xf32, #tpu.memory_space<vmem>>, %arg10: memref<1x32xf32, #tpu.memory_space<vmem>>, %arg11: memref<1x32xf32, #tpu.memory_space<vmem>>, %arg12: memref<1x32xf32, #tpu.memory_space<vmem>>, %arg13: memref<16x32xf32, #tpu.memory_space<vmem>>, %arg14: memref<16x96xf32, #tpu.memory_space<vmem>>, %arg15: memref<16x32xf32, #tpu.memory_space<vmem>>) attributes {dimension_semantics = [], scalar_prefetch = 0 : i64, scratch_operands = 2 : i64, tpu.core_type = #tpu.core_type<tc>} {
    %c0 = arith.constant 0 : index
    %c0_0 = arith.constant 0 : index
    %0 = vector.load %arg0[%c0, %c0_0] : memref<16x32xf32, #tpu.memory_space<vmem>>, vector<16x32xf32>
    %c0_1 = arith.constant 0 : index
    %c0_2 = arith.constant 0 : index
    %1 = vector.load %arg2[%c0_1, %c0_2] : memref<32x96xf32, #tpu.memory_space<vmem>>, vector<32x96xf32>
    %cst = arith.constant dense<0.000000e+00> : vector<16x96xf32>
    %2 = tpu.matmul %0, %1, %cst {dimension_numbers = #tpu.dot_dimension_numbers<[1], [0], [0], [1], [0, 0, 1, 1], [], []>} : vector<16x32xf32>, vector<32x96xf32>, vector<16x96xf32> -> vector<16x96xf32>
    %c0_3 = arith.constant 0 : index
    %c0_4 = arith.constant 0 : index
    %3 = vector.load %arg14[%c0_3, %c0_4] : memref<16x96xf32, #tpu.memory_space<vmem>>, vector<16x96xf32>
    tpu.vector_store %arg14[%c0_3, %c0_4], %2 {strides = array<i32>} : memref<16x96xf32, #tpu.memory_space<vmem>>, vector<16x96xf32>,
    %c0_5 = arith.constant 0 : index
    %c0_6 = arith.constant 0 : index
    %4 = vector.load %arg1[%c0_5, %c0_6] : memref<2x8xf32, #tpu.memory_space<vmem>>, vector<1x8xf32>
    %c0_7 = arith.constant 0 : index
    %c0_8 = arith.constant 0 : index
    %5 = vector.load %arg14[%c0_7, %c0_8] : memref<16x96xf32, #tpu.memory_space<vmem>>, vector<8x8xf32>
    %cst_9 = arith.constant 0.176776692 : f32
    %6 = vector.broadcast %cst_9 : f32 to vector<8x8xf32>
    %7 = arith.mulf %5, %6 : vector<8x8xf32>
    %c0_10 = arith.constant 0 : index
    %c32 = arith.constant 32 : index
    %8 = vector.load %arg14[%c0_10, %c32] : memref<16x96xf32, #tpu.memory_space<vmem>>, vector<8x8xf32>
    %c0_11 = arith.constant 0 : index
    %c64 = arith.constant 64 : index
    %9 = vector.load %arg14[%c0_11, %c64] : memref<16x96xf32, #tpu.memory_space<vmem>>, vector<8x8xf32>
    %cst_12 = arith.constant dense<0.000000e+00> : vector<8x8xf32>
    %10 = tpu.matmul %7, %8, %cst_12 {dimension_numbers = #tpu.dot_dimension_numbers<[1], [1], [0], [0], [0, 0, 1, 0], [], []>} : vector<8x8xf32>, vector<8x8xf32>, vector<8x8xf32> -> vector<8x8xf32>
    %cst_13 = arith.constant 0.000000e+00 : f32
    %11 = vector.broadcast %cst_13 : f32 to vector<1x8xf32>
    %12 = arith.cmpf oeq, %4, %11 : vector<1x8xf32>
    %cst_14 = arith.constant -1.000000e+20 : f32
    %13 = vector.shape_cast %12 : vector<1x8xi1> to vector<1x8xi1>
    %14 = vector.broadcast %13 : vector<1x8xi1> to vector<8x8xi1>
    %15 = vector.broadcast %cst_14 : f32 to vector<8x8xf32>
    %16 = arith.select %14, %15, %10 : vector<8x8xi1>, vector<8x8xf32>
    %cst_15 = arith.constant dense<0xFF800000> : vector<8xf32>
    %17 = vector.multi_reduction <maximumf>, %16, %cst_15 [1] : vector<8x8xf32> to vector<8xf32>
    %18 = vector.shape_cast %17 : vector<8xf32> to vector<8x1xf32>
    %19 = vector.broadcast %18 : vector<8x1xf32> to vector<8x8xf32>
    %20 = arith.subf %16, %19 : vector<8x8xf32>
    %21 = math.exp %20 : vector<8x8xf32>
    %cst_16 = arith.constant dense<0.000000e+00> : vector<8xf32>
    %22 = vector.multi_reduction <add>, %21, %cst_16 [1] : vector<8x8xf32> to vector<8xf32>
    %23 = vector.shape_cast %22 : vector<8xf32> to vector<8x1xf32>
    %24 = tpu.reciprocal %23 {approx = true} : vector<8x1xf32> -> vector<8x1xf32>
    %25 = vector.broadcast %24 : vector<8x1xf32> to vector<8x8xf32>
    %26 = arith.mulf %21, %25 : vector<8x8xf32>
    %cst_17 = arith.constant dense<0.000000e+00> : vector<8x8xf32>
    %27 = tpu.matmul %26, %9, %cst_17 {dimension_numbers = #tpu.dot_dimension_numbers<[1], [0], [0], [1], [0, 0, 1, 1], [], []>} : vector<8x8xf32>, vector<8x8xf32>, vector<8x8xf32> -> vector<8x8xf32>
    %c0_18 = arith.constant 0 : index
    %c0_19 = arith.constant 0 : index
    %28 = vector.load %arg15[%c0_18, %c0_19] : memref<16x32xf32, #tpu.memory_space<vmem>>, vector<8x8xf32>
    tpu.vector_store %arg15[%c0_18, %c0_19], %27 {strides = array<i32>} : memref<16x32xf32, #tpu.memory_space<vmem>>, vector<8x8xf32>,
    %c0_20 = arith.constant 0 : index
    %c8 = arith.constant 8 : index
    %29 = vector.load %arg14[%c0_20, %c8] : memref<16x96xf32, #tpu.memory_space<vmem>>, vector<8x8xf32>
    %cst_21 = arith.constant 0.176776692 : f32
    %30 = vector.broadcast %cst_21 : f32 to vector<8x8xf32>
    %31 = arith.mulf %29, %30 : vector<8x8xf32>
    %c0_22 = arith.constant 0 : index
    %c40 = arith.constant 40 : index
    %32 = vector.load %arg14[%c0_22, %c40] : memref<16x96xf32, #tpu.memory_space<vmem>>, vector<8x8xf32>
    %c0_23 = arith.constant 0 : index
    %c72 = arith.constant 72 : index
    %33 = vector.load %arg14[%c0_23, %c72] : memref<16x96xf32, #tpu.memory_space<vmem>>, vector<8x8xf32>
    %cst_24 = arith.constant dense<0.000000e+00> : vector<8x8xf32>
    %34 = tpu.matmul %31, %32, %cst_24 {dimension_numbers = #tpu.dot_dimension_numbers<[1], [1], [0], [0], [0, 0, 1, 0], [], []>} : vector<8x8xf32>, vector<8x8xf32>, vector<8x8xf32> -> vector<8x8xf32>
    %cst_25 = arith.constant 0.000000e+00 : f32
    %35 = vector.broadcast %cst_25 : f32 to vector<1x8xf32>
    %36 = arith.cmpf oeq, %4, %35 : vector<1x8xf32>
    %cst_26 = arith.constant -1.000000e+20 : f32
    %37 = vector.shape_cast %36 : vector<1x8xi1> to vector<1x8xi1>
    %38 = vector.broadcast %37 : vector<1x8xi1> to vector<8x8xi1>
    %39 = vector.broadcast %cst_26 : f32 to vector<8x8xf32>
    %40 = arith.select %38, %39, %34 : vector<8x8xi1>, vector<8x8xf32>
    %cst_27 = arith.constant dense<0xFF800000> : vector<8xf32>
    %41 = vector.multi_reduction <maximumf>, %40, %cst_27 [1] : vector<8x8xf32> to vector<8xf32>
    %42 = vector.shape_cast %41 : vector<8xf32> to vector<8x1xf32>
    %43 = vector.broadcast %42 : vector<8x1xf32> to vector<8x8xf32>
    %44 = arith.subf %40, %43 : vector<8x8xf32>
    %45 = math.exp %44 : vector<8x8xf32>
    %cst_28 = arith.constant dense<0.000000e+00> : vector<8xf32>
    %46 = vector.multi_reduction <add>, %45, %cst_28 [1] : vector<8x8xf32> to vector<8xf32>
    %47 = vector.shape_cast %46 : vector<8xf32> to vector<8x1xf32>
    %48 = tpu.reciprocal %47 {approx = true} : vector<8x1xf32> -> vector<8x1xf32>
    %49 = vector.broadcast %48 : vector<8x1xf32> to vector<8x8xf32>
    %50 = arith.mulf %45, %49 : vector<8x8xf32>
    %cst_29 = arith.constant dense<0.000000e+00> : vector<8x8xf32>
    %51 = tpu.matmul %50, %33, %cst_29 {dimension_numbers = #tpu.dot_dimension_numbers<[1], [0], [0], [1], [0, 0, 1, 1], [], []>} : vector<8x8xf32>, vector<8x8xf32>, vector<8x8xf32> -> vector<8x8xf32>
    %c0_30 = arith.constant 0 : index
    %c8_31 = arith.constant 8 : index
    %52 = vector.load %arg15[%c0_30, %c8_31] : memref<16x32xf32, #tpu.memory_space<vmem>>, vector<8x8xf32>
    tpu.vector_store %arg15[%c0_30, %c8_31], %51 {strides = array<i32>} : memref<16x32xf32, #tpu.memory_space<vmem>>, vector<8x8xf32>,
    %c0_32 = arith.constant 0 : index
    %c16 = arith.constant 16 : index
    %53 = vector.load %arg14[%c0_32, %c16] : memref<16x96xf32, #tpu.memory_space<vmem>>, vector<8x8xf32>
    %cst_33 = arith.constant 0.176776692 : f32
    %54 = vector.broadcast %cst_33 : f32 to vector<8x8xf32>
    %55 = arith.mulf %53, %54 : vector<8x8xf32>
    %c0_34 = arith.constant 0 : index
    %c48 = arith.constant 48 : index
    %56 = vector.load %arg14[%c0_34, %c48] : memref<16x96xf32, #tpu.memory_space<vmem>>, vector<8x8xf32>
    %c0_35 = arith.constant 0 : index
    %c80 = arith.constant 80 : index
    %57 = vector.load %arg14[%c0_35, %c80] : memref<16x96xf32, #tpu.memory_space<vmem>>, vector<8x8xf32>
    %cst_36 = arith.constant dense<0.000000e+00> : vector<8x8xf32>
    %58 = tpu.matmul %55, %56, %cst_36 {dimension_numbers = #tpu.dot_dimension_numbers<[1], [1], [0], [0], [0, 0, 1, 0], [], []>} : vector<8x8xf32>, vector<8x8xf32>, vector<8x8xf32> -> vector<8x8xf32>
    %cst_37 = arith.constant 0.000000e+00 : f32
    %59 = vector.broadcast %cst_37 : f32 to vector<1x8xf32>
    %60 = arith.cmpf oeq, %4, %59 : vector<1x8xf32>
    %cst_38 = arith.constant -1.000000e+20 : f32
    %61 = vector.shape_cast %60 : vector<1x8xi1> to vector<1x8xi1>
    %62 = vector.broadcast %61 : vector<1x8xi1> to vector<8x8xi1>
    %63 = vector.broadcast %cst_38 : f32 to vector<8x8xf32>
    %64 = arith.select %62, %63, %58 : vector<8x8xi1>, vector<8x8xf32>
    %cst_39 = arith.constant dense<0xFF800000> : vector<8xf32>
    %65 = vector.multi_reduction <maximumf>, %64, %cst_39 [1] : vector<8x8xf32> to vector<8xf32>
    %66 = vector.shape_cast %65 : vector<8xf32> to vector<8x1xf32>
    %67 = vector.broadcast %66 : vector<8x1xf32> to vector<8x8xf32>
    %68 = arith.subf %64, %67 : vector<8x8xf32>
    %69 = math.exp %68 : vector<8x8xf32>
    %cst_40 = arith.constant dense<0.000000e+00> : vector<8xf32>
    %70 = vector.multi_reduction <add>, %69, %cst_40 [1] : vector<8x8xf32> to vector<8xf32>
    %71 = vector.shape_cast %70 : vector<8xf32> to vector<8x1xf32>
    %72 = tpu.reciprocal %71 {approx = true} : vector<8x1xf32> -> vector<8x1xf32>
    %73 = vector.broadcast %72 : vector<8x1xf32> to vector<8x8xf32>
    %74 = arith.mulf %69, %73 : vector<8x8xf32>
    %cst_41 = arith.constant dense<0.000000e+00> : vector<8x8xf32>
    %75 = tpu.matmul %74, %57, %cst_41 {dimension_numbers = #tpu.dot_dimension_numbers<[1], [0], [0], [1], [0, 0, 1, 1], [], []>} : vector<8x8xf32>, vector<8x8xf32>, vector<8x8xf32> -> vector<8x8xf32>
    %c0_42 = arith.constant 0 : index
    %c16_43 = arith.constant 16 : index
    %76 = vector.load %arg15[%c0_42, %c16_43] : memref<16x32xf32, #tpu.memory_space<vmem>>, vector<8x8xf32>
    tpu.vector_store %arg15[%c0_42, %c16_43], %75 {strides = array<i32>} : memref<16x32xf32, #tpu.memory_space<vmem>>, vector<8x8xf32>,
    %c0_44 = arith.constant 0 : index
    %c24 = arith.constant 24 : index
    %77 = vector.load %arg14[%c0_44, %c24] : memref<16x96xf32, #tpu.memory_space<vmem>>, vector<8x8xf32>
    %cst_45 = arith.constant 0.176776692 : f32
    %78 = vector.broadcast %cst_45 : f32 to vector<8x8xf32>
    %79 = arith.mulf %77, %78 : vector<8x8xf32>
    %c0_46 = arith.constant 0 : index
    %c56 = arith.constant 56 : index
    %80 = vector.load %arg14[%c0_46, %c56] : memref<16x96xf32, #tpu.memory_space<vmem>>, vector<8x8xf32>
    %c0_47 = arith.constant 0 : index
    %c88 = arith.constant 88 : index
    %81 = vector.load %arg14[%c0_47, %c88] : memref<16x96xf32, #tpu.memory_space<vmem>>, vector<8x8xf32>
    %cst_48 = arith.constant dense<0.000000e+00> : vector<8x8xf32>
    %82 = tpu.matmul %79, %80, %cst_48 {dimension_numbers = #tpu.dot_dimension_numbers<[1], [1], [0], [0], [0, 0, 1, 0], [], []>} : vector<8x8xf32>, vector<8x8xf32>, vector<8x8xf32> -> vector<8x8xf32>
    %cst_49 = arith.constant 0.000000e+00 : f32
    %83 = vector.broadcast %cst_49 : f32 to vector<1x8xf32>
    %84 = arith.cmpf oeq, %4, %83 : vector<1x8xf32>
    %cst_50 = arith.constant -1.000000e+20 : f32
    %85 = vector.shape_cast %84 : vector<1x8xi1> to vector<1x8xi1>
    %86 = vector.broadcast %85 : vector<1x8xi1> to vector<8x8xi1>
    %87 = vector.broadcast %cst_50 : f32 to vector<8x8xf32>
    %88 = arith.select %86, %87, %82 : vector<8x8xi1>, vector<8x8xf32>
    %cst_51 = arith.constant dense<0xFF800000> : vector<8xf32>
    %89 = vector.multi_reduction <maximumf>, %88, %cst_51 [1] : vector<8x8xf32> to vector<8xf32>
    %90 = vector.shape_cast %89 : vector<8xf32> to vector<8x1xf32>
    %91 = vector.broadcast %90 : vector<8x1xf32> to vector<8x8xf32>
    %92 = arith.subf %88, %91 : vector<8x8xf32>
    %93 = math.exp %92 : vector<8x8xf32>
    %cst_52 = arith.constant dense<0.000000e+00> : vector<8xf32>
    %94 = vector.multi_reduction <add>, %93, %cst_52 [1] : vector<8x8xf32> to vector<8xf32>
    %95 = vector.shape_cast %94 : vector<8xf32> to vector<8x1xf32>
    %96 = tpu.reciprocal %95 {approx = true} : vector<8x1xf32> -> vector<8x1xf32>
    %97 = vector.broadcast %96 : vector<8x1xf32> to vector<8x8xf32>
    %98 = arith.mulf %93, %97 : vector<8x8xf32>
    %cst_53 = arith.constant dense<0.000000e+00> : vector<8x8xf32>
    %99 = tpu.matmul %98, %81, %cst_53 {dimension_numbers = #tpu.dot_dimension_numbers<[1], [0], [0], [1], [0, 0, 1, 1], [], []>} : vector<8x8xf32>, vector<8x8xf32>, vector<8x8xf32> -> vector<8x8xf32>
    %c0_54 = arith.constant 0 : index
    %c24_55 = arith.constant 24 : index
    %100 = vector.load %arg15[%c0_54, %c24_55] : memref<16x32xf32, #tpu.memory_space<vmem>>, vector<8x8xf32>
    tpu.vector_store %arg15[%c0_54, %c24_55], %99 {strides = array<i32>} : memref<16x32xf32, #tpu.memory_space<vmem>>, vector<8x8xf32>,
    %c1 = arith.constant 1 : index
    %c0_56 = arith.constant 0 : index
    %101 = vector.load %arg1[%c1, %c0_56] : memref<2x8xf32, #tpu.memory_space<vmem>>, vector<1x8xf32>
    %c8_57 = arith.constant 8 : index
    %c0_58 = arith.constant 0 : index
    %102 = vector.load %arg14[%c8_57, %c0_58] : memref<16x96xf32, #tpu.memory_space<vmem>>, vector<8x8xf32>
    %cst_59 = arith.constant 0.176776692 : f32
    %103 = vector.broadcast %cst_59 : f32 to vector<8x8xf32>
    %104 = arith.mulf %102, %103 : vector<8x8xf32>
    %c8_60 = arith.constant 8 : index
    %c32_61 = arith.constant 32 : index
    %105 = vector.load %arg14[%c8_60, %c32_61] : memref<16x96xf32, #tpu.memory_space<vmem>>, vector<8x8xf32>
    %c8_62 = arith.constant 8 : index
    %c64_63 = arith.constant 64 : index
    %106 = vector.load %arg14[%c8_62, %c64_63] : memref<16x96xf32, #tpu.memory_space<vmem>>, vector<8x8xf32>
    %cst_64 = arith.constant dense<0.000000e+00> : vector<8x8xf32>
    %107 = tpu.matmul %104, %105, %cst_64 {dimension_numbers = #tpu.dot_dimension_numbers<[1], [1], [0], [0], [0, 0, 1, 0], [], []>} : vector<8x8xf32>, vector<8x8xf32>, vector<8x8xf32> -> vector<8x8xf32>
    %cst_65 = arith.constant 0.000000e+00 : f32
    %108 = vector.broadcast %cst_65 : f32 to vector<1x8xf32>
    %109 = arith.cmpf oeq, %101, %108 : vector<1x8xf32>
    %cst_66 = arith.constant -1.000000e+20 : f32
    %110 = vector.shape_cast %109 : vector<1x8xi1> to vector<1x8xi1>
    %111 = vector.broadcast %110 : vector<1x8xi1> to vector<8x8xi1>
    %112 = vector.broadcast %cst_66 : f32 to vector<8x8xf32>
    %113 = arith.select %111, %112, %107 : vector<8x8xi1>, vector<8x8xf32>
    %cst_67 = arith.constant dense<0xFF800000> : vector<8xf32>
    %114 = vector.multi_reduction <maximumf>, %113, %cst_67 [1] : vector<8x8xf32> to vector<8xf32>
    %115 = vector.shape_cast %114 : vector<8xf32> to vector<8x1xf32>
    %116 = vector.broadcast %115 : vector<8x1xf32> to vector<8x8xf32>
    %117 = arith.subf %113, %116 : vector<8x8xf32>
    %118 = math.exp %117 : vector<8x8xf32>
    %cst_68 = arith.constant dense<0.000000e+00> : vector<8xf32>
    %119 = vector.multi_reduction <add>, %118, %cst_68 [1] : vector<8x8xf32> to vector<8xf32>
    %120 = vector.shape_cast %119 : vector<8xf32> to vector<8x1xf32>
    %121 = tpu.reciprocal %120 {approx = true} : vector<8x1xf32> -> vector<8x1xf32>
    %122 = vector.broadcast %121 : vector<8x1xf32> to vector<8x8xf32>
    %123 = arith.mulf %118, %122 : vector<8x8xf32>
    %cst_69 = arith.constant dense<0.000000e+00> : vector<8x8xf32>
    %124 = tpu.matmul %123, %106, %cst_69 {dimension_numbers = #tpu.dot_dimension_numbers<[1], [0], [0], [1], [0, 0, 1, 1], [], []>} : vector<8x8xf32>, vector<8x8xf32>, vector<8x8xf32> -> vector<8x8xf32>
    %c8_70 = arith.constant 8 : index
    %c0_71 = arith.constant 0 : index
    %125 = vector.load %arg15[%c8_70, %c0_71] : memref<16x32xf32, #tpu.memory_space<vmem>>, vector<8x8xf32>
    tpu.vector_store %arg15[%c8_70, %c0_71], %124 {strides = array<i32>} : memref<16x32xf32, #tpu.memory_space<vmem>>, vector<8x8xf32>,
    %c8_72 = arith.constant 8 : index
    %c8_73 = arith.constant 8 : index
    %126 = vector.load %arg14[%c8_72, %c8_73] : memref<16x96xf32, #tpu.memory_space<vmem>>, vector<8x8xf32>
    %cst_74 = arith.constant 0.176776692 : f32
    %127 = vector.broadcast %cst_74 : f32 to vector<8x8xf32>
    %128 = arith.mulf %126, %127 : vector<8x8xf32>
    %c8_75 = arith.constant 8 : index
    %c40_76 = arith.constant 40 : index
    %129 = vector.load %arg14[%c8_75, %c40_76] : memref<16x96xf32, #tpu.memory_space<vmem>>, vector<8x8xf32>
    %c8_77 = arith.constant 8 : index
    %c72_78 = arith.constant 72 : index
    %130 = vector.load %arg14[%c8_77, %c72_78] : memref<16x96xf32, #tpu.memory_space<vmem>>, vector<8x8xf32>
    %cst_79 = arith.constant dense<0.000000e+00> : vector<8x8xf32>
    %131 = tpu.matmul %128, %129, %cst_79 {dimension_numbers = #tpu.dot_dimension_numbers<[1], [1], [0], [0], [0, 0, 1, 0], [], []>} : vector<8x8xf32>, vector<8x8xf32>, vector<8x8xf32> -> vector<8x8xf32>
    %cst_80 = arith.constant 0.000000e+00 : f32
    %132 = vector.broadcast %cst_80 : f32 to vector<1x8xf32>
    %133 = arith.cmpf oeq, %101, %132 : vector<1x8xf32>
    %cst_81 = arith.constant -1.000000e+20 : f32
    %134 = vector.shape_cast %133 : vector<1x8xi1> to vector<1x8xi1>
    %135 = vector.broadcast %134 : vector<1x8xi1> to vector<8x8xi1>
    %136 = vector.broadcast %cst_81 : f32 to vector<8x8xf32>
    %137 = arith.select %135, %136, %131 : vector<8x8xi1>, vector<8x8xf32>
    %cst_82 = arith.constant dense<0xFF800000> : vector<8xf32>
    %138 = vector.multi_reduction <maximumf>, %137, %cst_82 [1] : vector<8x8xf32> to vector<8xf32>
    %139 = vector.shape_cast %138 : vector<8xf32> to vector<8x1xf32>
    %140 = vector.broadcast %139 : vector<8x1xf32> to vector<8x8xf32>
    %141 = arith.subf %137, %140 : vector<8x8xf32>
    %142 = math.exp %141 : vector<8x8xf32>
    %cst_83 = arith.constant dense<0.000000e+00> : vector<8xf32>
    %143 = vector.multi_reduction <add>, %142, %cst_83 [1] : vector<8x8xf32> to vector<8xf32>
    %144 = vector.shape_cast %143 : vector<8xf32> to vector<8x1xf32>
    %145 = tpu.reciprocal %144 {approx = true} : vector<8x1xf32> -> vector<8x1xf32>
    %146 = vector.broadcast %145 : vector<8x1xf32> to vector<8x8xf32>
    %147 = arith.mulf %142, %146 : vector<8x8xf32>
    %cst_84 = arith.constant dense<0.000000e+00> : vector<8x8xf32>
    %148 = tpu.matmul %147, %130, %cst_84 {dimension_numbers = #tpu.dot_dimension_numbers<[1], [0], [0], [1], [0, 0, 1, 1], [], []>} : vector<8x8xf32>, vector<8x8xf32>, vector<8x8xf32> -> vector<8x8xf32>
    %c8_85 = arith.constant 8 : index
    %c8_86 = arith.constant 8 : index
    %149 = vector.load %arg15[%c8_85, %c8_86] : memref<16x32xf32, #tpu.memory_space<vmem>>, vector<8x8xf32>
    tpu.vector_store %arg15[%c8_85, %c8_86], %148 {strides = array<i32>} : memref<16x32xf32, #tpu.memory_space<vmem>>, vector<8x8xf32>,
    %c8_87 = arith.constant 8 : index
    %c16_88 = arith.constant 16 : index
    %150 = vector.load %arg14[%c8_87, %c16_88] : memref<16x96xf32, #tpu.memory_space<vmem>>, vector<8x8xf32>
    %cst_89 = arith.constant 0.176776692 : f32
    %151 = vector.broadcast %cst_89 : f32 to vector<8x8xf32>
    %152 = arith.mulf %150, %151 : vector<8x8xf32>
    %c8_90 = arith.constant 8 : index
    %c48_91 = arith.constant 48 : index
    %153 = vector.load %arg14[%c8_90, %c48_91] : memref<16x96xf32, #tpu.memory_space<vmem>>, vector<8x8xf32>
    %c8_92 = arith.constant 8 : index
    %c80_93 = arith.constant 80 : index
    %154 = vector.load %arg14[%c8_92, %c80_93] : memref<16x96xf32, #tpu.memory_space<vmem>>, vector<8x8xf32>
    %cst_94 = arith.constant dense<0.000000e+00> : vector<8x8xf32>
    %155 = tpu.matmul %152, %153, %cst_94 {dimension_numbers = #tpu.dot_dimension_numbers<[1], [1], [0], [0], [0, 0, 1, 0], [], []>} : vector<8x8xf32>, vector<8x8xf32>, vector<8x8xf32> -> vector<8x8xf32>
    %cst_95 = arith.constant 0.000000e+00 : f32
    %156 = vector.broadcast %cst_95 : f32 to vector<1x8xf32>
    %157 = arith.cmpf oeq, %101, %156 : vector<1x8xf32>
    %cst_96 = arith.constant -1.000000e+20 : f32
    %158 = vector.shape_cast %157 : vector<1x8xi1> to vector<1x8xi1>
    %159 = vector.broadcast %158 : vector<1x8xi1> to vector<8x8xi1>
    %160 = vector.broadcast %cst_96 : f32 to vector<8x8xf32>
    %161 = arith.select %159, %160, %155 : vector<8x8xi1>, vector<8x8xf32>
    %cst_97 = arith.constant dense<0xFF800000> : vector<8xf32>
    %162 = vector.multi_reduction <maximumf>, %161, %cst_97 [1] : vector<8x8xf32> to vector<8xf32>
    %163 = vector.shape_cast %162 : vector<8xf32> to vector<8x1xf32>
    %164 = vector.broadcast %163 : vector<8x1xf32> to vector<8x8xf32>
    %165 = arith.subf %161, %164 : vector<8x8xf32>
    %166 = math.exp %165 : vector<8x8xf32>
    %cst_98 = arith.constant dense<0.000000e+00> : vector<8xf32>
    %167 = vector.multi_reduction <add>, %166, %cst_98 [1] : vector<8x8xf32> to vector<8xf32>
    %168 = vector.shape_cast %167 : vector<8xf32> to vector<8x1xf32>
    %169 = tpu.reciprocal %168 {approx = true} : vector<8x1xf32> -> vector<8x1xf32>
    %170 = vector.broadcast %169 : vector<8x1xf32> to vector<8x8xf32>
    %171 = arith.mulf %166, %170 : vector<8x8xf32>
    %cst_99 = arith.constant dense<0.000000e+00> : vector<8x8xf32>
    %172 = tpu.matmul %171, %154, %cst_99 {dimension_numbers = #tpu.dot_dimension_numbers<[1], [0], [0], [1], [0, 0, 1, 1], [], []>} : vector<8x8xf32>, vector<8x8xf32>, vector<8x8xf32> -> vector<8x8xf32>
    %c8_100 = arith.constant 8 : index
    %c16_101 = arith.constant 16 : index
    %173 = vector.load %arg15[%c8_100, %c16_101] : memref<16x32xf32, #tpu.memory_space<vmem>>, vector<8x8xf32>
    tpu.vector_store %arg15[%c8_100, %c16_101], %172 {strides = array<i32>} : memref<16x32xf32, #tpu.memory_space<vmem>>, vector<8x8xf32>,
    %c8_102 = arith.constant 8 : index
    %c24_103 = arith.constant 24 : index
    %174 = vector.load %arg14[%c8_102, %c24_103] : memref<16x96xf32, #tpu.memory_space<vmem>>, vector<8x8xf32>
    %cst_104 = arith.constant 0.176776692 : f32
    %175 = vector.broadcast %cst_104 : f32 to vector<8x8xf32>
    %176 = arith.mulf %174, %175 : vector<8x8xf32>
    %c8_105 = arith.constant 8 : index
    %c56_106 = arith.constant 56 : index
    %177 = vector.load %arg14[%c8_105, %c56_106] : memref<16x96xf32, #tpu.memory_space<vmem>>, vector<8x8xf32>
    %c8_107 = arith.constant 8 : index
    %c88_108 = arith.constant 88 : index
    %178 = vector.load %arg14[%c8_107, %c88_108] : memref<16x96xf32, #tpu.memory_space<vmem>>, vector<8x8xf32>
    %cst_109 = arith.constant dense<0.000000e+00> : vector<8x8xf32>
    %179 = tpu.matmul %176, %177, %cst_109 {dimension_numbers = #tpu.dot_dimension_numbers<[1], [1], [0], [0], [0, 0, 1, 0], [], []>} : vector<8x8xf32>, vector<8x8xf32>, vector<8x8xf32> -> vector<8x8xf32>
    %cst_110 = arith.constant 0.000000e+00 : f32
    %180 = vector.broadcast %cst_110 : f32 to vector<1x8xf32>
    %181 = arith.cmpf oeq, %101, %180 : vector<1x8xf32>
    %cst_111 = arith.constant -1.000000e+20 : f32
    %182 = vector.shape_cast %181 : vector<1x8xi1> to vector<1x8xi1>
    %183 = vector.broadcast %182 : vector<1x8xi1> to vector<8x8xi1>
    %184 = vector.broadcast %cst_111 : f32 to vector<8x8xf32>
    %185 = arith.select %183, %184, %179 : vector<8x8xi1>, vector<8x8xf32>
    %cst_112 = arith.constant dense<0xFF800000> : vector<8xf32>
    %186 = vector.multi_reduction <maximumf>, %185, %cst_112 [1] : vector<8x8xf32> to vector<8xf32>
    %187 = vector.shape_cast %186 : vector<8xf32> to vector<8x1xf32>
    %188 = vector.broadcast %187 : vector<8x1xf32> to vector<8x8xf32>
    %189 = arith.subf %185, %188 : vector<8x8xf32>
    %190 = math.exp %189 : vector<8x8xf32>
    %cst_113 = arith.constant dense<0.000000e+00> : vector<8xf32>
    %191 = vector.multi_reduction <add>, %190, %cst_113 [1] : vector<8x8xf32> to vector<8xf32>
    %192 = vector.shape_cast %191 : vector<8xf32> to vector<8x1xf32>
    %193 = tpu.reciprocal %192 {approx = true} : vector<8x1xf32> -> vector<8x1xf32>
    %194 = vector.broadcast %193 : vector<8x1xf32> to vector<8x8xf32>
    %195 = arith.mulf %190, %194 : vector<8x8xf32>
    %cst_114 = arith.constant dense<0.000000e+00> : vector<8x8xf32>
    %196 = tpu.matmul %195, %178, %cst_114 {dimension_numbers = #tpu.dot_dimension_numbers<[1], [0], [0], [1], [0, 0, 1, 1], [], []>} : vector<8x8xf32>, vector<8x8xf32>, vector<8x8xf32> -> vector<8x8xf32>
    %c8_115 = arith.constant 8 : index
    %c24_116 = arith.constant 24 : index
    %197 = vector.load %arg15[%c8_115, %c24_116] : memref<16x32xf32, #tpu.memory_space<vmem>>, vector<8x8xf32>
    tpu.vector_store %arg15[%c8_115, %c24_116], %196 {strides = array<i32>} : memref<16x32xf32, #tpu.memory_space<vmem>>, vector<8x8xf32>,
    %c0_117 = arith.constant 0 : index
    %c0_118 = arith.constant 0 : index
    %198 = vector.load %arg15[%c0_117, %c0_118] : memref<16x32xf32, #tpu.memory_space<vmem>>, vector<16x32xf32>
    %c0_119 = arith.constant 0 : index
    %c0_120 = arith.constant 0 : index
    %199 = vector.load %arg3[%c0_119, %c0_120] : memref<32x32xf32, #tpu.memory_space<vmem>>, vector<32x32xf32>
    %cst_121 = arith.constant dense<0.000000e+00> : vector<16x32xf32>
    %200 = tpu.matmul %198, %199, %cst_121 {dimension_numbers = #tpu.dot_dimension_numbers<[1], [0], [0], [1], [0, 0, 1, 1], [], []>} : vector<16x32xf32>, vector<32x32xf32>, vector<16x32xf32> -> vector<16x32xf32>
    %c0_122 = arith.constant 0 : index
    %c0_123 = arith.constant 0 : index
    %201 = vector.load %arg4[%c0_122, %c0_123] : memref<1x32xf32, #tpu.memory_space<vmem>>, vector<1x32xf32>
    %202 = vector.broadcast %201 : vector<1x32xf32> to vector<16x32xf32>
    %203 = arith.addf %200, %202 : vector<16x32xf32>
    %204 = arith.addf %203, %0 : vector<16x32xf32>
    %c0_124 = arith.constant 0 : index
    %c0_125 = arith.constant 0 : index
    %205 = vector.load %arg5[%c0_124, %c0_125] : memref<1x32xf32, #tpu.memory_space<vmem>>, vector<1x32xf32>
    %c0_126 = arith.constant 0 : index
    %c0_127 = arith.constant 0 : index
    %206 = vector.load %arg6[%c0_126, %c0_127] : memref<1x32xf32, #tpu.memory_space<vmem>>, vector<1x32xf32>
    %cst_128 = arith.constant dense<0.000000e+00> : vector<16xf32>
    %207 = vector.multi_reduction <add>, %204, %cst_128 [1] : vector<16x32xf32> to vector<16xf32>
    %208 = vector.shape_cast %207 : vector<16xf32> to vector<16x1xf32>
    %cst_129 = arith.constant 3.200000e+01 : f32
    %209 = vector.broadcast %cst_129 : f32 to vector<16x1xf32>
    %210 = arith.divf %208, %209 : vector<16x1xf32>
    %211 = vector.broadcast %210 : vector<16x1xf32> to vector<16x32xf32>
    %212 = arith.subf %204, %211 : vector<16x32xf32>
    %213 = arith.mulf %212, %212 : vector<16x32xf32>
    %cst_130 = arith.constant dense<0.000000e+00> : vector<16xf32>
    %214 = vector.multi_reduction <add>, %213, %cst_130 [1] : vector<16x32xf32> to vector<16xf32>
    %215 = vector.shape_cast %214 : vector<16xf32> to vector<16x1xf32>
    %cst_131 = arith.constant 3.200000e+01 : f32
    %216 = vector.broadcast %cst_131 : f32 to vector<16x1xf32>
    %217 = arith.divf %215, %216 : vector<16x1xf32>
    %218 = vector.broadcast %210 : vector<16x1xf32> to vector<16x32xf32>
    %219 = arith.subf %204, %218 : vector<16x32xf32>
    %cst_132 = arith.constant 9.99999974E-6 : f32
    %220 = vector.broadcast %cst_132 : f32 to vector<16x1xf32>
    %221 = arith.addf %217, %220 : vector<16x1xf32>
    %222 = math.rsqrt %221 : vector<16x1xf32>
    %223 = vector.broadcast %222 : vector<16x1xf32> to vector<16x32xf32>
    %224 = arith.mulf %219, %223 : vector<16x32xf32>
    %225 = vector.broadcast %205 : vector<1x32xf32> to vector<16x32xf32>
    %226 = arith.mulf %224, %225 : vector<16x32xf32>
    %227 = vector.broadcast %206 : vector<1x32xf32> to vector<16x32xf32>
    %228 = arith.addf %226, %227 : vector<16x32xf32>
    %c0_133 = arith.constant 0 : index
    %c0_134 = arith.constant 0 : index
    %229 = vector.load %arg7[%c0_133, %c0_134] : memref<32x128xf32, #tpu.memory_space<vmem>>, vector<32x128xf32>
    %cst_135 = arith.constant dense<0.000000e+00> : vector<16x128xf32>
    %230 = tpu.matmul %228, %229, %cst_135 {dimension_numbers = #tpu.dot_dimension_numbers<[1], [0], [0], [1], [0, 0, 1, 1], [], []>} : vector<16x32xf32>, vector<32x128xf32>, vector<16x128xf32> -> vector<16x128xf32>
    %c0_136 = arith.constant 0 : index
    %c0_137 = arith.constant 0 : index
    %231 = vector.load %arg8[%c0_136, %c0_137] : memref<1x128xf32, #tpu.memory_space<vmem>>, vector<1x128xf32>
    %232 = vector.broadcast %231 : vector<1x128xf32> to vector<16x128xf32>
    %233 = arith.addf %230, %232 : vector<16x128xf32>
    %cst_138 = arith.constant 0.000000e+00 : f32
    %234 = vector.broadcast %cst_138 : f32 to vector<16x128xf32>
    %235 = arith.maximumf %233, %234 : vector<16x128xf32>
    %c0_139 = arith.constant 0 : index
    %c0_140 = arith.constant 0 : index
    %236 = vector.load %arg9[%c0_139, %c0_140] : memref<128x32xf32, #tpu.memory_space<vmem>>, vector<128x32xf32>
    %cst_141 = arith.constant dense<0.000000e+00> : vector<16x32xf32>
    %237 = tpu.matmul %235, %236, %cst_141 {dimension_numbers = #tpu.dot_dimension_numbers<[1], [0], [0], [1], [0, 0, 1, 1], [], []>} : vector<16x128xf32>, vector<128x32xf32>, vector<16x32xf32> -> vector<16x32xf32>
    %c0_142 = arith.constant 0 : index
    %c0_143 = arith.constant 0 : index
    %238 = vector.load %arg10[%c0_142, %c0_143] : memref<1x32xf32, #tpu.memory_space<vmem>>, vector<1x32xf32>
    %239 = vector.broadcast %238 : vector<1x32xf32> to vector<16x32xf32>
    %240 = arith.addf %237, %239 : vector<16x32xf32>
    %241 = arith.addf %240, %228 : vector<16x32xf32>
    %c0_144 = arith.constant 0 : index
    %c0_145 = arith.constant 0 : index
    %242 = vector.load %arg11[%c0_144, %c0_145] : memref<1x32xf32, #tpu.memory_space<vmem>>, vector<1x32xf32>
    %c0_146 = arith.constant 0 : index
    %c0_147 = arith.constant 0 : index
    %243 = vector.load %arg12[%c0_146, %c0_147] : memref<1x32xf32, #tpu.memory_space<vmem>>, vector<1x32xf32>
    %cst_148 = arith.constant dense<0.000000e+00> : vector<16xf32>
    %244 = vector.multi_reduction <add>, %241, %cst_148 [1] : vector<16x32xf32> to vector<16xf32>
    %245 = vector.shape_cast %244 : vector<16xf32> to vector<16x1xf32>
    %cst_149 = arith.constant 3.200000e+01 : f32
    %246 = vector.broadcast %cst_149 : f32 to vector<16x1xf32>
    %247 = arith.divf %245, %246 : vector<16x1xf32>
    %248 = vector.broadcast %247 : vector<16x1xf32> to vector<16x32xf32>
    %249 = arith.subf %241, %248 : vector<16x32xf32>
    %250 = arith.mulf %249, %249 : vector<16x32xf32>
    %cst_150 = arith.constant dense<0.000000e+00> : vector<16xf32>
    %251 = vector.multi_reduction <add>, %250, %cst_150 [1] : vector<16x32xf32> to vector<16xf32>
    %252 = vector.shape_cast %251 : vector<16xf32> to vector<16x1xf32>
    %cst_151 = arith.constant 3.200000e+01 : f32
    %253 = vector.broadcast %cst_151 : f32 to vector<16x1xf32>
    %254 = arith.divf %252, %253 : vector<16x1xf32>
    %255 = vector.broadcast %247 : vector<16x1xf32> to vector<16x32xf32>
    %256 = arith.subf %241, %255 : vector<16x32xf32>
    %cst_152 = arith.constant 9.99999974E-6 : f32
    %257 = vector.broadcast %cst_152 : f32 to vector<16x1xf32>
    %258 = arith.addf %254, %257 : vector<16x1xf32>
    %259 = math.rsqrt %258 : vector<16x1xf32>
    %260 = vector.broadcast %259 : vector<16x1xf32> to vector<16x32xf32>
    %261 = arith.mulf %256, %260 : vector<16x32xf32>
    %262 = vector.broadcast %242 : vector<1x32xf32> to vector<16x32xf32>
    %263 = arith.mulf %261, %262 : vector<16x32xf32>
    %264 = vector.broadcast %243 : vector<1x32xf32> to vector<16x32xf32>
    %265 = arith.addf %263, %264 : vector<16x32xf32>
    %c0_153 = arith.constant 0 : index
    %c0_154 = arith.constant 0 : index
    %266 = vector.load %arg13[%c0_153, %c0_154] : memref<16x32xf32, #tpu.memory_space<vmem>>, vector<16x32xf32>
    tpu.vector_store %arg13[%c0_153, %c0_154], %265 {strides = array<i32>} : memref<16x32xf32, #tpu.memory_space<vmem>>, vector<16x32xf32>,
    return
  }
}

module attributes {stable_mosaic.version = 11 : i64} {
  func.func @_dec_block_kernel(%arg0: memref<16x32xf32, #tpu.memory_space<vmem>>, %arg1: memref<16x32xf32, #tpu.memory_space<vmem>>, %arg2: memref<8x8xf32, #tpu.memory_space<vmem>>, %arg3: memref<2x8xf32, #tpu.memory_space<vmem>>, %arg4: memref<32x96xf32, #tpu.memory_space<vmem>>, %arg5: memref<32x32xf32, #tpu.memory_space<vmem>>, %arg6: memref<1x32xf32, #tpu.memory_space<vmem>>, %arg7: memref<1x32xf32, #tpu.memory_space<vmem>>, %arg8: memref<1x32xf32, #tpu.memory_space<vmem>>, %arg9: memref<32x32xf32, #tpu.memory_space<vmem>>, %arg10: memref<32x64xf32, #tpu.memory_space<vmem>>, %arg11: memref<32x32xf32, #tpu.memory_space<vmem>>, %arg12: memref<1x32xf32, #tpu.memory_space<vmem>>, %arg13: memref<1x32xf32, #tpu.memory_space<vmem>>, %arg14: memref<1x32xf32, #tpu.memory_space<vmem>>, %arg15: memref<32x128xf32, #tpu.memory_space<vmem>>, %arg16: memref<1x128xf32, #tpu.memory_space<vmem>>, %arg17: memref<128x32xf32, #tpu.memory_space<vmem>>, %arg18: memref<1x32xf32, #tpu.memory_space<vmem>>, %arg19: memref<1x32xf32, #tpu.memory_space<vmem>>, %arg20: memref<1x32xf32, #tpu.memory_space<vmem>>, %arg21: memref<16x32xf32, #tpu.memory_space<vmem>>, %arg22: memref<16x96xf32, #tpu.memory_space<vmem>>, %arg23: memref<16x32xf32, #tpu.memory_space<vmem>>, %arg24: memref<16x32xf32, #tpu.memory_space<vmem>>, %arg25: memref<16x64xf32, #tpu.memory_space<vmem>>, %arg26: memref<16x32xf32, #tpu.memory_space<vmem>>) attributes {dimension_semantics = [], scalar_prefetch = 0 : i64, scratch_operands = 5 : i64, tpu.core_type = #tpu.core_type<tc>} {
    %c0 = arith.constant 0 : index
    %c0_0 = arith.constant 0 : index
    %0 = vector.load %arg0[%c0, %c0_0] : memref<16x32xf32, #tpu.memory_space<vmem>>, vector<16x32xf32>
    %c0_1 = arith.constant 0 : index
    %c0_2 = arith.constant 0 : index
    %1 = vector.load %arg4[%c0_1, %c0_2] : memref<32x96xf32, #tpu.memory_space<vmem>>, vector<32x96xf32>
    %cst = arith.constant dense<0.000000e+00> : vector<16x96xf32>
    %2 = tpu.matmul %0, %1, %cst {dimension_numbers = #tpu.dot_dimension_numbers<[1], [0], [0], [1], [0, 0, 1, 1], [], []>} : vector<16x32xf32>, vector<32x96xf32>, vector<16x96xf32> -> vector<16x96xf32>
    %c0_3 = arith.constant 0 : index
    %c0_4 = arith.constant 0 : index
    %3 = vector.load %arg22[%c0_3, %c0_4] : memref<16x96xf32, #tpu.memory_space<vmem>>, vector<16x96xf32>
    tpu.vector_store %arg22[%c0_3, %c0_4], %2 {strides = array<i32>} : memref<16x96xf32, #tpu.memory_space<vmem>>, vector<16x96xf32>,
    %c0_5 = arith.constant 0 : index
    %c0_6 = arith.constant 0 : index
    %4 = vector.load %arg2[%c0_5, %c0_6] : memref<8x8xf32, #tpu.memory_space<vmem>>, vector<8x8xf32>
    %c0_7 = arith.constant 0 : index
    %c0_8 = arith.constant 0 : index
    %5 = vector.load %arg22[%c0_7, %c0_8] : memref<16x96xf32, #tpu.memory_space<vmem>>, vector<8x8xf32>
    %cst_9 = arith.constant 0.176776692 : f32
    %6 = vector.broadcast %cst_9 : f32 to vector<8x8xf32>
    %7 = arith.mulf %5, %6 : vector<8x8xf32>
    %c0_10 = arith.constant 0 : index
    %c32 = arith.constant 32 : index
    %8 = vector.load %arg22[%c0_10, %c32] : memref<16x96xf32, #tpu.memory_space<vmem>>, vector<8x8xf32>
    %c0_11 = arith.constant 0 : index
    %c64 = arith.constant 64 : index
    %9 = vector.load %arg22[%c0_11, %c64] : memref<16x96xf32, #tpu.memory_space<vmem>>, vector<8x8xf32>
    %cst_12 = arith.constant dense<0.000000e+00> : vector<8x8xf32>
    %10 = tpu.matmul %7, %8, %cst_12 {dimension_numbers = #tpu.dot_dimension_numbers<[1], [1], [0], [0], [0, 0, 1, 0], [], []>} : vector<8x8xf32>, vector<8x8xf32>, vector<8x8xf32> -> vector<8x8xf32>
    %cst_13 = arith.constant 0.000000e+00 : f32
    %11 = vector.broadcast %cst_13 : f32 to vector<8x8xf32>
    %12 = arith.cmpf oeq, %4, %11 : vector<8x8xf32>
    %cst_14 = arith.constant -1.000000e+20 : f32
    %13 = vector.broadcast %cst_14 : f32 to vector<8x8xf32>
    %14 = arith.select %12, %13, %10 : vector<8x8xi1>, vector<8x8xf32>
    %cst_15 = arith.constant dense<0xFF800000> : vector<8xf32>
    %15 = vector.multi_reduction <maximumf>, %14, %cst_15 [1] : vector<8x8xf32> to vector<8xf32>
    %16 = vector.shape_cast %15 : vector<8xf32> to vector<8x1xf32>
    %17 = vector.broadcast %16 : vector<8x1xf32> to vector<8x8xf32>
    %18 = arith.subf %14, %17 : vector<8x8xf32>
    %19 = math.exp %18 : vector<8x8xf32>
    %cst_16 = arith.constant dense<0.000000e+00> : vector<8xf32>
    %20 = vector.multi_reduction <add>, %19, %cst_16 [1] : vector<8x8xf32> to vector<8xf32>
    %21 = vector.shape_cast %20 : vector<8xf32> to vector<8x1xf32>
    %22 = tpu.reciprocal %21 {approx = true} : vector<8x1xf32> -> vector<8x1xf32>
    %23 = vector.broadcast %22 : vector<8x1xf32> to vector<8x8xf32>
    %24 = arith.mulf %19, %23 : vector<8x8xf32>
    %cst_17 = arith.constant dense<0.000000e+00> : vector<8x8xf32>
    %25 = tpu.matmul %24, %9, %cst_17 {dimension_numbers = #tpu.dot_dimension_numbers<[1], [0], [0], [1], [0, 0, 1, 1], [], []>} : vector<8x8xf32>, vector<8x8xf32>, vector<8x8xf32> -> vector<8x8xf32>
    %c0_18 = arith.constant 0 : index
    %c0_19 = arith.constant 0 : index
    %26 = vector.load %arg23[%c0_18, %c0_19] : memref<16x32xf32, #tpu.memory_space<vmem>>, vector<8x8xf32>
    tpu.vector_store %arg23[%c0_18, %c0_19], %25 {strides = array<i32>} : memref<16x32xf32, #tpu.memory_space<vmem>>, vector<8x8xf32>,
    %c0_20 = arith.constant 0 : index
    %c8 = arith.constant 8 : index
    %27 = vector.load %arg22[%c0_20, %c8] : memref<16x96xf32, #tpu.memory_space<vmem>>, vector<8x8xf32>
    %cst_21 = arith.constant 0.176776692 : f32
    %28 = vector.broadcast %cst_21 : f32 to vector<8x8xf32>
    %29 = arith.mulf %27, %28 : vector<8x8xf32>
    %c0_22 = arith.constant 0 : index
    %c40 = arith.constant 40 : index
    %30 = vector.load %arg22[%c0_22, %c40] : memref<16x96xf32, #tpu.memory_space<vmem>>, vector<8x8xf32>
    %c0_23 = arith.constant 0 : index
    %c72 = arith.constant 72 : index
    %31 = vector.load %arg22[%c0_23, %c72] : memref<16x96xf32, #tpu.memory_space<vmem>>, vector<8x8xf32>
    %cst_24 = arith.constant dense<0.000000e+00> : vector<8x8xf32>
    %32 = tpu.matmul %29, %30, %cst_24 {dimension_numbers = #tpu.dot_dimension_numbers<[1], [1], [0], [0], [0, 0, 1, 0], [], []>} : vector<8x8xf32>, vector<8x8xf32>, vector<8x8xf32> -> vector<8x8xf32>
    %cst_25 = arith.constant 0.000000e+00 : f32
    %33 = vector.broadcast %cst_25 : f32 to vector<8x8xf32>
    %34 = arith.cmpf oeq, %4, %33 : vector<8x8xf32>
    %cst_26 = arith.constant -1.000000e+20 : f32
    %35 = vector.broadcast %cst_26 : f32 to vector<8x8xf32>
    %36 = arith.select %34, %35, %32 : vector<8x8xi1>, vector<8x8xf32>
    %cst_27 = arith.constant dense<0xFF800000> : vector<8xf32>
    %37 = vector.multi_reduction <maximumf>, %36, %cst_27 [1] : vector<8x8xf32> to vector<8xf32>
    %38 = vector.shape_cast %37 : vector<8xf32> to vector<8x1xf32>
    %39 = vector.broadcast %38 : vector<8x1xf32> to vector<8x8xf32>
    %40 = arith.subf %36, %39 : vector<8x8xf32>
    %41 = math.exp %40 : vector<8x8xf32>
    %cst_28 = arith.constant dense<0.000000e+00> : vector<8xf32>
    %42 = vector.multi_reduction <add>, %41, %cst_28 [1] : vector<8x8xf32> to vector<8xf32>
    %43 = vector.shape_cast %42 : vector<8xf32> to vector<8x1xf32>
    %44 = tpu.reciprocal %43 {approx = true} : vector<8x1xf32> -> vector<8x1xf32>
    %45 = vector.broadcast %44 : vector<8x1xf32> to vector<8x8xf32>
    %46 = arith.mulf %41, %45 : vector<8x8xf32>
    %cst_29 = arith.constant dense<0.000000e+00> : vector<8x8xf32>
    %47 = tpu.matmul %46, %31, %cst_29 {dimension_numbers = #tpu.dot_dimension_numbers<[1], [0], [0], [1], [0, 0, 1, 1], [], []>} : vector<8x8xf32>, vector<8x8xf32>, vector<8x8xf32> -> vector<8x8xf32>
    %c0_30 = arith.constant 0 : index
    %c8_31 = arith.constant 8 : index
    %48 = vector.load %arg23[%c0_30, %c8_31] : memref<16x32xf32, #tpu.memory_space<vmem>>, vector<8x8xf32>
    tpu.vector_store %arg23[%c0_30, %c8_31], %47 {strides = array<i32>} : memref<16x32xf32, #tpu.memory_space<vmem>>, vector<8x8xf32>,
    %c0_32 = arith.constant 0 : index
    %c16 = arith.constant 16 : index
    %49 = vector.load %arg22[%c0_32, %c16] : memref<16x96xf32, #tpu.memory_space<vmem>>, vector<8x8xf32>
    %cst_33 = arith.constant 0.176776692 : f32
    %50 = vector.broadcast %cst_33 : f32 to vector<8x8xf32>
    %51 = arith.mulf %49, %50 : vector<8x8xf32>
    %c0_34 = arith.constant 0 : index
    %c48 = arith.constant 48 : index
    %52 = vector.load %arg22[%c0_34, %c48] : memref<16x96xf32, #tpu.memory_space<vmem>>, vector<8x8xf32>
    %c0_35 = arith.constant 0 : index
    %c80 = arith.constant 80 : index
    %53 = vector.load %arg22[%c0_35, %c80] : memref<16x96xf32, #tpu.memory_space<vmem>>, vector<8x8xf32>
    %cst_36 = arith.constant dense<0.000000e+00> : vector<8x8xf32>
    %54 = tpu.matmul %51, %52, %cst_36 {dimension_numbers = #tpu.dot_dimension_numbers<[1], [1], [0], [0], [0, 0, 1, 0], [], []>} : vector<8x8xf32>, vector<8x8xf32>, vector<8x8xf32> -> vector<8x8xf32>
    %cst_37 = arith.constant 0.000000e+00 : f32
    %55 = vector.broadcast %cst_37 : f32 to vector<8x8xf32>
    %56 = arith.cmpf oeq, %4, %55 : vector<8x8xf32>
    %cst_38 = arith.constant -1.000000e+20 : f32
    %57 = vector.broadcast %cst_38 : f32 to vector<8x8xf32>
    %58 = arith.select %56, %57, %54 : vector<8x8xi1>, vector<8x8xf32>
    %cst_39 = arith.constant dense<0xFF800000> : vector<8xf32>
    %59 = vector.multi_reduction <maximumf>, %58, %cst_39 [1] : vector<8x8xf32> to vector<8xf32>
    %60 = vector.shape_cast %59 : vector<8xf32> to vector<8x1xf32>
    %61 = vector.broadcast %60 : vector<8x1xf32> to vector<8x8xf32>
    %62 = arith.subf %58, %61 : vector<8x8xf32>
    %63 = math.exp %62 : vector<8x8xf32>
    %cst_40 = arith.constant dense<0.000000e+00> : vector<8xf32>
    %64 = vector.multi_reduction <add>, %63, %cst_40 [1] : vector<8x8xf32> to vector<8xf32>
    %65 = vector.shape_cast %64 : vector<8xf32> to vector<8x1xf32>
    %66 = tpu.reciprocal %65 {approx = true} : vector<8x1xf32> -> vector<8x1xf32>
    %67 = vector.broadcast %66 : vector<8x1xf32> to vector<8x8xf32>
    %68 = arith.mulf %63, %67 : vector<8x8xf32>
    %cst_41 = arith.constant dense<0.000000e+00> : vector<8x8xf32>
    %69 = tpu.matmul %68, %53, %cst_41 {dimension_numbers = #tpu.dot_dimension_numbers<[1], [0], [0], [1], [0, 0, 1, 1], [], []>} : vector<8x8xf32>, vector<8x8xf32>, vector<8x8xf32> -> vector<8x8xf32>
    %c0_42 = arith.constant 0 : index
    %c16_43 = arith.constant 16 : index
    %70 = vector.load %arg23[%c0_42, %c16_43] : memref<16x32xf32, #tpu.memory_space<vmem>>, vector<8x8xf32>
    tpu.vector_store %arg23[%c0_42, %c16_43], %69 {strides = array<i32>} : memref<16x32xf32, #tpu.memory_space<vmem>>, vector<8x8xf32>,
    %c0_44 = arith.constant 0 : index
    %c24 = arith.constant 24 : index
    %71 = vector.load %arg22[%c0_44, %c24] : memref<16x96xf32, #tpu.memory_space<vmem>>, vector<8x8xf32>
    %cst_45 = arith.constant 0.176776692 : f32
    %72 = vector.broadcast %cst_45 : f32 to vector<8x8xf32>
    %73 = arith.mulf %71, %72 : vector<8x8xf32>
    %c0_46 = arith.constant 0 : index
    %c56 = arith.constant 56 : index
    %74 = vector.load %arg22[%c0_46, %c56] : memref<16x96xf32, #tpu.memory_space<vmem>>, vector<8x8xf32>
    %c0_47 = arith.constant 0 : index
    %c88 = arith.constant 88 : index
    %75 = vector.load %arg22[%c0_47, %c88] : memref<16x96xf32, #tpu.memory_space<vmem>>, vector<8x8xf32>
    %cst_48 = arith.constant dense<0.000000e+00> : vector<8x8xf32>
    %76 = tpu.matmul %73, %74, %cst_48 {dimension_numbers = #tpu.dot_dimension_numbers<[1], [1], [0], [0], [0, 0, 1, 0], [], []>} : vector<8x8xf32>, vector<8x8xf32>, vector<8x8xf32> -> vector<8x8xf32>
    %cst_49 = arith.constant 0.000000e+00 : f32
    %77 = vector.broadcast %cst_49 : f32 to vector<8x8xf32>
    %78 = arith.cmpf oeq, %4, %77 : vector<8x8xf32>
    %cst_50 = arith.constant -1.000000e+20 : f32
    %79 = vector.broadcast %cst_50 : f32 to vector<8x8xf32>
    %80 = arith.select %78, %79, %76 : vector<8x8xi1>, vector<8x8xf32>
    %cst_51 = arith.constant dense<0xFF800000> : vector<8xf32>
    %81 = vector.multi_reduction <maximumf>, %80, %cst_51 [1] : vector<8x8xf32> to vector<8xf32>
    %82 = vector.shape_cast %81 : vector<8xf32> to vector<8x1xf32>
    %83 = vector.broadcast %82 : vector<8x1xf32> to vector<8x8xf32>
    %84 = arith.subf %80, %83 : vector<8x8xf32>
    %85 = math.exp %84 : vector<8x8xf32>
    %cst_52 = arith.constant dense<0.000000e+00> : vector<8xf32>
    %86 = vector.multi_reduction <add>, %85, %cst_52 [1] : vector<8x8xf32> to vector<8xf32>
    %87 = vector.shape_cast %86 : vector<8xf32> to vector<8x1xf32>
    %88 = tpu.reciprocal %87 {approx = true} : vector<8x1xf32> -> vector<8x1xf32>
    %89 = vector.broadcast %88 : vector<8x1xf32> to vector<8x8xf32>
    %90 = arith.mulf %85, %89 : vector<8x8xf32>
    %cst_53 = arith.constant dense<0.000000e+00> : vector<8x8xf32>
    %91 = tpu.matmul %90, %75, %cst_53 {dimension_numbers = #tpu.dot_dimension_numbers<[1], [0], [0], [1], [0, 0, 1, 1], [], []>} : vector<8x8xf32>, vector<8x8xf32>, vector<8x8xf32> -> vector<8x8xf32>
    %c0_54 = arith.constant 0 : index
    %c24_55 = arith.constant 24 : index
    %92 = vector.load %arg23[%c0_54, %c24_55] : memref<16x32xf32, #tpu.memory_space<vmem>>, vector<8x8xf32>
    tpu.vector_store %arg23[%c0_54, %c24_55], %91 {strides = array<i32>} : memref<16x32xf32, #tpu.memory_space<vmem>>, vector<8x8xf32>,
    %c0_56 = arith.constant 0 : index
    %c0_57 = arith.constant 0 : index
    %93 = vector.load %arg2[%c0_56, %c0_57] : memref<8x8xf32, #tpu.memory_space<vmem>>, vector<8x8xf32>
    %c8_58 = arith.constant 8 : index
    %c0_59 = arith.constant 0 : index
    %94 = vector.load %arg22[%c8_58, %c0_59] : memref<16x96xf32, #tpu.memory_space<vmem>>, vector<8x8xf32>
    %cst_60 = arith.constant 0.176776692 : f32
    %95 = vector.broadcast %cst_60 : f32 to vector<8x8xf32>
    %96 = arith.mulf %94, %95 : vector<8x8xf32>
    %c8_61 = arith.constant 8 : index
    %c32_62 = arith.constant 32 : index
    %97 = vector.load %arg22[%c8_61, %c32_62] : memref<16x96xf32, #tpu.memory_space<vmem>>, vector<8x8xf32>
    %c8_63 = arith.constant 8 : index
    %c64_64 = arith.constant 64 : index
    %98 = vector.load %arg22[%c8_63, %c64_64] : memref<16x96xf32, #tpu.memory_space<vmem>>, vector<8x8xf32>
    %cst_65 = arith.constant dense<0.000000e+00> : vector<8x8xf32>
    %99 = tpu.matmul %96, %97, %cst_65 {dimension_numbers = #tpu.dot_dimension_numbers<[1], [1], [0], [0], [0, 0, 1, 0], [], []>} : vector<8x8xf32>, vector<8x8xf32>, vector<8x8xf32> -> vector<8x8xf32>
    %cst_66 = arith.constant 0.000000e+00 : f32
    %100 = vector.broadcast %cst_66 : f32 to vector<8x8xf32>
    %101 = arith.cmpf oeq, %93, %100 : vector<8x8xf32>
    %cst_67 = arith.constant -1.000000e+20 : f32
    %102 = vector.broadcast %cst_67 : f32 to vector<8x8xf32>
    %103 = arith.select %101, %102, %99 : vector<8x8xi1>, vector<8x8xf32>
    %cst_68 = arith.constant dense<0xFF800000> : vector<8xf32>
    %104 = vector.multi_reduction <maximumf>, %103, %cst_68 [1] : vector<8x8xf32> to vector<8xf32>
    %105 = vector.shape_cast %104 : vector<8xf32> to vector<8x1xf32>
    %106 = vector.broadcast %105 : vector<8x1xf32> to vector<8x8xf32>
    %107 = arith.subf %103, %106 : vector<8x8xf32>
    %108 = math.exp %107 : vector<8x8xf32>
    %cst_69 = arith.constant dense<0.000000e+00> : vector<8xf32>
    %109 = vector.multi_reduction <add>, %108, %cst_69 [1] : vector<8x8xf32> to vector<8xf32>
    %110 = vector.shape_cast %109 : vector<8xf32> to vector<8x1xf32>
    %111 = tpu.reciprocal %110 {approx = true} : vector<8x1xf32> -> vector<8x1xf32>
    %112 = vector.broadcast %111 : vector<8x1xf32> to vector<8x8xf32>
    %113 = arith.mulf %108, %112 : vector<8x8xf32>
    %cst_70 = arith.constant dense<0.000000e+00> : vector<8x8xf32>
    %114 = tpu.matmul %113, %98, %cst_70 {dimension_numbers = #tpu.dot_dimension_numbers<[1], [0], [0], [1], [0, 0, 1, 1], [], []>} : vector<8x8xf32>, vector<8x8xf32>, vector<8x8xf32> -> vector<8x8xf32>
    %c8_71 = arith.constant 8 : index
    %c0_72 = arith.constant 0 : index
    %115 = vector.load %arg23[%c8_71, %c0_72] : memref<16x32xf32, #tpu.memory_space<vmem>>, vector<8x8xf32>
    tpu.vector_store %arg23[%c8_71, %c0_72], %114 {strides = array<i32>} : memref<16x32xf32, #tpu.memory_space<vmem>>, vector<8x8xf32>,
    %c8_73 = arith.constant 8 : index
    %c8_74 = arith.constant 8 : index
    %116 = vector.load %arg22[%c8_73, %c8_74] : memref<16x96xf32, #tpu.memory_space<vmem>>, vector<8x8xf32>
    %cst_75 = arith.constant 0.176776692 : f32
    %117 = vector.broadcast %cst_75 : f32 to vector<8x8xf32>
    %118 = arith.mulf %116, %117 : vector<8x8xf32>
    %c8_76 = arith.constant 8 : index
    %c40_77 = arith.constant 40 : index
    %119 = vector.load %arg22[%c8_76, %c40_77] : memref<16x96xf32, #tpu.memory_space<vmem>>, vector<8x8xf32>
    %c8_78 = arith.constant 8 : index
    %c72_79 = arith.constant 72 : index
    %120 = vector.load %arg22[%c8_78, %c72_79] : memref<16x96xf32, #tpu.memory_space<vmem>>, vector<8x8xf32>
    %cst_80 = arith.constant dense<0.000000e+00> : vector<8x8xf32>
    %121 = tpu.matmul %118, %119, %cst_80 {dimension_numbers = #tpu.dot_dimension_numbers<[1], [1], [0], [0], [0, 0, 1, 0], [], []>} : vector<8x8xf32>, vector<8x8xf32>, vector<8x8xf32> -> vector<8x8xf32>
    %cst_81 = arith.constant 0.000000e+00 : f32
    %122 = vector.broadcast %cst_81 : f32 to vector<8x8xf32>
    %123 = arith.cmpf oeq, %93, %122 : vector<8x8xf32>
    %cst_82 = arith.constant -1.000000e+20 : f32
    %124 = vector.broadcast %cst_82 : f32 to vector<8x8xf32>
    %125 = arith.select %123, %124, %121 : vector<8x8xi1>, vector<8x8xf32>
    %cst_83 = arith.constant dense<0xFF800000> : vector<8xf32>
    %126 = vector.multi_reduction <maximumf>, %125, %cst_83 [1] : vector<8x8xf32> to vector<8xf32>
    %127 = vector.shape_cast %126 : vector<8xf32> to vector<8x1xf32>
    %128 = vector.broadcast %127 : vector<8x1xf32> to vector<8x8xf32>
    %129 = arith.subf %125, %128 : vector<8x8xf32>
    %130 = math.exp %129 : vector<8x8xf32>
    %cst_84 = arith.constant dense<0.000000e+00> : vector<8xf32>
    %131 = vector.multi_reduction <add>, %130, %cst_84 [1] : vector<8x8xf32> to vector<8xf32>
    %132 = vector.shape_cast %131 : vector<8xf32> to vector<8x1xf32>
    %133 = tpu.reciprocal %132 {approx = true} : vector<8x1xf32> -> vector<8x1xf32>
    %134 = vector.broadcast %133 : vector<8x1xf32> to vector<8x8xf32>
    %135 = arith.mulf %130, %134 : vector<8x8xf32>
    %cst_85 = arith.constant dense<0.000000e+00> : vector<8x8xf32>
    %136 = tpu.matmul %135, %120, %cst_85 {dimension_numbers = #tpu.dot_dimension_numbers<[1], [0], [0], [1], [0, 0, 1, 1], [], []>} : vector<8x8xf32>, vector<8x8xf32>, vector<8x8xf32> -> vector<8x8xf32>
    %c8_86 = arith.constant 8 : index
    %c8_87 = arith.constant 8 : index
    %137 = vector.load %arg23[%c8_86, %c8_87] : memref<16x32xf32, #tpu.memory_space<vmem>>, vector<8x8xf32>
    tpu.vector_store %arg23[%c8_86, %c8_87], %136 {strides = array<i32>} : memref<16x32xf32, #tpu.memory_space<vmem>>, vector<8x8xf32>,
    %c8_88 = arith.constant 8 : index
    %c16_89 = arith.constant 16 : index
    %138 = vector.load %arg22[%c8_88, %c16_89] : memref<16x96xf32, #tpu.memory_space<vmem>>, vector<8x8xf32>
    %cst_90 = arith.constant 0.176776692 : f32
    %139 = vector.broadcast %cst_90 : f32 to vector<8x8xf32>
    %140 = arith.mulf %138, %139 : vector<8x8xf32>
    %c8_91 = arith.constant 8 : index
    %c48_92 = arith.constant 48 : index
    %141 = vector.load %arg22[%c8_91, %c48_92] : memref<16x96xf32, #tpu.memory_space<vmem>>, vector<8x8xf32>
    %c8_93 = arith.constant 8 : index
    %c80_94 = arith.constant 80 : index
    %142 = vector.load %arg22[%c8_93, %c80_94] : memref<16x96xf32, #tpu.memory_space<vmem>>, vector<8x8xf32>
    %cst_95 = arith.constant dense<0.000000e+00> : vector<8x8xf32>
    %143 = tpu.matmul %140, %141, %cst_95 {dimension_numbers = #tpu.dot_dimension_numbers<[1], [1], [0], [0], [0, 0, 1, 0], [], []>} : vector<8x8xf32>, vector<8x8xf32>, vector<8x8xf32> -> vector<8x8xf32>
    %cst_96 = arith.constant 0.000000e+00 : f32
    %144 = vector.broadcast %cst_96 : f32 to vector<8x8xf32>
    %145 = arith.cmpf oeq, %93, %144 : vector<8x8xf32>
    %cst_97 = arith.constant -1.000000e+20 : f32
    %146 = vector.broadcast %cst_97 : f32 to vector<8x8xf32>
    %147 = arith.select %145, %146, %143 : vector<8x8xi1>, vector<8x8xf32>
    %cst_98 = arith.constant dense<0xFF800000> : vector<8xf32>
    %148 = vector.multi_reduction <maximumf>, %147, %cst_98 [1] : vector<8x8xf32> to vector<8xf32>
    %149 = vector.shape_cast %148 : vector<8xf32> to vector<8x1xf32>
    %150 = vector.broadcast %149 : vector<8x1xf32> to vector<8x8xf32>
    %151 = arith.subf %147, %150 : vector<8x8xf32>
    %152 = math.exp %151 : vector<8x8xf32>
    %cst_99 = arith.constant dense<0.000000e+00> : vector<8xf32>
    %153 = vector.multi_reduction <add>, %152, %cst_99 [1] : vector<8x8xf32> to vector<8xf32>
    %154 = vector.shape_cast %153 : vector<8xf32> to vector<8x1xf32>
    %155 = tpu.reciprocal %154 {approx = true} : vector<8x1xf32> -> vector<8x1xf32>
    %156 = vector.broadcast %155 : vector<8x1xf32> to vector<8x8xf32>
    %157 = arith.mulf %152, %156 : vector<8x8xf32>
    %cst_100 = arith.constant dense<0.000000e+00> : vector<8x8xf32>
    %158 = tpu.matmul %157, %142, %cst_100 {dimension_numbers = #tpu.dot_dimension_numbers<[1], [0], [0], [1], [0, 0, 1, 1], [], []>} : vector<8x8xf32>, vector<8x8xf32>, vector<8x8xf32> -> vector<8x8xf32>
    %c8_101 = arith.constant 8 : index
    %c16_102 = arith.constant 16 : index
    %159 = vector.load %arg23[%c8_101, %c16_102] : memref<16x32xf32, #tpu.memory_space<vmem>>, vector<8x8xf32>
    tpu.vector_store %arg23[%c8_101, %c16_102], %158 {strides = array<i32>} : memref<16x32xf32, #tpu.memory_space<vmem>>, vector<8x8xf32>,
    %c8_103 = arith.constant 8 : index
    %c24_104 = arith.constant 24 : index
    %160 = vector.load %arg22[%c8_103, %c24_104] : memref<16x96xf32, #tpu.memory_space<vmem>>, vector<8x8xf32>
    %cst_105 = arith.constant 0.176776692 : f32
    %161 = vector.broadcast %cst_105 : f32 to vector<8x8xf32>
    %162 = arith.mulf %160, %161 : vector<8x8xf32>
    %c8_106 = arith.constant 8 : index
    %c56_107 = arith.constant 56 : index
    %163 = vector.load %arg22[%c8_106, %c56_107] : memref<16x96xf32, #tpu.memory_space<vmem>>, vector<8x8xf32>
    %c8_108 = arith.constant 8 : index
    %c88_109 = arith.constant 88 : index
    %164 = vector.load %arg22[%c8_108, %c88_109] : memref<16x96xf32, #tpu.memory_space<vmem>>, vector<8x8xf32>
    %cst_110 = arith.constant dense<0.000000e+00> : vector<8x8xf32>
    %165 = tpu.matmul %162, %163, %cst_110 {dimension_numbers = #tpu.dot_dimension_numbers<[1], [1], [0], [0], [0, 0, 1, 0], [], []>} : vector<8x8xf32>, vector<8x8xf32>, vector<8x8xf32> -> vector<8x8xf32>
    %cst_111 = arith.constant 0.000000e+00 : f32
    %166 = vector.broadcast %cst_111 : f32 to vector<8x8xf32>
    %167 = arith.cmpf oeq, %93, %166 : vector<8x8xf32>
    %cst_112 = arith.constant -1.000000e+20 : f32
    %168 = vector.broadcast %cst_112 : f32 to vector<8x8xf32>
    %169 = arith.select %167, %168, %165 : vector<8x8xi1>, vector<8x8xf32>
    %cst_113 = arith.constant dense<0xFF800000> : vector<8xf32>
    %170 = vector.multi_reduction <maximumf>, %169, %cst_113 [1] : vector<8x8xf32> to vector<8xf32>
    %171 = vector.shape_cast %170 : vector<8xf32> to vector<8x1xf32>
    %172 = vector.broadcast %171 : vector<8x1xf32> to vector<8x8xf32>
    %173 = arith.subf %169, %172 : vector<8x8xf32>
    %174 = math.exp %173 : vector<8x8xf32>
    %cst_114 = arith.constant dense<0.000000e+00> : vector<8xf32>
    %175 = vector.multi_reduction <add>, %174, %cst_114 [1] : vector<8x8xf32> to vector<8xf32>
    %176 = vector.shape_cast %175 : vector<8xf32> to vector<8x1xf32>
    %177 = tpu.reciprocal %176 {approx = true} : vector<8x1xf32> -> vector<8x1xf32>
    %178 = vector.broadcast %177 : vector<8x1xf32> to vector<8x8xf32>
    %179 = arith.mulf %174, %178 : vector<8x8xf32>
    %cst_115 = arith.constant dense<0.000000e+00> : vector<8x8xf32>
    %180 = tpu.matmul %179, %164, %cst_115 {dimension_numbers = #tpu.dot_dimension_numbers<[1], [0], [0], [1], [0, 0, 1, 1], [], []>} : vector<8x8xf32>, vector<8x8xf32>, vector<8x8xf32> -> vector<8x8xf32>
    %c8_116 = arith.constant 8 : index
    %c24_117 = arith.constant 24 : index
    %181 = vector.load %arg23[%c8_116, %c24_117] : memref<16x32xf32, #tpu.memory_space<vmem>>, vector<8x8xf32>
    tpu.vector_store %arg23[%c8_116, %c24_117], %180 {strides = array<i32>} : memref<16x32xf32, #tpu.memory_space<vmem>>, vector<8x8xf32>,
    %c0_118 = arith.constant 0 : index
    %c0_119 = arith.constant 0 : index
    %182 = vector.load %arg23[%c0_118, %c0_119] : memref<16x32xf32, #tpu.memory_space<vmem>>, vector<16x32xf32>
    %c0_120 = arith.constant 0 : index
    %c0_121 = arith.constant 0 : index
    %183 = vector.load %arg5[%c0_120, %c0_121] : memref<32x32xf32, #tpu.memory_space<vmem>>, vector<32x32xf32>
    %cst_122 = arith.constant dense<0.000000e+00> : vector<16x32xf32>
    %184 = tpu.matmul %182, %183, %cst_122 {dimension_numbers = #tpu.dot_dimension_numbers<[1], [0], [0], [1], [0, 0, 1, 1], [], []>} : vector<16x32xf32>, vector<32x32xf32>, vector<16x32xf32> -> vector<16x32xf32>
    %c0_123 = arith.constant 0 : index
    %c0_124 = arith.constant 0 : index
    %185 = vector.load %arg6[%c0_123, %c0_124] : memref<1x32xf32, #tpu.memory_space<vmem>>, vector<1x32xf32>
    %186 = vector.broadcast %185 : vector<1x32xf32> to vector<16x32xf32>
    %187 = arith.addf %184, %186 : vector<16x32xf32>
    %188 = arith.addf %187, %0 : vector<16x32xf32>
    %c0_125 = arith.constant 0 : index
    %c0_126 = arith.constant 0 : index
    %189 = vector.load %arg7[%c0_125, %c0_126] : memref<1x32xf32, #tpu.memory_space<vmem>>, vector<1x32xf32>
    %c0_127 = arith.constant 0 : index
    %c0_128 = arith.constant 0 : index
    %190 = vector.load %arg8[%c0_127, %c0_128] : memref<1x32xf32, #tpu.memory_space<vmem>>, vector<1x32xf32>
    %cst_129 = arith.constant dense<0.000000e+00> : vector<16xf32>
    %191 = vector.multi_reduction <add>, %188, %cst_129 [1] : vector<16x32xf32> to vector<16xf32>
    %192 = vector.shape_cast %191 : vector<16xf32> to vector<16x1xf32>
    %cst_130 = arith.constant 3.200000e+01 : f32
    %193 = vector.broadcast %cst_130 : f32 to vector<16x1xf32>
    %194 = arith.divf %192, %193 : vector<16x1xf32>
    %195 = vector.broadcast %194 : vector<16x1xf32> to vector<16x32xf32>
    %196 = arith.subf %188, %195 : vector<16x32xf32>
    %197 = arith.mulf %196, %196 : vector<16x32xf32>
    %cst_131 = arith.constant dense<0.000000e+00> : vector<16xf32>
    %198 = vector.multi_reduction <add>, %197, %cst_131 [1] : vector<16x32xf32> to vector<16xf32>
    %199 = vector.shape_cast %198 : vector<16xf32> to vector<16x1xf32>
    %cst_132 = arith.constant 3.200000e+01 : f32
    %200 = vector.broadcast %cst_132 : f32 to vector<16x1xf32>
    %201 = arith.divf %199, %200 : vector<16x1xf32>
    %202 = vector.broadcast %194 : vector<16x1xf32> to vector<16x32xf32>
    %203 = arith.subf %188, %202 : vector<16x32xf32>
    %cst_133 = arith.constant 9.99999974E-6 : f32
    %204 = vector.broadcast %cst_133 : f32 to vector<16x1xf32>
    %205 = arith.addf %201, %204 : vector<16x1xf32>
    %206 = math.rsqrt %205 : vector<16x1xf32>
    %207 = vector.broadcast %206 : vector<16x1xf32> to vector<16x32xf32>
    %208 = arith.mulf %203, %207 : vector<16x32xf32>
    %209 = vector.broadcast %189 : vector<1x32xf32> to vector<16x32xf32>
    %210 = arith.mulf %208, %209 : vector<16x32xf32>
    %211 = vector.broadcast %190 : vector<1x32xf32> to vector<16x32xf32>
    %212 = arith.addf %210, %211 : vector<16x32xf32>
    %c0_134 = arith.constant 0 : index
    %c0_135 = arith.constant 0 : index
    %213 = vector.load %arg1[%c0_134, %c0_135] : memref<16x32xf32, #tpu.memory_space<vmem>>, vector<16x32xf32>
    %c0_136 = arith.constant 0 : index
    %c0_137 = arith.constant 0 : index
    %214 = vector.load %arg9[%c0_136, %c0_137] : memref<32x32xf32, #tpu.memory_space<vmem>>, vector<32x32xf32>
    %cst_138 = arith.constant dense<0.000000e+00> : vector<16x32xf32>
    %215 = tpu.matmul %212, %214, %cst_138 {dimension_numbers = #tpu.dot_dimension_numbers<[1], [0], [0], [1], [0, 0, 1, 1], [], []>} : vector<16x32xf32>, vector<32x32xf32>, vector<16x32xf32> -> vector<16x32xf32>
    %c0_139 = arith.constant 0 : index
    %c0_140 = arith.constant 0 : index
    %216 = vector.load %arg24[%c0_139, %c0_140] : memref<16x32xf32, #tpu.memory_space<vmem>>, vector<16x32xf32>
    tpu.vector_store %arg24[%c0_139, %c0_140], %215 {strides = array<i32>} : memref<16x32xf32, #tpu.memory_space<vmem>>, vector<16x32xf32>,
    %c0_141 = arith.constant 0 : index
    %c0_142 = arith.constant 0 : index
    %217 = vector.load %arg10[%c0_141, %c0_142] : memref<32x64xf32, #tpu.memory_space<vmem>>, vector<32x64xf32>
    %cst_143 = arith.constant dense<0.000000e+00> : vector<16x64xf32>
    %218 = tpu.matmul %213, %217, %cst_143 {dimension_numbers = #tpu.dot_dimension_numbers<[1], [0], [0], [1], [0, 0, 1, 1], [], []>} : vector<16x32xf32>, vector<32x64xf32>, vector<16x64xf32> -> vector<16x64xf32>
    %c0_144 = arith.constant 0 : index
    %c0_145 = arith.constant 0 : index
    %219 = vector.load %arg25[%c0_144, %c0_145] : memref<16x64xf32, #tpu.memory_space<vmem>>, vector<16x64xf32>
    tpu.vector_store %arg25[%c0_144, %c0_145], %218 {strides = array<i32>} : memref<16x64xf32, #tpu.memory_space<vmem>>, vector<16x64xf32>,
    %c0_146 = arith.constant 0 : index
    %c0_147 = arith.constant 0 : index
    %220 = vector.load %arg3[%c0_146, %c0_147] : memref<2x8xf32, #tpu.memory_space<vmem>>, vector<1x8xf32>
    %c0_148 = arith.constant 0 : index
    %c0_149 = arith.constant 0 : index
    %221 = vector.load %arg24[%c0_148, %c0_149] : memref<16x32xf32, #tpu.memory_space<vmem>>, vector<8x8xf32>
    %cst_150 = arith.constant 0.176776692 : f32
    %222 = vector.broadcast %cst_150 : f32 to vector<8x8xf32>
    %223 = arith.mulf %221, %222 : vector<8x8xf32>
    %c0_151 = arith.constant 0 : index
    %c0_152 = arith.constant 0 : index
    %224 = vector.load %arg25[%c0_151, %c0_152] : memref<16x64xf32, #tpu.memory_space<vmem>>, vector<8x8xf32>
    %c0_153 = arith.constant 0 : index
    %c32_154 = arith.constant 32 : index
    %225 = vector.load %arg25[%c0_153, %c32_154] : memref<16x64xf32, #tpu.memory_space<vmem>>, vector<8x8xf32>
    %cst_155 = arith.constant dense<0.000000e+00> : vector<8x8xf32>
    %226 = tpu.matmul %223, %224, %cst_155 {dimension_numbers = #tpu.dot_dimension_numbers<[1], [1], [0], [0], [0, 0, 1, 0], [], []>} : vector<8x8xf32>, vector<8x8xf32>, vector<8x8xf32> -> vector<8x8xf32>
    %cst_156 = arith.constant 0.000000e+00 : f32
    %227 = vector.broadcast %cst_156 : f32 to vector<1x8xf32>
    %228 = arith.cmpf oeq, %220, %227 : vector<1x8xf32>
    %cst_157 = arith.constant -1.000000e+20 : f32
    %229 = vector.shape_cast %228 : vector<1x8xi1> to vector<1x8xi1>
    %230 = vector.broadcast %229 : vector<1x8xi1> to vector<8x8xi1>
    %231 = vector.broadcast %cst_157 : f32 to vector<8x8xf32>
    %232 = arith.select %230, %231, %226 : vector<8x8xi1>, vector<8x8xf32>
    %cst_158 = arith.constant dense<0xFF800000> : vector<8xf32>
    %233 = vector.multi_reduction <maximumf>, %232, %cst_158 [1] : vector<8x8xf32> to vector<8xf32>
    %234 = vector.shape_cast %233 : vector<8xf32> to vector<8x1xf32>
    %235 = vector.broadcast %234 : vector<8x1xf32> to vector<8x8xf32>
    %236 = arith.subf %232, %235 : vector<8x8xf32>
    %237 = math.exp %236 : vector<8x8xf32>
    %cst_159 = arith.constant dense<0.000000e+00> : vector<8xf32>
    %238 = vector.multi_reduction <add>, %237, %cst_159 [1] : vector<8x8xf32> to vector<8xf32>
    %239 = vector.shape_cast %238 : vector<8xf32> to vector<8x1xf32>
    %240 = tpu.reciprocal %239 {approx = true} : vector<8x1xf32> -> vector<8x1xf32>
    %241 = vector.broadcast %240 : vector<8x1xf32> to vector<8x8xf32>
    %242 = arith.mulf %237, %241 : vector<8x8xf32>
    %cst_160 = arith.constant dense<0.000000e+00> : vector<8x8xf32>
    %243 = tpu.matmul %242, %225, %cst_160 {dimension_numbers = #tpu.dot_dimension_numbers<[1], [0], [0], [1], [0, 0, 1, 1], [], []>} : vector<8x8xf32>, vector<8x8xf32>, vector<8x8xf32> -> vector<8x8xf32>
    %c0_161 = arith.constant 0 : index
    %c0_162 = arith.constant 0 : index
    %244 = vector.load %arg26[%c0_161, %c0_162] : memref<16x32xf32, #tpu.memory_space<vmem>>, vector<8x8xf32>
    tpu.vector_store %arg26[%c0_161, %c0_162], %243 {strides = array<i32>} : memref<16x32xf32, #tpu.memory_space<vmem>>, vector<8x8xf32>,
    %c0_163 = arith.constant 0 : index
    %c8_164 = arith.constant 8 : index
    %245 = vector.load %arg24[%c0_163, %c8_164] : memref<16x32xf32, #tpu.memory_space<vmem>>, vector<8x8xf32>
    %cst_165 = arith.constant 0.176776692 : f32
    %246 = vector.broadcast %cst_165 : f32 to vector<8x8xf32>
    %247 = arith.mulf %245, %246 : vector<8x8xf32>
    %c0_166 = arith.constant 0 : index
    %c8_167 = arith.constant 8 : index
    %248 = vector.load %arg25[%c0_166, %c8_167] : memref<16x64xf32, #tpu.memory_space<vmem>>, vector<8x8xf32>
    %c0_168 = arith.constant 0 : index
    %c40_169 = arith.constant 40 : index
    %249 = vector.load %arg25[%c0_168, %c40_169] : memref<16x64xf32, #tpu.memory_space<vmem>>, vector<8x8xf32>
    %cst_170 = arith.constant dense<0.000000e+00> : vector<8x8xf32>
    %250 = tpu.matmul %247, %248, %cst_170 {dimension_numbers = #tpu.dot_dimension_numbers<[1], [1], [0], [0], [0, 0, 1, 0], [], []>} : vector<8x8xf32>, vector<8x8xf32>, vector<8x8xf32> -> vector<8x8xf32>
    %cst_171 = arith.constant 0.000000e+00 : f32
    %251 = vector.broadcast %cst_171 : f32 to vector<1x8xf32>
    %252 = arith.cmpf oeq, %220, %251 : vector<1x8xf32>
    %cst_172 = arith.constant -1.000000e+20 : f32
    %253 = vector.shape_cast %252 : vector<1x8xi1> to vector<1x8xi1>
    %254 = vector.broadcast %253 : vector<1x8xi1> to vector<8x8xi1>
    %255 = vector.broadcast %cst_172 : f32 to vector<8x8xf32>
    %256 = arith.select %254, %255, %250 : vector<8x8xi1>, vector<8x8xf32>
    %cst_173 = arith.constant dense<0xFF800000> : vector<8xf32>
    %257 = vector.multi_reduction <maximumf>, %256, %cst_173 [1] : vector<8x8xf32> to vector<8xf32>
    %258 = vector.shape_cast %257 : vector<8xf32> to vector<8x1xf32>
    %259 = vector.broadcast %258 : vector<8x1xf32> to vector<8x8xf32>
    %260 = arith.subf %256, %259 : vector<8x8xf32>
    %261 = math.exp %260 : vector<8x8xf32>
    %cst_174 = arith.constant dense<0.000000e+00> : vector<8xf32>
    %262 = vector.multi_reduction <add>, %261, %cst_174 [1] : vector<8x8xf32> to vector<8xf32>
    %263 = vector.shape_cast %262 : vector<8xf32> to vector<8x1xf32>
    %264 = tpu.reciprocal %263 {approx = true} : vector<8x1xf32> -> vector<8x1xf32>
    %265 = vector.broadcast %264 : vector<8x1xf32> to vector<8x8xf32>
    %266 = arith.mulf %261, %265 : vector<8x8xf32>
    %cst_175 = arith.constant dense<0.000000e+00> : vector<8x8xf32>
    %267 = tpu.matmul %266, %249, %cst_175 {dimension_numbers = #tpu.dot_dimension_numbers<[1], [0], [0], [1], [0, 0, 1, 1], [], []>} : vector<8x8xf32>, vector<8x8xf32>, vector<8x8xf32> -> vector<8x8xf32>
    %c0_176 = arith.constant 0 : index
    %c8_177 = arith.constant 8 : index
    %268 = vector.load %arg26[%c0_176, %c8_177] : memref<16x32xf32, #tpu.memory_space<vmem>>, vector<8x8xf32>
    tpu.vector_store %arg26[%c0_176, %c8_177], %267 {strides = array<i32>} : memref<16x32xf32, #tpu.memory_space<vmem>>, vector<8x8xf32>,
    %c0_178 = arith.constant 0 : index
    %c16_179 = arith.constant 16 : index
    %269 = vector.load %arg24[%c0_178, %c16_179] : memref<16x32xf32, #tpu.memory_space<vmem>>, vector<8x8xf32>
    %cst_180 = arith.constant 0.176776692 : f32
    %270 = vector.broadcast %cst_180 : f32 to vector<8x8xf32>
    %271 = arith.mulf %269, %270 : vector<8x8xf32>
    %c0_181 = arith.constant 0 : index
    %c16_182 = arith.constant 16 : index
    %272 = vector.load %arg25[%c0_181, %c16_182] : memref<16x64xf32, #tpu.memory_space<vmem>>, vector<8x8xf32>
    %c0_183 = arith.constant 0 : index
    %c48_184 = arith.constant 48 : index
    %273 = vector.load %arg25[%c0_183, %c48_184] : memref<16x64xf32, #tpu.memory_space<vmem>>, vector<8x8xf32>
    %cst_185 = arith.constant dense<0.000000e+00> : vector<8x8xf32>
    %274 = tpu.matmul %271, %272, %cst_185 {dimension_numbers = #tpu.dot_dimension_numbers<[1], [1], [0], [0], [0, 0, 1, 0], [], []>} : vector<8x8xf32>, vector<8x8xf32>, vector<8x8xf32> -> vector<8x8xf32>
    %cst_186 = arith.constant 0.000000e+00 : f32
    %275 = vector.broadcast %cst_186 : f32 to vector<1x8xf32>
    %276 = arith.cmpf oeq, %220, %275 : vector<1x8xf32>
    %cst_187 = arith.constant -1.000000e+20 : f32
    %277 = vector.shape_cast %276 : vector<1x8xi1> to vector<1x8xi1>
    %278 = vector.broadcast %277 : vector<1x8xi1> to vector<8x8xi1>
    %279 = vector.broadcast %cst_187 : f32 to vector<8x8xf32>
    %280 = arith.select %278, %279, %274 : vector<8x8xi1>, vector<8x8xf32>
    %cst_188 = arith.constant dense<0xFF800000> : vector<8xf32>
    %281 = vector.multi_reduction <maximumf>, %280, %cst_188 [1] : vector<8x8xf32> to vector<8xf32>
    %282 = vector.shape_cast %281 : vector<8xf32> to vector<8x1xf32>
    %283 = vector.broadcast %282 : vector<8x1xf32> to vector<8x8xf32>
    %284 = arith.subf %280, %283 : vector<8x8xf32>
    %285 = math.exp %284 : vector<8x8xf32>
    %cst_189 = arith.constant dense<0.000000e+00> : vector<8xf32>
    %286 = vector.multi_reduction <add>, %285, %cst_189 [1] : vector<8x8xf32> to vector<8xf32>
    %287 = vector.shape_cast %286 : vector<8xf32> to vector<8x1xf32>
    %288 = tpu.reciprocal %287 {approx = true} : vector<8x1xf32> -> vector<8x1xf32>
    %289 = vector.broadcast %288 : vector<8x1xf32> to vector<8x8xf32>
    %290 = arith.mulf %285, %289 : vector<8x8xf32>
    %cst_190 = arith.constant dense<0.000000e+00> : vector<8x8xf32>
    %291 = tpu.matmul %290, %273, %cst_190 {dimension_numbers = #tpu.dot_dimension_numbers<[1], [0], [0], [1], [0, 0, 1, 1], [], []>} : vector<8x8xf32>, vector<8x8xf32>, vector<8x8xf32> -> vector<8x8xf32>
    %c0_191 = arith.constant 0 : index
    %c16_192 = arith.constant 16 : index
    %292 = vector.load %arg26[%c0_191, %c16_192] : memref<16x32xf32, #tpu.memory_space<vmem>>, vector<8x8xf32>
    tpu.vector_store %arg26[%c0_191, %c16_192], %291 {strides = array<i32>} : memref<16x32xf32, #tpu.memory_space<vmem>>, vector<8x8xf32>,
    %c0_193 = arith.constant 0 : index
    %c24_194 = arith.constant 24 : index
    %293 = vector.load %arg24[%c0_193, %c24_194] : memref<16x32xf32, #tpu.memory_space<vmem>>, vector<8x8xf32>
    %cst_195 = arith.constant 0.176776692 : f32
    %294 = vector.broadcast %cst_195 : f32 to vector<8x8xf32>
    %295 = arith.mulf %293, %294 : vector<8x8xf32>
    %c0_196 = arith.constant 0 : index
    %c24_197 = arith.constant 24 : index
    %296 = vector.load %arg25[%c0_196, %c24_197] : memref<16x64xf32, #tpu.memory_space<vmem>>, vector<8x8xf32>
    %c0_198 = arith.constant 0 : index
    %c56_199 = arith.constant 56 : index
    %297 = vector.load %arg25[%c0_198, %c56_199] : memref<16x64xf32, #tpu.memory_space<vmem>>, vector<8x8xf32>
    %cst_200 = arith.constant dense<0.000000e+00> : vector<8x8xf32>
    %298 = tpu.matmul %295, %296, %cst_200 {dimension_numbers = #tpu.dot_dimension_numbers<[1], [1], [0], [0], [0, 0, 1, 0], [], []>} : vector<8x8xf32>, vector<8x8xf32>, vector<8x8xf32> -> vector<8x8xf32>
    %cst_201 = arith.constant 0.000000e+00 : f32
    %299 = vector.broadcast %cst_201 : f32 to vector<1x8xf32>
    %300 = arith.cmpf oeq, %220, %299 : vector<1x8xf32>
    %cst_202 = arith.constant -1.000000e+20 : f32
    %301 = vector.shape_cast %300 : vector<1x8xi1> to vector<1x8xi1>
    %302 = vector.broadcast %301 : vector<1x8xi1> to vector<8x8xi1>
    %303 = vector.broadcast %cst_202 : f32 to vector<8x8xf32>
    %304 = arith.select %302, %303, %298 : vector<8x8xi1>, vector<8x8xf32>
    %cst_203 = arith.constant dense<0xFF800000> : vector<8xf32>
    %305 = vector.multi_reduction <maximumf>, %304, %cst_203 [1] : vector<8x8xf32> to vector<8xf32>
    %306 = vector.shape_cast %305 : vector<8xf32> to vector<8x1xf32>
    %307 = vector.broadcast %306 : vector<8x1xf32> to vector<8x8xf32>
    %308 = arith.subf %304, %307 : vector<8x8xf32>
    %309 = math.exp %308 : vector<8x8xf32>
    %cst_204 = arith.constant dense<0.000000e+00> : vector<8xf32>
    %310 = vector.multi_reduction <add>, %309, %cst_204 [1] : vector<8x8xf32> to vector<8xf32>
    %311 = vector.shape_cast %310 : vector<8xf32> to vector<8x1xf32>
    %312 = tpu.reciprocal %311 {approx = true} : vector<8x1xf32> -> vector<8x1xf32>
    %313 = vector.broadcast %312 : vector<8x1xf32> to vector<8x8xf32>
    %314 = arith.mulf %309, %313 : vector<8x8xf32>
    %cst_205 = arith.constant dense<0.000000e+00> : vector<8x8xf32>
    %315 = tpu.matmul %314, %297, %cst_205 {dimension_numbers = #tpu.dot_dimension_numbers<[1], [0], [0], [1], [0, 0, 1, 1], [], []>} : vector<8x8xf32>, vector<8x8xf32>, vector<8x8xf32> -> vector<8x8xf32>
    %c0_206 = arith.constant 0 : index
    %c24_207 = arith.constant 24 : index
    %316 = vector.load %arg26[%c0_206, %c24_207] : memref<16x32xf32, #tpu.memory_space<vmem>>, vector<8x8xf32>
    tpu.vector_store %arg26[%c0_206, %c24_207], %315 {strides = array<i32>} : memref<16x32xf32, #tpu.memory_space<vmem>>, vector<8x8xf32>,
    %c1 = arith.constant 1 : index
    %c0_208 = arith.constant 0 : index
    %317 = vector.load %arg3[%c1, %c0_208] : memref<2x8xf32, #tpu.memory_space<vmem>>, vector<1x8xf32>
    %c8_209 = arith.constant 8 : index
    %c0_210 = arith.constant 0 : index
    %318 = vector.load %arg24[%c8_209, %c0_210] : memref<16x32xf32, #tpu.memory_space<vmem>>, vector<8x8xf32>
    %cst_211 = arith.constant 0.176776692 : f32
    %319 = vector.broadcast %cst_211 : f32 to vector<8x8xf32>
    %320 = arith.mulf %318, %319 : vector<8x8xf32>
    %c8_212 = arith.constant 8 : index
    %c0_213 = arith.constant 0 : index
    %321 = vector.load %arg25[%c8_212, %c0_213] : memref<16x64xf32, #tpu.memory_space<vmem>>, vector<8x8xf32>
    %c8_214 = arith.constant 8 : index
    %c32_215 = arith.constant 32 : index
    %322 = vector.load %arg25[%c8_214, %c32_215] : memref<16x64xf32, #tpu.memory_space<vmem>>, vector<8x8xf32>
    %cst_216 = arith.constant dense<0.000000e+00> : vector<8x8xf32>
    %323 = tpu.matmul %320, %321, %cst_216 {dimension_numbers = #tpu.dot_dimension_numbers<[1], [1], [0], [0], [0, 0, 1, 0], [], []>} : vector<8x8xf32>, vector<8x8xf32>, vector<8x8xf32> -> vector<8x8xf32>
    %cst_217 = arith.constant 0.000000e+00 : f32
    %324 = vector.broadcast %cst_217 : f32 to vector<1x8xf32>
    %325 = arith.cmpf oeq, %317, %324 : vector<1x8xf32>
    %cst_218 = arith.constant -1.000000e+20 : f32
    %326 = vector.shape_cast %325 : vector<1x8xi1> to vector<1x8xi1>
    %327 = vector.broadcast %326 : vector<1x8xi1> to vector<8x8xi1>
    %328 = vector.broadcast %cst_218 : f32 to vector<8x8xf32>
    %329 = arith.select %327, %328, %323 : vector<8x8xi1>, vector<8x8xf32>
    %cst_219 = arith.constant dense<0xFF800000> : vector<8xf32>
    %330 = vector.multi_reduction <maximumf>, %329, %cst_219 [1] : vector<8x8xf32> to vector<8xf32>
    %331 = vector.shape_cast %330 : vector<8xf32> to vector<8x1xf32>
    %332 = vector.broadcast %331 : vector<8x1xf32> to vector<8x8xf32>
    %333 = arith.subf %329, %332 : vector<8x8xf32>
    %334 = math.exp %333 : vector<8x8xf32>
    %cst_220 = arith.constant dense<0.000000e+00> : vector<8xf32>
    %335 = vector.multi_reduction <add>, %334, %cst_220 [1] : vector<8x8xf32> to vector<8xf32>
    %336 = vector.shape_cast %335 : vector<8xf32> to vector<8x1xf32>
    %337 = tpu.reciprocal %336 {approx = true} : vector<8x1xf32> -> vector<8x1xf32>
    %338 = vector.broadcast %337 : vector<8x1xf32> to vector<8x8xf32>
    %339 = arith.mulf %334, %338 : vector<8x8xf32>
    %cst_221 = arith.constant dense<0.000000e+00> : vector<8x8xf32>
    %340 = tpu.matmul %339, %322, %cst_221 {dimension_numbers = #tpu.dot_dimension_numbers<[1], [0], [0], [1], [0, 0, 1, 1], [], []>} : vector<8x8xf32>, vector<8x8xf32>, vector<8x8xf32> -> vector<8x8xf32>
    %c8_222 = arith.constant 8 : index
    %c0_223 = arith.constant 0 : index
    %341 = vector.load %arg26[%c8_222, %c0_223] : memref<16x32xf32, #tpu.memory_space<vmem>>, vector<8x8xf32>
    tpu.vector_store %arg26[%c8_222, %c0_223], %340 {strides = array<i32>} : memref<16x32xf32, #tpu.memory_space<vmem>>, vector<8x8xf32>,
    %c8_224 = arith.constant 8 : index
    %c8_225 = arith.constant 8 : index
    %342 = vector.load %arg24[%c8_224, %c8_225] : memref<16x32xf32, #tpu.memory_space<vmem>>, vector<8x8xf32>
    %cst_226 = arith.constant 0.176776692 : f32
    %343 = vector.broadcast %cst_226 : f32 to vector<8x8xf32>
    %344 = arith.mulf %342, %343 : vector<8x8xf32>
    %c8_227 = arith.constant 8 : index
    %c8_228 = arith.constant 8 : index
    %345 = vector.load %arg25[%c8_227, %c8_228] : memref<16x64xf32, #tpu.memory_space<vmem>>, vector<8x8xf32>
    %c8_229 = arith.constant 8 : index
    %c40_230 = arith.constant 40 : index
    %346 = vector.load %arg25[%c8_229, %c40_230] : memref<16x64xf32, #tpu.memory_space<vmem>>, vector<8x8xf32>
    %cst_231 = arith.constant dense<0.000000e+00> : vector<8x8xf32>
    %347 = tpu.matmul %344, %345, %cst_231 {dimension_numbers = #tpu.dot_dimension_numbers<[1], [1], [0], [0], [0, 0, 1, 0], [], []>} : vector<8x8xf32>, vector<8x8xf32>, vector<8x8xf32> -> vector<8x8xf32>
    %cst_232 = arith.constant 0.000000e+00 : f32
    %348 = vector.broadcast %cst_232 : f32 to vector<1x8xf32>
    %349 = arith.cmpf oeq, %317, %348 : vector<1x8xf32>
    %cst_233 = arith.constant -1.000000e+20 : f32
    %350 = vector.shape_cast %349 : vector<1x8xi1> to vector<1x8xi1>
    %351 = vector.broadcast %350 : vector<1x8xi1> to vector<8x8xi1>
    %352 = vector.broadcast %cst_233 : f32 to vector<8x8xf32>
    %353 = arith.select %351, %352, %347 : vector<8x8xi1>, vector<8x8xf32>
    %cst_234 = arith.constant dense<0xFF800000> : vector<8xf32>
    %354 = vector.multi_reduction <maximumf>, %353, %cst_234 [1] : vector<8x8xf32> to vector<8xf32>
    %355 = vector.shape_cast %354 : vector<8xf32> to vector<8x1xf32>
    %356 = vector.broadcast %355 : vector<8x1xf32> to vector<8x8xf32>
    %357 = arith.subf %353, %356 : vector<8x8xf32>
    %358 = math.exp %357 : vector<8x8xf32>
    %cst_235 = arith.constant dense<0.000000e+00> : vector<8xf32>
    %359 = vector.multi_reduction <add>, %358, %cst_235 [1] : vector<8x8xf32> to vector<8xf32>
    %360 = vector.shape_cast %359 : vector<8xf32> to vector<8x1xf32>
    %361 = tpu.reciprocal %360 {approx = true} : vector<8x1xf32> -> vector<8x1xf32>
    %362 = vector.broadcast %361 : vector<8x1xf32> to vector<8x8xf32>
    %363 = arith.mulf %358, %362 : vector<8x8xf32>
    %cst_236 = arith.constant dense<0.000000e+00> : vector<8x8xf32>
    %364 = tpu.matmul %363, %346, %cst_236 {dimension_numbers = #tpu.dot_dimension_numbers<[1], [0], [0], [1], [0, 0, 1, 1], [], []>} : vector<8x8xf32>, vector<8x8xf32>, vector<8x8xf32> -> vector<8x8xf32>
    %c8_237 = arith.constant 8 : index
    %c8_238 = arith.constant 8 : index
    %365 = vector.load %arg26[%c8_237, %c8_238] : memref<16x32xf32, #tpu.memory_space<vmem>>, vector<8x8xf32>
    tpu.vector_store %arg26[%c8_237, %c8_238], %364 {strides = array<i32>} : memref<16x32xf32, #tpu.memory_space<vmem>>, vector<8x8xf32>,
    %c8_239 = arith.constant 8 : index
    %c16_240 = arith.constant 16 : index
    %366 = vector.load %arg24[%c8_239, %c16_240] : memref<16x32xf32, #tpu.memory_space<vmem>>, vector<8x8xf32>
    %cst_241 = arith.constant 0.176776692 : f32
    %367 = vector.broadcast %cst_241 : f32 to vector<8x8xf32>
    %368 = arith.mulf %366, %367 : vector<8x8xf32>
    %c8_242 = arith.constant 8 : index
    %c16_243 = arith.constant 16 : index
    %369 = vector.load %arg25[%c8_242, %c16_243] : memref<16x64xf32, #tpu.memory_space<vmem>>, vector<8x8xf32>
    %c8_244 = arith.constant 8 : index
    %c48_245 = arith.constant 48 : index
    %370 = vector.load %arg25[%c8_244, %c48_245] : memref<16x64xf32, #tpu.memory_space<vmem>>, vector<8x8xf32>
    %cst_246 = arith.constant dense<0.000000e+00> : vector<8x8xf32>
    %371 = tpu.matmul %368, %369, %cst_246 {dimension_numbers = #tpu.dot_dimension_numbers<[1], [1], [0], [0], [0, 0, 1, 0], [], []>} : vector<8x8xf32>, vector<8x8xf32>, vector<8x8xf32> -> vector<8x8xf32>
    %cst_247 = arith.constant 0.000000e+00 : f32
    %372 = vector.broadcast %cst_247 : f32 to vector<1x8xf32>
    %373 = arith.cmpf oeq, %317, %372 : vector<1x8xf32>
    %cst_248 = arith.constant -1.000000e+20 : f32
    %374 = vector.shape_cast %373 : vector<1x8xi1> to vector<1x8xi1>
    %375 = vector.broadcast %374 : vector<1x8xi1> to vector<8x8xi1>
    %376 = vector.broadcast %cst_248 : f32 to vector<8x8xf32>
    %377 = arith.select %375, %376, %371 : vector<8x8xi1>, vector<8x8xf32>
    %cst_249 = arith.constant dense<0xFF800000> : vector<8xf32>
    %378 = vector.multi_reduction <maximumf>, %377, %cst_249 [1] : vector<8x8xf32> to vector<8xf32>
    %379 = vector.shape_cast %378 : vector<8xf32> to vector<8x1xf32>
    %380 = vector.broadcast %379 : vector<8x1xf32> to vector<8x8xf32>
    %381 = arith.subf %377, %380 : vector<8x8xf32>
    %382 = math.exp %381 : vector<8x8xf32>
    %cst_250 = arith.constant dense<0.000000e+00> : vector<8xf32>
    %383 = vector.multi_reduction <add>, %382, %cst_250 [1] : vector<8x8xf32> to vector<8xf32>
    %384 = vector.shape_cast %383 : vector<8xf32> to vector<8x1xf32>
    %385 = tpu.reciprocal %384 {approx = true} : vector<8x1xf32> -> vector<8x1xf32>
    %386 = vector.broadcast %385 : vector<8x1xf32> to vector<8x8xf32>
    %387 = arith.mulf %382, %386 : vector<8x8xf32>
    %cst_251 = arith.constant dense<0.000000e+00> : vector<8x8xf32>
    %388 = tpu.matmul %387, %370, %cst_251 {dimension_numbers = #tpu.dot_dimension_numbers<[1], [0], [0], [1], [0, 0, 1, 1], [], []>} : vector<8x8xf32>, vector<8x8xf32>, vector<8x8xf32> -> vector<8x8xf32>
    %c8_252 = arith.constant 8 : index
    %c16_253 = arith.constant 16 : index
    %389 = vector.load %arg26[%c8_252, %c16_253] : memref<16x32xf32, #tpu.memory_space<vmem>>, vector<8x8xf32>
    tpu.vector_store %arg26[%c8_252, %c16_253], %388 {strides = array<i32>} : memref<16x32xf32, #tpu.memory_space<vmem>>, vector<8x8xf32>,
    %c8_254 = arith.constant 8 : index
    %c24_255 = arith.constant 24 : index
    %390 = vector.load %arg24[%c8_254, %c24_255] : memref<16x32xf32, #tpu.memory_space<vmem>>, vector<8x8xf32>
    %cst_256 = arith.constant 0.176776692 : f32
    %391 = vector.broadcast %cst_256 : f32 to vector<8x8xf32>
    %392 = arith.mulf %390, %391 : vector<8x8xf32>
    %c8_257 = arith.constant 8 : index
    %c24_258 = arith.constant 24 : index
    %393 = vector.load %arg25[%c8_257, %c24_258] : memref<16x64xf32, #tpu.memory_space<vmem>>, vector<8x8xf32>
    %c8_259 = arith.constant 8 : index
    %c56_260 = arith.constant 56 : index
    %394 = vector.load %arg25[%c8_259, %c56_260] : memref<16x64xf32, #tpu.memory_space<vmem>>, vector<8x8xf32>
    %cst_261 = arith.constant dense<0.000000e+00> : vector<8x8xf32>
    %395 = tpu.matmul %392, %393, %cst_261 {dimension_numbers = #tpu.dot_dimension_numbers<[1], [1], [0], [0], [0, 0, 1, 0], [], []>} : vector<8x8xf32>, vector<8x8xf32>, vector<8x8xf32> -> vector<8x8xf32>
    %cst_262 = arith.constant 0.000000e+00 : f32
    %396 = vector.broadcast %cst_262 : f32 to vector<1x8xf32>
    %397 = arith.cmpf oeq, %317, %396 : vector<1x8xf32>
    %cst_263 = arith.constant -1.000000e+20 : f32
    %398 = vector.shape_cast %397 : vector<1x8xi1> to vector<1x8xi1>
    %399 = vector.broadcast %398 : vector<1x8xi1> to vector<8x8xi1>
    %400 = vector.broadcast %cst_263 : f32 to vector<8x8xf32>
    %401 = arith.select %399, %400, %395 : vector<8x8xi1>, vector<8x8xf32>
    %cst_264 = arith.constant dense<0xFF800000> : vector<8xf32>
    %402 = vector.multi_reduction <maximumf>, %401, %cst_264 [1] : vector<8x8xf32> to vector<8xf32>
    %403 = vector.shape_cast %402 : vector<8xf32> to vector<8x1xf32>
    %404 = vector.broadcast %403 : vector<8x1xf32> to vector<8x8xf32>
    %405 = arith.subf %401, %404 : vector<8x8xf32>
    %406 = math.exp %405 : vector<8x8xf32>
    %cst_265 = arith.constant dense<0.000000e+00> : vector<8xf32>
    %407 = vector.multi_reduction <add>, %406, %cst_265 [1] : vector<8x8xf32> to vector<8xf32>
    %408 = vector.shape_cast %407 : vector<8xf32> to vector<8x1xf32>
    %409 = tpu.reciprocal %408 {approx = true} : vector<8x1xf32> -> vector<8x1xf32>
    %410 = vector.broadcast %409 : vector<8x1xf32> to vector<8x8xf32>
    %411 = arith.mulf %406, %410 : vector<8x8xf32>
    %cst_266 = arith.constant dense<0.000000e+00> : vector<8x8xf32>
    %412 = tpu.matmul %411, %394, %cst_266 {dimension_numbers = #tpu.dot_dimension_numbers<[1], [0], [0], [1], [0, 0, 1, 1], [], []>} : vector<8x8xf32>, vector<8x8xf32>, vector<8x8xf32> -> vector<8x8xf32>
    %c8_267 = arith.constant 8 : index
    %c24_268 = arith.constant 24 : index
    %413 = vector.load %arg26[%c8_267, %c24_268] : memref<16x32xf32, #tpu.memory_space<vmem>>, vector<8x8xf32>
    tpu.vector_store %arg26[%c8_267, %c24_268], %412 {strides = array<i32>} : memref<16x32xf32, #tpu.memory_space<vmem>>, vector<8x8xf32>,
    %c0_269 = arith.constant 0 : index
    %c0_270 = arith.constant 0 : index
    %414 = vector.load %arg26[%c0_269, %c0_270] : memref<16x32xf32, #tpu.memory_space<vmem>>, vector<16x32xf32>
    %c0_271 = arith.constant 0 : index
    %c0_272 = arith.constant 0 : index
    %415 = vector.load %arg11[%c0_271, %c0_272] : memref<32x32xf32, #tpu.memory_space<vmem>>, vector<32x32xf32>
    %cst_273 = arith.constant dense<0.000000e+00> : vector<16x32xf32>
    %416 = tpu.matmul %414, %415, %cst_273 {dimension_numbers = #tpu.dot_dimension_numbers<[1], [0], [0], [1], [0, 0, 1, 1], [], []>} : vector<16x32xf32>, vector<32x32xf32>, vector<16x32xf32> -> vector<16x32xf32>
    %c0_274 = arith.constant 0 : index
    %c0_275 = arith.constant 0 : index
    %417 = vector.load %arg12[%c0_274, %c0_275] : memref<1x32xf32, #tpu.memory_space<vmem>>, vector<1x32xf32>
    %418 = vector.broadcast %417 : vector<1x32xf32> to vector<16x32xf32>
    %419 = arith.addf %416, %418 : vector<16x32xf32>
    %420 = arith.addf %419, %212 : vector<16x32xf32>
    %c0_276 = arith.constant 0 : index
    %c0_277 = arith.constant 0 : index
    %421 = vector.load %arg13[%c0_276, %c0_277] : memref<1x32xf32, #tpu.memory_space<vmem>>, vector<1x32xf32>
    %c0_278 = arith.constant 0 : index
    %c0_279 = arith.constant 0 : index
    %422 = vector.load %arg14[%c0_278, %c0_279] : memref<1x32xf32, #tpu.memory_space<vmem>>, vector<1x32xf32>
    %cst_280 = arith.constant dense<0.000000e+00> : vector<16xf32>
    %423 = vector.multi_reduction <add>, %420, %cst_280 [1] : vector<16x32xf32> to vector<16xf32>
    %424 = vector.shape_cast %423 : vector<16xf32> to vector<16x1xf32>
    %cst_281 = arith.constant 3.200000e+01 : f32
    %425 = vector.broadcast %cst_281 : f32 to vector<16x1xf32>
    %426 = arith.divf %424, %425 : vector<16x1xf32>
    %427 = vector.broadcast %426 : vector<16x1xf32> to vector<16x32xf32>
    %428 = arith.subf %420, %427 : vector<16x32xf32>
    %429 = arith.mulf %428, %428 : vector<16x32xf32>
    %cst_282 = arith.constant dense<0.000000e+00> : vector<16xf32>
    %430 = vector.multi_reduction <add>, %429, %cst_282 [1] : vector<16x32xf32> to vector<16xf32>
    %431 = vector.shape_cast %430 : vector<16xf32> to vector<16x1xf32>
    %cst_283 = arith.constant 3.200000e+01 : f32
    %432 = vector.broadcast %cst_283 : f32 to vector<16x1xf32>
    %433 = arith.divf %431, %432 : vector<16x1xf32>
    %434 = vector.broadcast %426 : vector<16x1xf32> to vector<16x32xf32>
    %435 = arith.subf %420, %434 : vector<16x32xf32>
    %cst_284 = arith.constant 9.99999974E-6 : f32
    %436 = vector.broadcast %cst_284 : f32 to vector<16x1xf32>
    %437 = arith.addf %433, %436 : vector<16x1xf32>
    %438 = math.rsqrt %437 : vector<16x1xf32>
    %439 = vector.broadcast %438 : vector<16x1xf32> to vector<16x32xf32>
    %440 = arith.mulf %435, %439 : vector<16x32xf32>
    %441 = vector.broadcast %421 : vector<1x32xf32> to vector<16x32xf32>
    %442 = arith.mulf %440, %441 : vector<16x32xf32>
    %443 = vector.broadcast %422 : vector<1x32xf32> to vector<16x32xf32>
    %444 = arith.addf %442, %443 : vector<16x32xf32>
    %c0_285 = arith.constant 0 : index
    %c0_286 = arith.constant 0 : index
    %445 = vector.load %arg15[%c0_285, %c0_286] : memref<32x128xf32, #tpu.memory_space<vmem>>, vector<32x128xf32>
    %cst_287 = arith.constant dense<0.000000e+00> : vector<16x128xf32>
    %446 = tpu.matmul %444, %445, %cst_287 {dimension_numbers = #tpu.dot_dimension_numbers<[1], [0], [0], [1], [0, 0, 1, 1], [], []>} : vector<16x32xf32>, vector<32x128xf32>, vector<16x128xf32> -> vector<16x128xf32>
    %c0_288 = arith.constant 0 : index
    %c0_289 = arith.constant 0 : index
    %447 = vector.load %arg16[%c0_288, %c0_289] : memref<1x128xf32, #tpu.memory_space<vmem>>, vector<1x128xf32>
    %448 = vector.broadcast %447 : vector<1x128xf32> to vector<16x128xf32>
    %449 = arith.addf %446, %448 : vector<16x128xf32>
    %cst_290 = arith.constant 0.000000e+00 : f32
    %450 = vector.broadcast %cst_290 : f32 to vector<16x128xf32>
    %451 = arith.maximumf %449, %450 : vector<16x128xf32>
    %c0_291 = arith.constant 0 : index
    %c0_292 = arith.constant 0 : index
    %452 = vector.load %arg17[%c0_291, %c0_292] : memref<128x32xf32, #tpu.memory_space<vmem>>, vector<128x32xf32>
    %cst_293 = arith.constant dense<0.000000e+00> : vector<16x32xf32>
    %453 = tpu.matmul %451, %452, %cst_293 {dimension_numbers = #tpu.dot_dimension_numbers<[1], [0], [0], [1], [0, 0, 1, 1], [], []>} : vector<16x128xf32>, vector<128x32xf32>, vector<16x32xf32> -> vector<16x32xf32>
    %c0_294 = arith.constant 0 : index
    %c0_295 = arith.constant 0 : index
    %454 = vector.load %arg18[%c0_294, %c0_295] : memref<1x32xf32, #tpu.memory_space<vmem>>, vector<1x32xf32>
    %455 = vector.broadcast %454 : vector<1x32xf32> to vector<16x32xf32>
    %456 = arith.addf %453, %455 : vector<16x32xf32>
    %457 = arith.addf %456, %444 : vector<16x32xf32>
    %c0_296 = arith.constant 0 : index
    %c0_297 = arith.constant 0 : index
    %458 = vector.load %arg19[%c0_296, %c0_297] : memref<1x32xf32, #tpu.memory_space<vmem>>, vector<1x32xf32>
    %c0_298 = arith.constant 0 : index
    %c0_299 = arith.constant 0 : index
    %459 = vector.load %arg20[%c0_298, %c0_299] : memref<1x32xf32, #tpu.memory_space<vmem>>, vector<1x32xf32>
    %cst_300 = arith.constant dense<0.000000e+00> : vector<16xf32>
    %460 = vector.multi_reduction <add>, %457, %cst_300 [1] : vector<16x32xf32> to vector<16xf32>
    %461 = vector.shape_cast %460 : vector<16xf32> to vector<16x1xf32>
    %cst_301 = arith.constant 3.200000e+01 : f32
    %462 = vector.broadcast %cst_301 : f32 to vector<16x1xf32>
    %463 = arith.divf %461, %462 : vector<16x1xf32>
    %464 = vector.broadcast %463 : vector<16x1xf32> to vector<16x32xf32>
    %465 = arith.subf %457, %464 : vector<16x32xf32>
    %466 = arith.mulf %465, %465 : vector<16x32xf32>
    %cst_302 = arith.constant dense<0.000000e+00> : vector<16xf32>
    %467 = vector.multi_reduction <add>, %466, %cst_302 [1] : vector<16x32xf32> to vector<16xf32>
    %468 = vector.shape_cast %467 : vector<16xf32> to vector<16x1xf32>
    %cst_303 = arith.constant 3.200000e+01 : f32
    %469 = vector.broadcast %cst_303 : f32 to vector<16x1xf32>
    %470 = arith.divf %468, %469 : vector<16x1xf32>
    %471 = vector.broadcast %463 : vector<16x1xf32> to vector<16x32xf32>
    %472 = arith.subf %457, %471 : vector<16x32xf32>
    %cst_304 = arith.constant 9.99999974E-6 : f32
    %473 = vector.broadcast %cst_304 : f32 to vector<16x1xf32>
    %474 = arith.addf %470, %473 : vector<16x1xf32>
    %475 = math.rsqrt %474 : vector<16x1xf32>
    %476 = vector.broadcast %475 : vector<16x1xf32> to vector<16x32xf32>
    %477 = arith.mulf %472, %476 : vector<16x32xf32>
    %478 = vector.broadcast %458 : vector<1x32xf32> to vector<16x32xf32>
    %479 = arith.mulf %477, %478 : vector<16x32xf32>
    %480 = vector.broadcast %459 : vector<1x32xf32> to vector<16x32xf32>
    %481 = arith.addf %479, %480 : vector<16x32xf32>
    %c0_305 = arith.constant 0 : index
    %c0_306 = arith.constant 0 : index
    %482 = vector.load %arg21[%c0_305, %c0_306] : memref<16x32xf32, #tpu.memory_space<vmem>>, vector<16x32xf32>
    tpu.vector_store %arg21[%c0_305, %c0_306], %481 {strides = array<i32>} : memref<16x32xf32, #tpu.memory_space<vmem>>, vector<16x32xf32>,
    return
  }
}

module attributes {stable_mosaic.version = 11 : i64} {
  func.func @_out_proj_kernel(%arg0: memref<16x32xf32, #tpu.memory_space<vmem>>, %arg1: memref<32x128xf32, #tpu.memory_space<vmem>>, %arg2: memref<1x128xf32, #tpu.memory_space<vmem>>, %arg3: memref<16x128xf32, #tpu.memory_space<vmem>>) attributes {dimension_semantics = [], scalar_prefetch = 0 : i64, scratch_operands = 0 : i64, tpu.core_type = #tpu.core_type<tc>} {
    %c0 = arith.constant 0 : index
    %c0_0 = arith.constant 0 : index
    %0 = vector.load %arg0[%c0, %c0_0] : memref<16x32xf32, #tpu.memory_space<vmem>>, vector<16x32xf32>
    %c0_1 = arith.constant 0 : index
    %c0_2 = arith.constant 0 : index
    %1 = vector.load %arg1[%c0_1, %c0_2] : memref<32x128xf32, #tpu.memory_space<vmem>>, vector<32x128xf32>
    %cst = arith.constant dense<0.000000e+00> : vector<16x128xf32>
    %2 = tpu.matmul %0, %1, %cst {dimension_numbers = #tpu.dot_dimension_numbers<[1], [0], [0], [1], [0, 0, 1, 1], [], []>} : vector<16x32xf32>, vector<32x128xf32>, vector<16x128xf32> -> vector<16x128xf32>
    %c0_3 = arith.constant 0 : index
    %c0_4 = arith.constant 0 : index
    %3 = vector.load %arg2[%c0_3, %c0_4] : memref<1x128xf32, #tpu.memory_space<vmem>>, vector<1x128xf32>
    %4 = vector.broadcast %3 : vector<1x128xf32> to vector<16x128xf32>
    %5 = arith.addf %2, %4 : vector<16x128xf32>
    %c0_5 = arith.constant 0 : index
    %c0_6 = arith.constant 0 : index
    %6 = vector.load %arg3[%c0_5, %c0_6] : memref<16x128xf32, #tpu.memory_space<vmem>>, vector<16x128xf32>
    tpu.vector_store %arg3[%c0_5, %c0_6], %5 {strides = array<i32>} : memref<16x128xf32, #tpu.memory_space<vmem>>, vector<16x128xf32>,
    return
  }
}

module attributes {stable_mosaic.version = 11 : i64} {
  func.func @_dec_block_kernel(%arg0: memref<16x32xf32, #tpu.memory_space<vmem>>, %arg1: memref<16x32xf32, #tpu.memory_space<vmem>>, %arg2: memref<8x8xf32, #tpu.memory_space<vmem>>, %arg3: memref<2x8xf32, #tpu.memory_space<vmem>>, %arg4: memref<32x96xf32, #tpu.memory_space<vmem>>, %arg5: memref<32x32xf32, #tpu.memory_space<vmem>>, %arg6: memref<1x32xf32, #tpu.memory_space<vmem>>, %arg7: memref<1x32xf32, #tpu.memory_space<vmem>>, %arg8: memref<1x32xf32, #tpu.memory_space<vmem>>, %arg9: memref<32x32xf32, #tpu.memory_space<vmem>>, %arg10: memref<32x64xf32, #tpu.memory_space<vmem>>, %arg11: memref<32x32xf32, #tpu.memory_space<vmem>>, %arg12: memref<1x32xf32, #tpu.memory_space<vmem>>, %arg13: memref<1x32xf32, #tpu.memory_space<vmem>>, %arg14: memref<1x32xf32, #tpu.memory_space<vmem>>, %arg15: memref<32x128xf32, #tpu.memory_space<vmem>>, %arg16: memref<1x128xf32, #tpu.memory_space<vmem>>, %arg17: memref<128x32xf32, #tpu.memory_space<vmem>>, %arg18: memref<1x32xf32, #tpu.memory_space<vmem>>, %arg19: memref<1x32xf32, #tpu.memory_space<vmem>>, %arg20: memref<1x32xf32, #tpu.memory_space<vmem>>, %arg21: memref<16x32xf32, #tpu.memory_space<vmem>>, %arg22: memref<16x96xf32, #tpu.memory_space<vmem>>, %arg23: memref<16x32xf32, #tpu.memory_space<vmem>>, %arg24: memref<16x32xf32, #tpu.memory_space<vmem>>, %arg25: memref<16x64xf32, #tpu.memory_space<vmem>>, %arg26: memref<16x32xf32, #tpu.memory_space<vmem>>) attributes {dimension_semantics = [], scalar_prefetch = 0 : i64, scratch_operands = 5 : i64, tpu.core_type = #tpu.core_type<tc>} {
    %c0 = arith.constant 0 : index
    %c0_0 = arith.constant 0 : index
    %0 = vector.load %arg0[%c0, %c0_0] : memref<16x32xf32, #tpu.memory_space<vmem>>, vector<16x32xf32>
    %c0_1 = arith.constant 0 : index
    %c0_2 = arith.constant 0 : index
    %1 = vector.load %arg4[%c0_1, %c0_2] : memref<32x96xf32, #tpu.memory_space<vmem>>, vector<32x96xf32>
    %cst = arith.constant dense<0.000000e+00> : vector<16x96xf32>
    %2 = tpu.matmul %0, %1, %cst {dimension_numbers = #tpu.dot_dimension_numbers<[1], [0], [0], [1], [0, 0, 1, 1], [], []>} : vector<16x32xf32>, vector<32x96xf32>, vector<16x96xf32> -> vector<16x96xf32>
    %c0_3 = arith.constant 0 : index
    %c0_4 = arith.constant 0 : index
    %3 = vector.load %arg22[%c0_3, %c0_4] : memref<16x96xf32, #tpu.memory_space<vmem>>, vector<16x96xf32>
    tpu.vector_store %arg22[%c0_3, %c0_4], %2 {strides = array<i32>} : memref<16x96xf32, #tpu.memory_space<vmem>>, vector<16x96xf32>,
    %c0_5 = arith.constant 0 : index
    %c0_6 = arith.constant 0 : index
    %4 = vector.load %arg2[%c0_5, %c0_6] : memref<8x8xf32, #tpu.memory_space<vmem>>, vector<8x8xf32>
    %c0_7 = arith.constant 0 : index
    %c0_8 = arith.constant 0 : index
    %5 = vector.load %arg22[%c0_7, %c0_8] : memref<16x96xf32, #tpu.memory_space<vmem>>, vector<8x8xf32>
    %cst_9 = arith.constant 0.176776692 : f32
    %6 = vector.broadcast %cst_9 : f32 to vector<8x8xf32>
    %7 = arith.mulf %5, %6 : vector<8x8xf32>
    %c0_10 = arith.constant 0 : index
    %c32 = arith.constant 32 : index
    %8 = vector.load %arg22[%c0_10, %c32] : memref<16x96xf32, #tpu.memory_space<vmem>>, vector<8x8xf32>
    %c0_11 = arith.constant 0 : index
    %c64 = arith.constant 64 : index
    %9 = vector.load %arg22[%c0_11, %c64] : memref<16x96xf32, #tpu.memory_space<vmem>>, vector<8x8xf32>
    %cst_12 = arith.constant dense<0.000000e+00> : vector<8x8xf32>
    %10 = tpu.matmul %7, %8, %cst_12 {dimension_numbers = #tpu.dot_dimension_numbers<[1], [1], [0], [0], [0, 0, 1, 0], [], []>} : vector<8x8xf32>, vector<8x8xf32>, vector<8x8xf32> -> vector<8x8xf32>
    %cst_13 = arith.constant 0.000000e+00 : f32
    %11 = vector.broadcast %cst_13 : f32 to vector<8x8xf32>
    %12 = arith.cmpf oeq, %4, %11 : vector<8x8xf32>
    %cst_14 = arith.constant -1.000000e+20 : f32
    %13 = vector.broadcast %cst_14 : f32 to vector<8x8xf32>
    %14 = arith.select %12, %13, %10 : vector<8x8xi1>, vector<8x8xf32>
    %cst_15 = arith.constant dense<0xFF800000> : vector<8xf32>
    %15 = vector.multi_reduction <maximumf>, %14, %cst_15 [1] : vector<8x8xf32> to vector<8xf32>
    %16 = vector.shape_cast %15 : vector<8xf32> to vector<8x1xf32>
    %17 = vector.broadcast %16 : vector<8x1xf32> to vector<8x8xf32>
    %18 = arith.subf %14, %17 : vector<8x8xf32>
    %19 = math.exp %18 : vector<8x8xf32>
    %cst_16 = arith.constant dense<0.000000e+00> : vector<8xf32>
    %20 = vector.multi_reduction <add>, %19, %cst_16 [1] : vector<8x8xf32> to vector<8xf32>
    %21 = vector.shape_cast %20 : vector<8xf32> to vector<8x1xf32>
    %22 = tpu.reciprocal %21 {approx = true} : vector<8x1xf32> -> vector<8x1xf32>
    %23 = vector.broadcast %22 : vector<8x1xf32> to vector<8x8xf32>
    %24 = arith.mulf %19, %23 : vector<8x8xf32>
    %cst_17 = arith.constant dense<0.000000e+00> : vector<8x8xf32>
    %25 = tpu.matmul %24, %9, %cst_17 {dimension_numbers = #tpu.dot_dimension_numbers<[1], [0], [0], [1], [0, 0, 1, 1], [], []>} : vector<8x8xf32>, vector<8x8xf32>, vector<8x8xf32> -> vector<8x8xf32>
    %c0_18 = arith.constant 0 : index
    %c0_19 = arith.constant 0 : index
    %26 = vector.load %arg23[%c0_18, %c0_19] : memref<16x32xf32, #tpu.memory_space<vmem>>, vector<8x8xf32>
    tpu.vector_store %arg23[%c0_18, %c0_19], %25 {strides = array<i32>} : memref<16x32xf32, #tpu.memory_space<vmem>>, vector<8x8xf32>,
    %c0_20 = arith.constant 0 : index
    %c8 = arith.constant 8 : index
    %27 = vector.load %arg22[%c0_20, %c8] : memref<16x96xf32, #tpu.memory_space<vmem>>, vector<8x8xf32>
    %cst_21 = arith.constant 0.176776692 : f32
    %28 = vector.broadcast %cst_21 : f32 to vector<8x8xf32>
    %29 = arith.mulf %27, %28 : vector<8x8xf32>
    %c0_22 = arith.constant 0 : index
    %c40 = arith.constant 40 : index
    %30 = vector.load %arg22[%c0_22, %c40] : memref<16x96xf32, #tpu.memory_space<vmem>>, vector<8x8xf32>
    %c0_23 = arith.constant 0 : index
    %c72 = arith.constant 72 : index
    %31 = vector.load %arg22[%c0_23, %c72] : memref<16x96xf32, #tpu.memory_space<vmem>>, vector<8x8xf32>
    %cst_24 = arith.constant dense<0.000000e+00> : vector<8x8xf32>
    %32 = tpu.matmul %29, %30, %cst_24 {dimension_numbers = #tpu.dot_dimension_numbers<[1], [1], [0], [0], [0, 0, 1, 0], [], []>} : vector<8x8xf32>, vector<8x8xf32>, vector<8x8xf32> -> vector<8x8xf32>
    %cst_25 = arith.constant 0.000000e+00 : f32
    %33 = vector.broadcast %cst_25 : f32 to vector<8x8xf32>
    %34 = arith.cmpf oeq, %4, %33 : vector<8x8xf32>
    %cst_26 = arith.constant -1.000000e+20 : f32
    %35 = vector.broadcast %cst_26 : f32 to vector<8x8xf32>
    %36 = arith.select %34, %35, %32 : vector<8x8xi1>, vector<8x8xf32>
    %cst_27 = arith.constant dense<0xFF800000> : vector<8xf32>
    %37 = vector.multi_reduction <maximumf>, %36, %cst_27 [1] : vector<8x8xf32> to vector<8xf32>
    %38 = vector.shape_cast %37 : vector<8xf32> to vector<8x1xf32>
    %39 = vector.broadcast %38 : vector<8x1xf32> to vector<8x8xf32>
    %40 = arith.subf %36, %39 : vector<8x8xf32>
    %41 = math.exp %40 : vector<8x8xf32>
    %cst_28 = arith.constant dense<0.000000e+00> : vector<8xf32>
    %42 = vector.multi_reduction <add>, %41, %cst_28 [1] : vector<8x8xf32> to vector<8xf32>
    %43 = vector.shape_cast %42 : vector<8xf32> to vector<8x1xf32>
    %44 = tpu.reciprocal %43 {approx = true} : vector<8x1xf32> -> vector<8x1xf32>
    %45 = vector.broadcast %44 : vector<8x1xf32> to vector<8x8xf32>
    %46 = arith.mulf %41, %45 : vector<8x8xf32>
    %cst_29 = arith.constant dense<0.000000e+00> : vector<8x8xf32>
    %47 = tpu.matmul %46, %31, %cst_29 {dimension_numbers = #tpu.dot_dimension_numbers<[1], [0], [0], [1], [0, 0, 1, 1], [], []>} : vector<8x8xf32>, vector<8x8xf32>, vector<8x8xf32> -> vector<8x8xf32>
    %c0_30 = arith.constant 0 : index
    %c8_31 = arith.constant 8 : index
    %48 = vector.load %arg23[%c0_30, %c8_31] : memref<16x32xf32, #tpu.memory_space<vmem>>, vector<8x8xf32>
    tpu.vector_store %arg23[%c0_30, %c8_31], %47 {strides = array<i32>} : memref<16x32xf32, #tpu.memory_space<vmem>>, vector<8x8xf32>,
    %c0_32 = arith.constant 0 : index
    %c16 = arith.constant 16 : index
    %49 = vector.load %arg22[%c0_32, %c16] : memref<16x96xf32, #tpu.memory_space<vmem>>, vector<8x8xf32>
    %cst_33 = arith.constant 0.176776692 : f32
    %50 = vector.broadcast %cst_33 : f32 to vector<8x8xf32>
    %51 = arith.mulf %49, %50 : vector<8x8xf32>
    %c0_34 = arith.constant 0 : index
    %c48 = arith.constant 48 : index
    %52 = vector.load %arg22[%c0_34, %c48] : memref<16x96xf32, #tpu.memory_space<vmem>>, vector<8x8xf32>
    %c0_35 = arith.constant 0 : index
    %c80 = arith.constant 80 : index
    %53 = vector.load %arg22[%c0_35, %c80] : memref<16x96xf32, #tpu.memory_space<vmem>>, vector<8x8xf32>
    %cst_36 = arith.constant dense<0.000000e+00> : vector<8x8xf32>
    %54 = tpu.matmul %51, %52, %cst_36 {dimension_numbers = #tpu.dot_dimension_numbers<[1], [1], [0], [0], [0, 0, 1, 0], [], []>} : vector<8x8xf32>, vector<8x8xf32>, vector<8x8xf32> -> vector<8x8xf32>
    %cst_37 = arith.constant 0.000000e+00 : f32
    %55 = vector.broadcast %cst_37 : f32 to vector<8x8xf32>
    %56 = arith.cmpf oeq, %4, %55 : vector<8x8xf32>
    %cst_38 = arith.constant -1.000000e+20 : f32
    %57 = vector.broadcast %cst_38 : f32 to vector<8x8xf32>
    %58 = arith.select %56, %57, %54 : vector<8x8xi1>, vector<8x8xf32>
    %cst_39 = arith.constant dense<0xFF800000> : vector<8xf32>
    %59 = vector.multi_reduction <maximumf>, %58, %cst_39 [1] : vector<8x8xf32> to vector<8xf32>
    %60 = vector.shape_cast %59 : vector<8xf32> to vector<8x1xf32>
    %61 = vector.broadcast %60 : vector<8x1xf32> to vector<8x8xf32>
    %62 = arith.subf %58, %61 : vector<8x8xf32>
    %63 = math.exp %62 : vector<8x8xf32>
    %cst_40 = arith.constant dense<0.000000e+00> : vector<8xf32>
    %64 = vector.multi_reduction <add>, %63, %cst_40 [1] : vector<8x8xf32> to vector<8xf32>
    %65 = vector.shape_cast %64 : vector<8xf32> to vector<8x1xf32>
    %66 = tpu.reciprocal %65 {approx = true} : vector<8x1xf32> -> vector<8x1xf32>
    %67 = vector.broadcast %66 : vector<8x1xf32> to vector<8x8xf32>
    %68 = arith.mulf %63, %67 : vector<8x8xf32>
    %cst_41 = arith.constant dense<0.000000e+00> : vector<8x8xf32>
    %69 = tpu.matmul %68, %53, %cst_41 {dimension_numbers = #tpu.dot_dimension_numbers<[1], [0], [0], [1], [0, 0, 1, 1], [], []>} : vector<8x8xf32>, vector<8x8xf32>, vector<8x8xf32> -> vector<8x8xf32>
    %c0_42 = arith.constant 0 : index
    %c16_43 = arith.constant 16 : index
    %70 = vector.load %arg23[%c0_42, %c16_43] : memref<16x32xf32, #tpu.memory_space<vmem>>, vector<8x8xf32>
    tpu.vector_store %arg23[%c0_42, %c16_43], %69 {strides = array<i32>} : memref<16x32xf32, #tpu.memory_space<vmem>>, vector<8x8xf32>,
    %c0_44 = arith.constant 0 : index
    %c24 = arith.constant 24 : index
    %71 = vector.load %arg22[%c0_44, %c24] : memref<16x96xf32, #tpu.memory_space<vmem>>, vector<8x8xf32>
    %cst_45 = arith.constant 0.176776692 : f32
    %72 = vector.broadcast %cst_45 : f32 to vector<8x8xf32>
    %73 = arith.mulf %71, %72 : vector<8x8xf32>
    %c0_46 = arith.constant 0 : index
    %c56 = arith.constant 56 : index
    %74 = vector.load %arg22[%c0_46, %c56] : memref<16x96xf32, #tpu.memory_space<vmem>>, vector<8x8xf32>
    %c0_47 = arith.constant 0 : index
    %c88 = arith.constant 88 : index
    %75 = vector.load %arg22[%c0_47, %c88] : memref<16x96xf32, #tpu.memory_space<vmem>>, vector<8x8xf32>
    %cst_48 = arith.constant dense<0.000000e+00> : vector<8x8xf32>
    %76 = tpu.matmul %73, %74, %cst_48 {dimension_numbers = #tpu.dot_dimension_numbers<[1], [1], [0], [0], [0, 0, 1, 0], [], []>} : vector<8x8xf32>, vector<8x8xf32>, vector<8x8xf32> -> vector<8x8xf32>
    %cst_49 = arith.constant 0.000000e+00 : f32
    %77 = vector.broadcast %cst_49 : f32 to vector<8x8xf32>
    %78 = arith.cmpf oeq, %4, %77 : vector<8x8xf32>
    %cst_50 = arith.constant -1.000000e+20 : f32
    %79 = vector.broadcast %cst_50 : f32 to vector<8x8xf32>
    %80 = arith.select %78, %79, %76 : vector<8x8xi1>, vector<8x8xf32>
    %cst_51 = arith.constant dense<0xFF800000> : vector<8xf32>
    %81 = vector.multi_reduction <maximumf>, %80, %cst_51 [1] : vector<8x8xf32> to vector<8xf32>
    %82 = vector.shape_cast %81 : vector<8xf32> to vector<8x1xf32>
    %83 = vector.broadcast %82 : vector<8x1xf32> to vector<8x8xf32>
    %84 = arith.subf %80, %83 : vector<8x8xf32>
    %85 = math.exp %84 : vector<8x8xf32>
    %cst_52 = arith.constant dense<0.000000e+00> : vector<8xf32>
    %86 = vector.multi_reduction <add>, %85, %cst_52 [1] : vector<8x8xf32> to vector<8xf32>
    %87 = vector.shape_cast %86 : vector<8xf32> to vector<8x1xf32>
    %88 = tpu.reciprocal %87 {approx = true} : vector<8x1xf32> -> vector<8x1xf32>
    %89 = vector.broadcast %88 : vector<8x1xf32> to vector<8x8xf32>
    %90 = arith.mulf %85, %89 : vector<8x8xf32>
    %cst_53 = arith.constant dense<0.000000e+00> : vector<8x8xf32>
    %91 = tpu.matmul %90, %75, %cst_53 {dimension_numbers = #tpu.dot_dimension_numbers<[1], [0], [0], [1], [0, 0, 1, 1], [], []>} : vector<8x8xf32>, vector<8x8xf32>, vector<8x8xf32> -> vector<8x8xf32>
    %c0_54 = arith.constant 0 : index
    %c24_55 = arith.constant 24 : index
    %92 = vector.load %arg23[%c0_54, %c24_55] : memref<16x32xf32, #tpu.memory_space<vmem>>, vector<8x8xf32>
    tpu.vector_store %arg23[%c0_54, %c24_55], %91 {strides = array<i32>} : memref<16x32xf32, #tpu.memory_space<vmem>>, vector<8x8xf32>,
    %c0_56 = arith.constant 0 : index
    %c0_57 = arith.constant 0 : index
    %93 = vector.load %arg2[%c0_56, %c0_57] : memref<8x8xf32, #tpu.memory_space<vmem>>, vector<8x8xf32>
    %c8_58 = arith.constant 8 : index
    %c0_59 = arith.constant 0 : index
    %94 = vector.load %arg22[%c8_58, %c0_59] : memref<16x96xf32, #tpu.memory_space<vmem>>, vector<8x8xf32>
    %cst_60 = arith.constant 0.176776692 : f32
    %95 = vector.broadcast %cst_60 : f32 to vector<8x8xf32>
    %96 = arith.mulf %94, %95 : vector<8x8xf32>
    %c8_61 = arith.constant 8 : index
    %c32_62 = arith.constant 32 : index
    %97 = vector.load %arg22[%c8_61, %c32_62] : memref<16x96xf32, #tpu.memory_space<vmem>>, vector<8x8xf32>
    %c8_63 = arith.constant 8 : index
    %c64_64 = arith.constant 64 : index
    %98 = vector.load %arg22[%c8_63, %c64_64] : memref<16x96xf32, #tpu.memory_space<vmem>>, vector<8x8xf32>
    %cst_65 = arith.constant dense<0.000000e+00> : vector<8x8xf32>
    %99 = tpu.matmul %96, %97, %cst_65 {dimension_numbers = #tpu.dot_dimension_numbers<[1], [1], [0], [0], [0, 0, 1, 0], [], []>} : vector<8x8xf32>, vector<8x8xf32>, vector<8x8xf32> -> vector<8x8xf32>
    %cst_66 = arith.constant 0.000000e+00 : f32
    %100 = vector.broadcast %cst_66 : f32 to vector<8x8xf32>
    %101 = arith.cmpf oeq, %93, %100 : vector<8x8xf32>
    %cst_67 = arith.constant -1.000000e+20 : f32
    %102 = vector.broadcast %cst_67 : f32 to vector<8x8xf32>
    %103 = arith.select %101, %102, %99 : vector<8x8xi1>, vector<8x8xf32>
    %cst_68 = arith.constant dense<0xFF800000> : vector<8xf32>
    %104 = vector.multi_reduction <maximumf>, %103, %cst_68 [1] : vector<8x8xf32> to vector<8xf32>
    %105 = vector.shape_cast %104 : vector<8xf32> to vector<8x1xf32>
    %106 = vector.broadcast %105 : vector<8x1xf32> to vector<8x8xf32>
    %107 = arith.subf %103, %106 : vector<8x8xf32>
    %108 = math.exp %107 : vector<8x8xf32>
    %cst_69 = arith.constant dense<0.000000e+00> : vector<8xf32>
    %109 = vector.multi_reduction <add>, %108, %cst_69 [1] : vector<8x8xf32> to vector<8xf32>
    %110 = vector.shape_cast %109 : vector<8xf32> to vector<8x1xf32>
    %111 = tpu.reciprocal %110 {approx = true} : vector<8x1xf32> -> vector<8x1xf32>
    %112 = vector.broadcast %111 : vector<8x1xf32> to vector<8x8xf32>
    %113 = arith.mulf %108, %112 : vector<8x8xf32>
    %cst_70 = arith.constant dense<0.000000e+00> : vector<8x8xf32>
    %114 = tpu.matmul %113, %98, %cst_70 {dimension_numbers = #tpu.dot_dimension_numbers<[1], [0], [0], [1], [0, 0, 1, 1], [], []>} : vector<8x8xf32>, vector<8x8xf32>, vector<8x8xf32> -> vector<8x8xf32>
    %c8_71 = arith.constant 8 : index
    %c0_72 = arith.constant 0 : index
    %115 = vector.load %arg23[%c8_71, %c0_72] : memref<16x32xf32, #tpu.memory_space<vmem>>, vector<8x8xf32>
    tpu.vector_store %arg23[%c8_71, %c0_72], %114 {strides = array<i32>} : memref<16x32xf32, #tpu.memory_space<vmem>>, vector<8x8xf32>,
    %c8_73 = arith.constant 8 : index
    %c8_74 = arith.constant 8 : index
    %116 = vector.load %arg22[%c8_73, %c8_74] : memref<16x96xf32, #tpu.memory_space<vmem>>, vector<8x8xf32>
    %cst_75 = arith.constant 0.176776692 : f32
    %117 = vector.broadcast %cst_75 : f32 to vector<8x8xf32>
    %118 = arith.mulf %116, %117 : vector<8x8xf32>
    %c8_76 = arith.constant 8 : index
    %c40_77 = arith.constant 40 : index
    %119 = vector.load %arg22[%c8_76, %c40_77] : memref<16x96xf32, #tpu.memory_space<vmem>>, vector<8x8xf32>
    %c8_78 = arith.constant 8 : index
    %c72_79 = arith.constant 72 : index
    %120 = vector.load %arg22[%c8_78, %c72_79] : memref<16x96xf32, #tpu.memory_space<vmem>>, vector<8x8xf32>
    %cst_80 = arith.constant dense<0.000000e+00> : vector<8x8xf32>
    %121 = tpu.matmul %118, %119, %cst_80 {dimension_numbers = #tpu.dot_dimension_numbers<[1], [1], [0], [0], [0, 0, 1, 0], [], []>} : vector<8x8xf32>, vector<8x8xf32>, vector<8x8xf32> -> vector<8x8xf32>
    %cst_81 = arith.constant 0.000000e+00 : f32
    %122 = vector.broadcast %cst_81 : f32 to vector<8x8xf32>
    %123 = arith.cmpf oeq, %93, %122 : vector<8x8xf32>
    %cst_82 = arith.constant -1.000000e+20 : f32
    %124 = vector.broadcast %cst_82 : f32 to vector<8x8xf32>
    %125 = arith.select %123, %124, %121 : vector<8x8xi1>, vector<8x8xf32>
    %cst_83 = arith.constant dense<0xFF800000> : vector<8xf32>
    %126 = vector.multi_reduction <maximumf>, %125, %cst_83 [1] : vector<8x8xf32> to vector<8xf32>
    %127 = vector.shape_cast %126 : vector<8xf32> to vector<8x1xf32>
    %128 = vector.broadcast %127 : vector<8x1xf32> to vector<8x8xf32>
    %129 = arith.subf %125, %128 : vector<8x8xf32>
    %130 = math.exp %129 : vector<8x8xf32>
    %cst_84 = arith.constant dense<0.000000e+00> : vector<8xf32>
    %131 = vector.multi_reduction <add>, %130, %cst_84 [1] : vector<8x8xf32> to vector<8xf32>
    %132 = vector.shape_cast %131 : vector<8xf32> to vector<8x1xf32>
    %133 = tpu.reciprocal %132 {approx = true} : vector<8x1xf32> -> vector<8x1xf32>
    %134 = vector.broadcast %133 : vector<8x1xf32> to vector<8x8xf32>
    %135 = arith.mulf %130, %134 : vector<8x8xf32>
    %cst_85 = arith.constant dense<0.000000e+00> : vector<8x8xf32>
    %136 = tpu.matmul %135, %120, %cst_85 {dimension_numbers = #tpu.dot_dimension_numbers<[1], [0], [0], [1], [0, 0, 1, 1], [], []>} : vector<8x8xf32>, vector<8x8xf32>, vector<8x8xf32> -> vector<8x8xf32>
    %c8_86 = arith.constant 8 : index
    %c8_87 = arith.constant 8 : index
    %137 = vector.load %arg23[%c8_86, %c8_87] : memref<16x32xf32, #tpu.memory_space<vmem>>, vector<8x8xf32>
    tpu.vector_store %arg23[%c8_86, %c8_87], %136 {strides = array<i32>} : memref<16x32xf32, #tpu.memory_space<vmem>>, vector<8x8xf32>,
    %c8_88 = arith.constant 8 : index
    %c16_89 = arith.constant 16 : index
    %138 = vector.load %arg22[%c8_88, %c16_89] : memref<16x96xf32, #tpu.memory_space<vmem>>, vector<8x8xf32>
    %cst_90 = arith.constant 0.176776692 : f32
    %139 = vector.broadcast %cst_90 : f32 to vector<8x8xf32>
    %140 = arith.mulf %138, %139 : vector<8x8xf32>
    %c8_91 = arith.constant 8 : index
    %c48_92 = arith.constant 48 : index
    %141 = vector.load %arg22[%c8_91, %c48_92] : memref<16x96xf32, #tpu.memory_space<vmem>>, vector<8x8xf32>
    %c8_93 = arith.constant 8 : index
    %c80_94 = arith.constant 80 : index
    %142 = vector.load %arg22[%c8_93, %c80_94] : memref<16x96xf32, #tpu.memory_space<vmem>>, vector<8x8xf32>
    %cst_95 = arith.constant dense<0.000000e+00> : vector<8x8xf32>
    %143 = tpu.matmul %140, %141, %cst_95 {dimension_numbers = #tpu.dot_dimension_numbers<[1], [1], [0], [0], [0, 0, 1, 0], [], []>} : vector<8x8xf32>, vector<8x8xf32>, vector<8x8xf32> -> vector<8x8xf32>
    %cst_96 = arith.constant 0.000000e+00 : f32
    %144 = vector.broadcast %cst_96 : f32 to vector<8x8xf32>
    %145 = arith.cmpf oeq, %93, %144 : vector<8x8xf32>
    %cst_97 = arith.constant -1.000000e+20 : f32
    %146 = vector.broadcast %cst_97 : f32 to vector<8x8xf32>
    %147 = arith.select %145, %146, %143 : vector<8x8xi1>, vector<8x8xf32>
    %cst_98 = arith.constant dense<0xFF800000> : vector<8xf32>
    %148 = vector.multi_reduction <maximumf>, %147, %cst_98 [1] : vector<8x8xf32> to vector<8xf32>
    %149 = vector.shape_cast %148 : vector<8xf32> to vector<8x1xf32>
    %150 = vector.broadcast %149 : vector<8x1xf32> to vector<8x8xf32>
    %151 = arith.subf %147, %150 : vector<8x8xf32>
    %152 = math.exp %151 : vector<8x8xf32>
    %cst_99 = arith.constant dense<0.000000e+00> : vector<8xf32>
    %153 = vector.multi_reduction <add>, %152, %cst_99 [1] : vector<8x8xf32> to vector<8xf32>
    %154 = vector.shape_cast %153 : vector<8xf32> to vector<8x1xf32>
    %155 = tpu.reciprocal %154 {approx = true} : vector<8x1xf32> -> vector<8x1xf32>
    %156 = vector.broadcast %155 : vector<8x1xf32> to vector<8x8xf32>
    %157 = arith.mulf %152, %156 : vector<8x8xf32>
    %cst_100 = arith.constant dense<0.000000e+00> : vector<8x8xf32>
    %158 = tpu.matmul %157, %142, %cst_100 {dimension_numbers = #tpu.dot_dimension_numbers<[1], [0], [0], [1], [0, 0, 1, 1], [], []>} : vector<8x8xf32>, vector<8x8xf32>, vector<8x8xf32> -> vector<8x8xf32>
    %c8_101 = arith.constant 8 : index
    %c16_102 = arith.constant 16 : index
    %159 = vector.load %arg23[%c8_101, %c16_102] : memref<16x32xf32, #tpu.memory_space<vmem>>, vector<8x8xf32>
    tpu.vector_store %arg23[%c8_101, %c16_102], %158 {strides = array<i32>} : memref<16x32xf32, #tpu.memory_space<vmem>>, vector<8x8xf32>,
    %c8_103 = arith.constant 8 : index
    %c24_104 = arith.constant 24 : index
    %160 = vector.load %arg22[%c8_103, %c24_104] : memref<16x96xf32, #tpu.memory_space<vmem>>, vector<8x8xf32>
    %cst_105 = arith.constant 0.176776692 : f32
    %161 = vector.broadcast %cst_105 : f32 to vector<8x8xf32>
    %162 = arith.mulf %160, %161 : vector<8x8xf32>
    %c8_106 = arith.constant 8 : index
    %c56_107 = arith.constant 56 : index
    %163 = vector.load %arg22[%c8_106, %c56_107] : memref<16x96xf32, #tpu.memory_space<vmem>>, vector<8x8xf32>
    %c8_108 = arith.constant 8 : index
    %c88_109 = arith.constant 88 : index
    %164 = vector.load %arg22[%c8_108, %c88_109] : memref<16x96xf32, #tpu.memory_space<vmem>>, vector<8x8xf32>
    %cst_110 = arith.constant dense<0.000000e+00> : vector<8x8xf32>
    %165 = tpu.matmul %162, %163, %cst_110 {dimension_numbers = #tpu.dot_dimension_numbers<[1], [1], [0], [0], [0, 0, 1, 0], [], []>} : vector<8x8xf32>, vector<8x8xf32>, vector<8x8xf32> -> vector<8x8xf32>
    %cst_111 = arith.constant 0.000000e+00 : f32
    %166 = vector.broadcast %cst_111 : f32 to vector<8x8xf32>
    %167 = arith.cmpf oeq, %93, %166 : vector<8x8xf32>
    %cst_112 = arith.constant -1.000000e+20 : f32
    %168 = vector.broadcast %cst_112 : f32 to vector<8x8xf32>
    %169 = arith.select %167, %168, %165 : vector<8x8xi1>, vector<8x8xf32>
    %cst_113 = arith.constant dense<0xFF800000> : vector<8xf32>
    %170 = vector.multi_reduction <maximumf>, %169, %cst_113 [1] : vector<8x8xf32> to vector<8xf32>
    %171 = vector.shape_cast %170 : vector<8xf32> to vector<8x1xf32>
    %172 = vector.broadcast %171 : vector<8x1xf32> to vector<8x8xf32>
    %173 = arith.subf %169, %172 : vector<8x8xf32>
    %174 = math.exp %173 : vector<8x8xf32>
    %cst_114 = arith.constant dense<0.000000e+00> : vector<8xf32>
    %175 = vector.multi_reduction <add>, %174, %cst_114 [1] : vector<8x8xf32> to vector<8xf32>
    %176 = vector.shape_cast %175 : vector<8xf32> to vector<8x1xf32>
    %177 = tpu.reciprocal %176 {approx = true} : vector<8x1xf32> -> vector<8x1xf32>
    %178 = vector.broadcast %177 : vector<8x1xf32> to vector<8x8xf32>
    %179 = arith.mulf %174, %178 : vector<8x8xf32>
    %cst_115 = arith.constant dense<0.000000e+00> : vector<8x8xf32>
    %180 = tpu.matmul %179, %164, %cst_115 {dimension_numbers = #tpu.dot_dimension_numbers<[1], [0], [0], [1], [0, 0, 1, 1], [], []>} : vector<8x8xf32>, vector<8x8xf32>, vector<8x8xf32> -> vector<8x8xf32>
    %c8_116 = arith.constant 8 : index
    %c24_117 = arith.constant 24 : index
    %181 = vector.load %arg23[%c8_116, %c24_117] : memref<16x32xf32, #tpu.memory_space<vmem>>, vector<8x8xf32>
    tpu.vector_store %arg23[%c8_116, %c24_117], %180 {strides = array<i32>} : memref<16x32xf32, #tpu.memory_space<vmem>>, vector<8x8xf32>,
    %c0_118 = arith.constant 0 : index
    %c0_119 = arith.constant 0 : index
    %182 = vector.load %arg23[%c0_118, %c0_119] : memref<16x32xf32, #tpu.memory_space<vmem>>, vector<16x32xf32>
    %c0_120 = arith.constant 0 : index
    %c0_121 = arith.constant 0 : index
    %183 = vector.load %arg5[%c0_120, %c0_121] : memref<32x32xf32, #tpu.memory_space<vmem>>, vector<32x32xf32>
    %cst_122 = arith.constant dense<0.000000e+00> : vector<16x32xf32>
    %184 = tpu.matmul %182, %183, %cst_122 {dimension_numbers = #tpu.dot_dimension_numbers<[1], [0], [0], [1], [0, 0, 1, 1], [], []>} : vector<16x32xf32>, vector<32x32xf32>, vector<16x32xf32> -> vector<16x32xf32>
    %c0_123 = arith.constant 0 : index
    %c0_124 = arith.constant 0 : index
    %185 = vector.load %arg6[%c0_123, %c0_124] : memref<1x32xf32, #tpu.memory_space<vmem>>, vector<1x32xf32>
    %186 = vector.broadcast %185 : vector<1x32xf32> to vector<16x32xf32>
    %187 = arith.addf %184, %186 : vector<16x32xf32>
    %188 = arith.addf %187, %0 : vector<16x32xf32>
    %c0_125 = arith.constant 0 : index
    %c0_126 = arith.constant 0 : index
    %189 = vector.load %arg7[%c0_125, %c0_126] : memref<1x32xf32, #tpu.memory_space<vmem>>, vector<1x32xf32>
    %c0_127 = arith.constant 0 : index
    %c0_128 = arith.constant 0 : index
    %190 = vector.load %arg8[%c0_127, %c0_128] : memref<1x32xf32, #tpu.memory_space<vmem>>, vector<1x32xf32>
    %cst_129 = arith.constant dense<0.000000e+00> : vector<16xf32>
    %191 = vector.multi_reduction <add>, %188, %cst_129 [1] : vector<16x32xf32> to vector<16xf32>
    %192 = vector.shape_cast %191 : vector<16xf32> to vector<16x1xf32>
    %cst_130 = arith.constant 3.200000e+01 : f32
    %193 = vector.broadcast %cst_130 : f32 to vector<16x1xf32>
    %194 = arith.divf %192, %193 : vector<16x1xf32>
    %195 = vector.broadcast %194 : vector<16x1xf32> to vector<16x32xf32>
    %196 = arith.subf %188, %195 : vector<16x32xf32>
    %197 = arith.mulf %196, %196 : vector<16x32xf32>
    %cst_131 = arith.constant dense<0.000000e+00> : vector<16xf32>
    %198 = vector.multi_reduction <add>, %197, %cst_131 [1] : vector<16x32xf32> to vector<16xf32>
    %199 = vector.shape_cast %198 : vector<16xf32> to vector<16x1xf32>
    %cst_132 = arith.constant 3.200000e+01 : f32
    %200 = vector.broadcast %cst_132 : f32 to vector<16x1xf32>
    %201 = arith.divf %199, %200 : vector<16x1xf32>
    %202 = vector.broadcast %194 : vector<16x1xf32> to vector<16x32xf32>
    %203 = arith.subf %188, %202 : vector<16x32xf32>
    %cst_133 = arith.constant 9.99999974E-6 : f32
    %204 = vector.broadcast %cst_133 : f32 to vector<16x1xf32>
    %205 = arith.addf %201, %204 : vector<16x1xf32>
    %206 = math.rsqrt %205 : vector<16x1xf32>
    %207 = vector.broadcast %206 : vector<16x1xf32> to vector<16x32xf32>
    %208 = arith.mulf %203, %207 : vector<16x32xf32>
    %209 = vector.broadcast %189 : vector<1x32xf32> to vector<16x32xf32>
    %210 = arith.mulf %208, %209 : vector<16x32xf32>
    %211 = vector.broadcast %190 : vector<1x32xf32> to vector<16x32xf32>
    %212 = arith.addf %210, %211 : vector<16x32xf32>
    %c0_134 = arith.constant 0 : index
    %c0_135 = arith.constant 0 : index
    %213 = vector.load %arg1[%c0_134, %c0_135] : memref<16x32xf32, #tpu.memory_space<vmem>>, vector<16x32xf32>
    %c0_136 = arith.constant 0 : index
    %c0_137 = arith.constant 0 : index
    %214 = vector.load %arg9[%c0_136, %c0_137] : memref<32x32xf32, #tpu.memory_space<vmem>>, vector<32x32xf32>
    %cst_138 = arith.constant dense<0.000000e+00> : vector<16x32xf32>
    %215 = tpu.matmul %212, %214, %cst_138 {dimension_numbers = #tpu.dot_dimension_numbers<[1], [0], [0], [1], [0, 0, 1, 1], [], []>} : vector<16x32xf32>, vector<32x32xf32>, vector<16x32xf32> -> vector<16x32xf32>
    %c0_139 = arith.constant 0 : index
    %c0_140 = arith.constant 0 : index
    %216 = vector.load %arg24[%c0_139, %c0_140] : memref<16x32xf32, #tpu.memory_space<vmem>>, vector<16x32xf32>
    tpu.vector_store %arg24[%c0_139, %c0_140], %215 {strides = array<i32>} : memref<16x32xf32, #tpu.memory_space<vmem>>, vector<16x32xf32>,
    %c0_141 = arith.constant 0 : index
    %c0_142 = arith.constant 0 : index
    %217 = vector.load %arg10[%c0_141, %c0_142] : memref<32x64xf32, #tpu.memory_space<vmem>>, vector<32x64xf32>
    %cst_143 = arith.constant dense<0.000000e+00> : vector<16x64xf32>
    %218 = tpu.matmul %213, %217, %cst_143 {dimension_numbers = #tpu.dot_dimension_numbers<[1], [0], [0], [1], [0, 0, 1, 1], [], []>} : vector<16x32xf32>, vector<32x64xf32>, vector<16x64xf32> -> vector<16x64xf32>
    %c0_144 = arith.constant 0 : index
    %c0_145 = arith.constant 0 : index
    %219 = vector.load %arg25[%c0_144, %c0_145] : memref<16x64xf32, #tpu.memory_space<vmem>>, vector<16x64xf32>
    tpu.vector_store %arg25[%c0_144, %c0_145], %218 {strides = array<i32>} : memref<16x64xf32, #tpu.memory_space<vmem>>, vector<16x64xf32>,
    %c0_146 = arith.constant 0 : index
    %c0_147 = arith.constant 0 : index
    %220 = vector.load %arg3[%c0_146, %c0_147] : memref<2x8xf32, #tpu.memory_space<vmem>>, vector<1x8xf32>
    %c0_148 = arith.constant 0 : index
    %c0_149 = arith.constant 0 : index
    %221 = vector.load %arg24[%c0_148, %c0_149] : memref<16x32xf32, #tpu.memory_space<vmem>>, vector<8x8xf32>
    %cst_150 = arith.constant 0.176776692 : f32
    %222 = vector.broadcast %cst_150 : f32 to vector<8x8xf32>
    %223 = arith.mulf %221, %222 : vector<8x8xf32>
    %c0_151 = arith.constant 0 : index
    %c0_152 = arith.constant 0 : index
    %224 = vector.load %arg25[%c0_151, %c0_152] : memref<16x64xf32, #tpu.memory_space<vmem>>, vector<8x8xf32>
    %c0_153 = arith.constant 0 : index
    %c32_154 = arith.constant 32 : index
    %225 = vector.load %arg25[%c0_153, %c32_154] : memref<16x64xf32, #tpu.memory_space<vmem>>, vector<8x8xf32>
    %cst_155 = arith.constant dense<0.000000e+00> : vector<8x8xf32>
    %226 = tpu.matmul %223, %224, %cst_155 {dimension_numbers = #tpu.dot_dimension_numbers<[1], [1], [0], [0], [0, 0, 1, 0], [], []>} : vector<8x8xf32>, vector<8x8xf32>, vector<8x8xf32> -> vector<8x8xf32>
    %cst_156 = arith.constant 0.000000e+00 : f32
    %227 = vector.broadcast %cst_156 : f32 to vector<1x8xf32>
    %228 = arith.cmpf oeq, %220, %227 : vector<1x8xf32>
    %cst_157 = arith.constant -1.000000e+20 : f32
    %229 = vector.shape_cast %228 : vector<1x8xi1> to vector<1x8xi1>
    %230 = vector.broadcast %229 : vector<1x8xi1> to vector<8x8xi1>
    %231 = vector.broadcast %cst_157 : f32 to vector<8x8xf32>
    %232 = arith.select %230, %231, %226 : vector<8x8xi1>, vector<8x8xf32>
    %cst_158 = arith.constant dense<0xFF800000> : vector<8xf32>
    %233 = vector.multi_reduction <maximumf>, %232, %cst_158 [1] : vector<8x8xf32> to vector<8xf32>
    %234 = vector.shape_cast %233 : vector<8xf32> to vector<8x1xf32>
    %235 = vector.broadcast %234 : vector<8x1xf32> to vector<8x8xf32>
    %236 = arith.subf %232, %235 : vector<8x8xf32>
    %237 = math.exp %236 : vector<8x8xf32>
    %cst_159 = arith.constant dense<0.000000e+00> : vector<8xf32>
    %238 = vector.multi_reduction <add>, %237, %cst_159 [1] : vector<8x8xf32> to vector<8xf32>
    %239 = vector.shape_cast %238 : vector<8xf32> to vector<8x1xf32>
    %240 = tpu.reciprocal %239 {approx = true} : vector<8x1xf32> -> vector<8x1xf32>
    %241 = vector.broadcast %240 : vector<8x1xf32> to vector<8x8xf32>
    %242 = arith.mulf %237, %241 : vector<8x8xf32>
    %cst_160 = arith.constant dense<0.000000e+00> : vector<8x8xf32>
    %243 = tpu.matmul %242, %225, %cst_160 {dimension_numbers = #tpu.dot_dimension_numbers<[1], [0], [0], [1], [0, 0, 1, 1], [], []>} : vector<8x8xf32>, vector<8x8xf32>, vector<8x8xf32> -> vector<8x8xf32>
    %c0_161 = arith.constant 0 : index
    %c0_162 = arith.constant 0 : index
    %244 = vector.load %arg26[%c0_161, %c0_162] : memref<16x32xf32, #tpu.memory_space<vmem>>, vector<8x8xf32>
    tpu.vector_store %arg26[%c0_161, %c0_162], %243 {strides = array<i32>} : memref<16x32xf32, #tpu.memory_space<vmem>>, vector<8x8xf32>,
    %c0_163 = arith.constant 0 : index
    %c8_164 = arith.constant 8 : index
    %245 = vector.load %arg24[%c0_163, %c8_164] : memref<16x32xf32, #tpu.memory_space<vmem>>, vector<8x8xf32>
    %cst_165 = arith.constant 0.176776692 : f32
    %246 = vector.broadcast %cst_165 : f32 to vector<8x8xf32>
    %247 = arith.mulf %245, %246 : vector<8x8xf32>
    %c0_166 = arith.constant 0 : index
    %c8_167 = arith.constant 8 : index
    %248 = vector.load %arg25[%c0_166, %c8_167] : memref<16x64xf32, #tpu.memory_space<vmem>>, vector<8x8xf32>
    %c0_168 = arith.constant 0 : index
    %c40_169 = arith.constant 40 : index
    %249 = vector.load %arg25[%c0_168, %c40_169] : memref<16x64xf32, #tpu.memory_space<vmem>>, vector<8x8xf32>
    %cst_170 = arith.constant dense<0.000000e+00> : vector<8x8xf32>
    %250 = tpu.matmul %247, %248, %cst_170 {dimension_numbers = #tpu.dot_dimension_numbers<[1], [1], [0], [0], [0, 0, 1, 0], [], []>} : vector<8x8xf32>, vector<8x8xf32>, vector<8x8xf32> -> vector<8x8xf32>
    %cst_171 = arith.constant 0.000000e+00 : f32
    %251 = vector.broadcast %cst_171 : f32 to vector<1x8xf32>
    %252 = arith.cmpf oeq, %220, %251 : vector<1x8xf32>
    %cst_172 = arith.constant -1.000000e+20 : f32
    %253 = vector.shape_cast %252 : vector<1x8xi1> to vector<1x8xi1>
    %254 = vector.broadcast %253 : vector<1x8xi1> to vector<8x8xi1>
    %255 = vector.broadcast %cst_172 : f32 to vector<8x8xf32>
    %256 = arith.select %254, %255, %250 : vector<8x8xi1>, vector<8x8xf32>
    %cst_173 = arith.constant dense<0xFF800000> : vector<8xf32>
    %257 = vector.multi_reduction <maximumf>, %256, %cst_173 [1] : vector<8x8xf32> to vector<8xf32>
    %258 = vector.shape_cast %257 : vector<8xf32> to vector<8x1xf32>
    %259 = vector.broadcast %258 : vector<8x1xf32> to vector<8x8xf32>
    %260 = arith.subf %256, %259 : vector<8x8xf32>
    %261 = math.exp %260 : vector<8x8xf32>
    %cst_174 = arith.constant dense<0.000000e+00> : vector<8xf32>
    %262 = vector.multi_reduction <add>, %261, %cst_174 [1] : vector<8x8xf32> to vector<8xf32>
    %263 = vector.shape_cast %262 : vector<8xf32> to vector<8x1xf32>
    %264 = tpu.reciprocal %263 {approx = true} : vector<8x1xf32> -> vector<8x1xf32>
    %265 = vector.broadcast %264 : vector<8x1xf32> to vector<8x8xf32>
    %266 = arith.mulf %261, %265 : vector<8x8xf32>
    %cst_175 = arith.constant dense<0.000000e+00> : vector<8x8xf32>
    %267 = tpu.matmul %266, %249, %cst_175 {dimension_numbers = #tpu.dot_dimension_numbers<[1], [0], [0], [1], [0, 0, 1, 1], [], []>} : vector<8x8xf32>, vector<8x8xf32>, vector<8x8xf32> -> vector<8x8xf32>
    %c0_176 = arith.constant 0 : index
    %c8_177 = arith.constant 8 : index
    %268 = vector.load %arg26[%c0_176, %c8_177] : memref<16x32xf32, #tpu.memory_space<vmem>>, vector<8x8xf32>
    tpu.vector_store %arg26[%c0_176, %c8_177], %267 {strides = array<i32>} : memref<16x32xf32, #tpu.memory_space<vmem>>, vector<8x8xf32>,
    %c0_178 = arith.constant 0 : index
    %c16_179 = arith.constant 16 : index
    %269 = vector.load %arg24[%c0_178, %c16_179] : memref<16x32xf32, #tpu.memory_space<vmem>>, vector<8x8xf32>
    %cst_180 = arith.constant 0.176776692 : f32
    %270 = vector.broadcast %cst_180 : f32 to vector<8x8xf32>
    %271 = arith.mulf %269, %270 : vector<8x8xf32>
    %c0_181 = arith.constant 0 : index
    %c16_182 = arith.constant 16 : index
    %272 = vector.load %arg25[%c0_181, %c16_182] : memref<16x64xf32, #tpu.memory_space<vmem>>, vector<8x8xf32>
    %c0_183 = arith.constant 0 : index
    %c48_184 = arith.constant 48 : index
    %273 = vector.load %arg25[%c0_183, %c48_184] : memref<16x64xf32, #tpu.memory_space<vmem>>, vector<8x8xf32>
    %cst_185 = arith.constant dense<0.000000e+00> : vector<8x8xf32>
    %274 = tpu.matmul %271, %272, %cst_185 {dimension_numbers = #tpu.dot_dimension_numbers<[1], [1], [0], [0], [0, 0, 1, 0], [], []>} : vector<8x8xf32>, vector<8x8xf32>, vector<8x8xf32> -> vector<8x8xf32>
    %cst_186 = arith.constant 0.000000e+00 : f32
    %275 = vector.broadcast %cst_186 : f32 to vector<1x8xf32>
    %276 = arith.cmpf oeq, %220, %275 : vector<1x8xf32>
    %cst_187 = arith.constant -1.000000e+20 : f32
    %277 = vector.shape_cast %276 : vector<1x8xi1> to vector<1x8xi1>
    %278 = vector.broadcast %277 : vector<1x8xi1> to vector<8x8xi1>
    %279 = vector.broadcast %cst_187 : f32 to vector<8x8xf32>
    %280 = arith.select %278, %279, %274 : vector<8x8xi1>, vector<8x8xf32>
    %cst_188 = arith.constant dense<0xFF800000> : vector<8xf32>
    %281 = vector.multi_reduction <maximumf>, %280, %cst_188 [1] : vector<8x8xf32> to vector<8xf32>
    %282 = vector.shape_cast %281 : vector<8xf32> to vector<8x1xf32>
    %283 = vector.broadcast %282 : vector<8x1xf32> to vector<8x8xf32>
    %284 = arith.subf %280, %283 : vector<8x8xf32>
    %285 = math.exp %284 : vector<8x8xf32>
    %cst_189 = arith.constant dense<0.000000e+00> : vector<8xf32>
    %286 = vector.multi_reduction <add>, %285, %cst_189 [1] : vector<8x8xf32> to vector<8xf32>
    %287 = vector.shape_cast %286 : vector<8xf32> to vector<8x1xf32>
    %288 = tpu.reciprocal %287 {approx = true} : vector<8x1xf32> -> vector<8x1xf32>
    %289 = vector.broadcast %288 : vector<8x1xf32> to vector<8x8xf32>
    %290 = arith.mulf %285, %289 : vector<8x8xf32>
    %cst_190 = arith.constant dense<0.000000e+00> : vector<8x8xf32>
    %291 = tpu.matmul %290, %273, %cst_190 {dimension_numbers = #tpu.dot_dimension_numbers<[1], [0], [0], [1], [0, 0, 1, 1], [], []>} : vector<8x8xf32>, vector<8x8xf32>, vector<8x8xf32> -> vector<8x8xf32>
    %c0_191 = arith.constant 0 : index
    %c16_192 = arith.constant 16 : index
    %292 = vector.load %arg26[%c0_191, %c16_192] : memref<16x32xf32, #tpu.memory_space<vmem>>, vector<8x8xf32>
    tpu.vector_store %arg26[%c0_191, %c16_192], %291 {strides = array<i32>} : memref<16x32xf32, #tpu.memory_space<vmem>>, vector<8x8xf32>,
    %c0_193 = arith.constant 0 : index
    %c24_194 = arith.constant 24 : index
    %293 = vector.load %arg24[%c0_193, %c24_194] : memref<16x32xf32, #tpu.memory_space<vmem>>, vector<8x8xf32>
    %cst_195 = arith.constant 0.176776692 : f32
    %294 = vector.broadcast %cst_195 : f32 to vector<8x8xf32>
    %295 = arith.mulf %293, %294 : vector<8x8xf32>
    %c0_196 = arith.constant 0 : index
    %c24_197 = arith.constant 24 : index
    %296 = vector.load %arg25[%c0_196, %c24_197] : memref<16x64xf32, #tpu.memory_space<vmem>>, vector<8x8xf32>
    %c0_198 = arith.constant 0 : index
    %c56_199 = arith.constant 56 : index
    %297 = vector.load %arg25[%c0_198, %c56_199] : memref<16x64xf32, #tpu.memory_space<vmem>>, vector<8x8xf32>
    %cst_200 = arith.constant dense<0.000000e+00> : vector<8x8xf32>
    %298 = tpu.matmul %295, %296, %cst_200 {dimension_numbers = #tpu.dot_dimension_numbers<[1], [1], [0], [0], [0, 0, 1, 0], [], []>} : vector<8x8xf32>, vector<8x8xf32>, vector<8x8xf32> -> vector<8x8xf32>
    %cst_201 = arith.constant 0.000000e+00 : f32
    %299 = vector.broadcast %cst_201 : f32 to vector<1x8xf32>
    %300 = arith.cmpf oeq, %220, %299 : vector<1x8xf32>
    %cst_202 = arith.constant -1.000000e+20 : f32
    %301 = vector.shape_cast %300 : vector<1x8xi1> to vector<1x8xi1>
    %302 = vector.broadcast %301 : vector<1x8xi1> to vector<8x8xi1>
    %303 = vector.broadcast %cst_202 : f32 to vector<8x8xf32>
    %304 = arith.select %302, %303, %298 : vector<8x8xi1>, vector<8x8xf32>
    %cst_203 = arith.constant dense<0xFF800000> : vector<8xf32>
    %305 = vector.multi_reduction <maximumf>, %304, %cst_203 [1] : vector<8x8xf32> to vector<8xf32>
    %306 = vector.shape_cast %305 : vector<8xf32> to vector<8x1xf32>
    %307 = vector.broadcast %306 : vector<8x1xf32> to vector<8x8xf32>
    %308 = arith.subf %304, %307 : vector<8x8xf32>
    %309 = math.exp %308 : vector<8x8xf32>
    %cst_204 = arith.constant dense<0.000000e+00> : vector<8xf32>
    %310 = vector.multi_reduction <add>, %309, %cst_204 [1] : vector<8x8xf32> to vector<8xf32>
    %311 = vector.shape_cast %310 : vector<8xf32> to vector<8x1xf32>
    %312 = tpu.reciprocal %311 {approx = true} : vector<8x1xf32> -> vector<8x1xf32>
    %313 = vector.broadcast %312 : vector<8x1xf32> to vector<8x8xf32>
    %314 = arith.mulf %309, %313 : vector<8x8xf32>
    %cst_205 = arith.constant dense<0.000000e+00> : vector<8x8xf32>
    %315 = tpu.matmul %314, %297, %cst_205 {dimension_numbers = #tpu.dot_dimension_numbers<[1], [0], [0], [1], [0, 0, 1, 1], [], []>} : vector<8x8xf32>, vector<8x8xf32>, vector<8x8xf32> -> vector<8x8xf32>
    %c0_206 = arith.constant 0 : index
    %c24_207 = arith.constant 24 : index
    %316 = vector.load %arg26[%c0_206, %c24_207] : memref<16x32xf32, #tpu.memory_space<vmem>>, vector<8x8xf32>
    tpu.vector_store %arg26[%c0_206, %c24_207], %315 {strides = array<i32>} : memref<16x32xf32, #tpu.memory_space<vmem>>, vector<8x8xf32>,
    %c1 = arith.constant 1 : index
    %c0_208 = arith.constant 0 : index
    %317 = vector.load %arg3[%c1, %c0_208] : memref<2x8xf32, #tpu.memory_space<vmem>>, vector<1x8xf32>
    %c8_209 = arith.constant 8 : index
    %c0_210 = arith.constant 0 : index
    %318 = vector.load %arg24[%c8_209, %c0_210] : memref<16x32xf32, #tpu.memory_space<vmem>>, vector<8x8xf32>
    %cst_211 = arith.constant 0.176776692 : f32
    %319 = vector.broadcast %cst_211 : f32 to vector<8x8xf32>
    %320 = arith.mulf %318, %319 : vector<8x8xf32>
    %c8_212 = arith.constant 8 : index
    %c0_213 = arith.constant 0 : index
    %321 = vector.load %arg25[%c8_212, %c0_213] : memref<16x64xf32, #tpu.memory_space<vmem>>, vector<8x8xf32>
    %c8_214 = arith.constant 8 : index
    %c32_215 = arith.constant 32 : index
    %322 = vector.load %arg25[%c8_214, %c32_215] : memref<16x64xf32, #tpu.memory_space<vmem>>, vector<8x8xf32>
    %cst_216 = arith.constant dense<0.000000e+00> : vector<8x8xf32>
    %323 = tpu.matmul %320, %321, %cst_216 {dimension_numbers = #tpu.dot_dimension_numbers<[1], [1], [0], [0], [0, 0, 1, 0], [], []>} : vector<8x8xf32>, vector<8x8xf32>, vector<8x8xf32> -> vector<8x8xf32>
    %cst_217 = arith.constant 0.000000e+00 : f32
    %324 = vector.broadcast %cst_217 : f32 to vector<1x8xf32>
    %325 = arith.cmpf oeq, %317, %324 : vector<1x8xf32>
    %cst_218 = arith.constant -1.000000e+20 : f32
    %326 = vector.shape_cast %325 : vector<1x8xi1> to vector<1x8xi1>
    %327 = vector.broadcast %326 : vector<1x8xi1> to vector<8x8xi1>
    %328 = vector.broadcast %cst_218 : f32 to vector<8x8xf32>
    %329 = arith.select %327, %328, %323 : vector<8x8xi1>, vector<8x8xf32>
    %cst_219 = arith.constant dense<0xFF800000> : vector<8xf32>
    %330 = vector.multi_reduction <maximumf>, %329, %cst_219 [1] : vector<8x8xf32> to vector<8xf32>
    %331 = vector.shape_cast %330 : vector<8xf32> to vector<8x1xf32>
    %332 = vector.broadcast %331 : vector<8x1xf32> to vector<8x8xf32>
    %333 = arith.subf %329, %332 : vector<8x8xf32>
    %334 = math.exp %333 : vector<8x8xf32>
    %cst_220 = arith.constant dense<0.000000e+00> : vector<8xf32>
    %335 = vector.multi_reduction <add>, %334, %cst_220 [1] : vector<8x8xf32> to vector<8xf32>
    %336 = vector.shape_cast %335 : vector<8xf32> to vector<8x1xf32>
    %337 = tpu.reciprocal %336 {approx = true} : vector<8x1xf32> -> vector<8x1xf32>
    %338 = vector.broadcast %337 : vector<8x1xf32> to vector<8x8xf32>
    %339 = arith.mulf %334, %338 : vector<8x8xf32>
    %cst_221 = arith.constant dense<0.000000e+00> : vector<8x8xf32>
    %340 = tpu.matmul %339, %322, %cst_221 {dimension_numbers = #tpu.dot_dimension_numbers<[1], [0], [0], [1], [0, 0, 1, 1], [], []>} : vector<8x8xf32>, vector<8x8xf32>, vector<8x8xf32> -> vector<8x8xf32>
    %c8_222 = arith.constant 8 : index
    %c0_223 = arith.constant 0 : index
    %341 = vector.load %arg26[%c8_222, %c0_223] : memref<16x32xf32, #tpu.memory_space<vmem>>, vector<8x8xf32>
    tpu.vector_store %arg26[%c8_222, %c0_223], %340 {strides = array<i32>} : memref<16x32xf32, #tpu.memory_space<vmem>>, vector<8x8xf32>,
    %c8_224 = arith.constant 8 : index
    %c8_225 = arith.constant 8 : index
    %342 = vector.load %arg24[%c8_224, %c8_225] : memref<16x32xf32, #tpu.memory_space<vmem>>, vector<8x8xf32>
    %cst_226 = arith.constant 0.176776692 : f32
    %343 = vector.broadcast %cst_226 : f32 to vector<8x8xf32>
    %344 = arith.mulf %342, %343 : vector<8x8xf32>
    %c8_227 = arith.constant 8 : index
    %c8_228 = arith.constant 8 : index
    %345 = vector.load %arg25[%c8_227, %c8_228] : memref<16x64xf32, #tpu.memory_space<vmem>>, vector<8x8xf32>
    %c8_229 = arith.constant 8 : index
    %c40_230 = arith.constant 40 : index
    %346 = vector.load %arg25[%c8_229, %c40_230] : memref<16x64xf32, #tpu.memory_space<vmem>>, vector<8x8xf32>
    %cst_231 = arith.constant dense<0.000000e+00> : vector<8x8xf32>
    %347 = tpu.matmul %344, %345, %cst_231 {dimension_numbers = #tpu.dot_dimension_numbers<[1], [1], [0], [0], [0, 0, 1, 0], [], []>} : vector<8x8xf32>, vector<8x8xf32>, vector<8x8xf32> -> vector<8x8xf32>
    %cst_232 = arith.constant 0.000000e+00 : f32
    %348 = vector.broadcast %cst_232 : f32 to vector<1x8xf32>
    %349 = arith.cmpf oeq, %317, %348 : vector<1x8xf32>
    %cst_233 = arith.constant -1.000000e+20 : f32
    %350 = vector.shape_cast %349 : vector<1x8xi1> to vector<1x8xi1>
    %351 = vector.broadcast %350 : vector<1x8xi1> to vector<8x8xi1>
    %352 = vector.broadcast %cst_233 : f32 to vector<8x8xf32>
    %353 = arith.select %351, %352, %347 : vector<8x8xi1>, vector<8x8xf32>
    %cst_234 = arith.constant dense<0xFF800000> : vector<8xf32>
    %354 = vector.multi_reduction <maximumf>, %353, %cst_234 [1] : vector<8x8xf32> to vector<8xf32>
    %355 = vector.shape_cast %354 : vector<8xf32> to vector<8x1xf32>
    %356 = vector.broadcast %355 : vector<8x1xf32> to vector<8x8xf32>
    %357 = arith.subf %353, %356 : vector<8x8xf32>
    %358 = math.exp %357 : vector<8x8xf32>
    %cst_235 = arith.constant dense<0.000000e+00> : vector<8xf32>
    %359 = vector.multi_reduction <add>, %358, %cst_235 [1] : vector<8x8xf32> to vector<8xf32>
    %360 = vector.shape_cast %359 : vector<8xf32> to vector<8x1xf32>
    %361 = tpu.reciprocal %360 {approx = true} : vector<8x1xf32> -> vector<8x1xf32>
    %362 = vector.broadcast %361 : vector<8x1xf32> to vector<8x8xf32>
    %363 = arith.mulf %358, %362 : vector<8x8xf32>
    %cst_236 = arith.constant dense<0.000000e+00> : vector<8x8xf32>
    %364 = tpu.matmul %363, %346, %cst_236 {dimension_numbers = #tpu.dot_dimension_numbers<[1], [0], [0], [1], [0, 0, 1, 1], [], []>} : vector<8x8xf32>, vector<8x8xf32>, vector<8x8xf32> -> vector<8x8xf32>
    %c8_237 = arith.constant 8 : index
    %c8_238 = arith.constant 8 : index
    %365 = vector.load %arg26[%c8_237, %c8_238] : memref<16x32xf32, #tpu.memory_space<vmem>>, vector<8x8xf32>
    tpu.vector_store %arg26[%c8_237, %c8_238], %364 {strides = array<i32>} : memref<16x32xf32, #tpu.memory_space<vmem>>, vector<8x8xf32>,
    %c8_239 = arith.constant 8 : index
    %c16_240 = arith.constant 16 : index
    %366 = vector.load %arg24[%c8_239, %c16_240] : memref<16x32xf32, #tpu.memory_space<vmem>>, vector<8x8xf32>
    %cst_241 = arith.constant 0.176776692 : f32
    %367 = vector.broadcast %cst_241 : f32 to vector<8x8xf32>
    %368 = arith.mulf %366, %367 : vector<8x8xf32>
    %c8_242 = arith.constant 8 : index
    %c16_243 = arith.constant 16 : index
    %369 = vector.load %arg25[%c8_242, %c16_243] : memref<16x64xf32, #tpu.memory_space<vmem>>, vector<8x8xf32>
    %c8_244 = arith.constant 8 : index
    %c48_245 = arith.constant 48 : index
    %370 = vector.load %arg25[%c8_244, %c48_245] : memref<16x64xf32, #tpu.memory_space<vmem>>, vector<8x8xf32>
    %cst_246 = arith.constant dense<0.000000e+00> : vector<8x8xf32>
    %371 = tpu.matmul %368, %369, %cst_246 {dimension_numbers = #tpu.dot_dimension_numbers<[1], [1], [0], [0], [0, 0, 1, 0], [], []>} : vector<8x8xf32>, vector<8x8xf32>, vector<8x8xf32> -> vector<8x8xf32>
    %cst_247 = arith.constant 0.000000e+00 : f32
    %372 = vector.broadcast %cst_247 : f32 to vector<1x8xf32>
    %373 = arith.cmpf oeq, %317, %372 : vector<1x8xf32>
    %cst_248 = arith.constant -1.000000e+20 : f32
    %374 = vector.shape_cast %373 : vector<1x8xi1> to vector<1x8xi1>
    %375 = vector.broadcast %374 : vector<1x8xi1> to vector<8x8xi1>
    %376 = vector.broadcast %cst_248 : f32 to vector<8x8xf32>
    %377 = arith.select %375, %376, %371 : vector<8x8xi1>, vector<8x8xf32>
    %cst_249 = arith.constant dense<0xFF800000> : vector<8xf32>
    %378 = vector.multi_reduction <maximumf>, %377, %cst_249 [1] : vector<8x8xf32> to vector<8xf32>
    %379 = vector.shape_cast %378 : vector<8xf32> to vector<8x1xf32>
    %380 = vector.broadcast %379 : vector<8x1xf32> to vector<8x8xf32>
    %381 = arith.subf %377, %380 : vector<8x8xf32>
    %382 = math.exp %381 : vector<8x8xf32>
    %cst_250 = arith.constant dense<0.000000e+00> : vector<8xf32>
    %383 = vector.multi_reduction <add>, %382, %cst_250 [1] : vector<8x8xf32> to vector<8xf32>
    %384 = vector.shape_cast %383 : vector<8xf32> to vector<8x1xf32>
    %385 = tpu.reciprocal %384 {approx = true} : vector<8x1xf32> -> vector<8x1xf32>
    %386 = vector.broadcast %385 : vector<8x1xf32> to vector<8x8xf32>
    %387 = arith.mulf %382, %386 : vector<8x8xf32>
    %cst_251 = arith.constant dense<0.000000e+00> : vector<8x8xf32>
    %388 = tpu.matmul %387, %370, %cst_251 {dimension_numbers = #tpu.dot_dimension_numbers<[1], [0], [0], [1], [0, 0, 1, 1], [], []>} : vector<8x8xf32>, vector<8x8xf32>, vector<8x8xf32> -> vector<8x8xf32>
    %c8_252 = arith.constant 8 : index
    %c16_253 = arith.constant 16 : index
    %389 = vector.load %arg26[%c8_252, %c16_253] : memref<16x32xf32, #tpu.memory_space<vmem>>, vector<8x8xf32>
    tpu.vector_store %arg26[%c8_252, %c16_253], %388 {strides = array<i32>} : memref<16x32xf32, #tpu.memory_space<vmem>>, vector<8x8xf32>,
    %c8_254 = arith.constant 8 : index
    %c24_255 = arith.constant 24 : index
    %390 = vector.load %arg24[%c8_254, %c24_255] : memref<16x32xf32, #tpu.memory_space<vmem>>, vector<8x8xf32>
    %cst_256 = arith.constant 0.176776692 : f32
    %391 = vector.broadcast %cst_256 : f32 to vector<8x8xf32>
    %392 = arith.mulf %390, %391 : vector<8x8xf32>
    %c8_257 = arith.constant 8 : index
    %c24_258 = arith.constant 24 : index
    %393 = vector.load %arg25[%c8_257, %c24_258] : memref<16x64xf32, #tpu.memory_space<vmem>>, vector<8x8xf32>
    %c8_259 = arith.constant 8 : index
    %c56_260 = arith.constant 56 : index
    %394 = vector.load %arg25[%c8_259, %c56_260] : memref<16x64xf32, #tpu.memory_space<vmem>>, vector<8x8xf32>
    %cst_261 = arith.constant dense<0.000000e+00> : vector<8x8xf32>
    %395 = tpu.matmul %392, %393, %cst_261 {dimension_numbers = #tpu.dot_dimension_numbers<[1], [1], [0], [0], [0, 0, 1, 0], [], []>} : vector<8x8xf32>, vector<8x8xf32>, vector<8x8xf32> -> vector<8x8xf32>
    %cst_262 = arith.constant 0.000000e+00 : f32
    %396 = vector.broadcast %cst_262 : f32 to vector<1x8xf32>
    %397 = arith.cmpf oeq, %317, %396 : vector<1x8xf32>
    %cst_263 = arith.constant -1.000000e+20 : f32
    %398 = vector.shape_cast %397 : vector<1x8xi1> to vector<1x8xi1>
    %399 = vector.broadcast %398 : vector<1x8xi1> to vector<8x8xi1>
    %400 = vector.broadcast %cst_263 : f32 to vector<8x8xf32>
    %401 = arith.select %399, %400, %395 : vector<8x8xi1>, vector<8x8xf32>
    %cst_264 = arith.constant dense<0xFF800000> : vector<8xf32>
    %402 = vector.multi_reduction <maximumf>, %401, %cst_264 [1] : vector<8x8xf32> to vector<8xf32>
    %403 = vector.shape_cast %402 : vector<8xf32> to vector<8x1xf32>
    %404 = vector.broadcast %403 : vector<8x1xf32> to vector<8x8xf32>
    %405 = arith.subf %401, %404 : vector<8x8xf32>
    %406 = math.exp %405 : vector<8x8xf32>
    %cst_265 = arith.constant dense<0.000000e+00> : vector<8xf32>
    %407 = vector.multi_reduction <add>, %406, %cst_265 [1] : vector<8x8xf32> to vector<8xf32>
    %408 = vector.shape_cast %407 : vector<8xf32> to vector<8x1xf32>
    %409 = tpu.reciprocal %408 {approx = true} : vector<8x1xf32> -> vector<8x1xf32>
    %410 = vector.broadcast %409 : vector<8x1xf32> to vector<8x8xf32>
    %411 = arith.mulf %406, %410 : vector<8x8xf32>
    %cst_266 = arith.constant dense<0.000000e+00> : vector<8x8xf32>
    %412 = tpu.matmul %411, %394, %cst_266 {dimension_numbers = #tpu.dot_dimension_numbers<[1], [0], [0], [1], [0, 0, 1, 1], [], []>} : vector<8x8xf32>, vector<8x8xf32>, vector<8x8xf32> -> vector<8x8xf32>
    %c8_267 = arith.constant 8 : index
    %c24_268 = arith.constant 24 : index
    %413 = vector.load %arg26[%c8_267, %c24_268] : memref<16x32xf32, #tpu.memory_space<vmem>>, vector<8x8xf32>
    tpu.vector_store %arg26[%c8_267, %c24_268], %412 {strides = array<i32>} : memref<16x32xf32, #tpu.memory_space<vmem>>, vector<8x8xf32>,
    %c0_269 = arith.constant 0 : index
    %c0_270 = arith.constant 0 : index
    %414 = vector.load %arg26[%c0_269, %c0_270] : memref<16x32xf32, #tpu.memory_space<vmem>>, vector<16x32xf32>
    %c0_271 = arith.constant 0 : index
    %c0_272 = arith.constant 0 : index
    %415 = vector.load %arg11[%c0_271, %c0_272] : memref<32x32xf32, #tpu.memory_space<vmem>>, vector<32x32xf32>
    %cst_273 = arith.constant dense<0.000000e+00> : vector<16x32xf32>
    %416 = tpu.matmul %414, %415, %cst_273 {dimension_numbers = #tpu.dot_dimension_numbers<[1], [0], [0], [1], [0, 0, 1, 1], [], []>} : vector<16x32xf32>, vector<32x32xf32>, vector<16x32xf32> -> vector<16x32xf32>
    %c0_274 = arith.constant 0 : index
    %c0_275 = arith.constant 0 : index
    %417 = vector.load %arg12[%c0_274, %c0_275] : memref<1x32xf32, #tpu.memory_space<vmem>>, vector<1x32xf32>
    %418 = vector.broadcast %417 : vector<1x32xf32> to vector<16x32xf32>
    %419 = arith.addf %416, %418 : vector<16x32xf32>
    %420 = arith.addf %419, %212 : vector<16x32xf32>
    %c0_276 = arith.constant 0 : index
    %c0_277 = arith.constant 0 : index
    %421 = vector.load %arg13[%c0_276, %c0_277] : memref<1x32xf32, #tpu.memory_space<vmem>>, vector<1x32xf32>
    %c0_278 = arith.constant 0 : index
    %c0_279 = arith.constant 0 : index
    %422 = vector.load %arg14[%c0_278, %c0_279] : memref<1x32xf32, #tpu.memory_space<vmem>>, vector<1x32xf32>
    %cst_280 = arith.constant dense<0.000000e+00> : vector<16xf32>
    %423 = vector.multi_reduction <add>, %420, %cst_280 [1] : vector<16x32xf32> to vector<16xf32>
    %424 = vector.shape_cast %423 : vector<16xf32> to vector<16x1xf32>
    %cst_281 = arith.constant 3.200000e+01 : f32
    %425 = vector.broadcast %cst_281 : f32 to vector<16x1xf32>
    %426 = arith.divf %424, %425 : vector<16x1xf32>
    %427 = vector.broadcast %426 : vector<16x1xf32> to vector<16x32xf32>
    %428 = arith.subf %420, %427 : vector<16x32xf32>
    %429 = arith.mulf %428, %428 : vector<16x32xf32>
    %cst_282 = arith.constant dense<0.000000e+00> : vector<16xf32>
    %430 = vector.multi_reduction <add>, %429, %cst_282 [1] : vector<16x32xf32> to vector<16xf32>
    %431 = vector.shape_cast %430 : vector<16xf32> to vector<16x1xf32>
    %cst_283 = arith.constant 3.200000e+01 : f32
    %432 = vector.broadcast %cst_283 : f32 to vector<16x1xf32>
    %433 = arith.divf %431, %432 : vector<16x1xf32>
    %434 = vector.broadcast %426 : vector<16x1xf32> to vector<16x32xf32>
    %435 = arith.subf %420, %434 : vector<16x32xf32>
    %cst_284 = arith.constant 9.99999974E-6 : f32
    %436 = vector.broadcast %cst_284 : f32 to vector<16x1xf32>
    %437 = arith.addf %433, %436 : vector<16x1xf32>
    %438 = math.rsqrt %437 : vector<16x1xf32>
    %439 = vector.broadcast %438 : vector<16x1xf32> to vector<16x32xf32>
    %440 = arith.mulf %435, %439 : vector<16x32xf32>
    %441 = vector.broadcast %421 : vector<1x32xf32> to vector<16x32xf32>
    %442 = arith.mulf %440, %441 : vector<16x32xf32>
    %443 = vector.broadcast %422 : vector<1x32xf32> to vector<16x32xf32>
    %444 = arith.addf %442, %443 : vector<16x32xf32>
    %c0_285 = arith.constant 0 : index
    %c0_286 = arith.constant 0 : index
    %445 = vector.load %arg15[%c0_285, %c0_286] : memref<32x128xf32, #tpu.memory_space<vmem>>, vector<32x128xf32>
    %cst_287 = arith.constant dense<0.000000e+00> : vector<16x128xf32>
    %446 = tpu.matmul %444, %445, %cst_287 {dimension_numbers = #tpu.dot_dimension_numbers<[1], [0], [0], [1], [0, 0, 1, 1], [], []>} : vector<16x32xf32>, vector<32x128xf32>, vector<16x128xf32> -> vector<16x128xf32>
    %c0_288 = arith.constant 0 : index
    %c0_289 = arith.constant 0 : index
    %447 = vector.load %arg16[%c0_288, %c0_289] : memref<1x128xf32, #tpu.memory_space<vmem>>, vector<1x128xf32>
    %448 = vector.broadcast %447 : vector<1x128xf32> to vector<16x128xf32>
    %449 = arith.addf %446, %448 : vector<16x128xf32>
    %cst_290 = arith.constant 0.000000e+00 : f32
    %450 = vector.broadcast %cst_290 : f32 to vector<16x128xf32>
    %451 = arith.maximumf %449, %450 : vector<16x128xf32>
    %c0_291 = arith.constant 0 : index
    %c0_292 = arith.constant 0 : index
    %452 = vector.load %arg17[%c0_291, %c0_292] : memref<128x32xf32, #tpu.memory_space<vmem>>, vector<128x32xf32>
    %cst_293 = arith.constant dense<0.000000e+00> : vector<16x32xf32>
    %453 = tpu.matmul %451, %452, %cst_293 {dimension_numbers = #tpu.dot_dimension_numbers<[1], [0], [0], [1], [0, 0, 1, 1], [], []>} : vector<16x128xf32>, vector<128x32xf32>, vector<16x32xf32> -> vector<16x32xf32>
    %c0_294 = arith.constant 0 : index
    %c0_295 = arith.constant 0 : index
    %454 = vector.load %arg18[%c0_294, %c0_295] : memref<1x32xf32, #tpu.memory_space<vmem>>, vector<1x32xf32>
    %455 = vector.broadcast %454 : vector<1x32xf32> to vector<16x32xf32>
    %456 = arith.addf %453, %455 : vector<16x32xf32>
    %457 = arith.addf %456, %444 : vector<16x32xf32>
    %c0_296 = arith.constant 0 : index
    %c0_297 = arith.constant 0 : index
    %458 = vector.load %arg19[%c0_296, %c0_297] : memref<1x32xf32, #tpu.memory_space<vmem>>, vector<1x32xf32>
    %c0_298 = arith.constant 0 : index
    %c0_299 = arith.constant 0 : index
    %459 = vector.load %arg20[%c0_298, %c0_299] : memref<1x32xf32, #tpu.memory_space<vmem>>, vector<1x32xf32>
    %cst_300 = arith.constant dense<0.000000e+00> : vector<16xf32>
    %460 = vector.multi_reduction <add>, %457, %cst_300 [1] : vector<16x32xf32> to vector<16xf32>
    %461 = vector.shape_cast %460 : vector<16xf32> to vector<16x1xf32>
    %cst_301 = arith.constant 3.200000e+01 : f32
    %462 = vector.broadcast %cst_301 : f32 to vector<16x1xf32>
    %463 = arith.divf %461, %462 : vector<16x1xf32>
    %464 = vector.broadcast %463 : vector<16x1xf32> to vector<16x32xf32>
    %465 = arith.subf %457, %464 : vector<16x32xf32>
    %466 = arith.mulf %465, %465 : vector<16x32xf32>
    %cst_302 = arith.constant dense<0.000000e+00> : vector<16xf32>
    %467 = vector.multi_reduction <add>, %466, %cst_302 [1] : vector<16x32xf32> to vector<16xf32>
    %468 = vector.shape_cast %467 : vector<16xf32> to vector<16x1xf32>
    %cst_303 = arith.constant 3.200000e+01 : f32
    %469 = vector.broadcast %cst_303 : f32 to vector<16x1xf32>
    %470 = arith.divf %468, %469 : vector<16x1xf32>
    %471 = vector.broadcast %463 : vector<16x1xf32> to vector<16x32xf32>
    %472 = arith.subf %457, %471 : vector<16x32xf32>
    %cst_304 = arith.constant 9.99999974E-6 : f32
    %473 = vector.broadcast %cst_304 : f32 to vector<16x1xf32>
    %474 = arith.addf %470, %473 : vector<16x1xf32>
    %475 = math.rsqrt %474 : vector<16x1xf32>
    %476 = vector.broadcast %475 : vector<16x1xf32> to vector<16x32xf32>
    %477 = arith.mulf %472, %476 : vector<16x32xf32>
    %478 = vector.broadcast %458 : vector<1x32xf32> to vector<16x32xf32>
    %479 = arith.mulf %477, %478 : vector<16x32xf32>
    %480 = vector.broadcast %459 : vector<1x32xf32> to vector<16x32xf32>
    %481 = arith.addf %479, %480 : vector<16x32xf32>
    %c0_305 = arith.constant 0 : index
    %c0_306 = arith.constant 0 : index
    %482 = vector.load %arg21[%c0_305, %c0_306] : memref<16x32xf32, #tpu.memory_space<vmem>>, vector<16x32xf32>
    tpu.vector_store %arg21[%c0_305, %c0_306], %481 {strides = array<i32>} : memref<16x32xf32, #tpu.memory_space<vmem>>, vector<16x32xf32>,
    return
  }
}

</mosaic_0001>

<bundles_post_ra>
// kernel: transformer_forward.9
= control target key start
LH: loop header
LB: loop body
LE: loop exit
PB: predicated region body
PF: predicated region fallthrough
CT: control target
= control target key end

     0   :  { %8 = vsyncpa [#allocation3], 0  ;;  %s109_s15 = smov [#allocation2]   ;;  %s157_s0 = inlined_call_operand.vmem [shape: f32[16,32], index: 0, kind: input, shape index: {}]   ;;  %s158_s1 = inlined_call_operand.vmem [shape: f32[32,128], index: 1, kind: input, shape index: {}]   ;;  %s159_s2 = inlined_call_operand.hbm [shape: f32[1,128], index: 2, kind: input, shape index: {}]   ;;  %s160_s3 = inlined_call_operand.vmem [shape: f32[16,128], index: 3, kind: output, shape index: {}]  }
   0x1   :  { %s18_s14 = sshll.u32 %s159_s2, 4  ;;  %s20_s16 = sshll.u32 %s109_s15, 4  ;;  %s19_s14 = int_to_ptr.hbm [resolvable:$true] %s18_s14  ;;  %s21_s16 = int_to_ptr.vmem [resolvable:$true] %s20_s16 }
   0x2   :  { %23 = dma.hbm_to_vmem [thread:$0]  %s19_s14, 16, %s21_s16, [#allocation3]  }
   0x3   :  { %107 = dma.done.wait [#allocation3], 16  }
   0x4   :  { %108 = vsyncadd [#allocation3], 4294967280  ;;  %v33_v0 = vld [vmem:[%s158_s1 + $0x18] sm:$0xff]  ;;  %v32_v1 = vld [vmem:[%s158_s1 + $0x10] sm:$0xff]  ;;  %vm38_vm0 = vcmask 261120  }
   0x5   :  { %57 = vmatpush.msra.mxu0 %v33_v0  ;;  %77 = vmatpush.msra.mxu1 %v33_v0  ;;  %v31_v2 = vld [vmem:[%s158_s1 + $0x8] sm:$0xff]  ;;  %v30_v3 = vld [vmem:[%s158_s1] sm:$0xff] }
   0x6   :  { %v28_v4 = vld [vmem:[%s157_s0] sm:$0xff]  ;;  %v29_v5 = vld [vmem:[%s157_s0 + $0x8] sm:$0xff] }
   0x7   :  { %58 = vmatpush.msra.mxu0 %v32_v1  ;;  %78 = vmatpush.msra.mxu1 %v32_v1  ;;  %v82_v6 = vld [vmem:[#allocation2] ss:$0 sm:$0xff] }
   0x9   :  { %59 = vmatpush.msra.mxu0 %v31_v2  ;;  %79 = vmatpush.msra.mxu1 %v31_v2 }
   0xb   :  { %60 = vmatpush.msra.mxu0 %v30_v3  ;;  %80 = vmatpush.msra.mxu1 %v30_v3 }
   0xc   :  { %75 = vmatmul.msk.f32.vlgmr.msra.gmra.mxu0 %vm38_vm0, %v28_v4  ;;  %76 = vmatmul.msk.f32.vlgmr.msra.gmra.mxu1 %vm38_vm0, %v29_v5 }
  0x89   :  { %v62_v7 = vpop.f32.mrf.mxu0  ;;  %v65_v8 = vpop.f32.mrf.mxu1 }
  0x8a   :  { %v63_v9 = vadd.f32 %v82_v6, %v62_v7  ;;  %v66_v10 = vadd.f32 %v82_v6, %v65_v8 }
  0x8c   :  { %68 = vst [vmem:[%s160_s3] sm:$0xff] %v63_v9 }
  0x8d   :  { %69 = vst [vmem:[%s160_s3 + $0x8] sm:$0xff] %v66_v10 }
  0x8e   :  { %74 = vsyncpa [#allocation3], 1 }

// kernel: transformer_forward.5
= control target key start
LH: loop header
LB: loop body
LE: loop exit
PB: predicated region body
PF: predicated region fallthrough
CT: control target
= control target key end

     0   :  { %vm50_vm0 = vcmask 261120   ;;  %vm80_vm1 = vcmask 785408   ;;  %s1030_s18 = smov 96   ;;  %s1032_s19 = smov 64   ;;  %vm89_vm2 = vcmask 64512   ;;  %v1035_v13 = vmov 0   ;;  %s1421_s2 = inlined_call_operand.vmem [shape: f32[32,96], index: 2, kind: input, shape index: {}]   ;;  %s1422_s0 = inlined_call_operand.vmem [shape: f32[16,32], index: 0, kind: input, shape index: {}]   ;;  %s1423_s1 = inlined_call_operand.vmem [shape: f32[2,8], index: 1, kind: input, shape index: {}]   ;;  %s1424_s4 = inlined_call_operand.vmem [shape: f32[1,32], index: 4, kind: input, shape index: {}]   ;;  %s1425_s3 = inlined_call_operand.vmem [shape: f32[32,32], index: 3, kind: input, shape index: {}]   ;;  %s1426_s5 = inlined_call_operand.vmem [shape: f32[1,32], index: 5, kind: input, shape index: {}]   ;;  %s1427_s6 = inlined_call_operand.vmem [shape: f32[1,32], index: 6, kind: input, shape index: {}]   ;;  %s1428_s8 = inlined_call_operand.vmem [shape: f32[1,128], index: 8, kind: input, shape index: {}]   ;;  %s1429_s7 = inlined_call_operand.vmem [shape: f32[32,128], index: 7, kind: input, shape index: {}]   ;;  %s1430_s9 = inlined_call_operand.vmem [shape: f32[128,32], index: 9, kind: input, shape index: {}]   ;;  %s1431_s10 = inlined_call_operand.vmem [shape: f32[1,32], index: 10, kind: input, shape index: {}]   ;;  %s1432_s11 = inlined_call_operand.vmem [shape: f32[1,32], index: 11, kind: input, shape index: {}]   ;;  %s1433_s12 = inlined_call_operand.vmem [shape: f32[1,32], index: 12, kind: input, shape index: {}]   ;;  %s1434_s13 = inlined_call_operand.vmem [shape: f32[16,32], index: 13, kind: output, shape index: {}]  }
   0x1   :  { %v49_v0 = vld [vmem:[%s1421_s2 + $0x18] sm:$0xff]  ;;  %v48_v1 = vld [vmem:[%s1421_s2 + $0x10] sm:$0xff]  ;;  %v47_v2 = vld [vmem:[%s1421_s2 + $0x8] sm:$0xff]  ;;  %s1033_s20 = smov 80   ;;  %s1034_s21 = smov 112   ;;  %vm232_vm7 = vcmask 130112  }
   0x2   :  { %69 = vmatpush.msra.mxu0 %v49_v0  ;;  %v46_v3 = vld [vmem:[%s1421_s2] sm:$0xff]  ;;  %s1031_s2 = smov 120   ;;  %s1036_s24 = smov 88   ;;  %v1177_v31 = vld [vmem:[%s1422_s0 + $0x8] sm:$0xff]  ;;  %vm308_vm8 = vcmask 195712   ;;  %vm384_vm9 = vcmask 261312  }
   0x3   :  { %v1131_v4 = vld [vmem:[%s1422_s0] sm:$0xff]  ;;  %s1037_s27 = smov 72   ;;  %s1038_s0 = smov 48  }
   0x4   :  { %70 = vmatpush.msra.mxu0 %v48_v1  ;;  %v83_v12 = vld [vmem:[%s1423_s1] sm:$0x1]  ;;  %s1039_s28 = smov 104   ;;  %s1040_s29 = smov 56  }
   0x5   :  { %vm115_vm3 = vcmp.eq.f32.partialorder %v83_v12, 0.0  ;;  %s1042_s15 = smov 16   ;;  %s1043_s16 = smov 8  }
   0x6   :  { %71 = vmatpush.msra.mxu0 %v47_v2  ;;  %v116_v14 = vsel %vm115_vm3, 1, %v1035_v13  ;;  %s1044_s17 = smov 24  }
   0x7   :  { %v117_v15 = vperm.slane %v116_v14, 0 }
   0x8   :  { %72 = vmatpush.msra.mxu0 %v46_v3 }
   0x9   :  { %935 = vmatmul.msk.f32.vlgmr.msra.gmra.mxu0 %vm50_vm0, %v1131_v4  ;;  %vm1159_vm4 = vcmp.eq.s32.totalorder %v117_v15, 1 }
  0x11   :  { %936 = vmatmul.msk.f32.gmra.mxu0 %vm50_vm0, %v1177_v31 }
  0x86   :  { %v74_v5 = vpop.f32.mrf.mxu0 }
  0x87   :  { %81 = vst.msk [vmem:[#allocation2] sm:$0xff] %vm80_vm1, %v74_v5 }
  0x8e   :  { %v1136_v6 = vld [vmem:[#allocation2] sm:$0xff]  ;;  %v77_v38 = vpop.f32.mrf.mxu0 }
  0x8f   :  { %87 = vrot.lane.b32.xlu0 %v1136_v6, %s1030_s18  ;;  %v1141_v7 = vmul.f32 0.17677669, %v1136_v6  ;;  %82 = vst.msk [vmem:[#allocation2 + $0x8] sm:$0xff] %vm80_vm1, %v77_v38 }
  0x91   :  { %161 = vrot.lane.b32.xlu2 %v1141_v7, %s1031_s2 }
  0x96   :  { %v1193_v41 = vld [vmem:[#allocation2 + $0x8] sm:$0xff] }
  0x97   :  { %v461_v43 = vmul.f32 0.17677669, %v1193_v41 }
  0x99   :  { %131 = vrot.lane.b32.xlu2 %v1136_v6, %s1032_s19 }
  0xa1   :  { %240 = vrot.lane.b32.xlu2 %v1136_v6, %s1033_s20 }
  0xa9   :  { %237 = vrot.lane.b32.xlu2 %v1141_v7, %s1034_s21 }
  0xeb   :  { %v162_v8 = vpop.permute.xlu2 %161 }
  0xf3   :  { %v132_v9 = vpop.permute.xlu2 %131 }
  0xfb   :  { %v241_v11 = vpop.permute.xlu2 %240 }
 0x101   :  { %v88_v10 = vpop.permute.xlu0 %87 }
 0x102   :  { %937 = vmatpush.xpose.msk.msra.mxu1 %vm89_vm2, %v88_v10 }
 0x103   :  { %v238_v28 = vpop.permute.xlu2 %237 }
 0x105   :  { %938 = vmatmul.msk.f32.vlgmr.msra.gmra.mxu1 %vm89_vm2, %v1141_v7 }
 0x106   :  { %152 = vmatpush.msrb.mxu1 %v132_v9  ;;  %v386_v9 = vld [vmem:[%s1423_s1 + $0x1] sm:$0x1]  ;;  %s1041_s1 = smov 40  }
 0x107   :  { %vm417_vm5 = vcmp.eq.f32.partialorder %v386_v9, 0.0  ;;  %v687_v9 = vld [vmem:[%s1425_s3] sm:$0xff] }
 0x108   :  { %943 = vmatpush.xpose.msk.msra.mxu1 %vm89_vm2, %v241_v11  ;;  %v418_v11 = vsel %vm417_vm5, 1, %v1035_v13 }
 0x109   :  { %v419_v14 = vperm.slane %v418_v11, 0 }
 0x10b   :  { %vm1229_vm6 = vcmp.eq.s32.totalorder %v419_v14, 1 }
 0x182   :  { %v112_v17 = vpop.f32.mrf.mxu1 }
 0x183   :  { %v119_v18 = vsel %vm1159_vm4, -1e+20, %v112_v17 }
 0x184   :  { %v120_v19 = vsel %vm89_vm2, %v119_v18, -inf }
 0x185   :  { %121 = vmax.xlane.f32.xlu0 %v120_v19 }
 0x1f8   :  { %v122_v20 = vpop.xlane.xlu0 %121 }
 0x1f9   :  { %v123_v21 = vsub.f32 %v119_v18, %v122_v20 }
 0x1fb   :  { %v124_v22 = vmul.f32 1.442695, %v123_v21 }
 0x1fd   :  { %988 = vpow2.f32 %v124_v22 }
 0x203   :  { %v989_v23 = vpop.eup %988 }
 0x204   :  { %v126_v24 = vsel %vm89_vm2, %v989_v23, 0.0 }
 0x205   :  { %127 = vadd.xlane.f32.xlu1 %v126_v24 }
 0x21e   :  { %164 = vrot.lane.b32.xlu1 %v1136_v6, %s1036_s24 }
 0x278   :  { %v128_v25 = vpop.xlane.xlu1 %127 }
 0x279   :  { %990 = vrcp.f32 %v128_v25 }
 0x27f   :  { %v991_v26 = vpop.eup %990 }
 0x280   :  { %v130_v27 = vmul.f32 %v991_v26, %v989_v23 }
 0x282   :  { %939 = vmatmul.msk.f32.vlgmr.msrb.gmra.mxu1 %vm89_vm2, %v130_v27 }
 0x28a   :  { %944 = vmatmul.msk.f32.vlgmr.msra.gmra.mxu1 %vm89_vm2, %v238_v28 }
 0x290   :  { %v165_v29 = vpop.permute.xlu1 %164 }
 0x291   :  { %940 = vmatpush.xpose.msk.msra.mxu3 %vm89_vm2, %v165_v29 }
 0x294   :  { %941 = vmatmul.msk.f32.vlgmr.msra.gmra.mxu3 %vm89_vm2, %v162_v8 }
 0x2ff   :  { %v154_v30 = vpop.f32.mrf.mxu1 }
 0x300   :  { %157 = vst.msk [vmem:[#allocation3] sm:$0xff] %vm89_vm2, %v154_v30 }
 0x307   :  { %v263_v32 = vpop.f32.mrf.mxu1 }
 0x308   :  { %v266_v33 = vsel %vm1159_vm4, -1e+20, %v263_v32 }
 0x309   :  { %v267_v34 = vsel %vm89_vm2, %v266_v33, -inf }
 0x30a   :  { %268 = vmax.xlane.f32.xlu1 %v267_v34 }
 0x317   :  { %v187_v35 = vpop.f32.mrf.mxu3 }
 0x318   :  { %v190_v36 = vsel %vm1159_vm4, -1e+20, %v187_v35 }
 0x319   :  { %v191_v37 = vsel %vm89_vm2, %v190_v36, -inf }
 0x31a   :  { %192 = vmax.xlane.f32.xlu2 %v191_v37 }
 0x323   :  { %316 = vrot.lane.b32.xlu1 %v1136_v6, %s1037_s27 }
 0x32b   :  { %463 = vrot.lane.b32.xlu1 %v461_v43, %s1031_s2 }
 0x332   :  { %278 = vrot.lane.b32.xlu2 %v1136_v6, %s1038_s0 }
 0x333   :  { %538 = vrot.lane.b32.xlu1 %v461_v43, %s1034_s21 }
 0x33a   :  { %313 = vrot.lane.b32.xlu2 %v1141_v7, %s1039_s28 }
 0x342   :  { %616 = vrot.lane.b32.xlu2 %v1193_v41, %s1037_s27 }
 0x37d   :  { %v269_v39 = vpop.xlane.xlu1 %268 }
 0x37e   :  { %v270_v50 = vsub.f32 %v266_v33, %v269_v39 }
 0x380   :  { %v271_v51 = vmul.f32 1.442695, %v270_v50 }
 0x38d   :  { %v193_v40 = vpop.xlane.xlu2 %192 }
 0x38e   :  { %v194_v42 = vsub.f32 %v190_v36, %v193_v40 }
 0x390   :  { %v195_v44 = vmul.f32 1.442695, %v194_v42 }
 0x392   :  { %992 = vpow2.f32 %v195_v44 }
 0x393   :  { %994 = vpow2.f32 %v271_v51 }
 0x395   :  { %v279_v45 = vpop.permute.xlu2 %278  ;;  %v317_v46 = vpop.permute.xlu1 %316 }
 0x396   :  { %946 = vmatpush.xpose.msk.msrb.mxu1 %vm89_vm2, %v317_v46 }
 0x398   :  { %v993_v47 = vpop.eup %992 }
 0x399   :  { %v197_v48 = vsel %vm89_vm2, %v993_v47, 0.0  ;;  %v995_v52 = vpop.eup %994 }
 0x39a   :  { %198 = vadd.xlane.f32.xlu0 %v197_v48  ;;  %v273_v53 = vsel %vm89_vm2, %v995_v52, 0.0 }
 0x39d   :  { %v314_v49 = vpop.permute.xlu2 %313  ;;  %v464_v0 = vpop.permute.xlu1 %463 }
 0x39e   :  { %947 = vmatmul.msk.f32.vlgmr.msrb.gmra.mxu1 %vm89_vm2, %v314_v49 }
 0x3a5   :  { %v617_v63 = vpop.permute.xlu2 %616  ;;  %v539_v8 = vpop.permute.xlu1 %538 }
 0x3ae   :  { %202 = vrot.lane.b32.xlu0 %v1136_v6, %s1040_s29 }
 0x3b6   :  { %390 = vrot.lane.b32.xlu0 %v1193_v41, %s1030_s18 }
 0x3be   :  { %466 = vrot.lane.b32.xlu0 %v1193_v41, %s1036_s24 }
 0x3c6   :  { %541 = vrot.lane.b32.xlu0 %v1193_v41, %s1033_s20 }
 0x3f0   :  { %274 = vadd.xlane.f32.xlu0 %v273_v53 }
 0x404   :  { %613 = vrot.lane.b32.xlu0 %v461_v43, %s1039_s28 }
 0x40d   :  { %v199_v54 = vpop.xlane.xlu0 %198 }
 0x40e   :  { %996 = vrcp.f32 %v199_v54 }
 0x414   :  { %v997_v57 = vpop.eup %996 }
 0x415   :  { %v201_v60 = vmul.f32 %v997_v57, %v993_v47 }
 0x41b   :  { %v339_v55 = vpop.f32.mrf.mxu1 }
 0x41c   :  { %v342_v56 = vsel %vm1159_vm4, -1e+20, %v339_v55 }
 0x41d   :  { %v343_v58 = vsel %vm89_vm2, %v342_v56, -inf }
 0x41e   :  { %344 = vmax.xlane.f32.xlu2 %v343_v58 }
 0x420   :  { %v203_v59 = vpop.permute.xlu0 %202 }
 0x421   :  { %223 = vmatpush.msrb.mxu3 %v203_v59 }
 0x422   :  { %942 = vmatmul.msk.f32.vlgmr.msrb.gmra.mxu3 %vm89_vm2, %v201_v60 }
 0x423   :  { %299 = vmatpush.msra.mxu3 %v279_v45 }
 0x428   :  { %v391_v61 = vpop.permute.xlu0 %390 }
 0x429   :  { %949 = vmatpush.xpose.msk.msrb.mxu3 %vm89_vm2, %v391_v61 }
 0x430   :  { %v467_v62 = vpop.permute.xlu0 %466 }
 0x431   :  { %952 = vmatpush.xpose.msk.msra.mxu2 %vm89_vm2, %v467_v62 }
 0x434   :  { %953 = vmatmul.msk.f32.vlgmr.msra.gmra.mxu2 %vm89_vm2, %v464_v0 }
 0x435   :  { %958 = vmatpush.xpose.msk.msrb.mxu2 %vm89_vm2, %v617_v63 }
 0x438   :  { %v542_v1 = vpop.permute.xlu0 %541 }
 0x463   :  { %v275_v2 = vpop.xlane.xlu0 %274 }
 0x464   :  { %998 = vrcp.f32 %v275_v2 }
 0x46a   :  { %v999_v3 = vpop.eup %998 }
 0x46b   :  { %v277_v5 = vmul.f32 %v999_v3, %v995_v52 }
 0x46d   :  { %945 = vmatmul.msk.f32.vlgmr.msra.gmra.mxu3 %vm89_vm2, %v277_v5  ;;  %v690_v5 = vld [vmem:[%s1425_s3 + $0x18] sm:$0xff] }
 0x46e   :  { %955 = vmatpush.xpose.msk.msra.mxu3 %vm89_vm2, %v542_v1 }
 0x475   :  { %950 = vmatmul.msk.f32.vlgmr.msrb.gmra.mxu3 %vm89_vm2, %v461_v43 }
 0x476   :  { %v614_v7 = vpop.permute.xlu0 %613  ;;  %713 = vmatpush.msrb.mxu3 %v690_v5  ;;  %v841_v5 = vld [vmem:[%s1430_s9 + $0x68] sm:$0xff] }
 0x477   :  { %959 = vmatmul.msk.f32.vlgmr.msrb.gmra.mxu2 %vm89_vm2, %v614_v7  ;;  %v689_v7 = vld [vmem:[%s1425_s3 + $0x10] sm:$0xff] }
 0x478   :  { %714 = vmatpush.msrb.mxu3 %v689_v7  ;;  %v840_v7 = vld [vmem:[%s1430_s9 + $0x60] sm:$0xff] }
 0x47d   :  { %956 = vmatmul.msk.f32.vlgmr.msra.gmra.mxu3 %vm89_vm2, %v539_v8  ;;  %v688_v8 = vld [vmem:[%s1425_s3 + $0x8] sm:$0xff] }
 0x47e   :  { %715 = vmatpush.msrb.mxu3 %v688_v8  ;;  %v839_v8 = vld [vmem:[%s1430_s9 + $0x58] sm:$0xff] }
 0x480   :  { %716 = vmatpush.msrb.mxu3 %v687_v9  ;;  %v838_v9 = vld [vmem:[%s1430_s9 + $0x50] sm:$0xff] }
 0x491   :  { %v345_v10 = vpop.xlane.xlu2 %344 }
 0x492   :  { %v346_v12 = vsub.f32 %v342_v56, %v345_v10 }
 0x494   :  { %v347_v15 = vmul.f32 1.442695, %v346_v12 }
 0x496   :  { %1000 = vpow2.f32 %v347_v15 }
 0x49c   :  { %v1001_v20 = vpop.eup %1000 }
 0x49d   :  { %v349_v21 = vsel %vm89_vm2, %v1001_v20, 0.0 }
 0x4a5   :  { %v225_v13 = vpop.f32.mrf.mxu3 }
 0x4b7   :  { %v489_v17 = vpop.f32.mrf.mxu2 }
 0x4b8   :  { %v492_v18 = vsel %vm1229_vm6, -1e+20, %v489_v17 }
 0x4b9   :  { %v493_v19 = vsel %vm89_vm2, %v492_v18, -inf }
 0x4ba   :  { %494 = vmax.xlane.f32.xlu0 %v493_v19 }
 0x4c2   :  { %350 = vadd.xlane.f32.xlu0 %v349_v21 }
 0x4d6   :  { %354 = vrot.lane.b32.xlu0 %v1136_v6, %s1041_s1 }
 0x4de   :  { %579 = vrot.lane.b32.xlu0 %v1193_v41, %s1038_s0 }
 0x4e6   :  { %654 = vrot.lane.b32.xlu0 %v1193_v41, %s1041_s1 }
 0x4f0   :  { %v301_v22 = vpop.f32.mrf.mxu3 }
 0x4f1   :  { %305 = vrot.lane.b32.xlu0 %v301_v22, %s1042_s15 }
 0x4f8   :  { %v414_v23 = vpop.f32.mrf.mxu3 }
 0x4f9   :  { %v421_v24 = vsel %vm1229_vm6, -1e+20, %v414_v23  ;;  %v981_v23 = vld [vmem:[%s1424_s4] ss:$0 sm:$0xff] }
 0x4fa   :  { %v422_v25 = vsel %vm89_vm2, %v421_v24, -inf  ;;  %v639_v26 = vpop.f32.mrf.mxu2 }
 0x4fb   :  { %423 = vmax.xlane.f32.xlu1 %v422_v25  ;;  %v642_v6 = vsel %vm1229_vm6, -1e+20, %v639_v26 }
 0x4fc   :  { %v643_v27 = vsel %vm89_vm2, %v642_v6, -inf }
 0x500   :  { %v564_v46 = vpop.f32.mrf.mxu3 }
 0x501   :  { %v567_v48 = vsel %vm1229_vm6, -1e+20, %v564_v46 }
 0x502   :  { %v568_v49 = vsel %vm89_vm2, %v567_v48, -inf }
 0x503   :  { %644 = vmax.xlane.f32.xlu1 %v643_v27 }
 0x52d   :  { %v495_v28 = vpop.xlane.xlu0 %494 }
 0x52e   :  { %v496_v29 = vsub.f32 %v492_v18, %v495_v28 }
 0x530   :  { %v497_v30 = vmul.f32 1.442695, %v496_v29 }
 0x532   :  { %1002 = vpow2.f32 %v497_v30  ;;  %v1045_v30 = vmov 32.0  }
 0x535   :  { %v351_v34 = vpop.xlane.xlu0 %350 }
 0x536   :  { %1004 = vrcp.f32 %v351_v34 }
 0x538   :  { %v1248_v32 = vpop.eup %1002 }
 0x539   :  { %v499_v33 = vsel %vm89_vm2, %v1248_v32, 0.0 }
 0x53a   :  { %500 = vadd.xlane.f32.xlu1 %v499_v33 }
 0x53c   :  { %v1005_v35 = vpop.eup %1004 }
 0x53d   :  { %v353_v36 = vmul.f32 %v1005_v35, %v1001_v20 }
 0x548   :  { %v355_v37 = vpop.permute.xlu0 %354 }
 0x549   :  { %375 = vmatpush.msra.mxu1 %v355_v37 }
 0x54a   :  { %948 = vmatmul.msk.f32.vlgmr.msra.gmra.mxu1 %vm89_vm2, %v353_v36 }
 0x550   :  { %v580_v52 = vpop.permute.xlu0 %579 }
 0x553   :  { %433 = vrot.lane.b32.xlu1 %v1193_v41, %s1032_s19 }
 0x558   :  { %v655_v55 = vpop.permute.xlu0 %654 }
 0x55b   :  { %229 = vrot.lane.b32.xlu1 %v225_v13, %s1043_s16 }
 0x563   :  { %v306_v58 = vpop.permute.xlu0 %305 }
 0x56e   :  { %v424_v38 = vpop.xlane.xlu1 %423 }
 0x56f   :  { %v425_v44 = vsub.f32 %v421_v24, %v424_v38 }
 0x571   :  { %v426_v47 = vmul.f32 1.442695, %v425_v44 }
 0x576   :  { %v645_v39 = vpop.xlane.xlu1 %644 }
 0x577   :  { %v646_v40 = vsub.f32 %v642_v6, %v645_v39 }
 0x579   :  { %v647_v42 = vmul.f32 1.442695, %v646_v40 }
 0x57b   :  { %1006 = vpow2.f32 %v647_v42 }
 0x57c   :  { %1008 = vpow2.f32 %v426_v47 }
 0x581   :  { %v1256_v43 = vpop.eup %1006 }
 0x582   :  { %v649_v45 = vsel %vm89_vm2, %v1256_v43, 0.0  ;;  %v1009_v50 = vpop.eup %1008 }
 0x583   :  { %650 = vadd.xlane.f32.xlu2 %v649_v45  ;;  %v428_v51 = vsel %vm89_vm2, %v1009_v50, 0.0 }
 0x58b   :  { %569 = vmax.xlane.f32.xlu2 %v568_v49  ;;  %v791_v49 = vld [vmem:[%s1429_s7 + $0x10] sm:$0xff] }
 0x593   :  { %429 = vadd.xlane.f32.xlu2 %v428_v51 }
 0x5ad   :  { %v501_v53 = vpop.xlane.xlu1 %500 }
 0x5c5   :  { %v434_v54 = vpop.permute.xlu1 %433 }
 0x5c6   :  { %454 = vmatpush.msrb.mxu0 %v434_v54 }
 0x5c7   :  { %v377_v56 = vpop.f32.mrf.mxu1 }
 0x5c8   :  { %600 = vmatpush.msra.mxu0 %v580_v52  ;;  %381 = vrot.lane.b32.xlu1 %v377_v56, %s1044_s17 }
 0x5cd   :  { %v230_v57 = vpop.permute.xlu1 %229 }
 0x5ce   :  { %233 = vst.msk [vmem:[#allocation3] sm:$0xff] %vm232_vm7, %v230_v57 }
 0x5cf   :  { %309 = vst.msk [vmem:[#allocation3] sm:$0xff] %vm308_vm8, %v306_v58 }
 0x5f6   :  { %v651_v59 = vpop.xlane.xlu2 %650 }
 0x5fe   :  { %v570_v60 = vpop.xlane.xlu2 %569 }
 0x5ff   :  { %v571_v61 = vsub.f32 %v567_v48, %v570_v60  ;;  %v792_v48 = vld [vmem:[%s1429_s7 + $0x18] sm:$0xff]  ;;  %v1325_v60 = vld [vmem:[%s1426_s5] ss:$0 sm:$0xff] }
 0x601   :  { %v572_v62 = vmul.f32 1.442695, %v571_v61 }
 0x603   :  { %1010 = vpow2.f32 %v572_v62 }
 0x606   :  { %v430_v63 = vpop.xlane.xlu2 %429 }
 0x607   :  { %1012 = vrcp.f32 %v430_v63  ;;  %v1330_v63 = vld [vmem:[%s1427_s6] ss:$0 sm:$0xff] }
 0x608   :  { %1014 = vrcp.f32 %v501_v53 }
 0x609   :  { %v1011_v0 = vpop.eup %1010 }
 0x60a   :  { %v574_v1 = vsel %vm89_vm2, %v1011_v0, 0.0 }
 0x60b   :  { %575 = vadd.xlane.f32.xlu2 %v574_v1 }
 0x60d   :  { %v1013_v2 = vpop.eup %1012 }
 0x60e   :  { %v432_v3 = vmul.f32 %v1013_v2, %v1009_v50  ;;  %v1015_v14 = vpop.eup %1014  ;;  %v790_v50 = vld [vmem:[%s1429_s7 + $0x8] sm:$0xff]  ;;  %v843_v2 = vld [vmem:[%s1430_s9 + $0x78] sm:$0xff] }
 0x60f   :  { %v503_v16 = vmul.f32 %v1015_v14, %v1248_v32  ;;  %848 = vmatpush.msra.mxu2 %v843_v2  ;;  %v834_v14 = vld [vmem:[%s1430_s9 + $0x30] sm:$0xff] }
 0x610   :  { %951 = vmatmul.msk.f32.vlgmr.msrb.gmra.mxu0 %vm89_vm2, %v432_v3  ;;  %v842_v3 = vld [vmem:[%s1430_s9 + $0x70] sm:$0xff] }
 0x611   :  { %815 = vmatpush.msrb.mxu0 %v792_v48  ;;  %849 = vmatpush.msra.mxu2 %v842_v3  ;;  %v986_v3 = vld [vmem:[%s1432_s11] ss:$0 sm:$0xff] }
 0x613   :  { %816 = vmatpush.msrb.mxu0 %v791_v49  ;;  %850 = vmatpush.msra.mxu2 %v841_v5 }
 0x615   :  { %817 = vmatpush.msrb.mxu0 %v790_v50  ;;  %851 = vmatpush.msra.mxu2 %v840_v7  ;;  %v987_v7 = vld [vmem:[%s1433_s12] ss:$0 sm:$0xff] }
 0x617   :  { %852 = vmatpush.msra.mxu2 %v839_v8 }
 0x619   :  { %853 = vmatpush.msra.mxu2 %v838_v9 }
 0x623   :  { %504 = vrot.lane.b32.xlu2 %v1193_v41, %s1040_s29 }
 0x63a   :  { %v382_v10 = vpop.permute.xlu1 %381 }
 0x63b   :  { %385 = vst.msk [vmem:[#allocation3] sm:$0xff] %vm384_vm9, %v382_v10  ;;  %v837_v10 = vld [vmem:[%s1430_s9 + $0x48] sm:$0xff] }
 0x63c   :  { %854 = vmatpush.msra.mxu2 %v837_v10 }
 0x642   :  { %v685_v11 = vld [vmem:[#allocation3] sm:$0xff] }
 0x643   :  { %961 = vmatmul.msk.f32.vlgmr.msrb.gmra.mxu3 %vm50_vm0, %v685_v11  ;;  %v836_v11 = vld [vmem:[%s1430_s9 + $0x40] sm:$0xff] }
 0x644   :  { %855 = vmatpush.msra.mxu2 %v836_v11 }
 0x67e   :  { %v576_v12 = vpop.xlane.xlu2 %575 }
 0x67f   :  { %1016 = vrcp.f32 %v576_v12  ;;  %v835_v12 = vld [vmem:[%s1430_s9 + $0x38] sm:$0xff] }
 0x680   :  { %1018 = vrcp.f32 %v651_v59  ;;  %856 = vmatpush.msra.mxu2 %v835_v12 }
 0x681   :  { %1020 = vrcp.f32 %v1045_v30 }
 0x682   :  { %857 = vmatpush.msra.mxu2 %v834_v14 }
 0x685   :  { %v1017_v15 = vpop.eup %1016 }
 0x686   :  { %v578_v17 = vmul.f32 %v1017_v15, %v1011_v0  ;;  %v505_v18 = vpop.permute.xlu2 %504  ;;  %v1019_v41 = vpop.eup %1018  ;;  %v833_v15 = vld [vmem:[%s1430_s9 + $0x28] sm:$0xff] }
 0x687   :  { %525 = vmatpush.msrb.mxu1 %v505_v18  ;;  %v653_v20 = vmul.f32 %v1019_v41, %v1256_v43  ;;  %v1021_v33 = vpop.eup %1020  ;;  %858 = vmatpush.msra.mxu2 %v833_v15 }
 0x688   :  { %954 = vmatmul.msk.f32.vlgmr.msrb.gmra.mxu1 %vm89_vm2, %v503_v16  ;;  %957 = vmatmul.msk.f32.vlgmr.msra.gmra.mxu0 %vm89_vm2, %v578_v17  ;;  %v735_v34 = vmul.f32 32.0, %v1021_v33  ;;  %vm739_vm10 = vweird.f32 %v1021_v33  ;;  %v832_v16 = vld [vmem:[%s1430_s9 + $0x20] sm:$0xff]  ;;  %v831_v17 = vld [vmem:[%s1430_s9 + $0x18] sm:$0xff] }
 0x689   :  { %675 = vmatpush.msra.mxu1 %v655_v55  ;;  %859 = vmatpush.msra.mxu2 %v832_v16 }
 0x68b   :  { %860 = vmatpush.msra.mxu2 %v831_v17 }
 0x68d   :  { %v456_v19 = vpop.f32.mrf.mxu0 }
 0x68e   :  { %459 = vst.msk [vmem:[#allocation3 + $0x8] sm:$0xff] %vm89_vm2, %v456_v19 }
 0x690   :  { %960 = vmatmul.msk.f32.vlgmr.msra.gmra.mxu1 %vm89_vm2, %v653_v20 }
 0x6c6   :  { %v718_v24 = vpop.f32.mrf.mxu3 }
 0x6c7   :  { %v719_v25 = vadd.f32 %v981_v23, %v718_v24  ;;  %v984_v24 = vld [vmem:[%s1428_s8] ss:$0 sm:$0xff] }
 0x6c9   :  { %v724_v26 = vadd.f32 %v719_v25, %v1131_v4  ;;  %v736_v4 = vsub.f32 1.0, %v735_v34 }
 0x6cb   :  { %v728_v6 = vsel %vm50_vm0, %v724_v26, 0.0  ;;  %v737_v35 = vmul.f32 %v1021_v33, %v736_v4 }
 0x6cd   :  { %v738_v36 = vadd.f32 %v1021_v33, %v737_v35 }
 0x6cf   :  { %v1303_v37 = vsel %vm739_vm10, %v1021_v33, %v738_v36 }
 0x705   :  { %v527_v21 = vpop.f32.mrf.mxu1  ;;  %v602_v13 = vpop.f32.mrf.mxu0 }
 0x706   :  { %531 = vrot.lane.b32.xlu2 %v527_v21, %s1043_s16  ;;  %606 = vrot.lane.b32.xlu0 %v602_v13, %s1042_s15  ;;  %v830_v13 = vld [vmem:[%s1430_s9 + $0x10] sm:$0xff] }
 0x707   :  { %861 = vmatpush.msra.mxu2 %v830_v13 }
 0x70d   :  { %v677_v22 = vpop.f32.mrf.mxu1 }
 0x70e   :  { %681 = vrot.lane.b32.xlu1 %v677_v22, %s1044_s17  ;;  %v829_v22 = vld [vmem:[%s1430_s9 + $0x8] sm:$0xff] }
 0x70f   :  { %862 = vmatpush.msra.mxu2 %v829_v22 }
 0x72f   :  { %729 = vadd.xlane.f32.xlu2 %v728_v6 }
 0x760   :  { %v532_v27 = vpop.permute.xlu2 %531 }
 0x761   :  { %534 = vst.msk [vmem:[#allocation3 + $0x8] sm:$0xff] %vm232_vm7, %v532_v27 }
 0x778   :  { %v607_v28 = vpop.permute.xlu0 %606 }
 0x779   :  { %609 = vst.msk [vmem:[#allocation3 + $0x8] sm:$0xff] %vm308_vm8, %v607_v28 }
 0x780   :  { %v682_v29 = vpop.permute.xlu1 %681 }
 0x781   :  { %684 = vst.msk [vmem:[#allocation3 + $0x8] sm:$0xff] %vm384_vm9, %v682_v29 }
 0x788   :  { %v686_v32 = vld [vmem:[#allocation3 + $0x8] sm:$0xff] }
 0x789   :  { %962 = vmatmul.msk.f32.gmra.mxu3 %vm50_vm0, %v686_v32 }
 0x7a2   :  { %v730_v38 = vpop.xlane.xlu2 %729 }
 0x7a3   :  { %v741_v39 = vmul.f32 %v1303_v37, %v730_v38 }
 0x7a5   :  { %v743_v40 = vsub.f32 %v724_v26, %v741_v39 }
 0x7a7   :  { %v745_v42 = vmul.f32 %v743_v40, %v743_v40 }
 0x7a9   :  { %v747_v43 = vsel %vm50_vm0, %v745_v42, 0.0  ;;  %v985_v42 = vld [vmem:[%s1431_s10] ss:$0 sm:$0xff] }
 0x7aa   :  { %748 = vadd.xlane.f32.xlu1 %v747_v43 }
 0x80c   :  { %v721_v44 = vpop.f32.mrf.mxu3 }
 0x80d   :  { %v722_v45 = vadd.f32 %v981_v23, %v721_v44  ;;  %v828_v23 = vld [vmem:[%s1430_s9] sm:$0xff] }
 0x80e   :  { %863 = vmatpush.msra.mxu2 %v828_v23 }
 0x80f   :  { %v725_v46 = vadd.f32 %v722_v45, %v1177_v31  ;;  %v789_v31 = vld [vmem:[%s1429_s7] sm:$0xff] }
 0x810   :  { %818 = vmatpush.msrb.mxu0 %v789_v31 }
 0x811   :  { %v731_v47 = vsel %vm50_vm0, %v725_v46, 0.0 }
 0x812   :  { %732 = vadd.xlane.f32.xlu0 %v731_v47 }
 0x81d   :  { %v749_v51 = vpop.xlane.xlu1 %748 }
 0x81e   :  { %v753_v52 = vmul.f32 %v749_v51, %v1303_v37 }
 0x820   :  { %v755_v53 = vadd.f32 1e-05, %v753_v52 }
 0x822   :  { %1022 = vrsqrt.f32 %v755_v53  ;;  %vm763_vm12 = vweird.f32 %v755_v53 }
 0x828   :  { %v1023_v54 = vpop.eup %1022 }
 0x829   :  { %v758_v55 = vmul.f32 %v1023_v54, %v755_v53  ;;  %vm764_vm11 = vweird.f32 %v1023_v54 }
 0x82a   :  { %vm765_vm13 = vmor %vm763_vm12, %vm764_vm11 }
 0x82b   :  { %v759_v56 = vmul.f32 %v1023_v54, %v758_v55 }
 0x82d   :  { %v760_v57 = vmul.f32 0.5, %v759_v56 }
 0x82f   :  { %v761_v58 = vsub.f32 1.5, %v760_v57 }
 0x831   :  { %v762_v59 = vmul.f32 %v1023_v54, %v761_v58 }
 0x833   :  { %v766_v61 = vsel %vm765_vm13, %v1023_v54, %v762_v59 }
 0x834   :  { %v777_v62 = vmul.f32 %v766_v61, %v743_v40 }
 0x836   :  { %v782_v0 = vmul.f32 %v1325_v60, %v777_v62 }
 0x838   :  { %v1334_v1 = vadd.f32 %v1330_v63, %v782_v0 }
 0x83a   :  { %963 = vmatmul.msk.f32.vlgmr.msrb.gmra.mxu0 %vm50_vm0, %v1334_v1 }
 0x885   :  { %v733_v18 = vpop.xlane.xlu0 %732 }
 0x886   :  { %v742_v41 = vmul.f32 %v1303_v37, %v733_v18 }
 0x888   :  { %v744_v19 = vsub.f32 %v725_v46, %v742_v41 }
 0x88a   :  { %v746_v20 = vmul.f32 %v744_v19, %v744_v19 }
 0x88c   :  { %v750_v21 = vsel %vm50_vm0, %v746_v20, 0.0 }
 0x88d   :  { %751 = vadd.xlane.f32.xlu2 %v750_v21 }
 0x8b7   :  { %v820_v25 = vpop.f32.mrf.mxu0 }
 0x8b8   :  { %v821_v26 = vadd.f32 %v984_v24, %v820_v25 }
 0x8ba   :  { %v826_v6 = vmax.f32 %v821_v26, 0.0 }
 0x8bc   :  { %864 = vmatmul.f32.vlgmr.msra.gmra.mxu2 %v826_v6 }
 0x900   :  { %v752_v27 = vpop.xlane.xlu2 %751 }
 0x901   :  { %v754_v28 = vmul.f32 %v752_v27, %v1303_v37 }
 0x903   :  { %v756_v29 = vadd.f32 1e-05, %v754_v28 }
 0x905   :  { %1024 = vrsqrt.f32 %v756_v29  ;;  %vm773_vm15 = vweird.f32 %v756_v29 }
 0x90b   :  { %v1025_v30 = vpop.eup %1024 }
 0x90c   :  { %v768_v32 = vmul.f32 %v1025_v30, %v756_v29  ;;  %vm774_vm14 = vweird.f32 %v1025_v30 }
 0x90d   :  { %vm775_vm1 = vmor %vm773_vm15, %vm774_vm14 }
 0x90e   :  { %v769_v33 = vmul.f32 %v1025_v30, %v768_v32 }
 0x910   :  { %v770_v34 = vmul.f32 0.5, %v769_v33 }
 0x912   :  { %v771_v4 = vsub.f32 1.5, %v770_v34 }
 0x914   :  { %v772_v35 = vmul.f32 %v1025_v30, %v771_v4 }
 0x916   :  { %v776_v36 = vsel %vm775_vm1, %v1025_v30, %v772_v35 }
 0x917   :  { %v778_v38 = vmul.f32 %v776_v36, %v744_v19 }
 0x919   :  { %v783_v39 = vmul.f32 %v1325_v60, %v778_v38 }
 0x91b   :  { %v788_v40 = vadd.f32 %v1330_v63, %v783_v39 }
 0x91d   :  { %964 = vmatmul.msk.f32.gmra.mxu0 %vm50_vm0, %v788_v40 }
 0x93f   :  { %v865_v43 = vpop.f32.mrf.mxu2 }
 0x940   :  { %v866_v44 = vadd.f32 %v985_v42, %v865_v43 }
 0x942   :  { %v871_v45 = vadd.f32 %v866_v44, %v1334_v1 }
 0x944   :  { %v875_v46 = vsel %vm50_vm0, %v871_v45, 0.0 }
 0x945   :  { %876 = vadd.xlane.f32.xlu0 %v875_v46 }
 0x99a   :  { %v823_v47 = vpop.f32.mrf.mxu0 }
 0x99b   :  { %v824_v48 = vadd.f32 %v984_v24, %v823_v47 }
 0x99d   :  { %v827_v49 = vmax.f32 %v824_v48, 0.0 }
 0x99f   :  { %867 = vmatmul.f32.gmra.mxu2 %v827_v49 }
 0x9b8   :  { %v877_v50 = vpop.xlane.xlu0 %876 }
 0x9b9   :  { %v881_v31 = vmul.f32 %v877_v50, %v1303_v37 }
 0x9bb   :  { %v883_v51 = vsub.f32 %v871_v45, %v881_v31 }
 0x9bd   :  { %v885_v52 = vmul.f32 %v883_v51, %v883_v51 }
 0x9bf   :  { %v887_v53 = vsel %vm50_vm0, %v885_v52, 0.0 }
 0x9c0   :  { %888 = vadd.xlane.f32.xlu2 %v887_v53 }
 0xa22   :  { %v868_v54 = vpop.f32.mrf.mxu2 }
 0xa23   :  { %v869_v55 = vadd.f32 %v985_v42, %v868_v54 }
 0xa25   :  { %v872_v56 = vadd.f32 %v869_v55, %v788_v40 }
 0xa27   :  { %v878_v57 = vsel %vm50_vm0, %v872_v56, 0.0 }
 0xa28   :  { %879 = vadd.xlane.f32.xlu1 %v878_v57 }
 0xa33   :  { %v889_v58 = vpop.xlane.xlu2 %888 }
 0xa34   :  { %v893_v59 = vmul.f32 %v889_v58, %v1303_v37 }
 0xa36   :  { %v895_v60 = vadd.f32 1e-05, %v893_v59 }
 0xa38   :  { %1026 = vrsqrt.f32 %v895_v60  ;;  %vm903_vm3 = vweird.f32 %v895_v60 }
 0xa3e   :  { %v1027_v61 = vpop.eup %1026 }
 0xa3f   :  { %v898_v62 = vmul.f32 %v1027_v61, %v895_v60  ;;  %vm904_vm2 = vweird.f32 %v1027_v61 }
 0xa40   :  { %vm905_vm4 = vmor %vm903_vm3, %vm904_vm2 }
 0xa41   :  { %v899_v63 = vmul.f32 %v1027_v61, %v898_v62 }
 0xa43   :  { %v900_v0 = vmul.f32 0.5, %v899_v63 }
 0xa45   :  { %v901_v1 = vsub.f32 1.5, %v900_v0 }
 0xa47   :  { %v902_v2 = vmul.f32 %v1027_v61, %v901_v1 }
 0xa49   :  { %v906_v5 = vsel %vm905_vm4, %v1027_v61, %v902_v2 }
 0xa4a   :  { %v917_v8 = vmul.f32 %v906_v5, %v883_v51 }
 0xa4c   :  { %v922_v9 = vmul.f32 %v986_v3, %v917_v8 }
 0xa4e   :  { %v927_v10 = vadd.f32 %v987_v7, %v922_v9 }
 0xa50   :  { %929 = vst.msk [vmem:[%s1434_s13] sm:$0xff] %vm50_vm0, %v927_v10 }
 0xa9b   :  { %v880_v11 = vpop.xlane.xlu1 %879 }
 0xa9c   :  { %v882_v12 = vmul.f32 %v880_v11, %v1303_v37 }
 0xa9e   :  { %v884_v14 = vsub.f32 %v872_v56, %v882_v12 }
 0xaa0   :  { %v886_v15 = vmul.f32 %v884_v14, %v884_v14 }
 0xaa2   :  { %v890_v16 = vsel %vm50_vm0, %v886_v15, 0.0 }
 0xaa3   :  { %891 = vadd.xlane.f32.xlu0 %v890_v16 }
 0xb16   :  { %v892_v17 = vpop.xlane.xlu0 %891 }
 0xb17   :  { %v894_v18 = vmul.f32 %v892_v17, %v1303_v37 }
 0xb19   :  { %v896_v41 = vadd.f32 1e-05, %v894_v18 }
 0xb1b   :  { %1028 = vrsqrt.f32 %v896_v41  ;;  %vm913_vm6 = vweird.f32 %v896_v41 }
 0xb21   :  { %v1029_v19 = vpop.eup %1028 }
 0xb22   :  { %v908_v20 = vmul.f32 %v1029_v19, %v896_v41  ;;  %vm914_vm5 = vweird.f32 %v1029_v19 }
 0xb23   :  { %vm915_vm7 = vmor %vm913_vm6, %vm914_vm5 }
 0xb24   :  { %v909_v21 = vmul.f32 %v1029_v19, %v908_v20 }
 0xb26   :  { %v910_v13 = vmul.f32 0.5, %v909_v21 }
 0xb28   :  { %v911_v22 = vsub.f32 1.5, %v910_v13 }
 0xb2a   :  { %v912_v23 = vmul.f32 %v1029_v19, %v911_v22 }
 0xb2c   :  { %v916_v24 = vsel %vm915_vm7, %v1029_v19, %v912_v23 }
 0xb2d   :  { %v918_v25 = vmul.f32 %v916_v24, %v884_v14 }
 0xb2f   :  { %v923_v26 = vmul.f32 %v986_v3, %v918_v25 }
 0xb31   :  { %v928_v6 = vadd.f32 %v987_v7, %v923_v26 }
 0xb33   :  { %930 = vst.msk [vmem:[%s1434_s13 + $0x8] sm:$0xff] %vm50_vm0, %v928_v6 }

// kernel: transformer_forward.7
= control target key start
LH: loop header
LB: loop body
LE: loop exit
PB: predicated region body
PF: predicated region fallthrough
CT: control target
= control target key end

     0   :  { %s2724_s0 = inlined_call_operand.vmem [shape: f32[16,32], index: 0, kind: input, shape index: {}]   ;;  %s2725_s1 = inlined_call_operand.vmem [shape: f32[16,32], index: 1, kind: input, shape index: {}]   ;;  %s2726_s2 = inlined_call_operand.vmem [shape: f32[8,8], index: 2, kind: input, shape index: {}]   ;;  %s2727_s3 = inlined_call_operand.vmem [shape: f32[2,8], index: 3, kind: input, shape index: {}]   ;;  %s2728_s4 = inlined_call_operand.vmem [shape: f32[32,96], index: 4, kind: input, shape index: {}]   ;;  %s2729_s5 = inlined_call_operand.vmem [shape: f32[32,32], index: 5, kind: input, shape index: {}]   ;;  %s2730_s6 = inlined_call_operand.vmem [shape: f32[1,32], index: 6, kind: input, shape index: {}]   ;;  %s2731_s7 = inlined_call_operand.vmem [shape: f32[1,32], index: 7, kind: input, shape index: {}]   ;;  %s2732_s8 = inlined_call_operand.vmem [shape: f32[1,32], index: 8, kind: input, shape index: {}]   ;;  %s2733_s9 = inlined_call_operand.vmem [shape: f32[32,32], index: 9, kind: input, shape index: {}]   ;;  %s2734_s10 = inlined_call_operand.vmem [shape: f32[32,64], index: 10, kind: input, shape index: {}]   ;;  %s2735_s11 = inlined_call_operand.vmem [shape: f32[32,32], index: 11, kind: input, shape index: {}]   ;;  %s2736_s12 = inlined_call_operand.vmem [shape: f32[1,32], index: 12, kind: input, shape index: {}]   ;;  %s2737_s13 = inlined_call_operand.vmem [shape: f32[1,32], index: 13, kind: input, shape index: {}]   ;;  %s2738_s14 = inlined_call_operand.hbm [shape: f32[1,32], index: 14, kind: input, shape index: {}]   ;;  %s2739_s15 = inlined_call_operand.vmem [shape: f32[32,128], index: 15, kind: input, shape index: {}]   ;;  %s2740_s16 = inlined_call_operand.hbm [shape: f32[1,128], index: 16, kind: input, shape index: {}]   ;;  %s2741_s17 = inlined_call_operand.vmem [shape: f32[128,32], index: 17, kind: input, shape index: {}]   ;;  %s2742_s18 = inlined_call_operand.hbm [shape: f32[1,32], index: 18, kind: input, shape index: {}]   ;;  %s2743_s19 = inlined_call_operand.hbm [shape: f32[1,32], index: 19, kind: input, shape index: {}]   ;;  %s2744_s20 = inlined_call_operand.hbm [shape: f32[1,32], index: 20, kind: input, shape index: {}]   ;;  %s2745_s21 = inlined_call_operand.vmem [shape: f32[16,32], index: 21, kind: output, shape index: {}]  }
   0x1   :  { %2751 = sst [smem:[#allocation18_spill]] %s2724_s0 }
   0x2   :  { %2752 = sst [smem:[#allocation19_spill]] %s2725_s1 }
   0x3   :  { %2753 = sst [smem:[#allocation20_spill]] %s2726_s2 }
   0x4   :  { %2754 = sst [smem:[#allocation21_spill]] %s2727_s3 }
   0x5   :  { %2755 = sst [smem:[#allocation22_spill]] %s2728_s4 }
   0x6   :  { %2756 = sst [smem:[#allocation23_spill]] %s2729_s5 }
   0x7   :  { %26 = vsyncpa [#allocation8], 0 }
   0x8   :  { %27 = vsyncpa [#allocation10], 0  ;;  %s75_s26 = sshll.u32 %s2740_s16, 4  ;;  %s76_s26 = int_to_ptr.hbm [resolvable:$true] %s75_s26 }
   0x9   :  { %28 = vsyncpa [#allocation13], 0  ;;  %s2096_s27 = smov [#allocation9]   ;;  %s99_s0 = sshll.u32 %s2743_s19, 4  ;;  %s100_s0 = int_to_ptr.hbm [resolvable:$true] %s99_s0 }
   0xa   :  { %s77_s3 = sshll.u32 %s2096_s27, 4  ;;  %s2097_s4 = smov [#allocation12]   ;;  %s78_s3 = int_to_ptr.vmem [resolvable:$true] %s77_s3 }
   0xb   :  { %80 = dma.hbm_to_vmem [thread:$0]  %s76_s26, 16, %s78_s3, [#allocation10]  }
   0xc   :  { %s101_s30 = sshll.u32 %s2097_s4, 4  ;;  %s62_s23 = sshll.u32 %s2738_s14, 4  ;;  %s102_s30 = int_to_ptr.vmem [resolvable:$true] %s101_s30  ;;  %s63_s23 = int_to_ptr.hbm [resolvable:$true] %s62_s23 }
   0xd   :  { %104 = dma.hbm_to_vmem [thread:$0]  %s100_s0, 16, %s102_s30, [#allocation13]  }
   0xe   :  { %s88_s24 = sshll.u32 %s2742_s18, 4  ;;  %s2098_s2 = smov [#allocation7]   ;;  %s89_s24 = int_to_ptr.hbm [resolvable:$true] %s88_s24 }
   0xf   :  { %s64_s25 = sshll.u32 %s2098_s2, 4  ;;  %s2099_s19 = smov [#allocation11]   ;;  %s65_s25 = int_to_ptr.vmem [resolvable:$true] %s64_s25 }
  0x10   :  { %67 = dma.hbm_to_vmem [thread:$0]  %s63_s23, 16, %s65_s25, [#allocation8]  }
  0x11   :  { %s90_s26 = sshll.u32 %s2099_s19, 4  ;;  %s110_s28 = sshll.u32 %s2744_s20, 4  ;;  %s91_s26 = int_to_ptr.vmem [resolvable:$true] %s90_s26  ;;  %s111_s28 = int_to_ptr.hbm [resolvable:$true] %s110_s28 }
  0x12   :  { %93 = dma.hbm_to_vmem [thread:$0]  %s89_s24, 16, %s91_s26, [#allocation10]  }
  0x13   :  { %s2100_s14 = smov [#allocation14]  }
  0x14   :  { %s112_s29 = sshll.u32 %s2100_s14, 4  ;;  %s113_s29 = int_to_ptr.vmem [resolvable:$true] %s112_s29 }
  0x15   :  { %115 = dma.hbm_to_vmem [thread:$0]  %s111_s28, 16, %s113_s29, [#allocation13]  }
  0x16   :  { %2090 = dma.done.wait [#allocation8], 16  }
  0x17   :  { %2091 = vsyncadd [#allocation8], 4294967280 }
  0x18   :  { %2092 = dma.done.wait [#allocation10], 32  }
  0x19   :  { %2093 = vsyncadd [#allocation10], 4294967264 }
  0x1a   :  { %2094 = dma.done.wait [#allocation13], 32  }
  0x1b   :  { %2095 = vsyncadd [#allocation13], 4294967264  ;;  %s2757_s4 = sld [smem:[#allocation22_spill]]  ;;  %vm142_vm0 = vcmask 261120   ;;  %vm172_vm1 = vcmask 785408   ;;  %s2101_s25 = smov 88  }
  0x1c   :  { %s2758_s2 = sld [smem:[#allocation18_spill]]  ;;  %s2102_s19 = smov 96   ;;  %vm181_vm2 = vcmask 64512   ;;  %vm321_vm4 = vcmask 130112   ;;  %vm397_vm5 = vcmask 195712   ;;  %vm473_vm6 = vcmask 261312  }
  0x1d   :  { %s2103_s26 = smov 120   ;;  %s2104_s27 = smov 80   ;;  %vm945_vm14 = vcmask 523264  }
  0x1e   :  { %s2105_s3 = smov 112   ;;  %s2759_s29 = sld [smem:[#allocation20_spill]] }
  0x1f   :  { %s2106_s18 = smov 64   ;;  %s2107_s30 = smov 48  }
  0x20   :  { %s2108_s5 = smov 56   ;;  %s2109_s20 = smov 104  }
  0x21   :  { %v141_v0 = vld [vmem:[%s2757_s4 + $0x18] sm:$0xff]  ;;  %v140_v1 = vld [vmem:[%s2757_s4 + $0x10] sm:$0xff]  ;;  %v139_v2 = vld [vmem:[%s2757_s4 + $0x8] sm:$0xff]  ;;  %s2110_s22 = smov 72   ;;  %s2111_s23 = smov 40  }
  0x22   :  { %161 = vmatpush.msra.mxu0 %v141_v0  ;;  %v138_v3 = vld [vmem:[%s2757_s4] sm:$0xff]  ;;  %v2297_v23 = vld [vmem:[%s2758_s2 + $0x8] sm:$0xff]  ;;  %s2112_s16 = smov 16   ;;  %s2113_s1 = smov 8  }
  0x23   :  { %v2257_v4 = vld [vmem:[%s2758_s2] sm:$0xff]  ;;  %s2114_s24 = smov 24   ;;  %s2760_s14 = sld [smem:[#allocation23_spill]] }
  0x24   :  { %162 = vmatpush.msra.mxu0 %v140_v1  ;;  %v2285_v13 = vld [vmem:[%s2759_s29] sm:$0xff]  ;;  %s2761_s2 = sld [smem:[#allocation19_spill]] }
  0x25   :  { %vm207_vm3 = vcmp.eq.f32.partialorder %v2285_v13, 0.0  ;;  %s2762_s28 = sld [smem:[#allocation21_spill]] }
  0x26   :  { %163 = vmatpush.msra.mxu0 %v139_v2 }
  0x28   :  { %164 = vmatpush.msra.mxu0 %v138_v3 }
  0x29   :  { %1796 = vmatmul.msk.f32.vlgmr.msra.gmra.mxu0 %vm142_vm0, %v2257_v4 }
  0x31   :  { %1797 = vmatmul.msk.f32.gmra.mxu0 %vm142_vm0, %v2297_v23 }
  0xa6   :  { %v166_v5 = vpop.f32.mrf.mxu0 }
  0xa7   :  { %173 = vst.msk [vmem:[#allocation2] sm:$0xff] %vm172_vm1, %v166_v5 }
  0xae   :  { %v2262_v6 = vld [vmem:[#allocation2] sm:$0xff]  ;;  %v169_v33 = vpop.f32.mrf.mxu0 }
  0xaf   :  { %253 = vrot.lane.b32.xlu2 %v2262_v6, %s2101_s25  ;;  %179 = vrot.lane.b32.xlu0 %v2262_v6, %s2102_s19  ;;  %v2269_v7 = vmul.f32 0.17677669, %v2262_v6  ;;  %174 = vst.msk [vmem:[#allocation2 + $0x8] sm:$0xff] %vm172_vm1, %v169_v33 }
  0xb6   :  { %v2311_v36 = vld [vmem:[#allocation2 + $0x8] sm:$0xff] }
  0xb7   :  { %250 = vrot.lane.b32.xlu2 %v2269_v7, %s2103_s26  ;;  %v477_v37 = vmul.f32 0.17677669, %v2311_v36 }
  0xbf   :  { %329 = vrot.lane.b32.xlu2 %v2262_v6, %s2104_s27 }
  0xc7   :  { %326 = vrot.lane.b32.xlu2 %v2269_v7, %s2105_s3 }
 0x109   :  { %v254_v8 = vpop.permute.xlu2 %253 }
 0x111   :  { %v251_v9 = vpop.permute.xlu2 %250 }
 0x119   :  { %v330_v11 = vpop.permute.xlu2 %329 }
 0x121   :  { %v180_v10 = vpop.permute.xlu0 %179  ;;  %v327_v12 = vpop.permute.xlu2 %326 }
 0x122   :  { %1798 = vmatpush.xpose.msk.msra.mxu1 %vm181_vm2, %v180_v10 }
 0x125   :  { %1799 = vmatmul.msk.f32.vlgmr.msra.gmra.mxu1 %vm181_vm2, %v2269_v7 }
 0x126   :  { %1804 = vmatpush.xpose.msk.msrb.mxu1 %vm181_vm2, %v330_v11 }
 0x12d   :  { %1805 = vmatmul.msk.f32.vlgmr.msrb.gmra.mxu1 %vm181_vm2, %v327_v12 }
 0x1a2   :  { %v204_v14 = vpop.f32.mrf.mxu1 }
 0x1a3   :  { %v208_v15 = vsel %vm207_vm3, -1e+20, %v204_v14 }
 0x1a4   :  { %v209_v16 = vsel %vm181_vm2, %v208_v15, -inf }
 0x1a5   :  { %210 = vmax.xlane.f32.xlu0 %v209_v16 }
 0x1aa   :  { %v352_v22 = vpop.f32.mrf.mxu1 }
 0x1ab   :  { %v355_v24 = vsel %vm207_vm3, -1e+20, %v352_v22 }
 0x1ac   :  { %v356_v25 = vsel %vm181_vm2, %v355_v24, -inf }
 0x218   :  { %v211_v17 = vpop.xlane.xlu0 %210 }
 0x219   :  { %v212_v18 = vsub.f32 %v208_v15, %v211_v17 }
 0x21b   :  { %v213_v19 = vmul.f32 1.442695, %v212_v18 }
 0x21d   :  { %1892 = vpow2.f32 %v213_v19 }
 0x223   :  { %v1893_v20 = vpop.eup %1892 }
 0x224   :  { %v215_v21 = vsel %vm181_vm2, %v1893_v20, 0.0 }
 0x225   :  { %216 = vadd.xlane.f32.xlu1 %v215_v21 }
 0x23e   :  { %220 = vrot.lane.b32.xlu1 %v2262_v6, %s2106_s18 }
 0x268   :  { %357 = vmax.xlane.f32.xlu1 %v356_v25 }
 0x281   :  { %367 = vrot.lane.b32.xlu1 %v2262_v6, %s2107_s30 }
 0x289   :  { %549 = vrot.lane.b32.xlu1 %v477_v37, %s2103_s26 }
 0x291   :  { %624 = vrot.lane.b32.xlu1 %v477_v37, %s2105_s3 }
 0x298   :  { %v217_v26 = vpop.xlane.xlu1 %216 }
 0x299   :  { %1894 = vrcp.f32 %v217_v26 }
 0x29f   :  { %v1895_v27 = vpop.eup %1894 }
 0x2a0   :  { %v219_v29 = vmul.f32 %v1895_v27, %v1893_v20 }
 0x2b0   :  { %v221_v28 = vpop.permute.xlu1 %220 }
 0x2b1   :  { %241 = vmatpush.msra.mxu2 %v221_v28 }
 0x2b2   :  { %1800 = vmatmul.msk.f32.vlgmr.msra.gmra.mxu2 %vm181_vm2, %v219_v29 }
 0x2b3   :  { %1801 = vmatpush.xpose.msk.msrb.mxu2 %vm181_vm2, %v254_v8 }
 0x2ba   :  { %1802 = vmatmul.msk.f32.vlgmr.msrb.gmra.mxu2 %vm181_vm2, %v251_v9 }
 0x2db   :  { %v358_v30 = vpop.xlane.xlu1 %357 }
 0x2dc   :  { %v359_v31 = vsub.f32 %v355_v24, %v358_v30 }
 0x2de   :  { %v360_v32 = vmul.f32 1.442695, %v359_v31 }
 0x2e0   :  { %1896 = vpow2.f32 %v360_v32 }
 0x2e6   :  { %v1897_v34 = vpop.eup %1896 }
 0x2e7   :  { %v362_v35 = vsel %vm181_vm2, %v1897_v34, 0.0 }
 0x2e8   :  { %363 = vadd.xlane.f32.xlu0 %v362_v35 }
 0x2f3   :  { %v368_v38 = vpop.permute.xlu1 %367 }
 0x2f4   :  { %388 = vmatpush.msra.mxu3 %v368_v38 }
 0x2fb   :  { %v550_v55 = vpop.permute.xlu1 %549 }
 0x2fc   :  { %291 = vrot.lane.b32.xlu0 %v2262_v6, %s2108_s5 }
 0x303   :  { %v625_v57 = vpop.permute.xlu1 %624 }
 0x304   :  { %402 = vrot.lane.b32.xlu0 %v2269_v7, %s2109_s20 }
 0x30c   :  { %479 = vrot.lane.b32.xlu0 %v2311_v36, %s2102_s19 }
 0x314   :  { %627 = vrot.lane.b32.xlu0 %v2311_v36, %s2104_s27 }
 0x335   :  { %v243_v39 = vpop.f32.mrf.mxu2 }
 0x336   :  { %246 = vst.msk [vmem:[#allocation3] sm:$0xff] %vm181_vm2, %v243_v39 }
 0x33d   :  { %v276_v40 = vpop.f32.mrf.mxu2 }
 0x33e   :  { %v279_v41 = vsel %vm207_vm3, -1e+20, %v276_v40 }
 0x33f   :  { %v280_v42 = vsel %vm181_vm2, %v279_v41, -inf }
 0x340   :  { %281 = vmax.xlane.f32.xlu2 %v280_v42 }
 0x358   :  { %405 = vrot.lane.b32.xlu2 %v2262_v6, %s2110_s22 }
 0x35b   :  { %v364_v43 = vpop.xlane.xlu0 %363 }
 0x35c   :  { %1898 = vrcp.f32 %v364_v43 }
 0x360   :  { %552 = vrot.lane.b32.xlu2 %v2311_v36, %s2101_s25 }
 0x362   :  { %v1899_v44 = vpop.eup %1898 }
 0x363   :  { %v366_v45 = vmul.f32 %v1899_v44, %v1897_v34 }
 0x365   :  { %1806 = vmatmul.msk.f32.vlgmr.msra.gmra.mxu3 %vm181_vm2, %v366_v45 }
 0x368   :  { %702 = vrot.lane.b32.xlu2 %v2311_v36, %s2110_s22 }
 0x36e   :  { %v292_v46 = vpop.permute.xlu0 %291 }
 0x36f   :  { %312 = vmatpush.msra.mxu2 %v292_v46 }
 0x376   :  { %v403_v47 = vpop.permute.xlu0 %402 }
 0x37e   :  { %v480_v48 = vpop.permute.xlu0 %479 }
 0x37f   :  { %1810 = vmatpush.xpose.msk.msrb.mxu3 %vm181_vm2, %v480_v48 }
 0x382   :  { %1811 = vmatmul.msk.f32.vlgmr.msrb.gmra.mxu3 %vm181_vm2, %v477_v37 }
 0x386   :  { %v628_v56 = vpop.permute.xlu0 %627 }
 0x387   :  { %1816 = vmatpush.xpose.msk.msra.mxu3 %vm181_vm2, %v628_v56 }
 0x38a   :  { %1817 = vmatmul.msk.f32.vlgmr.msra.gmra.mxu3 %vm181_vm2, %v625_v57 }
 0x3b3   :  { %v282_v49 = vpop.xlane.xlu2 %281 }
 0x3b4   :  { %v283_v50 = vsub.f32 %v279_v41, %v282_v49 }
 0x3b6   :  { %v284_v51 = vmul.f32 1.442695, %v283_v50 }
 0x3b8   :  { %1900 = vpow2.f32 %v284_v51 }
 0x3bb   :  { %v406_v52 = vpop.permute.xlu2 %405 }
 0x3bc   :  { %1807 = vmatpush.xpose.msk.msrb.mxu2 %vm181_vm2, %v406_v52 }
 0x3be   :  { %v1901_v53 = vpop.eup %1900 }
 0x3bf   :  { %v286_v54 = vsel %vm181_vm2, %v1901_v53, 0.0 }
 0x3c0   :  { %287 = vadd.xlane.f32.xlu0 %v286_v54 }
 0x3c3   :  { %v553_v0 = vpop.permute.xlu2 %552 }
 0x3cb   :  { %v703_v2 = vpop.permute.xlu2 %702 }
 0x3d4   :  { %699 = vrot.lane.b32.xlu0 %v477_v37, %s2109_s20 }
 0x3e8   :  { %v2342_v58 = vpop.f32.mrf.mxu3 }
 0x405   :  { %v503_v59 = vpop.f32.mrf.mxu3 }
 0x406   :  { %v507_v60 = vsel %vm207_vm3, -1e+20, %v503_v59 }
 0x407   :  { %v508_v61 = vsel %vm181_vm2, %v507_v60, -inf }
 0x408   :  { %509 = vmax.xlane.f32.xlu1 %v508_v61 }
 0x40d   :  { %v650_v12 = vpop.f32.mrf.mxu3 }
 0x40e   :  { %v653_v15 = vsel %vm207_vm3, -1e+20, %v650_v12  ;;  %v773_v12 = vld [vmem:[%s2760_s14] sm:$0xff] }
 0x40f   :  { %v654_v19 = vsel %vm181_vm2, %v653_v15, -inf }
 0x433   :  { %v288_v62 = vpop.xlane.xlu0 %287 }
 0x434   :  { %1902 = vrcp.f32 %v288_v62 }
 0x43a   :  { %v1903_v63 = vpop.eup %1902 }
 0x43b   :  { %v290_v1 = vmul.f32 %v1903_v63, %v1901_v53 }
 0x43d   :  { %1803 = vmatmul.msk.f32.vlgmr.msra.gmra.mxu2 %vm181_vm2, %v290_v1 }
 0x43e   :  { %1813 = vmatpush.xpose.msk.msra.mxu2 %vm181_vm2, %v553_v0 }
 0x445   :  { %1808 = vmatmul.msk.f32.vlgmr.msrb.gmra.mxu2 %vm181_vm2, %v403_v47 }
 0x446   :  { %1819 = vmatpush.xpose.msk.msrb.mxu2 %vm181_vm2, %v703_v2  ;;  %v700_v3 = vpop.permute.xlu0 %699 }
 0x44d   :  { %1814 = vmatmul.msk.f32.vlgmr.msra.gmra.mxu2 %vm181_vm2, %v550_v55 }
 0x455   :  { %1820 = vmatmul.msk.f32.vlgmr.msrb.gmra.mxu2 %vm181_vm2, %v700_v3 }
 0x47b   :  { %v510_v7 = vpop.xlane.xlu1 %509 }
 0x47c   :  { %v511_v9 = vsub.f32 %v507_v60, %v510_v7 }
 0x47e   :  { %v512_v14 = vmul.f32 1.442695, %v511_v9  ;;  %v776_v9 = vld [vmem:[%s2760_s14 + $0x18] sm:$0xff] }
 0x480   :  { %1904 = vpow2.f32 %v512_v14 }
 0x486   :  { %v2362_v20 = vpop.eup %1904 }
 0x487   :  { %v514_v25 = vsel %vm181_vm2, %v2362_v20, 0.0 }
 0x4c0   :  { %v314_v5 = vpop.f32.mrf.mxu2 }
 0x4c8   :  { %v428_v8 = vpop.f32.mrf.mxu2 }
 0x4c9   :  { %v431_v10 = vsel %vm207_vm3, -1e+20, %v428_v8 }
 0x4ca   :  { %v432_v11 = vsel %vm181_vm2, %v431_v10, -inf }
 0x4cb   :  { %433 = vmax.xlane.f32.xlu2 %v432_v11  ;;  %v774_v11 = vld [vmem:[%s2760_s14 + $0x8] sm:$0xff] }
 0x4d0   :  { %v575_v16 = vpop.f32.mrf.mxu2 }
 0x4d1   :  { %v578_v17 = vsel %vm207_vm3, -1e+20, %v575_v16 }
 0x4d2   :  { %v579_v18 = vsel %vm181_vm2, %v578_v17, -inf }
 0x4d3   :  { %580 = vmax.xlane.f32.xlu0 %v579_v18  ;;  %655 = vmax.xlane.f32.xlu2 %v654_v19 }
 0x4d8   :  { %v725_v21 = vpop.f32.mrf.mxu2 }
 0x4d9   :  { %v728_v22 = vsel %vm207_vm3, -1e+20, %v725_v21 }
 0x4da   :  { %v729_v24 = vsel %vm181_vm2, %v728_v22, -inf }
 0x4db   :  { %730 = vmax.xlane.f32.xlu1 %v729_v24  ;;  %515 = vadd.xlane.f32.xlu2 %v514_v25 }
 0x4e7   :  { %443 = vrot.lane.b32.xlu0 %v2262_v6, %s2111_s23 }
 0x53e   :  { %v434_v26 = vpop.xlane.xlu2 %433 }
 0x53f   :  { %v435_v27 = vsub.f32 %v431_v10, %v434_v26  ;;  %v775_v10 = vld [vmem:[%s2760_s14 + $0x10] sm:$0xff] }
 0x541   :  { %v436_v28 = vmul.f32 1.442695, %v435_v27 }
 0x543   :  { %1906 = vpow2.f32 %v436_v28 }
 0x546   :  { %v581_v29 = vpop.xlane.xlu0 %580  ;;  %v656_v30 = vpop.xlane.xlu2 %655 }
 0x547   :  { %v582_v31 = vsub.f32 %v578_v17, %v581_v29  ;;  %v657_v13 = vsub.f32 %v653_v15, %v656_v30  ;;  %v2115_v30 = vmov 32.0  }
 0x549   :  { %v1907_v32 = vpop.eup %1906  ;;  %v583_v33 = vmul.f32 1.442695, %v582_v31  ;;  %v658_v34 = vmul.f32 1.442695, %v657_v13 }
 0x54a   :  { %v438_v35 = vsel %vm181_vm2, %v1907_v32, 0.0 }
 0x54b   :  { %1908 = vpow2.f32 %v583_v33  ;;  %439 = vadd.xlane.f32.xlu0 %v438_v35 }
 0x54c   :  { %1910 = vpow2.f32 %v658_v34 }
 0x54e   :  { %v731_v37 = vpop.xlane.xlu1 %730  ;;  %v516_v47 = vpop.xlane.xlu2 %515 }
 0x54f   :  { %v732_v38 = vsub.f32 %v728_v22, %v731_v37 }
 0x551   :  { %v1909_v39 = vpop.eup %1908  ;;  %v733_v6 = vmul.f32 1.442695, %v732_v38 }
 0x552   :  { %v1911_v40 = vpop.eup %1910  ;;  %v585_v41 = vsel %vm181_vm2, %v1909_v39, 0.0 }
 0x553   :  { %1912 = vpow2.f32 %v733_v6  ;;  %586 = vadd.xlane.f32.xlu1 %v585_v41  ;;  %v660_v42 = vsel %vm181_vm2, %v1911_v40, 0.0  ;;  %v915_v6 = vld [vmem:[%s2734_s10 + $0x18] sm:$0xff]  ;;  %v913_v41 = vld [vmem:[%s2734_s10 + $0x8] sm:$0xff] }
 0x554   :  { %661 = vadd.xlane.f32.xlu2 %v660_v42  ;;  %934 = vmatpush.msra.mxu2 %v915_v6 }
 0x559   :  { %v1913_v43 = vpop.eup %1912  ;;  %v444_v44 = vpop.permute.xlu0 %443 }
 0x55a   :  { %464 = vmatpush.msra.mxu1 %v444_v44  ;;  %v735_v45 = vsel %vm181_vm2, %v1913_v43, 0.0 }
 0x55c   :  { %736 = vadd.xlane.f32.xlu2 %v735_v45 }
 0x55f   :  { %665 = vrot.lane.b32.xlu0 %v2311_v36, %s2107_s30 }
 0x567   :  { %740 = vrot.lane.b32.xlu0 %v2311_v36, %s2111_s23 }
 0x56c   :  { %519 = vrot.lane.b32.xlu1 %v2311_v36, %s2106_s18 }
 0x56f   :  { %394 = vrot.lane.b32.xlu0 %v2342_v58, %s2112_s16 }
 0x574   :  { %590 = vrot.lane.b32.xlu2 %v2311_v36, %s2108_s5  ;;  %318 = vrot.lane.b32.xlu1 %v314_v5, %s2113_s1 }
 0x5be   :  { %v440_v46 = vpop.xlane.xlu0 %439 }
 0x5bf   :  { %1914 = vrcp.f32 %v440_v46 }
 0x5c5   :  { %v1915_v48 = vpop.eup %1914 }
 0x5c6   :  { %v442_v49 = vmul.f32 %v1915_v48, %v1907_v32  ;;  %v587_v51 = vpop.xlane.xlu1 %586  ;;  %v875_v48 = vld [vmem:[%s2761_s2] sm:$0xff] }
 0x5c7   :  { %v662_v50 = vpop.xlane.xlu2 %661  ;;  %1916 = vrcp.f32 %v587_v51  ;;  %v879_v51 = vld [vmem:[%s2733_s9 + $0x10] sm:$0xff] }
 0x5c8   :  { %1809 = vmatmul.msk.f32.vlgmr.msra.gmra.mxu1 %vm181_vm2, %v442_v49  ;;  %1918 = vrcp.f32 %v516_v47  ;;  %v912_v47 = vld [vmem:[%s2734_s10] sm:$0xff]  ;;  %v880_v49 = vld [vmem:[%s2733_s9 + $0x18] sm:$0xff] }
 0x5cd   :  { %v1917_v54 = vpop.eup %1916 }
 0x5ce   :  { %v589_v55 = vmul.f32 %v1917_v54, %v1909_v39  ;;  %v1919_v57 = vpop.eup %1918 }
 0x5cf   :  { %v737_v52 = vpop.xlane.xlu2 %736  ;;  %v518_v60 = vmul.f32 %v1919_v57, %v2362_v20  ;;  %v1882_v20 = vld [vmem:[%s2730_s6] ss:$0 sm:$0xff] }
 0x5d0   :  { %1920 = vrcp.f32 %v737_v52  ;;  %v878_v52 = vld [vmem:[%s2733_s9 + $0x8] sm:$0xff] }
 0x5d1   :  { %v666_v53 = vpop.permute.xlu0 %665  ;;  %1922 = vrcp.f32 %v662_v50  ;;  %v876_v50 = vld [vmem:[%s2761_s2 + $0x8] sm:$0xff] }
 0x5d2   :  { %1924 = vrcp.f32 %v2115_v30 }
 0x5d6   :  { %v1921_v58 = vpop.eup %1920 }
 0x5d7   :  { %v591_v36 = vpop.permute.xlu2 %590  ;;  %v739_v61 = vmul.f32 %v1921_v58, %v1913_v43  ;;  %v1923_v62 = vpop.eup %1922 }
 0x5d8   :  { %611 = vmatpush.msrb.mxu1 %v591_v36  ;;  %v664_v63 = vmul.f32 %v1923_v62, %v1911_v40  ;;  %v1925_v31 = vpop.eup %1924  ;;  %v914_v40 = vld [vmem:[%s2734_s10 + $0x10] sm:$0xff]  ;;  %v1883_v62 = vld [vmem:[%s2731_s7] ss:$0 sm:$0xff] }
 0x5d9   :  { %1815 = vmatmul.msk.f32.vlgmr.msrb.gmra.mxu1 %vm181_vm2, %v589_v55  ;;  %v741_v56 = vpop.permute.xlu0 %740  ;;  %v821_v13 = vmul.f32 32.0, %v1925_v31  ;;  %vm825_vm7 = vweird.f32 %v1925_v31  ;;  %935 = vmatpush.msra.mxu2 %v914_v40 }
 0x5da   :  { %761 = vmatpush.msra.mxu1 %v741_v56 }
 0x5db   :  { %v822_v32 = vsub.f32 1.0, %v821_v13  ;;  %936 = vmatpush.msra.mxu2 %v913_v41 }
 0x5dd   :  { %v823_v33 = vmul.f32 %v1925_v31, %v822_v32  ;;  %937 = vmatpush.msra.mxu2 %v912_v47 }
 0x5de   :  { %v520_v59 = vpop.permute.xlu1 %519  ;;  %1826 = vmatmul.msk.f32.vlgmr.msra.gmra.mxu2 %vm142_vm0, %v875_v48 }
 0x5df   :  { %540 = vmatpush.msrb.mxu0 %v520_v59  ;;  %v824_v34 = vadd.f32 %v1925_v31, %v823_v33  ;;  %v948_v33 = vld [vmem:[%s2762_s28] sm:$0x1] }
 0x5e0   :  { %1812 = vmatmul.msk.f32.vlgmr.msrb.gmra.mxu0 %vm181_vm2, %v518_v60  ;;  %vm978_vm15 = vcmp.eq.f32.partialorder %v948_v33, 0.0 }
 0x5e1   :  { %686 = vmatpush.msra.mxu0 %v666_v53  ;;  %1821 = vmatmul.msk.f32.vlgmr.msra.gmra.mxu1 %vm181_vm2, %v739_v61  ;;  %v395_v1 = vpop.permute.xlu0 %394  ;;  %v2424_v35 = vsel %vm825_vm7, %v1925_v31, %v824_v34  ;;  %v877_v53 = vld [vmem:[%s2733_s9] sm:$0xff] }
 0x5e3   :  { %799 = vmatpush.msrb.mxu0 %v776_v9 }
 0x5e5   :  { %800 = vmatpush.msrb.mxu0 %v775_v10 }
 0x5e6   :  { %v319_v0 = vpop.permute.xlu1 %318  ;;  %1827 = vmatmul.msk.f32.gmra.mxu2 %vm142_vm0, %v876_v50 }
 0x5e7   :  { %322 = vst.msk [vmem:[#allocation3] sm:$0xff] %vm321_vm4, %v319_v0  ;;  %801 = vmatpush.msrb.mxu0 %v774_v11 }
 0x5e8   :  { %1818 = vmatmul.msk.f32.vlgmr.msra.gmra.mxu0 %vm181_vm2, %v664_v63  ;;  %398 = vst.msk [vmem:[#allocation3] sm:$0xff] %vm397_vm5, %v395_v1  ;;  %v1884_v1 = vld [vmem:[%s2732_s8] ss:$0 sm:$0xff] }
 0x5e9   :  { %802 = vmatpush.msrb.mxu0 %v773_v12 }
 0x5eb   :  { %899 = vmatpush.msra.mxu0 %v880_v49  ;;  %v1249_v49 = vld [vmem:[%s2762_s28 + $0x1] sm:$0x1] }
 0x5ec   :  { %vm1279_vm3 = vcmp.eq.f32.partialorder %v1249_v49, 0.0 }
 0x5ed   :  { %900 = vmatpush.msra.mxu0 %v879_v51 }
 0x5ef   :  { %901 = vmatpush.msra.mxu0 %v878_v52 }
 0x5f1   :  { %902 = vmatpush.msra.mxu0 %v877_v53 }
 0x645   :  { %v466_v2 = vpop.f32.mrf.mxu1 }
 0x646   :  { %470 = vrot.lane.b32.xlu1 %v466_v2, %s2114_s24 }
 0x656   :  { %v613_v3 = vpop.f32.mrf.mxu1 }
 0x657   :  { %617 = vrot.lane.b32.xlu2 %v613_v3, %s2113_s1 }
 0x65d   :  { %v542_v5 = vpop.f32.mrf.mxu0 }
 0x65e   :  { %545 = vst.msk [vmem:[#allocation3 + $0x8] sm:$0xff] %vm181_vm2, %v542_v5  ;;  %v763_v7 = vpop.f32.mrf.mxu1 }
 0x65f   :  { %767 = vrot.lane.b32.xlu1 %v763_v7, %s2114_s24 }
 0x665   :  { %v688_v8 = vpop.f32.mrf.mxu0 }
 0x666   :  { %692 = vrot.lane.b32.xlu0 %v688_v8, %s2112_s16 }
 0x6b1   :  { %v618_v14 = vpop.permute.xlu2 %617 }
 0x6b2   :  { %620 = vst.msk [vmem:[#allocation3 + $0x8] sm:$0xff] %vm321_vm4, %v618_v14 }
 0x6b8   :  { %v471_v15 = vpop.permute.xlu1 %470 }
 0x6b9   :  { %474 = vst.msk [vmem:[#allocation3] sm:$0xff] %vm473_vm6, %v471_v15 }
 0x6c0   :  { %v771_v16 = vld [vmem:[#allocation3] sm:$0xff] }
 0x6c1   :  { %1822 = vmatmul.msk.f32.vlgmr.msrb.gmra.mxu0 %vm142_vm0, %v771_v16 }
 0x6d1   :  { %v768_v18 = vpop.permute.xlu1 %767 }
 0x6d8   :  { %v693_v17 = vpop.permute.xlu0 %692 }
 0x6d9   :  { %695 = vst.msk [vmem:[#allocation3 + $0x8] sm:$0xff] %vm397_vm5, %v693_v17 }
 0x6da   :  { %770 = vst.msk [vmem:[#allocation3 + $0x8] sm:$0xff] %vm473_vm6, %v768_v18 }
 0x6e1   :  { %v772_v19 = vld [vmem:[#allocation3 + $0x8] sm:$0xff] }
 0x6e2   :  { %1823 = vmatmul.msk.f32.gmra.mxu0 %vm142_vm0, %v772_v19 }
 0x73e   :  { %v804_v21 = vpop.f32.mrf.mxu0 }
 0x73f   :  { %v805_v22 = vadd.f32 %v1882_v20, %v804_v21 }
 0x741   :  { %v810_v24 = vadd.f32 %v805_v22, %v2257_v4 }
 0x743   :  { %v814_v25 = vsel %vm142_vm0, %v810_v24, 0.0 }
 0x744   :  { %815 = vadd.xlane.f32.xlu2 %v814_v25 }
 0x75f   :  { %v807_v26 = vpop.f32.mrf.mxu0 }
 0x760   :  { %v808_v27 = vadd.f32 %v1882_v20, %v807_v26  ;;  %v939_v20 = vpop.f32.mrf.mxu2 }
 0x761   :  { %946 = vst.msk [vmem:[#allocation5] sm:$0xff] %vm945_vm14, %v939_v20 }
 0x762   :  { %v811_v28 = vadd.f32 %v808_v27, %v2297_v23 }
 0x764   :  { %v817_v29 = vsel %vm142_vm0, %v811_v28, 0.0 }
 0x765   :  { %818 = vadd.xlane.f32.xlu0 %v817_v29 }
 0x768   :  { %v2478_v21 = vld [vmem:[#allocation5] sm:$0xff]  ;;  %v942_v22 = vpop.f32.mrf.mxu2 }
 0x769   :  { %1828 = vmatpush.xpose.msk.msrb.mxu1 %vm181_vm2, %v2478_v21  ;;  %947 = vst.msk [vmem:[#allocation5 + $0x8] sm:$0xff] %vm945_vm14, %v942_v22 }
 0x779   :  { %1028 = vrot.lane.b32.xlu0 %v2478_v21, %s2103_s26 }
 0x781   :  { %1180 = vrot.lane.b32.xlu0 %v2478_v21, %s2109_s20 }
 0x7b7   :  { %v816_v4 = vpop.xlane.xlu2 %815 }
 0x7b8   :  { %v827_v37 = vmul.f32 %v2424_v35, %v816_v4 }
 0x7ba   :  { %v829_v38 = vsub.f32 %v810_v24, %v827_v37  ;;  %v2488_v24 = vld [vmem:[#allocation5 + $0x8] sm:$0xff] }
 0x7bc   :  { %v831_v39 = vmul.f32 %v829_v38, %v829_v38 }
 0x7be   :  { %v833_v23 = vsel %vm142_vm0, %v831_v39, 0.0 }
 0x7bf   :  { %834 = vadd.xlane.f32.xlu1 %v833_v23 }
 0x7d8   :  { %v819_v42 = vpop.xlane.xlu0 %818 }
 0x7d9   :  { %v828_v43 = vmul.f32 %v2424_v35, %v819_v42 }
 0x7db   :  { %v830_v44 = vsub.f32 %v811_v28, %v828_v43 }
 0x7dd   :  { %v832_v45 = vmul.f32 %v830_v44, %v830_v44 }
 0x7df   :  { %v836_v46 = vsel %vm142_vm0, %v832_v45, 0.0 }
 0x7e0   :  { %837 = vadd.xlane.f32.xlu2 %v836_v46 }
 0x7eb   :  { %v1029_v13 = vpop.permute.xlu0 %1028 }
 0x7ec   :  { %1831 = vmatpush.xpose.msk.msrb.mxu3 %vm181_vm2, %v1029_v13 }
 0x7f3   :  { %v1181_v32 = vpop.permute.xlu0 %1180 }
 0x7f4   :  { %1837 = vmatpush.xpose.msk.msra.mxu3 %vm181_vm2, %v1181_v32 }
 0x7f8   :  { %1104 = vrot.lane.b32.xlu2 %v2478_v21, %s2105_s3 }
 0x800   :  { %1329 = vrot.lane.b32.xlu2 %v2488_v24, %s2103_s26 }
 0x808   :  { %1481 = vrot.lane.b32.xlu2 %v2488_v24, %s2109_s20 }
 0x832   :  { %v835_v54 = vpop.xlane.xlu1 %834 }
 0x833   :  { %v839_v55 = vmul.f32 %v835_v54, %v2424_v35 }
 0x835   :  { %v841_v36 = vadd.f32 1e-05, %v839_v55 }
 0x837   :  { %1926 = vrsqrt.f32 %v841_v36  ;;  %vm849_vm9 = vweird.f32 %v841_v36 }
 0x83d   :  { %v1927_v56 = vpop.eup %1926 }
 0x83e   :  { %v844_v57 = vmul.f32 %v1927_v56, %v841_v36  ;;  %vm850_vm8 = vweird.f32 %v1927_v56 }
 0x83f   :  { %vm851_vm10 = vmor %vm849_vm9, %vm850_vm8 }
 0x840   :  { %v845_v58 = vmul.f32 %v1927_v56, %v844_v57 }
 0x842   :  { %v846_v59 = vmul.f32 0.5, %v845_v58 }
 0x844   :  { %v847_v60 = vsub.f32 1.5, %v846_v59 }
 0x846   :  { %v848_v61 = vmul.f32 %v1927_v56, %v847_v60 }
 0x848   :  { %v852_v63 = vsel %vm851_vm10, %v1927_v56, %v848_v61 }
 0x849   :  { %v863_v0 = vmul.f32 %v852_v63, %v829_v38  ;;  %v2116_v38 = vmov 0  }
 0x84a   :  { %v979_v39 = vsel %vm978_vm15, 1, %v2116_v38  ;;  %v1280_v52 = vsel %vm1279_vm3, 1, %v2116_v38 }
 0x84b   :  { %v868_v2 = vmul.f32 %v1883_v62, %v863_v0  ;;  %v980_v23 = vperm.slane %v979_v39, 0  ;;  %v1281_v59 = vperm.slane %v1280_v52, 0 }
 0x84d   :  { %v2469_v3 = vadd.f32 %v1884_v1, %v868_v2  ;;  %vm2518_vm1 = vcmp.eq.s32.totalorder %v980_v23, 1  ;;  %vm2539_vm7 = vcmp.eq.s32.totalorder %v1281_v59, 1 }
 0x84f   :  { %1824 = vmatmul.msk.f32.vlgmr.msra.gmra.mxu0 %vm142_vm0, %v2469_v3 }
 0x853   :  { %v838_v5 = vpop.xlane.xlu2 %837 }
 0x854   :  { %v840_v7 = vmul.f32 %v838_v5, %v2424_v35 }
 0x856   :  { %v842_v8 = vadd.f32 1e-05, %v840_v7 }
 0x858   :  { %1928 = vrsqrt.f32 %v842_v8  ;;  %vm859_vm12 = vweird.f32 %v842_v8 }
 0x85b   :  { %v1105_v31 = vpop.permute.xlu2 %1104 }
 0x85c   :  { %1834 = vmatpush.xpose.msk.msrb.mxu2 %vm181_vm2, %v1105_v31 }
 0x85e   :  { %v1929_v9 = vpop.eup %1928 }
 0x85f   :  { %v854_v10 = vmul.f32 %v1929_v9, %v842_v8  ;;  %vm860_vm11 = vweird.f32 %v1929_v9 }
 0x860   :  { %vm861_vm13 = vmor %vm859_vm12, %vm860_vm11  ;;  %1840 = vmatpush.xpose.msk.msra.mxu2 %vm181_vm2, %v2488_v24 }
 0x861   :  { %v855_v11 = vmul.f32 %v1929_v9, %v854_v10 }
 0x863   :  { %v856_v12 = vmul.f32 0.5, %v855_v11  ;;  %v1330_v34 = vpop.permute.xlu2 %1329  ;;  %v1877_v11 = vpack.i.bf16 %v2488_v24, %v2478_v21 }
 0x865   :  { %v857_v14 = vsub.f32 1.5, %v856_v12 }
 0x867   :  { %v858_v15 = vmul.f32 %v1929_v9, %v857_v14 }
 0x869   :  { %v862_v16 = vsel %vm861_vm13, %v1929_v9, %v858_v15 }
 0x86a   :  { %v864_v17 = vmul.f32 %v862_v16, %v830_v44 }
 0x86b   :  { %v1482_v6 = vpop.permute.xlu2 %1481 }
 0x86c   :  { %v869_v18 = vmul.f32 %v1883_v62, %v864_v17 }
 0x86e   :  { %v2474_v19 = vadd.f32 %v1884_v1, %v869_v18 }
 0x870   :  { %1825 = vmatmul.msk.f32.gmra.mxu0 %vm142_vm0, %v2474_v19 }
 0x8cc   :  { %v904_v25 = vpop.f32.mrf.mxu0 }
 0x8cd   :  { %910 = vst.msk [vmem:[#allocation4] sm:$0xff] %vm142_vm0, %v904_v25 }
 0x8d4   :  { %v1097_v26 = vld [vmem:[#allocation4] sm:$0xff] }
 0x8d5   :  { %v1098_v27 = vmul.f32 0.17677669, %v1097_v26 }
 0x8d7   :  { %1101 = vrot.lane.b32.xlu0 %v1098_v27, %s2105_s3  ;;  %1025 = vrot.lane.b32.xlu1 %v1098_v27, %s2103_s26 }
 0x8d8   :  { %1829 = vmatmul.msk.f32.vlgmr.msrb.gmra.mxu1 %vm181_vm2, %v1098_v27 }
 0x8df   :  { %1177 = vrot.lane.b32.xlu1 %v1098_v27, %s2109_s20 }
 0x8e7   :  { %1405 = vrot.lane.b32.xlu1 %v2488_v24, %s2105_s3 }
 0x8ed   :  { %v907_v28 = vpop.f32.mrf.mxu0 }
 0x8ee   :  { %911 = vst.msk [vmem:[#allocation4 + $0x8] sm:$0xff] %vm142_vm0, %v907_v28 }
 0x8f5   :  { %v1474_v29 = vld [vmem:[#allocation4 + $0x8] sm:$0xff] }
 0x8f6   :  { %v1475_v30 = vmul.f32 0.17677669, %v1474_v29 }
 0x8f8   :  { %1478 = vrot.lane.b32.xlu1 %v1475_v30, %s2109_s20  ;;  %1326 = vrot.lane.b32.xlu0 %v1475_v30, %s2103_s26 }
 0x900   :  { %1402 = vrot.lane.b32.xlu0 %v1475_v30, %s2105_s3 }
 0x949   :  { %v1102_v4 = vpop.permute.xlu0 %1101  ;;  %v1026_v37 = vpop.permute.xlu1 %1025 }
 0x94a   :  { %1832 = vmatmul.msk.f32.vlgmr.msrb.gmra.mxu3 %vm181_vm2, %v1026_v37  ;;  %1835 = vmatmul.msk.f32.vlgmr.msrb.gmra.mxu2 %vm181_vm2, %v1102_v4 }
 0x94b   :  { %1843 = vmatpush.xpose.msk.msrb.mxu3 %vm181_vm2, %v1330_v34 }
 0x951   :  { %v1178_v40 = vpop.permute.xlu1 %1177 }
 0x952   :  { %1838 = vmatmul.msk.f32.vlgmr.msra.gmra.mxu3 %vm181_vm2, %v1178_v40  ;;  %1841 = vmatmul.msk.f32.vlgmr.msra.gmra.mxu2 %vm181_vm2, %v1475_v30 }
 0x953   :  { %1849 = vmatpush.xpose.msk.msra.mxu3 %vm181_vm2, %v1482_v6 }
 0x955   :  { %v975_v42 = vpop.f32.mrf.mxu1 }
 0x956   :  { %v982_v43 = vsel %vm2518_vm1, -1e+20, %v975_v42 }
 0x957   :  { %v983_v44 = vsel %vm181_vm2, %v982_v43, -inf }
 0x958   :  { %984 = vmax.xlane.f32.xlu2 %v983_v44 }
 0x959   :  { %v1406_v45 = vpop.permute.xlu1 %1405 }
 0x95a   :  { %1846 = vmatpush.xpose.msk.msrb.mxu2 %vm181_vm2, %v1406_v45 }
 0x96a   :  { %v1327_v46 = vpop.permute.xlu0 %1326  ;;  %v1479_v47 = vpop.permute.xlu1 %1478 }
 0x96b   :  { %1844 = vmatmul.msk.f32.vlgmr.msrb.gmra.mxu3 %vm181_vm2, %v1327_v46 }
 0x972   :  { %v1403_v48 = vpop.permute.xlu0 %1402 }
 0x973   :  { %1847 = vmatmul.msk.f32.vlgmr.msrb.gmra.mxu2 %vm181_vm2, %v1403_v48  ;;  %1850 = vmatmul.msk.f32.vlgmr.msra.gmra.mxu3 %vm181_vm2, %v1479_v47 }
 0x9cb   :  { %v985_v50 = vpop.xlane.xlu2 %984 }
 0x9cc   :  { %v986_v51 = vsub.f32 %v982_v43, %v985_v50 }
 0x9cd   :  { %v1051_v53 = vpop.f32.mrf.mxu3  ;;  %v1127_v54 = vpop.f32.mrf.mxu2 }
 0x9ce   :  { %v987_v55 = vmul.f32 1.442695, %v986_v51  ;;  %v1054_v36 = vsel %vm2518_vm1, -1e+20, %v1051_v53  ;;  %v1130_v56 = vsel %vm2518_vm1, -1e+20, %v1127_v54 }
 0x9cf   :  { %v1131_v57 = vsel %vm181_vm2, %v1130_v56, -inf  ;;  %v1055_v58 = vsel %vm181_vm2, %v1054_v36, -inf }
 0x9d0   :  { %1930 = vpow2.f32 %v987_v55  ;;  %1132 = vmax.xlane.f32.xlu1 %v1131_v57  ;;  %1056 = vmax.xlane.f32.xlu0 %v1055_v58 }
 0x9d5   :  { %v1203_v61 = vpop.f32.mrf.mxu3  ;;  %v1276_v62 = vpop.f32.mrf.mxu2 }
 0x9d6   :  { %v2543_v63 = vpop.eup %1930  ;;  %v1206_v0 = vsel %vm2518_vm1, -1e+20, %v1203_v61  ;;  %v1283_v1 = vsel %vm2539_vm7, -1e+20, %v1276_v62 }
 0x9d7   :  { %v1207_v2 = vsel %vm181_vm2, %v1206_v0, -inf  ;;  %v989_v5 = vsel %vm181_vm2, %v2543_v63, 0.0  ;;  %v1284_v7 = vsel %vm181_vm2, %v1283_v1, -inf }
 0x9d8   :  { %1208 = vmax.xlane.f32.xlu2 %v1207_v2  ;;  %990 = vadd.xlane.f32.xlu1 %v989_v5 }
 0x9d9   :  { %1285 = vmax.xlane.f32.xlu0 %v1284_v7 }
 0x9ed   :  { %1066 = vrot.lane.b32.xlu0 %v2478_v21, %s2101_s25 }
 0x9ee   :  { %v1352_v8 = vpop.f32.mrf.mxu3 }
 0x9ef   :  { %v1355_v9 = vsel %vm2539_vm7, -1e+20, %v1352_v8 }
 0x9f0   :  { %1142 = vrot.lane.b32.xlu2 %v2478_v21, %s2104_s27  ;;  %v1356_v10 = vsel %vm181_vm2, %v1355_v9, -inf }
 0x9f1   :  { %1357 = vmax.xlane.f32.xlu1 %v1356_v10 }
 0x9f6   :  { %v1504_v12 = vpop.f32.mrf.mxu3  ;;  %v1428_v14 = vpop.f32.mrf.mxu2 }
 0x9f7   :  { %v1507_v15 = vsel %vm2539_vm7, -1e+20, %v1504_v12  ;;  %v1431_v16 = vsel %vm2539_vm7, -1e+20, %v1428_v14 }
 0x9f8   :  { %v1508_v17 = vsel %vm181_vm2, %v1507_v15, -inf  ;;  %v1432_v18 = vsel %vm181_vm2, %v1431_v16, -inf }
 0xa0a   :  { %1878 = vrot.lane.b32.xlu1 %v1877_v11, %s2102_s19 }
 0xa17   :  { %1509 = vmax.xlane.f32.xlu0 %v1508_v17 }
 0xa19   :  { %1433 = vmax.xlane.f32.xlu2 %v1432_v18 }
 0xa2b   :  { %1218 = vrot.lane.b32.xlu0 %v2478_v21, %s2110_s22 }
 0xa43   :  { %v1133_v20 = vpop.xlane.xlu1 %1132  ;;  %v1057_v22 = vpop.xlane.xlu0 %1056 }
 0xa44   :  { %v1134_v25 = vsub.f32 %v1130_v56, %v1133_v20  ;;  %v1058_v26 = vsub.f32 %v1054_v36, %v1057_v22 }
 0xa46   :  { %v1059_v27 = vmul.f32 1.442695, %v1058_v26  ;;  %v1135_v28 = vmul.f32 1.442695, %v1134_v25 }
 0xa48   :  { %1932 = vpow2.f32 %v1059_v27 }
 0xa49   :  { %1934 = vpow2.f32 %v1135_v28 }
 0xa4b   :  { %v1209_v29 = vpop.xlane.xlu2 %1208  ;;  %v991_v23 = vpop.xlane.xlu1 %990 }
 0xa4c   :  { %v1210_v30 = vsub.f32 %v1206_v0, %v1209_v29  ;;  %v1286_v31 = vpop.xlane.xlu0 %1285 }
 0xa4d   :  { %v1287_v33 = vsub.f32 %v1283_v1, %v1286_v31 }
 0xa4e   :  { %v1211_v13 = vmul.f32 1.442695, %v1210_v30  ;;  %v1933_v32 = vpop.eup %1932 }
 0xa4f   :  { %v1061_v34 = vsel %vm181_vm2, %v1933_v32, 0.0  ;;  %v1935_v4 = vpop.eup %1934  ;;  %v1288_v21 = vmul.f32 1.442695, %v1287_v33 }
 0xa50   :  { %1936 = vpow2.f32 %v1211_v13  ;;  %1062 = vadd.xlane.f32.xlu2 %v1061_v34  ;;  %v1137_v37 = vsel %vm181_vm2, %v1935_v4, 0.0 }
 0xa51   :  { %1938 = vpow2.f32 %v1288_v21 }
 0xa53   :  { %v1143_v51 = vpop.permute.xlu2 %1142 }
 0xa55   :  { %1138 = vadd.xlane.f32.xlu0 %v1137_v37  ;;  %v1555_v37 = vld [vmem:[%s2735_s11 + $0x18] sm:$0xff] }
 0xa56   :  { %v1937_v38 = vpop.eup %1936  ;;  %1578 = vmatpush.msra.mxu2 %v1555_v37 }
 0xa57   :  { %v1213_v39 = vsel %vm181_vm2, %v1937_v38, 0.0  ;;  %v1939_v6 = vpop.eup %1938 }
 0xa58   :  { %1214 = vadd.xlane.f32.xlu2 %v1213_v39  ;;  %v1290_v41 = vsel %vm181_vm2, %v1939_v6, 0.0  ;;  %v1553_v39 = vld [vmem:[%s2735_s11 + $0x8] sm:$0xff] }
 0xa5f   :  { %v1067_v40 = vpop.permute.xlu0 %1066 }
 0xa60   :  { %1087 = vmatpush.msrb.mxu0 %v1067_v40  ;;  %1291 = vadd.xlane.f32.xlu2 %v1290_v41 }
 0xa64   :  { %v1358_v42 = vpop.xlane.xlu1 %1357 }
 0xa65   :  { %v1359_v43 = vsub.f32 %v1355_v9, %v1358_v42 }
 0xa67   :  { %v1360_v44 = vmul.f32 1.442695, %v1359_v43 }
 0xa69   :  { %1940 = vpow2.f32 %v1360_v44 }
 0xa6a   :  { %1942 = vrcp.f32 %v991_v23  ;;  %v1552_v23 = vld [vmem:[%s2735_s11] sm:$0xff] }
 0xa6f   :  { %v1941_v45 = vpop.eup %1940 }
 0xa70   :  { %v1362_v46 = vsel %vm181_vm2, %v1941_v45, 0.0  ;;  %v1943_v47 = vpop.eup %1942 }
 0xa71   :  { %1363 = vadd.xlane.f32.xlu1 %v1362_v46  ;;  %v993_v50 = vmul.f32 %v1943_v47, %v2543_v63  ;;  %v1885_v47 = vld [vmem:[%s2736_s12] ss:$0 sm:$0xff] }
 0xa7c   :  { %v1879_v48 = vpop.permute.xlu1 %1878 }
 0xa7d   :  { %v1880_v49 = vunpack.i.l.bf16 %v1879_v48  ;;  %v1881_v52 = vunpack.i.h.bf16 %v1879_v48 }
 0xa7f   :  { %1015 = vmatpush.msra.mxu1 %v1880_v49 }
 0xa80   :  { %1830 = vmatmul.msk.f32.vlgmr.msra.gmra.mxu1 %vm181_vm2, %v993_v50 }
 0xa81   :  { %1163 = vmatpush.msrb.mxu1 %v1143_v51 }
 0xa83   :  { %1316 = vmatpush.msra.mxu1 %v1881_v52 }
 0xa8a   :  { %v1510_v53 = vpop.xlane.xlu0 %1509  ;;  %1367 = vrot.lane.b32.xlu1 %v2488_v24, %s2101_s25 }
 0xa8b   :  { %v1511_v54 = vsub.f32 %v1507_v15, %v1510_v53 }
 0xa8c   :  { %v1434_v55 = vpop.xlane.xlu2 %1433 }
 0xa8d   :  { %v1512_v36 = vmul.f32 1.442695, %v1511_v54  ;;  %v1435_v56 = vsub.f32 %v1431_v16, %v1434_v55 }
 0xa8f   :  { %1944 = vpow2.f32 %v1512_v36  ;;  %v1436_v57 = vmul.f32 1.442695, %v1435_v56 }
 0xa91   :  { %1946 = vpow2.f32 %v1436_v57 }
 0xa95   :  { %v1945_v58 = vpop.eup %1944 }
 0xa96   :  { %v1514_v59 = vsel %vm181_vm2, %v1945_v58, 0.0 }
 0xa97   :  { %v1947_v60 = vpop.eup %1946  ;;  %1515 = vadd.xlane.f32.xlu2 %v1514_v59 }
 0xa98   :  { %v1438_v61 = vsel %vm181_vm2, %v1947_v60, 0.0 }
 0xa99   :  { %1439 = vadd.xlane.f32.xlu0 %v1438_v61 }
 0xa9d   :  { %v1219_v62 = vpop.permute.xlu0 %1218 }
 0xa9e   :  { %1239 = vmatpush.msra.mxu0 %v1219_v62 }
 0xaad   :  { %1443 = vrot.lane.b32.xlu0 %v2488_v24, %s2104_s27 }
 0xaaf   :  { %1519 = vrot.lane.b32.xlu2 %v2488_v24, %s2110_s22 }
 0xac3   :  { %v1063_v63 = vpop.xlane.xlu2 %1062 }
 0xac4   :  { %1948 = vrcp.f32 %v1063_v63  ;;  %v1650_v63 = vld [vmem:[%s2739_s15 + $0x18] sm:$0xff] }
 0xac8   :  { %v1139_v0 = vpop.xlane.xlu0 %1138 }
 0xac9   :  { %1950 = vrcp.f32 %v1139_v0  ;;  %v1649_v0 = vld [vmem:[%s2739_s15 + $0x10] sm:$0xff] }
 0xaca   :  { %v1949_v1 = vpop.eup %1948 }
 0xacb   :  { %v1065_v2 = vmul.f32 %v1949_v1, %v1933_v32  ;;  %v1215_v5 = vpop.xlane.xlu2 %1214  ;;  %v1648_v1 = vld [vmem:[%s2739_s15 + $0x8] sm:$0xff] }
 0xacc   :  { %1952 = vrcp.f32 %v1215_v5 }
 0xacd   :  { %1833 = vmatmul.msk.f32.vlgmr.msrb.gmra.mxu0 %vm181_vm2, %v1065_v2  ;;  %v1647_v2 = vld [vmem:[%s2739_s15] sm:$0xff] }
 0xacf   :  { %v1951_v7 = vpop.eup %1950 }
 0xad0   :  { %v1141_v8 = vmul.f32 %v1951_v7, %v1935_v4 }
 0xad2   :  { %1836 = vmatmul.msk.f32.vlgmr.msrb.gmra.mxu1 %vm181_vm2, %v1141_v8  ;;  %v1953_v9 = vpop.eup %1952 }
 0xad3   :  { %v1217_v10 = vmul.f32 %v1953_v9, %v1937_v38  ;;  %v1292_v11 = vpop.xlane.xlu2 %1291  ;;  %v1554_v38 = vld [vmem:[%s2735_s11 + $0x10] sm:$0xff] }
 0xad4   :  { %1954 = vrcp.f32 %v1292_v11  ;;  %1579 = vmatpush.msra.mxu2 %v1554_v38  ;;  %v1692_v38 = vld [vmem:[%s2741_s17 + $0x30] sm:$0xff] }
 0xad5   :  { %1839 = vmatmul.msk.f32.vlgmr.msra.gmra.mxu0 %vm181_vm2, %v1217_v10 }
 0xad6   :  { %1580 = vmatpush.msra.mxu2 %v1553_v39 }
 0xad8   :  { %1581 = vmatpush.msra.mxu2 %v1552_v23  ;;  %v1691_v23 = vld [vmem:[%s2741_s17 + $0x28] sm:$0xff] }
 0xada   :  { %v1955_v24 = vpop.eup %1954 }
 0xadb   :  { %v1294_v12 = vmul.f32 %v1955_v24, %v1939_v6 }
 0xadd   :  { %1842 = vmatmul.msk.f32.vlgmr.msra.gmra.mxu1 %vm181_vm2, %v1294_v12 }
 0xae4   :  { %v1364_v14 = vpop.xlane.xlu1 %1363 }
 0xae5   :  { %1956 = vrcp.f32 %v1364_v14 }
 0xaeb   :  { %v1957_v15 = vpop.eup %1956 }
 0xaec   :  { %v1366_v16 = vmul.f32 %v1957_v15, %v1941_v45  ;;  %v1886_v15 = vld [vmem:[%s2737_s13] ss:$0 sm:$0xff] }
 0xafc   :  { %v1368_v17 = vpop.permute.xlu1 %1367 }
 0xafd   :  { %v1017_v18 = vpop.f32.mrf.mxu1  ;;  %1388 = vmatpush.msrb.mxu0 %v1368_v17 }
 0xafe   :  { %1020 = vst.msk [vmem:[#allocation6] sm:$0xff] %vm181_vm2, %v1017_v18  ;;  %1845 = vmatmul.msk.f32.vlgmr.msrb.gmra.mxu0 %vm181_vm2, %v1366_v16  ;;  %v1887_v18 = vld [vmem:[#allocation7] ss:$0 sm:$0xff] }
 0xb0a   :  { %v1516_v20 = vpop.xlane.xlu2 %1515 }
 0xb0b   :  { %1958 = vrcp.f32 %v1516_v20 }
 0xb0c   :  { %v1440_v27 = vpop.xlane.xlu0 %1439 }
 0xb0d   :  { %1960 = vrcp.f32 %v1440_v27  ;;  %v1699_v27 = vld [vmem:[%s2741_s17 + $0x68] sm:$0xff] }
 0xb11   :  { %v1959_v22 = vpop.eup %1958 }
 0xb12   :  { %v1518_v25 = vmul.f32 %v1959_v22, %v1945_v58  ;;  %v1520_v26 = vpop.permute.xlu2 %1519 }
 0xb13   :  { %1540 = vmatpush.msra.mxu0 %v1520_v26  ;;  %v1961_v28 = vpop.eup %1960  ;;  %v1700_v26 = vld [vmem:[%s2741_s17 + $0x70] sm:$0xff] }
 0xb14   :  { %1851 = vmatmul.msk.f32.vlgmr.msra.gmra.mxu0 %vm181_vm2, %v1518_v25  ;;  %v1442_v29 = vmul.f32 %v1961_v28, %v1947_v60  ;;  %v1701_v25 = vld [vmem:[%s2741_s17 + $0x78] sm:$0xff] }
 0xb15   :  { %1706 = vmatpush.msrb.mxu3 %v1701_v25 }
 0xb17   :  { %1707 = vmatpush.msrb.mxu3 %v1700_v26  ;;  %v1890_v26 = vld [vmem:[#allocation12] ss:$0 sm:$0xff] }
 0xb19   :  { %1708 = vmatpush.msrb.mxu3 %v1699_v27 }
 0xb1f   :  { %v1444_v30 = vpop.permute.xlu0 %1443 }
 0xb20   :  { %1464 = vmatpush.msrb.mxu1 %v1444_v30  ;;  %v1698_v30 = vld [vmem:[%s2741_s17 + $0x60] sm:$0xff] }
 0xb21   :  { %1848 = vmatmul.msk.f32.vlgmr.msrb.gmra.mxu1 %vm181_vm2, %v1442_v29  ;;  %1709 = vmatpush.msrb.mxu3 %v1698_v30 }
 0xb22   :  { %1673 = vmatpush.msra.mxu1 %v1650_v63 }
 0xb24   :  { %1674 = vmatpush.msra.mxu1 %v1649_v0 }
 0xb26   :  { %1675 = vmatpush.msra.mxu1 %v1648_v1 }
 0xb28   :  { %1676 = vmatpush.msra.mxu1 %v1647_v2 }
 0xb4a   :  { %v1089_v31 = vpop.f32.mrf.mxu0 }
 0xb4b   :  { %1093 = vrot.lane.b32.xlu1 %v1089_v31, %s2113_s1 }
 0xb4f   :  { %v1165_v13 = vpop.f32.mrf.mxu1 }
 0xb50   :  { %1169 = vrot.lane.b32.xlu0 %v1165_v13, %s2112_s16  ;;  %v1697_v13 = vld [vmem:[%s2741_s17 + $0x58] sm:$0xff] }
 0xb51   :  { %1710 = vmatpush.msrb.mxu3 %v1697_v13 }
 0xb52   :  { %v1241_v32 = vpop.f32.mrf.mxu0 }
 0xb53   :  { %1245 = vrot.lane.b32.xlu1 %v1241_v32, %s2114_s24  ;;  %v1696_v32 = vld [vmem:[%s2741_s17 + $0x50] sm:$0xff] }
 0xb54   :  { %1711 = vmatpush.msrb.mxu3 %v1696_v32 }
 0xb5a   :  { %v1318_v33 = vpop.f32.mrf.mxu1 }
 0xb5b   :  { %1321 = vst.msk [vmem:[#allocation6 + $0x8] sm:$0xff] %vm181_vm2, %v1318_v33  ;;  %v1695_v33 = vld [vmem:[%s2741_s17 + $0x48] sm:$0xff] }
 0xb5c   :  { %1712 = vmatpush.msrb.mxu3 %v1695_v33 }
 0xb7b   :  { %v1390_v34 = vpop.f32.mrf.mxu0 }
 0xb7c   :  { %1394 = vrot.lane.b32.xlu2 %v1390_v34, %s2113_s1  ;;  %v1694_v34 = vld [vmem:[%s2741_s17 + $0x40] sm:$0xff] }
 0xb7d   :  { %1713 = vmatpush.msrb.mxu3 %v1694_v34 }
 0xb91   :  { %v1542_v4 = vpop.f32.mrf.mxu0 }
 0xb92   :  { %1546 = vrot.lane.b32.xlu1 %v1542_v4, %s2114_s24 }
 0xb9e   :  { %v1466_v21 = vpop.f32.mrf.mxu1 }
 0xb9f   :  { %1470 = vrot.lane.b32.xlu0 %v1466_v21, %s2112_s16  ;;  %v1693_v21 = vld [vmem:[%s2741_s17 + $0x38] sm:$0xff] }
 0xba0   :  { %1714 = vmatpush.msrb.mxu3 %v1693_v21 }
 0xba2   :  { %1715 = vmatpush.msrb.mxu3 %v1692_v38 }
 0xba4   :  { %1716 = vmatpush.msrb.mxu3 %v1691_v23 }
 0xbbd   :  { %v1094_v6 = vpop.permute.xlu1 %1093 }
 0xbbe   :  { %1096 = vst.msk [vmem:[#allocation6] sm:$0xff] %vm321_vm4, %v1094_v6 }
 0xbc2   :  { %v1170_v40 = vpop.permute.xlu0 %1169 }
 0xbc3   :  { %1172 = vst.msk [vmem:[#allocation6] sm:$0xff] %vm397_vm5, %v1170_v40  ;;  %v1690_v40 = vld [vmem:[%s2741_s17 + $0x20] sm:$0xff] }
 0xbc4   :  { %1717 = vmatpush.msrb.mxu3 %v1690_v40 }
 0xbc5   :  { %v1246_v41 = vpop.permute.xlu1 %1245 }
 0xbc6   :  { %1248 = vst.msk [vmem:[#allocation6] sm:$0xff] %vm473_vm6, %v1246_v41 }
 0xbcd   :  { %v1550_v42 = vld [vmem:[#allocation6] sm:$0xff] }
 0xbce   :  { %1852 = vmatmul.msk.f32.vlgmr.msra.gmra.mxu2 %vm142_vm0, %v1550_v42  ;;  %v1689_v42 = vld [vmem:[%s2741_s17 + $0x18] sm:$0xff] }
 0xbcf   :  { %1718 = vmatpush.msrb.mxu3 %v1689_v42 }
 0xbd6   :  { %v1395_v43 = vpop.permute.xlu2 %1394 }
 0xbd7   :  { %1397 = vst.msk [vmem:[#allocation6 + $0x8] sm:$0xff] %vm321_vm4, %v1395_v43 }
 0xc04   :  { %v1547_v45 = vpop.permute.xlu1 %1546 }
 0xc11   :  { %v1471_v44 = vpop.permute.xlu0 %1470 }
 0xc12   :  { %1473 = vst.msk [vmem:[#allocation6 + $0x8] sm:$0xff] %vm397_vm5, %v1471_v44 }
 0xc13   :  { %1549 = vst.msk [vmem:[#allocation6 + $0x8] sm:$0xff] %vm473_vm6, %v1547_v45 }
 0xc1a   :  { %v1551_v46 = vld [vmem:[#allocation6 + $0x8] sm:$0xff] }
 0xc1b   :  { %1853 = vmatmul.msk.f32.gmra.mxu2 %vm142_vm0, %v1551_v46 }
 0xc51   :  { %v1583_v48 = vpop.f32.mrf.mxu2 }
 0xc52   :  { %v1584_v49 = vadd.f32 %v1885_v47, %v1583_v48  ;;  %v1688_v48 = vld [vmem:[%s2741_s17 + $0x10] sm:$0xff] }
 0xc53   :  { %1719 = vmatpush.msrb.mxu3 %v1688_v48 }
 0xc54   :  { %v1589_v50 = vadd.f32 %v1584_v49, %v2469_v3  ;;  %v1687_v49 = vld [vmem:[%s2741_s17 + $0x8] sm:$0xff] }
 0xc55   :  { %1720 = vmatpush.msrb.mxu3 %v1687_v49 }
 0xc56   :  { %v1593_v51 = vsel %vm142_vm0, %v1589_v50, 0.0 }
 0xc57   :  { %1594 = vadd.xlane.f32.xlu2 %v1593_v51  ;;  %v1888_v51 = vld [vmem:[#allocation9] ss:$0 sm:$0xff] }
 0xc9e   :  { %v1586_v52 = vpop.f32.mrf.mxu2 }
 0xc9f   :  { %v1587_v53 = vadd.f32 %v1885_v47, %v1586_v52 }
 0xca1   :  { %v1590_v54 = vadd.f32 %v1587_v53, %v2474_v19 }
 0xca3   :  { %v1596_v55 = vsel %vm142_vm0, %v1590_v54, 0.0 }
 0xca4   :  { %1597 = vadd.xlane.f32.xlu0 %v1596_v55 }
 0xcca   :  { %v1595_v36 = vpop.xlane.xlu2 %1594 }
 0xccb   :  { %v1599_v56 = vmul.f32 %v1595_v36, %v2424_v35 }
 0xccd   :  { %v1601_v57 = vsub.f32 %v1589_v50, %v1599_v56  ;;  %v1686_v50 = vld [vmem:[%s2741_s17] sm:$0xff] }
 0xcce   :  { %1721 = vmatpush.msrb.mxu3 %v1686_v50 }
 0xccf   :  { %v1603_v58 = vmul.f32 %v1601_v57, %v1601_v57 }
 0xcd1   :  { %v1605_v59 = vsel %vm142_vm0, %v1603_v58, 0.0 }
 0xcd2   :  { %1606 = vadd.xlane.f32.xlu1 %v1605_v59 }
 0xd17   :  { %v1598_v60 = vpop.xlane.xlu0 %1597 }
 0xd18   :  { %v1600_v3 = vmul.f32 %v1598_v60, %v2424_v35 }
 0xd1a   :  { %v2631_v61 = vsub.f32 %v1590_v54, %v1600_v3 }
 0xd1c   :  { %v1604_v62 = vmul.f32 %v2631_v61, %v2631_v61 }
 0xd1e   :  { %v1608_v19 = vsel %vm142_vm0, %v1604_v62, 0.0 }
 0xd1f   :  { %1609 = vadd.xlane.f32.xlu2 %v1608_v19 }
 0xd45   :  { %v1607_v5 = vpop.xlane.xlu1 %1606 }
 0xd46   :  { %v1611_v7 = vmul.f32 %v1607_v5, %v2424_v35 }
 0xd48   :  { %v1613_v8 = vadd.f32 1e-05, %v1611_v7 }
 0xd4a   :  { %1962 = vrsqrt.f32 %v1613_v8  ;;  %vm1621_vm4 = vweird.f32 %v1613_v8 }
 0xd50   :  { %v1963_v9 = vpop.eup %1962 }
 0xd51   :  { %v1616_v10 = vmul.f32 %v1963_v9, %v1613_v8  ;;  %vm1622_vm2 = vweird.f32 %v1963_v9 }
 0xd52   :  { %vm1623_vm5 = vmor %vm1621_vm4, %vm1622_vm2 }
 0xd53   :  { %v1617_v11 = vmul.f32 %v1963_v9, %v1616_v10 }
 0xd55   :  { %v1618_v24 = vmul.f32 0.5, %v1617_v11 }
 0xd57   :  { %v1619_v12 = vsub.f32 1.5, %v1618_v24 }
 0xd59   :  { %v1620_v14 = vmul.f32 %v1963_v9, %v1619_v12 }
 0xd5b   :  { %v1624_v16 = vsel %vm1623_vm5, %v1963_v9, %v1620_v14 }
 0xd5c   :  { %v1635_v17 = vmul.f32 %v1624_v16, %v1601_v57  ;;  %v1889_v57 = vld [vmem:[#allocation11] ss:$0 sm:$0xff] }
 0xd5e   :  { %v1640_v20 = vmul.f32 %v1886_v15, %v1635_v17 }
 0xd60   :  { %v2652_v22 = vadd.f32 %v1887_v18, %v1640_v20 }
 0xd62   :  { %1854 = vmatmul.msk.f32.vlgmr.msra.gmra.mxu1 %vm142_vm0, %v2652_v22 }
 0xd92   :  { %v1610_v28 = vpop.xlane.xlu2 %1609 }
 0xd93   :  { %v1612_v29 = vmul.f32 %v1610_v28, %v2424_v35  ;;  %v1891_v28 = vld [vmem:[#allocation14] ss:$0 sm:$0xff] }
 0xd95   :  { %v1614_v31 = vadd.f32 1e-05, %v1612_v29 }
 0xd97   :  { %1964 = vrsqrt.f32 %v1614_v31  ;;  %vm1631_vm8 = vweird.f32 %v1614_v31 }
 0xd9d   :  { %v1965_v4 = vpop.eup %1964 }
 0xd9e   :  { %v1626_v37 = vmul.f32 %v1965_v4, %v1614_v31  ;;  %vm1632_vm6 = vweird.f32 %v1965_v4 }
 0xd9f   :  { %vm1633_vm9 = vmor %vm1631_vm8, %vm1632_vm6 }
 0xda0   :  { %v1627_v39 = vmul.f32 %v1965_v4, %v1626_v37 }
 0xda2   :  { %v1628_v6 = vmul.f32 0.5, %v1627_v39 }
 0xda4   :  { %v1629_v41 = vsub.f32 1.5, %v1628_v6 }
 0xda6   :  { %v1630_v43 = vmul.f32 %v1965_v4, %v1629_v41 }
 0xda8   :  { %v1634_v44 = vsel %vm1633_vm9, %v1965_v4, %v1630_v43 }
 0xda9   :  { %v1636_v45 = vmul.f32 %v1634_v44, %v2631_v61 }
 0xdab   :  { %v1641_v46 = vmul.f32 %v1886_v15, %v1636_v45 }
 0xdad   :  { %v1646_v47 = vadd.f32 %v1887_v18, %v1641_v46 }
 0xdaf   :  { %1855 = vmatmul.msk.f32.gmra.mxu1 %vm142_vm0, %v1646_v47 }
 0xddf   :  { %v1678_v52 = vpop.f32.mrf.mxu1 }
 0xde0   :  { %v1679_v53 = vadd.f32 %v1888_v51, %v1678_v52 }
 0xde2   :  { %v1684_v54 = vmax.f32 %v1679_v53, 0.0 }
 0xde4   :  { %1722 = vmatmul.f32.vlgmr.msrb.gmra.mxu3 %v1684_v54 }
 0xe2c   :  { %v1681_v55 = vpop.f32.mrf.mxu1 }
 0xe2d   :  { %v1682_v36 = vadd.f32 %v1888_v51, %v1681_v55 }
 0xe2f   :  { %v1685_v56 = vmax.f32 %v1682_v36, 0.0 }
 0xe31   :  { %1725 = vmatmul.f32.gmra.mxu3 %v1685_v56 }
 0xe67   :  { %v1723_v58 = vpop.f32.mrf.mxu3 }
 0xe68   :  { %v1724_v59 = vadd.f32 %v1889_v57, %v1723_v58 }
 0xe6a   :  { %v1729_v60 = vadd.f32 %v1724_v59, %v2652_v22 }
 0xe6c   :  { %v1733_v3 = vsel %vm142_vm0, %v1729_v60, 0.0 }
 0xe6d   :  { %1734 = vadd.xlane.f32.xlu0 %v1733_v3 }
 0xeb4   :  { %v1726_v61 = vpop.f32.mrf.mxu3 }
 0xeb5   :  { %v1727_v62 = vadd.f32 %v1889_v57, %v1726_v61 }
 0xeb7   :  { %v1730_v19 = vadd.f32 %v1727_v62, %v1646_v47 }
 0xeb9   :  { %v1736_v63 = vsel %vm142_vm0, %v1730_v19, 0.0 }
 0xeba   :  { %1737 = vadd.xlane.f32.xlu1 %v1736_v63 }
 0xee0   :  { %v1735_v0 = vpop.xlane.xlu0 %1734 }
 0xee1   :  { %v1739_v1 = vmul.f32 %v1735_v0, %v2424_v35 }
 0xee3   :  { %v1741_v2 = vsub.f32 %v1729_v60, %v1739_v1 }
 0xee5   :  { %v1743_v5 = vmul.f32 %v1741_v2, %v1741_v2 }
 0xee7   :  { %v1745_v7 = vsel %vm142_vm0, %v1743_v5, 0.0 }
 0xee8   :  { %1746 = vadd.xlane.f32.xlu2 %v1745_v7 }
 0xf2d   :  { %v1738_v8 = vpop.xlane.xlu1 %1737 }
 0xf2e   :  { %v1740_v9 = vmul.f32 %v1738_v8, %v2424_v35 }
 0xf30   :  { %v1742_v10 = vsub.f32 %v1730_v19, %v1740_v9 }
 0xf32   :  { %v1744_v11 = vmul.f32 %v1742_v10, %v1742_v10 }
 0xf34   :  { %v1748_v24 = vsel %vm142_vm0, %v1744_v11, 0.0 }
 0xf35   :  { %1749 = vadd.xlane.f32.xlu0 %v1748_v24 }
 0xf5b   :  { %v1747_v12 = vpop.xlane.xlu2 %1746 }
 0xf5c   :  { %v1751_v14 = vmul.f32 %v1747_v12, %v2424_v35 }
 0xf5e   :  { %v1753_v15 = vadd.f32 1e-05, %v1751_v14 }
 0xf60   :  { %1966 = vrsqrt.f32 %v1753_v15  ;;  %vm1761_vm11 = vweird.f32 %v1753_v15 }
 0xf66   :  { %v1967_v16 = vpop.eup %1966 }
 0xf67   :  { %v1756_v17 = vmul.f32 %v1967_v16, %v1753_v15  ;;  %vm1762_vm10 = vweird.f32 %v1967_v16 }
 0xf68   :  { %vm1763_vm12 = vmor %vm1761_vm11, %vm1762_vm10 }
 0xf69   :  { %v1757_v18 = vmul.f32 %v1967_v16, %v1756_v17 }
 0xf6b   :  { %v1758_v20 = vmul.f32 0.5, %v1757_v18 }
 0xf6d   :  { %v1759_v22 = vsub.f32 1.5, %v1758_v20 }
 0xf6f   :  { %v1760_v25 = vmul.f32 %v1967_v16, %v1759_v22 }
 0xf71   :  { %v1764_v27 = vsel %vm1763_vm12, %v1967_v16, %v1760_v25 }
 0xf72   :  { %v1775_v29 = vmul.f32 %v1764_v27, %v1741_v2 }
 0xf74   :  { %v1780_v30 = vmul.f32 %v1890_v26, %v1775_v29 }
 0xf76   :  { %v1785_v31 = vadd.f32 %v1891_v28, %v1780_v30 }
 0xf78   :  { %1787 = vst.msk [vmem:[%s2745_s21] sm:$0xff] %vm142_vm0, %v1785_v31 }
 0xfa8   :  { %v1750_v13 = vpop.xlane.xlu0 %1749 }
 0xfa9   :  { %v1752_v32 = vmul.f32 %v1750_v13, %v2424_v35 }
 0xfab   :  { %v1754_v33 = vadd.f32 1e-05, %v1752_v32 }
 0xfad   :  { %1968 = vrsqrt.f32 %v1754_v33  ;;  %vm1771_vm14 = vweird.f32 %v1754_v33 }
 0xfb3   :  { %v1969_v34 = vpop.eup %1968 }
 0xfb4   :  { %v1766_v4 = vmul.f32 %v1969_v34, %v1754_v33  ;;  %vm1772_vm13 = vweird.f32 %v1969_v34 }
 0xfb5   :  { %vm1773_vm15 = vmor %vm1771_vm14, %vm1772_vm13 }
 0xfb6   :  { %v1767_v21 = vmul.f32 %v1969_v34, %v1766_v4 }
 0xfb8   :  { %v1768_v37 = vmul.f32 0.5, %v1767_v21 }
 0xfba   :  { %v1769_v38 = vsub.f32 1.5, %v1768_v37 }
 0xfbc   :  { %v1770_v39 = vmul.f32 %v1969_v34, %v1769_v38 }
 0xfbe   :  { %v1774_v23 = vsel %vm1773_vm15, %v1969_v34, %v1770_v39 }
 0xfbf   :  { %v1776_v6 = vmul.f32 %v1774_v23, %v1742_v10 }
 0xfc1   :  { %v1781_v40 = vmul.f32 %v1890_v26, %v1776_v6 }
 0xfc3   :  { %v1786_v41 = vadd.f32 %v1891_v28, %v1781_v40 }
 0xfc5   :  { %1788 = vst.msk [vmem:[%s2745_s21 + $0x8] sm:$0xff] %vm142_vm0, %v1786_v41 }
 0xfc6   :  { %1793 = vsyncpa [#allocation8], 1 }
 0xfc7   :  { %1794 = vsyncpa [#allocation10], 1 }
 0xfc8   :  { %1795 = vsyncpa [#allocation13], 1 }

// kernel: transformer_forward.8
= control target key start
LH: loop header
LB: loop body
LE: loop exit
PB: predicated region body
PF: predicated region fallthrough
CT: control target
= control target key end

     0   :  { %s2931_s0 = inlined_call_operand.vmem [shape: f32[16,32], index: 0, kind: input, shape index: {}]   ;;  %s2932_s1 = inlined_call_operand.vmem [shape: f32[16,32], index: 1, kind: input, shape index: {}]   ;;  %s2933_s2 = inlined_call_operand.vmem [shape: f32[8,8], index: 2, kind: input, shape index: {}]   ;;  %s2934_s3 = inlined_call_operand.vmem [shape: f32[2,8], index: 3, kind: input, shape index: {}]   ;;  %s2935_s4 = inlined_call_operand.vmem [shape: f32[32,96], index: 4, kind: input, shape index: {}]   ;;  %s2936_s5 = inlined_call_operand.vmem [shape: f32[32,32], index: 5, kind: input, shape index: {}]   ;;  %s2937_s6 = inlined_call_operand.hbm [shape: f32[1,32], index: 6, kind: input, shape index: {}]   ;;  %s2938_s7 = inlined_call_operand.hbm [shape: f32[1,32], index: 7, kind: input, shape index: {}]   ;;  %s2939_s8 = inlined_call_operand.hbm [shape: f32[1,32], index: 8, kind: input, shape index: {}]   ;;  %s2940_s9 = inlined_call_operand.vmem [shape: f32[32,32], index: 9, kind: input, shape index: {}]   ;;  %s2941_s10 = inlined_call_operand.vmem [shape: f32[32,64], index: 10, kind: input, shape index: {}]   ;;  %s2942_s11 = inlined_call_operand.vmem [shape: f32[32,32], index: 11, kind: input, shape index: {}]   ;;  %s2943_s12 = inlined_call_operand.hbm [shape: f32[1,32], index: 12, kind: input, shape index: {}]   ;;  %s2944_s13 = inlined_call_operand.hbm [shape: f32[1,32], index: 13, kind: input, shape index: {}]   ;;  %s2945_s14 = inlined_call_operand.hbm [shape: f32[1,32], index: 14, kind: input, shape index: {}]   ;;  %s2946_s15 = inlined_call_operand.vmem [shape: f32[32,128], index: 15, kind: input, shape index: {}]   ;;  %s2947_s16 = inlined_call_operand.hbm [shape: f32[1,128], index: 16, kind: input, shape index: {}]   ;;  %s2948_s17 = inlined_call_operand.vmem [shape: f32[128,32], index: 17, kind: input, shape index: {}]   ;;  %s2949_s18 = inlined_call_operand.hbm [shape: f32[1,32], index: 18, kind: input, shape index: {}]   ;;  %s2950_s19 = inlined_call_operand.hbm [shape: f32[1,32], index: 19, kind: input, shape index: {}]   ;;  %s2951_s20 = inlined_call_operand.hbm [shape: f32[1,32], index: 20, kind: input, shape index: {}]   ;;  %s2952_s21 = inlined_call_operand.vmem [shape: f32[16,32], index: 21, kind: output, shape index: {}]  }
   0x1   :  { %2958 = sst [smem:[#allocation29_spill]] %s2931_s0 }
   0x2   :  { %2959 = sst [smem:[#allocation30_spill]] %s2932_s1 }
   0x3   :  { %2960 = sst [smem:[#allocation31_spill]] %s2933_s2 }
   0x4   :  { %2961 = sst [smem:[#allocation32_spill]] %s2934_s3 }
   0x5   :  { %2962 = sst [smem:[#allocation33_spill]] %s2935_s4 }
   0x6   :  { %2963 = sst [smem:[#allocation34_spill]] %s2936_s5 }
   0x7   :  { %26 = vsyncpa [#allocation8], 0 }
   0x8   :  { %27 = vsyncpa [#allocation10], 0 }
   0x9   :  { %28 = vsyncpa [#allocation13], 0 }
   0xa   :  { %29 = vsyncpa [#allocation16], 0 }
   0xb   :  { %30 = vsyncpa [#allocation19], 0  ;;  %s60_s26 = sshll.u32 %s2938_s7, 4  ;;  %s61_s26 = int_to_ptr.hbm [resolvable:$true] %s60_s26 }
   0xc   :  { %31 = vsyncpa [#allocation22], 0  ;;  %s2298_s27 = smov [#allocation9]   ;;  %s88_s0 = sshll.u32 %s2943_s12, 4  ;;  %s89_s0 = int_to_ptr.hbm [resolvable:$true] %s88_s0 }
   0xd   :  { %s62_s3 = sshll.u32 %s2298_s27, 4  ;;  %s2299_s4 = smov [#allocation12]   ;;  %s63_s3 = int_to_ptr.vmem [resolvable:$true] %s62_s3 }
   0xe   :  { %65 = dma.hbm_to_vmem [thread:$0]  %s61_s26, 16, %s63_s3, [#allocation10]  }
   0xf   :  { %s90_s30 = sshll.u32 %s2299_s4, 4  ;;  %s110_s23 = sshll.u32 %s2945_s14, 4  ;;  %s91_s30 = int_to_ptr.vmem [resolvable:$true] %s90_s30  ;;  %s111_s23 = int_to_ptr.hbm [resolvable:$true] %s110_s23 }
  0x10   :  { %93 = dma.hbm_to_vmem [thread:$0]  %s89_s0, 16, %s91_s30, [#allocation13]  }
  0x11   :  { %s136_s24 = sshll.u32 %s2949_s18, 4  ;;  %s2300_s2 = smov [#allocation15]   ;;  %s137_s24 = int_to_ptr.hbm [resolvable:$true] %s136_s24 }
  0x12   :  { %s112_s25 = sshll.u32 %s2300_s2, 4  ;;  %s2301_s12 = smov [#allocation18]   ;;  %s113_s25 = int_to_ptr.vmem [resolvable:$true] %s112_s25 }
  0x13   :  { %115 = dma.hbm_to_vmem [thread:$0]  %s111_s23, 16, %s113_s25, [#allocation16]  }
  0x14   :  { %s138_s26 = sshll.u32 %s2301_s12, 4  ;;  %s49_s28 = sshll.u32 %s2937_s6, 4  ;;  %s139_s26 = int_to_ptr.vmem [resolvable:$true] %s138_s26  ;;  %s50_s28 = int_to_ptr.hbm [resolvable:$true] %s49_s28 }
  0x15   :  { %141 = dma.hbm_to_vmem [thread:$0]  %s137_s24, 16, %s139_s26, [#allocation19]  }
  0x16   :  { %s71_s0 = sshll.u32 %s2939_s8, 4  ;;  %s2302_s4 = smov [#allocation7]   ;;  %s72_s0 = int_to_ptr.hbm [resolvable:$true] %s71_s0 }
  0x17   :  { %s51_s18 = sshll.u32 %s2302_s4, 4  ;;  %s2303_s30 = smov [#allocation11]   ;;  %s52_s18 = int_to_ptr.vmem [resolvable:$true] %s51_s18 }
  0x18   :  { %54 = dma.hbm_to_vmem [thread:$0]  %s50_s28, 16, %s52_s18, [#allocation8]  }
  0x19   :  { %s73_s5 = sshll.u32 %s2303_s30, 4  ;;  %s99_s7 = sshll.u32 %s2944_s13, 4  ;;  %s74_s5 = int_to_ptr.vmem [resolvable:$true] %s73_s5  ;;  %s100_s7 = int_to_ptr.hbm [resolvable:$true] %s99_s7 }
  0x1a   :  { %76 = dma.hbm_to_vmem [thread:$0]  %s72_s0, 16, %s74_s5, [#allocation10]  }
  0x1b   :  { %s123_s24 = sshll.u32 %s2947_s16, 4  ;;  %s2304_s2 = smov [#allocation14]   ;;  %s124_s24 = int_to_ptr.hbm [resolvable:$true] %s123_s24 }
  0x1c   :  { %s101_s8 = sshll.u32 %s2304_s2, 4  ;;  %s2305_s25 = smov [#allocation17]   ;;  %s102_s8 = int_to_ptr.vmem [resolvable:$true] %s101_s8 }
  0x1d   :  { %104 = dma.hbm_to_vmem [thread:$0]  %s100_s7, 16, %s102_s8, [#allocation13]  }
  0x1e   :  { %s125_s12 = sshll.u32 %s2305_s25, 4  ;;  %s147_s3 = sshll.u32 %s2950_s19, 4  ;;  %s126_s12 = int_to_ptr.vmem [resolvable:$true] %s125_s12  ;;  %s148_s3 = int_to_ptr.hbm [resolvable:$true] %s147_s3 }
  0x1f   :  { %128 = dma.hbm_to_vmem [thread:$0]  %s124_s24, 16, %s126_s12, [#allocation16]  }
  0x20   :  { %s158_s14 = sshll.u32 %s2951_s20, 4  ;;  %s2306_s29 = smov [#allocation20]   ;;  %s159_s14 = int_to_ptr.hbm [resolvable:$true] %s158_s14 }
  0x21   :  { %s149_s16 = sshll.u32 %s2306_s29, 4  ;;  %s2307_s0 = smov [#allocation21]   ;;  %s150_s16 = int_to_ptr.vmem [resolvable:$true] %s149_s16 }
  0x22   :  { %152 = dma.hbm_to_vmem [thread:$0]  %s148_s3, 16, %s150_s16, [#allocation19]  }
  0x23   :  { %s160_s4 = sshll.u32 %s2307_s0, 4  ;;  %s161_s4 = int_to_ptr.vmem [resolvable:$true] %s160_s4 }
  0x24   :  { %163 = dma.hbm_to_vmem [thread:$0]  %s159_s14, 16, %s161_s4, [#allocation22]  }
  0x25   :  { %2286 = dma.done.wait [#allocation8], 16  }
  0x26   :  { %2287 = vsyncadd [#allocation8], 4294967280 }
  0x27   :  { %2288 = dma.done.wait [#allocation10], 32  }
  0x28   :  { %2289 = vsyncadd [#allocation10], 4294967264 }
  0x29   :  { %2290 = dma.done.wait [#allocation13], 32  }
  0x2a   :  { %2291 = vsyncadd [#allocation13], 4294967264 }
  0x2b   :  { %2292 = dma.done.wait [#allocation16], 32  }
  0x2c   :  { %2293 = vsyncadd [#allocation16], 4294967264 }
  0x2d   :  { %2294 = dma.done.wait [#allocation19], 32  }
  0x2e   :  { %2295 = vsyncadd [#allocation19], 4294967264 }
  0x2f   :  { %2296 = dma.done.wait [#allocation22], 16  }
  0x30   :  { %2297 = vsyncadd [#allocation22], 4294967280  ;;  %s2964_s18 = sld [smem:[#allocation33_spill]]  ;;  %vm210_vm0 = vcmask 261120   ;;  %vm240_vm1 = vcmask 785408   ;;  %s2308_s8 = smov 88  }
  0x31   :  { %s2965_s2 = sld [smem:[#allocation29_spill]]  ;;  %s2309_s25 = smov 96   ;;  %vm249_vm2 = vcmask 64512   ;;  %vm389_vm4 = vcmask 130112   ;;  %vm465_vm5 = vcmask 195712   ;;  %vm541_vm6 = vcmask 261312  }
  0x32   :  { %s2310_s12 = smov 120   ;;  %s2311_s26 = smov 80   ;;  %vm1013_vm14 = vcmask 523264  }
  0x33   :  { %s2312_s27 = smov 112   ;;  %s2966_s28 = sld [smem:[#allocation31_spill]] }
  0x34   :  { %s2313_s14 = smov 64   ;;  %s2314_s0 = smov 48  }
  0x35   :  { %s2315_s4 = smov 56   ;;  %s2316_s19 = smov 104  }
  0x36   :  { %v209_v0 = vld [vmem:[%s2964_s18 + $0x18] sm:$0xff]  ;;  %v208_v1 = vld [vmem:[%s2964_s18 + $0x10] sm:$0xff]  ;;  %v207_v2 = vld [vmem:[%s2964_s18 + $0x8] sm:$0xff]  ;;  %s2317_s20 = smov 72   ;;  %s2319_s30 = smov 16  }
  0x37   :  { %229 = vmatpush.msra.mxu0 %v209_v0  ;;  %v206_v3 = vld [vmem:[%s2964_s18] sm:$0xff]  ;;  %v2519_v23 = vld [vmem:[%s2965_s2 + $0x8] sm:$0xff]  ;;  %s2318_s18 = smov 40   ;;  %s2320_s5 = smov 8  }
  0x38   :  { %v2479_v4 = vld [vmem:[%s2965_s2] sm:$0xff]  ;;  %s2321_s22 = smov 24   ;;  %s2967_s6 = sld [smem:[#allocation34_spill]] }
  0x39   :  { %230 = vmatpush.msra.mxu0 %v208_v1  ;;  %v2507_v13 = vld [vmem:[%s2966_s28] sm:$0xff]  ;;  %s2968_s24 = sld [smem:[#allocation30_spill]] }
  0x3a   :  { %vm275_vm3 = vcmp.eq.f32.partialorder %v2507_v13, 0.0  ;;  %s2969_s23 = sld [smem:[#allocation32_spill]] }
  0x3b   :  { %231 = vmatpush.msra.mxu0 %v207_v2 }
  0x3d   :  { %232 = vmatpush.msra.mxu0 %v206_v3 }
  0x3e   :  { %1867 = vmatmul.msk.f32.vlgmr.msra.gmra.mxu0 %vm210_vm0, %v2479_v4 }
  0x46   :  { %1868 = vmatmul.msk.f32.gmra.mxu0 %vm210_vm0, %v2519_v23 }
  0xbb   :  { %v234_v5 = vpop.f32.mrf.mxu0 }
  0xbc   :  { %241 = vst.msk [vmem:[#allocation2] sm:$0xff] %vm240_vm1, %v234_v5 }
  0xc3   :  { %v2484_v6 = vld [vmem:[#allocation2] sm:$0xff]  ;;  %v237_v33 = vpop.f32.mrf.mxu0 }
  0xc4   :  { %321 = vrot.lane.b32.xlu2 %v2484_v6, %s2308_s8  ;;  %247 = vrot.lane.b32.xlu0 %v2484_v6, %s2309_s25  ;;  %v2491_v7 = vmul.f32 0.17677669, %v2484_v6  ;;  %242 = vst.msk [vmem:[#allocation2 + $0x8] sm:$0xff] %vm240_vm1, %v237_v33 }
  0xcb   :  { %v2533_v36 = vld [vmem:[#allocation2 + $0x8] sm:$0xff] }
  0xcc   :  { %318 = vrot.lane.b32.xlu2 %v2491_v7, %s2310_s12  ;;  %v545_v37 = vmul.f32 0.17677669, %v2533_v36 }
  0xd4   :  { %397 = vrot.lane.b32.xlu2 %v2484_v6, %s2311_s26 }
  0xdc   :  { %394 = vrot.lane.b32.xlu2 %v2491_v7, %s2312_s27 }
 0x11e   :  { %v322_v8 = vpop.permute.xlu2 %321 }
 0x126   :  { %v319_v9 = vpop.permute.xlu2 %318 }
 0x12e   :  { %v398_v11 = vpop.permute.xlu2 %397 }
 0x136   :  { %v248_v10 = vpop.permute.xlu0 %247  ;;  %v395_v12 = vpop.permute.xlu2 %394 }
 0x137   :  { %1869 = vmatpush.xpose.msk.msra.mxu1 %vm249_vm2, %v248_v10 }
 0x13a   :  { %1870 = vmatmul.msk.f32.vlgmr.msra.gmra.mxu1 %vm249_vm2, %v2491_v7 }
 0x13b   :  { %1875 = vmatpush.xpose.msk.msrb.mxu1 %vm249_vm2, %v398_v11 }
 0x142   :  { %1876 = vmatmul.msk.f32.vlgmr.msrb.gmra.mxu1 %vm249_vm2, %v395_v12 }
 0x1b7   :  { %v272_v14 = vpop.f32.mrf.mxu1 }
 0x1b8   :  { %v276_v15 = vsel %vm275_vm3, -1e+20, %v272_v14 }
 0x1b9   :  { %v277_v16 = vsel %vm249_vm2, %v276_v15, -inf }
 0x1ba   :  { %278 = vmax.xlane.f32.xlu0 %v277_v16 }
 0x1bf   :  { %v420_v22 = vpop.f32.mrf.mxu1 }
 0x1c0   :  { %v423_v24 = vsel %vm275_vm3, -1e+20, %v420_v22 }
 0x1c1   :  { %v424_v25 = vsel %vm249_vm2, %v423_v24, -inf }
 0x22d   :  { %v279_v17 = vpop.xlane.xlu0 %278 }
 0x22e   :  { %v280_v18 = vsub.f32 %v276_v15, %v279_v17 }
 0x230   :  { %v281_v19 = vmul.f32 1.442695, %v280_v18 }
 0x232   :  { %1968 = vpow2.f32 %v281_v19 }
 0x238   :  { %v1969_v20 = vpop.eup %1968 }
 0x239   :  { %v283_v21 = vsel %vm249_vm2, %v1969_v20, 0.0 }
 0x23a   :  { %284 = vadd.xlane.f32.xlu1 %v283_v21 }
 0x253   :  { %288 = vrot.lane.b32.xlu1 %v2484_v6, %s2313_s14 }
 0x27d   :  { %425 = vmax.xlane.f32.xlu1 %v424_v25 }
 0x296   :  { %435 = vrot.lane.b32.xlu1 %v2484_v6, %s2314_s0 }
 0x29e   :  { %617 = vrot.lane.b32.xlu1 %v545_v37, %s2310_s12 }
 0x2a6   :  { %692 = vrot.lane.b32.xlu1 %v545_v37, %s2312_s27 }
 0x2ad   :  { %v285_v26 = vpop.xlane.xlu1 %284 }
 0x2ae   :  { %1970 = vrcp.f32 %v285_v26 }
 0x2b4   :  { %v1971_v27 = vpop.eup %1970 }
 0x2b5   :  { %v287_v29 = vmul.f32 %v1971_v27, %v1969_v20 }
 0x2c5   :  { %v289_v28 = vpop.permute.xlu1 %288 }
 0x2c6   :  { %309 = vmatpush.msra.mxu2 %v289_v28 }
 0x2c7   :  { %1871 = vmatmul.msk.f32.vlgmr.msra.gmra.mxu2 %vm249_vm2, %v287_v29 }
 0x2c8   :  { %1872 = vmatpush.xpose.msk.msrb.mxu2 %vm249_vm2, %v322_v8 }
 0x2cf   :  { %1873 = vmatmul.msk.f32.vlgmr.msrb.gmra.mxu2 %vm249_vm2, %v319_v9 }
 0x2f0   :  { %v426_v30 = vpop.xlane.xlu1 %425 }
 0x2f1   :  { %v427_v31 = vsub.f32 %v423_v24, %v426_v30 }
 0x2f3   :  { %v428_v32 = vmul.f32 1.442695, %v427_v31 }
 0x2f5   :  { %1972 = vpow2.f32 %v428_v32 }
 0x2fb   :  { %v1973_v34 = vpop.eup %1972 }
 0x2fc   :  { %v430_v35 = vsel %vm249_vm2, %v1973_v34, 0.0 }
 0x2fd   :  { %431 = vadd.xlane.f32.xlu0 %v430_v35 }
 0x308   :  { %v436_v38 = vpop.permute.xlu1 %435 }
 0x309   :  { %456 = vmatpush.msra.mxu3 %v436_v38 }
 0x310   :  { %v618_v55 = vpop.permute.xlu1 %617 }
 0x311   :  { %359 = vrot.lane.b32.xlu0 %v2484_v6, %s2315_s4 }
 0x318   :  { %v693_v57 = vpop.permute.xlu1 %692 }
 0x319   :  { %470 = vrot.lane.b32.xlu0 %v2491_v7, %s2316_s19 }
 0x321   :  { %547 = vrot.lane.b32.xlu0 %v2533_v36, %s2309_s25 }
 0x329   :  { %695 = vrot.lane.b32.xlu0 %v2533_v36, %s2311_s26 }
 0x34a   :  { %v311_v39 = vpop.f32.mrf.mxu2 }
 0x34b   :  { %314 = vst.msk [vmem:[#allocation3] sm:$0xff] %vm249_vm2, %v311_v39 }
 0x352   :  { %v344_v40 = vpop.f32.mrf.mxu2 }
 0x353   :  { %v347_v41 = vsel %vm275_vm3, -1e+20, %v344_v40 }
 0x354   :  { %v348_v42 = vsel %vm249_vm2, %v347_v41, -inf }
 0x355   :  { %349 = vmax.xlane.f32.xlu2 %v348_v42 }
 0x36d   :  { %473 = vrot.lane.b32.xlu2 %v2484_v6, %s2317_s20 }
 0x370   :  { %v432_v43 = vpop.xlane.xlu0 %431 }
 0x371   :  { %1974 = vrcp.f32 %v432_v43 }
 0x375   :  { %620 = vrot.lane.b32.xlu2 %v2533_v36, %s2308_s8 }
 0x377   :  { %v1975_v44 = vpop.eup %1974 }
 0x378   :  { %v434_v45 = vmul.f32 %v1975_v44, %v1973_v34 }
 0x37a   :  { %1877 = vmatmul.msk.f32.vlgmr.msra.gmra.mxu3 %vm249_vm2, %v434_v45 }
 0x37d   :  { %770 = vrot.lane.b32.xlu2 %v2533_v36, %s2317_s20 }
 0x383   :  { %v360_v46 = vpop.permute.xlu0 %359 }
 0x384   :  { %380 = vmatpush.msra.mxu2 %v360_v46 }
 0x38b   :  { %v471_v47 = vpop.permute.xlu0 %470 }
 0x393   :  { %v548_v48 = vpop.permute.xlu0 %547 }
 0x394   :  { %1881 = vmatpush.xpose.msk.msrb.mxu3 %vm249_vm2, %v548_v48 }
 0x397   :  { %1882 = vmatmul.msk.f32.vlgmr.msrb.gmra.mxu3 %vm249_vm2, %v545_v37 }
 0x39b   :  { %v696_v56 = vpop.permute.xlu0 %695 }
 0x39c   :  { %1887 = vmatpush.xpose.msk.msra.mxu3 %vm249_vm2, %v696_v56 }
 0x39f   :  { %1888 = vmatmul.msk.f32.vlgmr.msra.gmra.mxu3 %vm249_vm2, %v693_v57 }
 0x3c8   :  { %v350_v49 = vpop.xlane.xlu2 %349 }
 0x3c9   :  { %v351_v50 = vsub.f32 %v347_v41, %v350_v49 }
 0x3cb   :  { %v352_v51 = vmul.f32 1.442695, %v351_v50 }
 0x3cd   :  { %1976 = vpow2.f32 %v352_v51 }
 0x3d0   :  { %v474_v52 = vpop.permute.xlu2 %473 }
 0x3d1   :  { %1878 = vmatpush.xpose.msk.msrb.mxu2 %vm249_vm2, %v474_v52 }
 0x3d3   :  { %v1977_v53 = vpop.eup %1976 }
 0x3d4   :  { %v354_v54 = vsel %vm249_vm2, %v1977_v53, 0.0 }
 0x3d5   :  { %355 = vadd.xlane.f32.xlu0 %v354_v54 }
 0x3d8   :  { %v621_v0 = vpop.permute.xlu2 %620 }
 0x3e0   :  { %v771_v2 = vpop.permute.xlu2 %770 }
 0x3e9   :  { %767 = vrot.lane.b32.xlu0 %v545_v37, %s2316_s19 }
 0x3fd   :  { %v2564_v58 = vpop.f32.mrf.mxu3 }
 0x41a   :  { %v571_v59 = vpop.f32.mrf.mxu3 }
 0x41b   :  { %v575_v60 = vsel %vm275_vm3, -1e+20, %v571_v59 }
 0x41c   :  { %v576_v61 = vsel %vm249_vm2, %v575_v60, -inf }
 0x41d   :  { %577 = vmax.xlane.f32.xlu1 %v576_v61 }
 0x422   :  { %v718_v12 = vpop.f32.mrf.mxu3 }
 0x423   :  { %v721_v15 = vsel %vm275_vm3, -1e+20, %v718_v12  ;;  %v841_v12 = vld [vmem:[%s2967_s6] sm:$0xff] }
 0x424   :  { %v722_v19 = vsel %vm249_vm2, %v721_v15, -inf }
 0x448   :  { %v356_v62 = vpop.xlane.xlu0 %355 }
 0x449   :  { %1978 = vrcp.f32 %v356_v62 }
 0x44f   :  { %v1979_v63 = vpop.eup %1978 }
 0x450   :  { %v358_v1 = vmul.f32 %v1979_v63, %v1977_v53 }
 0x452   :  { %1874 = vmatmul.msk.f32.vlgmr.msra.gmra.mxu2 %vm249_vm2, %v358_v1 }
 0x453   :  { %1884 = vmatpush.xpose.msk.msra.mxu2 %vm249_vm2, %v621_v0 }
 0x45a   :  { %1879 = vmatmul.msk.f32.vlgmr.msrb.gmra.mxu2 %vm249_vm2, %v471_v47 }
 0x45b   :  { %1890 = vmatpush.xpose.msk.msrb.mxu2 %vm249_vm2, %v771_v2  ;;  %v768_v3 = vpop.permute.xlu0 %767 }
 0x462   :  { %1885 = vmatmul.msk.f32.vlgmr.msra.gmra.mxu2 %vm249_vm2, %v618_v55 }
 0x46a   :  { %1891 = vmatmul.msk.f32.vlgmr.msrb.gmra.mxu2 %vm249_vm2, %v768_v3 }
 0x490   :  { %v578_v7 = vpop.xlane.xlu1 %577 }
 0x491   :  { %v579_v9 = vsub.f32 %v575_v60, %v578_v7 }
 0x493   :  { %v580_v14 = vmul.f32 1.442695, %v579_v9  ;;  %v844_v9 = vld [vmem:[%s2967_s6 + $0x18] sm:$0xff] }
 0x495   :  { %1980 = vpow2.f32 %v580_v14 }
 0x49b   :  { %v2584_v20 = vpop.eup %1980 }
 0x49c   :  { %v582_v25 = vsel %vm249_vm2, %v2584_v20, 0.0 }
 0x4d5   :  { %v382_v5 = vpop.f32.mrf.mxu2 }
 0x4dd   :  { %v496_v8 = vpop.f32.mrf.mxu2 }
 0x4de   :  { %v499_v10 = vsel %vm275_vm3, -1e+20, %v496_v8 }
 0x4df   :  { %v500_v11 = vsel %vm249_vm2, %v499_v10, -inf }
 0x4e0   :  { %501 = vmax.xlane.f32.xlu2 %v500_v11  ;;  %v842_v11 = vld [vmem:[%s2967_s6 + $0x8] sm:$0xff] }
 0x4e5   :  { %v643_v16 = vpop.f32.mrf.mxu2 }
 0x4e6   :  { %v646_v17 = vsel %vm275_vm3, -1e+20, %v643_v16 }
 0x4e7   :  { %v647_v18 = vsel %vm249_vm2, %v646_v17, -inf }
 0x4e8   :  { %648 = vmax.xlane.f32.xlu0 %v647_v18  ;;  %723 = vmax.xlane.f32.xlu2 %v722_v19 }
 0x4ed   :  { %v793_v21 = vpop.f32.mrf.mxu2 }
 0x4ee   :  { %v796_v22 = vsel %vm275_vm3, -1e+20, %v793_v21 }
 0x4ef   :  { %v797_v24 = vsel %vm249_vm2, %v796_v22, -inf }
 0x4f0   :  { %798 = vmax.xlane.f32.xlu1 %v797_v24  ;;  %583 = vadd.xlane.f32.xlu2 %v582_v25 }
 0x4fc   :  { %511 = vrot.lane.b32.xlu0 %v2484_v6, %s2318_s18 }
 0x553   :  { %v502_v26 = vpop.xlane.xlu2 %501 }
 0x554   :  { %v503_v27 = vsub.f32 %v499_v10, %v502_v26  ;;  %v843_v10 = vld [vmem:[%s2967_s6 + $0x10] sm:$0xff] }
 0x556   :  { %v504_v28 = vmul.f32 1.442695, %v503_v27 }
 0x558   :  { %1982 = vpow2.f32 %v504_v28 }
 0x55b   :  { %v649_v29 = vpop.xlane.xlu0 %648  ;;  %v724_v30 = vpop.xlane.xlu2 %723 }
 0x55c   :  { %v650_v31 = vsub.f32 %v646_v17, %v649_v29  ;;  %v725_v13 = vsub.f32 %v721_v15, %v724_v30  ;;  %v2322_v30 = vmov 32.0  }
 0x55e   :  { %v1983_v32 = vpop.eup %1982  ;;  %v651_v33 = vmul.f32 1.442695, %v650_v31  ;;  %v726_v34 = vmul.f32 1.442695, %v725_v13 }
 0x55f   :  { %v506_v35 = vsel %vm249_vm2, %v1983_v32, 0.0 }
 0x560   :  { %1984 = vpow2.f32 %v651_v33  ;;  %507 = vadd.xlane.f32.xlu0 %v506_v35 }
 0x561   :  { %1986 = vpow2.f32 %v726_v34 }
 0x563   :  { %v799_v37 = vpop.xlane.xlu1 %798  ;;  %v584_v47 = vpop.xlane.xlu2 %583 }
 0x564   :  { %v800_v38 = vsub.f32 %v796_v22, %v799_v37 }
 0x566   :  { %v1985_v39 = vpop.eup %1984  ;;  %v801_v6 = vmul.f32 1.442695, %v800_v38 }
 0x567   :  { %v1987_v40 = vpop.eup %1986  ;;  %v653_v41 = vsel %vm249_vm2, %v1985_v39, 0.0 }
 0x568   :  { %1988 = vpow2.f32 %v801_v6  ;;  %654 = vadd.xlane.f32.xlu1 %v653_v41  ;;  %v728_v42 = vsel %vm249_vm2, %v1987_v40, 0.0  ;;  %v983_v6 = vld [vmem:[%s2941_s10 + $0x18] sm:$0xff]  ;;  %v981_v41 = vld [vmem:[%s2941_s10 + $0x8] sm:$0xff] }
 0x569   :  { %729 = vadd.xlane.f32.xlu2 %v728_v42  ;;  %1002 = vmatpush.msra.mxu2 %v983_v6 }
 0x56e   :  { %v1989_v43 = vpop.eup %1988  ;;  %v512_v44 = vpop.permute.xlu0 %511 }
 0x56f   :  { %532 = vmatpush.msra.mxu1 %v512_v44  ;;  %v803_v45 = vsel %vm249_vm2, %v1989_v43, 0.0 }
 0x571   :  { %804 = vadd.xlane.f32.xlu2 %v803_v45 }
 0x574   :  { %733 = vrot.lane.b32.xlu0 %v2533_v36, %s2314_s0 }
 0x57c   :  { %808 = vrot.lane.b32.xlu0 %v2533_v36, %s2318_s18 }
 0x581   :  { %587 = vrot.lane.b32.xlu1 %v2533_v36, %s2313_s14 }
 0x584   :  { %462 = vrot.lane.b32.xlu0 %v2564_v58, %s2319_s30 }
 0x589   :  { %658 = vrot.lane.b32.xlu2 %v2533_v36, %s2315_s4  ;;  %386 = vrot.lane.b32.xlu1 %v382_v5, %s2320_s5 }
 0x5d3   :  { %v508_v46 = vpop.xlane.xlu0 %507 }
 0x5d4   :  { %1990 = vrcp.f32 %v508_v46 }
 0x5da   :  { %v1991_v48 = vpop.eup %1990 }
 0x5db   :  { %v510_v49 = vmul.f32 %v1991_v48, %v1983_v32  ;;  %v655_v51 = vpop.xlane.xlu1 %654  ;;  %v943_v48 = vld [vmem:[%s2968_s24] sm:$0xff] }
 0x5dc   :  { %v730_v50 = vpop.xlane.xlu2 %729  ;;  %1992 = vrcp.f32 %v655_v51  ;;  %v947_v51 = vld [vmem:[%s2940_s9 + $0x10] sm:$0xff] }
 0x5dd   :  { %1880 = vmatmul.msk.f32.vlgmr.msra.gmra.mxu1 %vm249_vm2, %v510_v49  ;;  %1994 = vrcp.f32 %v584_v47  ;;  %v980_v47 = vld [vmem:[%s2941_s10] sm:$0xff]  ;;  %v948_v49 = vld [vmem:[%s2940_s9 + $0x18] sm:$0xff] }
 0x5e2   :  { %v1993_v54 = vpop.eup %1992 }
 0x5e3   :  { %v657_v55 = vmul.f32 %v1993_v54, %v1985_v39  ;;  %v1995_v57 = vpop.eup %1994 }
 0x5e4   :  { %v805_v52 = vpop.xlane.xlu2 %804  ;;  %v586_v60 = vmul.f32 %v1995_v57, %v2584_v20  ;;  %v1958_v20 = vld [vmem:[#allocation7] ss:$0 sm:$0xff] }
 0x5e5   :  { %1996 = vrcp.f32 %v805_v52  ;;  %v946_v52 = vld [vmem:[%s2940_s9 + $0x8] sm:$0xff] }
 0x5e6   :  { %v734_v53 = vpop.permute.xlu0 %733  ;;  %1998 = vrcp.f32 %v730_v50  ;;  %v944_v50 = vld [vmem:[%s2968_s24 + $0x8] sm:$0xff] }
 0x5e7   :  { %2000 = vrcp.f32 %v2322_v30 }
 0x5eb   :  { %v1997_v58 = vpop.eup %1996 }
 0x5ec   :  { %v659_v36 = vpop.permute.xlu2 %658  ;;  %v807_v61 = vmul.f32 %v1997_v58, %v1989_v43  ;;  %v1999_v62 = vpop.eup %1998 }
 0x5ed   :  { %679 = vmatpush.msrb.mxu1 %v659_v36  ;;  %v732_v63 = vmul.f32 %v1999_v62, %v1987_v40  ;;  %v2001_v31 = vpop.eup %2000  ;;  %v982_v40 = vld [vmem:[%s2941_s10 + $0x10] sm:$0xff] }
 0x5ee   :  { %1886 = vmatmul.msk.f32.vlgmr.msrb.gmra.mxu1 %vm249_vm2, %v657_v55  ;;  %v809_v56 = vpop.permute.xlu0 %808  ;;  %v889_v13 = vmul.f32 32.0, %v2001_v31  ;;  %vm893_vm7 = vweird.f32 %v2001_v31  ;;  %1003 = vmatpush.msra.mxu2 %v982_v40  ;;  %v1959_v62 = vld [vmem:[#allocation9] ss:$0 sm:$0xff] }
 0x5ef   :  { %829 = vmatpush.msra.mxu1 %v809_v56 }
 0x5f0   :  { %v890_v32 = vsub.f32 1.0, %v889_v13  ;;  %1004 = vmatpush.msra.mxu2 %v981_v41 }
 0x5f2   :  { %v891_v33 = vmul.f32 %v2001_v31, %v890_v32  ;;  %1005 = vmatpush.msra.mxu2 %v980_v47 }
 0x5f3   :  { %v588_v59 = vpop.permute.xlu1 %587  ;;  %1897 = vmatmul.msk.f32.vlgmr.msra.gmra.mxu2 %vm210_vm0, %v943_v48 }
 0x5f4   :  { %608 = vmatpush.msrb.mxu0 %v588_v59  ;;  %v892_v34 = vadd.f32 %v2001_v31, %v891_v33  ;;  %v1016_v33 = vld [vmem:[%s2969_s23] sm:$0x1] }
 0x5f5   :  { %1883 = vmatmul.msk.f32.vlgmr.msrb.gmra.mxu0 %vm249_vm2, %v586_v60  ;;  %vm1046_vm15 = vcmp.eq.f32.partialorder %v1016_v33, 0.0 }
 0x5f6   :  { %754 = vmatpush.msra.mxu0 %v734_v53  ;;  %1892 = vmatmul.msk.f32.vlgmr.msra.gmra.mxu1 %vm249_vm2, %v807_v61  ;;  %v463_v1 = vpop.permute.xlu0 %462  ;;  %v2643_v35 = vsel %vm893_vm7, %v2001_v31, %v892_v34  ;;  %v945_v53 = vld [vmem:[%s2940_s9] sm:$0xff] }
 0x5f8   :  { %867 = vmatpush.msrb.mxu0 %v844_v9 }
 0x5fa   :  { %868 = vmatpush.msrb.mxu0 %v843_v10 }
 0x5fb   :  { %v387_v0 = vpop.permute.xlu1 %386  ;;  %1898 = vmatmul.msk.f32.gmra.mxu2 %vm210_vm0, %v944_v50 }
 0x5fc   :  { %390 = vst.msk [vmem:[#allocation3] sm:$0xff] %vm389_vm4, %v387_v0  ;;  %869 = vmatpush.msrb.mxu0 %v842_v11 }
 0x5fd   :  { %1889 = vmatmul.msk.f32.vlgmr.msra.gmra.mxu0 %vm249_vm2, %v732_v63  ;;  %466 = vst.msk [vmem:[#allocation3] sm:$0xff] %vm465_vm5, %v463_v1  ;;  %v1960_v1 = vld [vmem:[#allocation11] ss:$0 sm:$0xff] }
 0x5fe   :  { %870 = vmatpush.msrb.mxu0 %v841_v12 }
 0x600   :  { %967 = vmatpush.msra.mxu0 %v948_v49  ;;  %v1317_v49 = vld [vmem:[%s2969_s23 + $0x1] sm:$0x1] }
 0x601   :  { %vm1347_vm3 = vcmp.eq.f32.partialorder %v1317_v49, 0.0 }
 0x602   :  { %968 = vmatpush.msra.mxu0 %v947_v51 }
 0x604   :  { %969 = vmatpush.msra.mxu0 %v946_v52 }
 0x606   :  { %970 = vmatpush.msra.mxu0 %v945_v53 }
 0x65a   :  { %v534_v2 = vpop.f32.mrf.mxu1 }
 0x65b   :  { %538 = vrot.lane.b32.xlu1 %v534_v2, %s2321_s22 }
 0x66b   :  { %v681_v3 = vpop.f32.mrf.mxu1 }
 0x66c   :  { %685 = vrot.lane.b32.xlu2 %v681_v3, %s2320_s5 }
 0x672   :  { %v610_v5 = vpop.f32.mrf.mxu0 }
 0x673   :  { %613 = vst.msk [vmem:[#allocation3 + $0x8] sm:$0xff] %vm249_vm2, %v610_v5  ;;  %v831_v7 = vpop.f32.mrf.mxu1 }
 0x674   :  { %835 = vrot.lane.b32.xlu1 %v831_v7, %s2321_s22 }
 0x67a   :  { %v756_v8 = vpop.f32.mrf.mxu0 }
 0x67b   :  { %760 = vrot.lane.b32.xlu0 %v756_v8, %s2319_s30 }
 0x6c6   :  { %v686_v14 = vpop.permute.xlu2 %685 }
 0x6c7   :  { %688 = vst.msk [vmem:[#allocation3 + $0x8] sm:$0xff] %vm389_vm4, %v686_v14 }
 0x6cd   :  { %v539_v15 = vpop.permute.xlu1 %538 }
 0x6ce   :  { %542 = vst.msk [vmem:[#allocation3] sm:$0xff] %vm541_vm6, %v539_v15 }
 0x6d5   :  { %v839_v16 = vld [vmem:[#allocation3] sm:$0xff] }
 0x6d6   :  { %1893 = vmatmul.msk.f32.vlgmr.msrb.gmra.mxu0 %vm210_vm0, %v839_v16 }
 0x6e6   :  { %v836_v18 = vpop.permute.xlu1 %835 }
 0x6ed   :  { %v761_v17 = vpop.permute.xlu0 %760 }
 0x6ee   :  { %763 = vst.msk [vmem:[#allocation3 + $0x8] sm:$0xff] %vm465_vm5, %v761_v17 }
 0x6ef   :  { %838 = vst.msk [vmem:[#allocation3 + $0x8] sm:$0xff] %vm541_vm6, %v836_v18 }
 0x6f6   :  { %v840_v19 = vld [vmem:[#allocation3 + $0x8] sm:$0xff] }
 0x6f7   :  { %1894 = vmatmul.msk.f32.gmra.mxu0 %vm210_vm0, %v840_v19 }
 0x753   :  { %v872_v21 = vpop.f32.mrf.mxu0 }
 0x754   :  { %v873_v22 = vadd.f32 %v1958_v20, %v872_v21 }
 0x756   :  { %v878_v24 = vadd.f32 %v873_v22, %v2479_v4 }
 0x758   :  { %v882_v25 = vsel %vm210_vm0, %v878_v24, 0.0 }
 0x759   :  { %883 = vadd.xlane.f32.xlu2 %v882_v25 }
 0x774   :  { %v875_v26 = vpop.f32.mrf.mxu0 }
 0x775   :  { %v876_v27 = vadd.f32 %v1958_v20, %v875_v26  ;;  %v1007_v20 = vpop.f32.mrf.mxu2 }
 0x776   :  { %1014 = vst.msk [vmem:[#allocation5] sm:$0xff] %vm1013_vm14, %v1007_v20 }
 0x777   :  { %v879_v28 = vadd.f32 %v876_v27, %v2519_v23 }
 0x779   :  { %v885_v29 = vsel %vm210_vm0, %v879_v28, 0.0 }
 0x77a   :  { %886 = vadd.xlane.f32.xlu0 %v885_v29 }
 0x77d   :  { %v2691_v21 = vld [vmem:[#allocation5] sm:$0xff]  ;;  %v1010_v22 = vpop.f32.mrf.mxu2 }
 0x77e   :  { %1899 = vmatpush.xpose.msk.msrb.mxu1 %vm249_vm2, %v2691_v21  ;;  %1015 = vst.msk [vmem:[#allocation5 + $0x8] sm:$0xff] %vm1013_vm14, %v1010_v22 }
 0x78e   :  { %1096 = vrot.lane.b32.xlu0 %v2691_v21, %s2310_s12 }
 0x796   :  { %1248 = vrot.lane.b32.xlu0 %v2691_v21, %s2316_s19 }
 0x7cc   :  { %v884_v4 = vpop.xlane.xlu2 %883 }
 0x7cd   :  { %v895_v37 = vmul.f32 %v2643_v35, %v884_v4 }
 0x7cf   :  { %v897_v38 = vsub.f32 %v878_v24, %v895_v37  ;;  %v2701_v24 = vld [vmem:[#allocation5 + $0x8] sm:$0xff] }
 0x7d1   :  { %v899_v39 = vmul.f32 %v897_v38, %v897_v38 }
 0x7d3   :  { %v901_v23 = vsel %vm210_vm0, %v899_v39, 0.0 }
 0x7d4   :  { %902 = vadd.xlane.f32.xlu1 %v901_v23 }
 0x7ed   :  { %v887_v42 = vpop.xlane.xlu0 %886 }
 0x7ee   :  { %v896_v43 = vmul.f32 %v2643_v35, %v887_v42 }
 0x7f0   :  { %v898_v44 = vsub.f32 %v879_v28, %v896_v43 }
 0x7f2   :  { %v900_v45 = vmul.f32 %v898_v44, %v898_v44 }
 0x7f4   :  { %v904_v46 = vsel %vm210_vm0, %v900_v45, 0.0 }
 0x7f5   :  { %905 = vadd.xlane.f32.xlu2 %v904_v46 }
 0x800   :  { %v1097_v13 = vpop.permute.xlu0 %1096 }
 0x801   :  { %1902 = vmatpush.xpose.msk.msrb.mxu3 %vm249_vm2, %v1097_v13 }
 0x808   :  { %v1249_v32 = vpop.permute.xlu0 %1248 }
 0x809   :  { %1908 = vmatpush.xpose.msk.msra.mxu3 %vm249_vm2, %v1249_v32 }
 0x80d   :  { %1172 = vrot.lane.b32.xlu2 %v2691_v21, %s2312_s27 }
 0x815   :  { %1397 = vrot.lane.b32.xlu2 %v2701_v24, %s2310_s12 }
 0x81d   :  { %1549 = vrot.lane.b32.xlu2 %v2701_v24, %s2316_s19 }
 0x847   :  { %v903_v54 = vpop.xlane.xlu1 %902 }
 0x848   :  { %v907_v55 = vmul.f32 %v903_v54, %v2643_v35 }
 0x84a   :  { %v909_v36 = vadd.f32 1e-05, %v907_v55 }
 0x84c   :  { %2002 = vrsqrt.f32 %v909_v36  ;;  %vm917_vm9 = vweird.f32 %v909_v36 }
 0x852   :  { %v2003_v56 = vpop.eup %2002 }
 0x853   :  { %v912_v57 = vmul.f32 %v2003_v56, %v909_v36  ;;  %vm918_vm8 = vweird.f32 %v2003_v56 }
 0x854   :  { %vm919_vm10 = vmor %vm917_vm9, %vm918_vm8 }
 0x855   :  { %v913_v58 = vmul.f32 %v2003_v56, %v912_v57 }
 0x857   :  { %v914_v59 = vmul.f32 0.5, %v913_v58 }
 0x859   :  { %v915_v60 = vsub.f32 1.5, %v914_v59 }
 0x85b   :  { %v916_v61 = vmul.f32 %v2003_v56, %v915_v60 }
 0x85d   :  { %v920_v63 = vsel %vm919_vm10, %v2003_v56, %v916_v61 }
 0x85e   :  { %v931_v0 = vmul.f32 %v920_v63, %v897_v38  ;;  %v2323_v38 = vmov 0  }
 0x85f   :  { %v1047_v39 = vsel %vm1046_vm15, 1, %v2323_v38  ;;  %v1348_v52 = vsel %vm1347_vm3, 1, %v2323_v38 }
 0x860   :  { %v936_v2 = vmul.f32 %v1959_v62, %v931_v0  ;;  %v1048_v23 = vperm.slane %v1047_v39, 0  ;;  %v1349_v59 = vperm.slane %v1348_v52, 0 }
 0x862   :  { %v2682_v3 = vadd.f32 %v1960_v1, %v936_v2  ;;  %vm2731_vm1 = vcmp.eq.s32.totalorder %v1048_v23, 1  ;;  %vm2752_vm7 = vcmp.eq.s32.totalorder %v1349_v59, 1 }
 0x864   :  { %1895 = vmatmul.msk.f32.vlgmr.msra.gmra.mxu0 %vm210_vm0, %v2682_v3 }
 0x868   :  { %v906_v5 = vpop.xlane.xlu2 %905 }
 0x869   :  { %v908_v7 = vmul.f32 %v906_v5, %v2643_v35 }
 0x86b   :  { %v910_v8 = vadd.f32 1e-05, %v908_v7 }
 0x86d   :  { %2004 = vrsqrt.f32 %v910_v8  ;;  %vm927_vm12 = vweird.f32 %v910_v8 }
 0x870   :  { %v1173_v31 = vpop.permute.xlu2 %1172 }
 0x871   :  { %1905 = vmatpush.xpose.msk.msrb.mxu2 %vm249_vm2, %v1173_v31 }
 0x873   :  { %v2005_v9 = vpop.eup %2004 }
 0x874   :  { %v922_v10 = vmul.f32 %v2005_v9, %v910_v8  ;;  %vm928_vm11 = vweird.f32 %v2005_v9 }
 0x875   :  { %vm929_vm13 = vmor %vm927_vm12, %vm928_vm11  ;;  %1911 = vmatpush.xpose.msk.msra.mxu2 %vm249_vm2, %v2701_v24 }
 0x876   :  { %v923_v11 = vmul.f32 %v2005_v9, %v922_v10 }
 0x878   :  { %v924_v12 = vmul.f32 0.5, %v923_v11  ;;  %v1398_v34 = vpop.permute.xlu2 %1397  ;;  %v1953_v11 = vpack.i.bf16 %v2701_v24, %v2691_v21 }
 0x87a   :  { %v925_v14 = vsub.f32 1.5, %v924_v12 }
 0x87c   :  { %v926_v15 = vmul.f32 %v2005_v9, %v925_v14 }
 0x87e   :  { %v930_v16 = vsel %vm929_vm13, %v2005_v9, %v926_v15 }
 0x87f   :  { %v932_v17 = vmul.f32 %v930_v16, %v898_v44 }
 0x880   :  { %v1550_v6 = vpop.permute.xlu2 %1549 }
 0x881   :  { %v937_v18 = vmul.f32 %v1959_v62, %v932_v17 }
 0x883   :  { %v2687_v19 = vadd.f32 %v1960_v1, %v937_v18 }
 0x885   :  { %1896 = vmatmul.msk.f32.gmra.mxu0 %vm210_vm0, %v2687_v19 }
 0x8e1   :  { %v972_v25 = vpop.f32.mrf.mxu0 }
 0x8e2   :  { %978 = vst.msk [vmem:[#allocation4] sm:$0xff] %vm210_vm0, %v972_v25 }
 0x8e9   :  { %v1165_v26 = vld [vmem:[#allocation4] sm:$0xff] }
 0x8ea   :  { %v1166_v27 = vmul.f32 0.17677669, %v1165_v26 }
 0x8ec   :  { %1169 = vrot.lane.b32.xlu0 %v1166_v27, %s2312_s27  ;;  %1093 = vrot.lane.b32.xlu1 %v1166_v27, %s2310_s12 }
 0x8ed   :  { %1900 = vmatmul.msk.f32.vlgmr.msrb.gmra.mxu1 %vm249_vm2, %v1166_v27 }
 0x8f4   :  { %1245 = vrot.lane.b32.xlu1 %v1166_v27, %s2316_s19 }
 0x8fc   :  { %1473 = vrot.lane.b32.xlu1 %v2701_v24, %s2312_s27 }
 0x902   :  { %v975_v28 = vpop.f32.mrf.mxu0 }
 0x903   :  { %979 = vst.msk [vmem:[#allocation4 + $0x8] sm:$0xff] %vm210_vm0, %v975_v28 }
 0x90a   :  { %v1542_v29 = vld [vmem:[#allocation4 + $0x8] sm:$0xff] }
 0x90b   :  { %v1543_v30 = vmul.f32 0.17677669, %v1542_v29 }
 0x90d   :  { %1546 = vrot.lane.b32.xlu1 %v1543_v30, %s2316_s19  ;;  %1394 = vrot.lane.b32.xlu0 %v1543_v30, %s2310_s12 }
 0x915   :  { %1470 = vrot.lane.b32.xlu0 %v1543_v30, %s2312_s27 }
 0x95e   :  { %v1170_v4 = vpop.permute.xlu0 %1169  ;;  %v1094_v37 = vpop.permute.xlu1 %1093 }
 0x95f   :  { %1903 = vmatmul.msk.f32.vlgmr.msrb.gmra.mxu3 %vm249_vm2, %v1094_v37  ;;  %1906 = vmatmul.msk.f32.vlgmr.msrb.gmra.mxu2 %vm249_vm2, %v1170_v4 }
 0x960   :  { %1914 = vmatpush.xpose.msk.msrb.mxu3 %vm249_vm2, %v1398_v34 }
 0x966   :  { %v1246_v40 = vpop.permute.xlu1 %1245 }
 0x967   :  { %1909 = vmatmul.msk.f32.vlgmr.msra.gmra.mxu3 %vm249_vm2, %v1246_v40  ;;  %1912 = vmatmul.msk.f32.vlgmr.msra.gmra.mxu2 %vm249_vm2, %v1543_v30 }
 0x968   :  { %1920 = vmatpush.xpose.msk.msra.mxu3 %vm249_vm2, %v1550_v6 }
 0x96a   :  { %v1043_v42 = vpop.f32.mrf.mxu1 }
 0x96b   :  { %v1050_v43 = vsel %vm2731_vm1, -1e+20, %v1043_v42 }
 0x96c   :  { %v1051_v44 = vsel %vm249_vm2, %v1050_v43, -inf }
 0x96d   :  { %1052 = vmax.xlane.f32.xlu2 %v1051_v44 }
 0x96e   :  { %v1474_v45 = vpop.permute.xlu1 %1473 }
 0x96f   :  { %1917 = vmatpush.xpose.msk.msrb.mxu2 %vm249_vm2, %v1474_v45 }
 0x97f   :  { %v1395_v46 = vpop.permute.xlu0 %1394  ;;  %v1547_v47 = vpop.permute.xlu1 %1546 }
 0x980   :  { %1915 = vmatmul.msk.f32.vlgmr.msrb.gmra.mxu3 %vm249_vm2, %v1395_v46 }
 0x987   :  { %v1471_v48 = vpop.permute.xlu0 %1470 }
 0x988   :  { %1918 = vmatmul.msk.f32.vlgmr.msrb.gmra.mxu2 %vm249_vm2, %v1471_v48  ;;  %1921 = vmatmul.msk.f32.vlgmr.msra.gmra.mxu3 %vm249_vm2, %v1547_v47 }
 0x9e0   :  { %v1053_v50 = vpop.xlane.xlu2 %1052 }
 0x9e1   :  { %v1054_v51 = vsub.f32 %v1050_v43, %v1053_v50 }
 0x9e2   :  { %v1119_v53 = vpop.f32.mrf.mxu3  ;;  %v1195_v54 = vpop.f32.mrf.mxu2 }
 0x9e3   :  { %v1055_v55 = vmul.f32 1.442695, %v1054_v51  ;;  %v1122_v36 = vsel %vm2731_vm1, -1e+20, %v1119_v53  ;;  %v1198_v56 = vsel %vm2731_vm1, -1e+20, %v1195_v54 }
 0x9e4   :  { %v1199_v57 = vsel %vm249_vm2, %v1198_v56, -inf  ;;  %v1123_v58 = vsel %vm249_vm2, %v1122_v36, -inf }
 0x9e5   :  { %2006 = vpow2.f32 %v1055_v55  ;;  %1200 = vmax.xlane.f32.xlu1 %v1199_v57  ;;  %1124 = vmax.xlane.f32.xlu0 %v1123_v58 }
 0x9ea   :  { %v1271_v61 = vpop.f32.mrf.mxu3  ;;  %v1344_v62 = vpop.f32.mrf.mxu2 }
 0x9eb   :  { %v2756_v63 = vpop.eup %2006  ;;  %v1274_v0 = vsel %vm2731_vm1, -1e+20, %v1271_v61  ;;  %v1351_v1 = vsel %vm2752_vm7, -1e+20, %v1344_v62 }
 0x9ec   :  { %v1275_v2 = vsel %vm249_vm2, %v1274_v0, -inf  ;;  %v1057_v5 = vsel %vm249_vm2, %v2756_v63, 0.0  ;;  %v1352_v7 = vsel %vm249_vm2, %v1351_v1, -inf }
 0x9ed   :  { %1276 = vmax.xlane.f32.xlu2 %v1275_v2  ;;  %1058 = vadd.xlane.f32.xlu1 %v1057_v5 }
 0x9ee   :  { %1353 = vmax.xlane.f32.xlu0 %v1352_v7 }
 0xa02   :  { %1134 = vrot.lane.b32.xlu0 %v2691_v21, %s2308_s8 }
 0xa03   :  { %v1420_v8 = vpop.f32.mrf.mxu3 }
 0xa04   :  { %v1423_v9 = vsel %vm2752_vm7, -1e+20, %v1420_v8 }
 0xa05   :  { %1210 = vrot.lane.b32.xlu2 %v2691_v21, %s2311_s26  ;;  %v1424_v10 = vsel %vm249_vm2, %v1423_v9, -inf }
 0xa06   :  { %1425 = vmax.xlane.f32.xlu1 %v1424_v10 }
 0xa0b   :  { %v1572_v12 = vpop.f32.mrf.mxu3  ;;  %v1496_v14 = vpop.f32.mrf.mxu2 }
 0xa0c   :  { %v1575_v15 = vsel %vm2752_vm7, -1e+20, %v1572_v12  ;;  %v1499_v16 = vsel %vm2752_vm7, -1e+20, %v1496_v14 }
 0xa0d   :  { %v1576_v17 = vsel %vm249_vm2, %v1575_v15, -inf  ;;  %v1500_v18 = vsel %vm249_vm2, %v1499_v16, -inf }
 0xa1f   :  { %1954 = vrot.lane.b32.xlu1 %v1953_v11, %s2309_s25 }
 0xa2c   :  { %1577 = vmax.xlane.f32.xlu0 %v1576_v17 }
 0xa2e   :  { %1501 = vmax.xlane.f32.xlu2 %v1500_v18 }
 0xa40   :  { %1286 = vrot.lane.b32.xlu0 %v2691_v21, %s2317_s20 }
 0xa58   :  { %v1201_v20 = vpop.xlane.xlu1 %1200  ;;  %v1125_v22 = vpop.xlane.xlu0 %1124 }
 0xa59   :  { %v1202_v25 = vsub.f32 %v1198_v56, %v1201_v20  ;;  %v1126_v26 = vsub.f32 %v1122_v36, %v1125_v22 }
 0xa5b   :  { %v1127_v27 = vmul.f32 1.442695, %v1126_v26  ;;  %v1203_v28 = vmul.f32 1.442695, %v1202_v25 }
 0xa5d   :  { %2008 = vpow2.f32 %v1127_v27 }
 0xa5e   :  { %2010 = vpow2.f32 %v1203_v28 }
 0xa60   :  { %v1277_v29 = vpop.xlane.xlu2 %1276  ;;  %v1059_v23 = vpop.xlane.xlu1 %1058 }
 0xa61   :  { %v1278_v30 = vsub.f32 %v1274_v0, %v1277_v29  ;;  %v1354_v31 = vpop.xlane.xlu0 %1353 }
 0xa62   :  { %v1355_v33 = vsub.f32 %v1351_v1, %v1354_v31 }
 0xa63   :  { %v1279_v13 = vmul.f32 1.442695, %v1278_v30  ;;  %v2009_v32 = vpop.eup %2008 }
 0xa64   :  { %v1129_v34 = vsel %vm249_vm2, %v2009_v32, 0.0  ;;  %v2011_v4 = vpop.eup %2010  ;;  %v1356_v21 = vmul.f32 1.442695, %v1355_v33 }
 0xa65   :  { %2012 = vpow2.f32 %v1279_v13  ;;  %1130 = vadd.xlane.f32.xlu2 %v1129_v34  ;;  %v1205_v37 = vsel %vm249_vm2, %v2011_v4, 0.0 }
 0xa66   :  { %2014 = vpow2.f32 %v1356_v21 }
 0xa68   :  { %v1211_v51 = vpop.permute.xlu2 %1210 }
 0xa6a   :  { %1206 = vadd.xlane.f32.xlu0 %v1205_v37  ;;  %v1623_v37 = vld [vmem:[%s2942_s11 + $0x18] sm:$0xff] }
 0xa6b   :  { %v2013_v38 = vpop.eup %2012  ;;  %1646 = vmatpush.msra.mxu2 %v1623_v37 }
 0xa6c   :  { %v1281_v39 = vsel %vm249_vm2, %v2013_v38, 0.0  ;;  %v2015_v6 = vpop.eup %2014 }
 0xa6d   :  { %1282 = vadd.xlane.f32.xlu2 %v1281_v39  ;;  %v1358_v41 = vsel %vm249_vm2, %v2015_v6, 0.0  ;;  %v1621_v39 = vld [vmem:[%s2942_s11 + $0x8] sm:$0xff] }
 0xa74   :  { %v1135_v40 = vpop.permute.xlu0 %1134 }
 0xa75   :  { %1155 = vmatpush.msrb.mxu0 %v1135_v40  ;;  %1359 = vadd.xlane.f32.xlu2 %v1358_v41 }
 0xa79   :  { %v1426_v42 = vpop.xlane.xlu1 %1425 }
 0xa7a   :  { %v1427_v43 = vsub.f32 %v1423_v9, %v1426_v42 }
 0xa7c   :  { %v1428_v44 = vmul.f32 1.442695, %v1427_v43 }
 0xa7e   :  { %2016 = vpow2.f32 %v1428_v44 }
 0xa7f   :  { %2018 = vrcp.f32 %v1059_v23  ;;  %v1620_v23 = vld [vmem:[%s2942_s11] sm:$0xff] }
 0xa84   :  { %v2017_v45 = vpop.eup %2016 }
 0xa85   :  { %v1430_v46 = vsel %vm249_vm2, %v2017_v45, 0.0  ;;  %v2019_v47 = vpop.eup %2018 }
 0xa86   :  { %1431 = vadd.xlane.f32.xlu1 %v1430_v46  ;;  %v1061_v50 = vmul.f32 %v2019_v47, %v2756_v63  ;;  %v1961_v47 = vld [vmem:[#allocation12] ss:$0 sm:$0xff] }
 0xa91   :  { %v1955_v48 = vpop.permute.xlu1 %1954 }
 0xa92   :  { %v1956_v49 = vunpack.i.l.bf16 %v1955_v48  ;;  %v1957_v52 = vunpack.i.h.bf16 %v1955_v48 }
 0xa94   :  { %1083 = vmatpush.msra.mxu1 %v1956_v49 }
 0xa95   :  { %1901 = vmatmul.msk.f32.vlgmr.msra.gmra.mxu1 %vm249_vm2, %v1061_v50 }
 0xa96   :  { %1231 = vmatpush.msrb.mxu1 %v1211_v51 }
 0xa98   :  { %1384 = vmatpush.msra.mxu1 %v1957_v52 }
 0xa9f   :  { %v1578_v53 = vpop.xlane.xlu0 %1577  ;;  %1435 = vrot.lane.b32.xlu1 %v2701_v24, %s2308_s8 }
 0xaa0   :  { %v1579_v54 = vsub.f32 %v1575_v15, %v1578_v53 }
 0xaa1   :  { %v1502_v55 = vpop.xlane.xlu2 %1501 }
 0xaa2   :  { %v1580_v36 = vmul.f32 1.442695, %v1579_v54  ;;  %v1503_v56 = vsub.f32 %v1499_v16, %v1502_v55 }
 0xaa4   :  { %2020 = vpow2.f32 %v1580_v36  ;;  %v1504_v57 = vmul.f32 1.442695, %v1503_v56 }
 0xaa6   :  { %2022 = vpow2.f32 %v1504_v57 }
 0xaaa   :  { %v2021_v58 = vpop.eup %2020 }
 0xaab   :  { %v1582_v59 = vsel %vm249_vm2, %v2021_v58, 0.0 }
 0xaac   :  { %v2023_v60 = vpop.eup %2022  ;;  %1583 = vadd.xlane.f32.xlu2 %v1582_v59 }
 0xaad   :  { %v1506_v61 = vsel %vm249_vm2, %v2023_v60, 0.0 }
 0xaae   :  { %1507 = vadd.xlane.f32.xlu0 %v1506_v61 }
 0xab2   :  { %v1287_v62 = vpop.permute.xlu0 %1286 }
 0xab3   :  { %1307 = vmatpush.msra.mxu0 %v1287_v62 }
 0xac2   :  { %1511 = vrot.lane.b32.xlu0 %v2701_v24, %s2311_s26 }
 0xac4   :  { %1587 = vrot.lane.b32.xlu2 %v2701_v24, %s2317_s20 }
 0xad8   :  { %v1131_v63 = vpop.xlane.xlu2 %1130 }
 0xad9   :  { %2024 = vrcp.f32 %v1131_v63  ;;  %v1718_v63 = vld [vmem:[%s2946_s15 + $0x18] sm:$0xff] }
 0xadd   :  { %v1207_v0 = vpop.xlane.xlu0 %1206 }
 0xade   :  { %2026 = vrcp.f32 %v1207_v0  ;;  %v1717_v0 = vld [vmem:[%s2946_s15 + $0x10] sm:$0xff] }
 0xadf   :  { %v2025_v1 = vpop.eup %2024 }
 0xae0   :  { %v1133_v2 = vmul.f32 %v2025_v1, %v2009_v32  ;;  %v1283_v5 = vpop.xlane.xlu2 %1282  ;;  %v1716_v1 = vld [vmem:[%s2946_s15 + $0x8] sm:$0xff] }
 0xae1   :  { %2028 = vrcp.f32 %v1283_v5 }
 0xae2   :  { %1904 = vmatmul.msk.f32.vlgmr.msrb.gmra.mxu0 %vm249_vm2, %v1133_v2  ;;  %v1715_v2 = vld [vmem:[%s2946_s15] sm:$0xff] }
 0xae4   :  { %v2027_v7 = vpop.eup %2026 }
 0xae5   :  { %v1209_v8 = vmul.f32 %v2027_v7, %v2011_v4 }
 0xae7   :  { %1907 = vmatmul.msk.f32.vlgmr.msrb.gmra.mxu1 %vm249_vm2, %v1209_v8  ;;  %v2029_v9 = vpop.eup %2028 }
 0xae8   :  { %v1285_v10 = vmul.f32 %v2029_v9, %v2013_v38  ;;  %v1360_v11 = vpop.xlane.xlu2 %1359  ;;  %v1622_v38 = vld [vmem:[%s2942_s11 + $0x10] sm:$0xff] }
 0xae9   :  { %2030 = vrcp.f32 %v1360_v11  ;;  %1647 = vmatpush.msra.mxu2 %v1622_v38  ;;  %v1760_v38 = vld [vmem:[%s2948_s17 + $0x30] sm:$0xff] }
 0xaea   :  { %1910 = vmatmul.msk.f32.vlgmr.msra.gmra.mxu0 %vm249_vm2, %v1285_v10 }
 0xaeb   :  { %1648 = vmatpush.msra.mxu2 %v1621_v39 }
 0xaed   :  { %1649 = vmatpush.msra.mxu2 %v1620_v23  ;;  %v1759_v23 = vld [vmem:[%s2948_s17 + $0x28] sm:$0xff] }
 0xaef   :  { %v2031_v24 = vpop.eup %2030 }
 0xaf0   :  { %v1362_v12 = vmul.f32 %v2031_v24, %v2015_v6 }
 0xaf2   :  { %1913 = vmatmul.msk.f32.vlgmr.msra.gmra.mxu1 %vm249_vm2, %v1362_v12 }
 0xaf9   :  { %v1432_v14 = vpop.xlane.xlu1 %1431 }
 0xafa   :  { %2032 = vrcp.f32 %v1432_v14 }
 0xb00   :  { %v2033_v15 = vpop.eup %2032 }
 0xb01   :  { %v1434_v16 = vmul.f32 %v2033_v15, %v2017_v45  ;;  %v1962_v15 = vld [vmem:[#allocation14] ss:$0 sm:$0xff] }
 0xb11   :  { %v1436_v17 = vpop.permute.xlu1 %1435 }
 0xb12   :  { %v1085_v18 = vpop.f32.mrf.mxu1  ;;  %1456 = vmatpush.msrb.mxu0 %v1436_v17 }
 0xb13   :  { %1088 = vst.msk [vmem:[#allocation6] sm:$0xff] %vm249_vm2, %v1085_v18  ;;  %1916 = vmatmul.msk.f32.vlgmr.msrb.gmra.mxu0 %vm249_vm2, %v1434_v16  ;;  %v1963_v18 = vld [vmem:[#allocation15] ss:$0 sm:$0xff] }
 0xb1f   :  { %v1584_v20 = vpop.xlane.xlu2 %1583 }
 0xb20   :  { %2034 = vrcp.f32 %v1584_v20 }
 0xb21   :  { %v1508_v27 = vpop.xlane.xlu0 %1507 }
 0xb22   :  { %2036 = vrcp.f32 %v1508_v27  ;;  %v1767_v27 = vld [vmem:[%s2948_s17 + $0x68] sm:$0xff] }
 0xb26   :  { %v2035_v22 = vpop.eup %2034 }
 0xb27   :  { %v1586_v25 = vmul.f32 %v2035_v22, %v2021_v58  ;;  %v1588_v26 = vpop.permute.xlu2 %1587 }
 0xb28   :  { %1608 = vmatpush.msra.mxu0 %v1588_v26  ;;  %v2037_v28 = vpop.eup %2036  ;;  %v1768_v26 = vld [vmem:[%s2948_s17 + $0x70] sm:$0xff] }
 0xb29   :  { %1922 = vmatmul.msk.f32.vlgmr.msra.gmra.mxu0 %vm249_vm2, %v1586_v25  ;;  %v1510_v29 = vmul.f32 %v2037_v28, %v2023_v60  ;;  %v1769_v25 = vld [vmem:[%s2948_s17 + $0x78] sm:$0xff] }
 0xb2a   :  { %1774 = vmatpush.msrb.mxu3 %v1769_v25 }
 0xb2c   :  { %1775 = vmatpush.msrb.mxu3 %v1768_v26  ;;  %v1966_v26 = vld [vmem:[#allocation20] ss:$0 sm:$0xff] }
 0xb2e   :  { %1776 = vmatpush.msrb.mxu3 %v1767_v27 }
 0xb34   :  { %v1512_v30 = vpop.permute.xlu0 %1511 }
 0xb35   :  { %1532 = vmatpush.msrb.mxu1 %v1512_v30  ;;  %v1766_v30 = vld [vmem:[%s2948_s17 + $0x60] sm:$0xff] }
 0xb36   :  { %1919 = vmatmul.msk.f32.vlgmr.msrb.gmra.mxu1 %vm249_vm2, %v1510_v29  ;;  %1777 = vmatpush.msrb.mxu3 %v1766_v30 }
 0xb37   :  { %1741 = vmatpush.msra.mxu1 %v1718_v63 }
 0xb39   :  { %1742 = vmatpush.msra.mxu1 %v1717_v0 }
 0xb3b   :  { %1743 = vmatpush.msra.mxu1 %v1716_v1 }
 0xb3d   :  { %1744 = vmatpush.msra.mxu1 %v1715_v2 }
 0xb5f   :  { %v1157_v31 = vpop.f32.mrf.mxu0 }
 0xb60   :  { %1161 = vrot.lane.b32.xlu1 %v1157_v31, %s2320_s5 }
 0xb64   :  { %v1233_v13 = vpop.f32.mrf.mxu1 }
 0xb65   :  { %1237 = vrot.lane.b32.xlu0 %v1233_v13, %s2319_s30  ;;  %v1765_v13 = vld [vmem:[%s2948_s17 + $0x58] sm:$0xff] }
 0xb66   :  { %1778 = vmatpush.msrb.mxu3 %v1765_v13 }
 0xb67   :  { %v1309_v32 = vpop.f32.mrf.mxu0 }
 0xb68   :  { %1313 = vrot.lane.b32.xlu1 %v1309_v32, %s2321_s22  ;;  %v1764_v32 = vld [vmem:[%s2948_s17 + $0x50] sm:$0xff] }
 0xb69   :  { %1779 = vmatpush.msrb.mxu3 %v1764_v32 }
 0xb6f   :  { %v1386_v33 = vpop.f32.mrf.mxu1 }
 0xb70   :  { %1389 = vst.msk [vmem:[#allocation6 + $0x8] sm:$0xff] %vm249_vm2, %v1386_v33  ;;  %v1763_v33 = vld [vmem:[%s2948_s17 + $0x48] sm:$0xff] }
 0xb71   :  { %1780 = vmatpush.msrb.mxu3 %v1763_v33 }
 0xb90   :  { %v1458_v34 = vpop.f32.mrf.mxu0 }
 0xb91   :  { %1462 = vrot.lane.b32.xlu2 %v1458_v34, %s2320_s5  ;;  %v1762_v34 = vld [vmem:[%s2948_s17 + $0x40] sm:$0xff] }
 0xb92   :  { %1781 = vmatpush.msrb.mxu3 %v1762_v34 }
 0xba6   :  { %v1610_v4 = vpop.f32.mrf.mxu0 }
 0xba7   :  { %1614 = vrot.lane.b32.xlu1 %v1610_v4, %s2321_s22 }
 0xbb3   :  { %v1534_v21 = vpop.f32.mrf.mxu1 }
 0xbb4   :  { %1538 = vrot.lane.b32.xlu0 %v1534_v21, %s2319_s30  ;;  %v1761_v21 = vld [vmem:[%s2948_s17 + $0x38] sm:$0xff] }
 0xbb5   :  { %1782 = vmatpush.msrb.mxu3 %v1761_v21 }
 0xbb7   :  { %1783 = vmatpush.msrb.mxu3 %v1760_v38 }
 0xbb9   :  { %1784 = vmatpush.msrb.mxu3 %v1759_v23 }
 0xbd2   :  { %v1162_v6 = vpop.permute.xlu1 %1161 }
 0xbd3   :  { %1164 = vst.msk [vmem:[#allocation6] sm:$0xff] %vm389_vm4, %v1162_v6 }
 0xbd7   :  { %v1238_v40 = vpop.permute.xlu0 %1237 }
 0xbd8   :  { %1240 = vst.msk [vmem:[#allocation6] sm:$0xff] %vm465_vm5, %v1238_v40  ;;  %v1758_v40 = vld [vmem:[%s2948_s17 + $0x20] sm:$0xff] }
 0xbd9   :  { %1785 = vmatpush.msrb.mxu3 %v1758_v40 }
 0xbda   :  { %v1314_v41 = vpop.permute.xlu1 %1313 }
 0xbdb   :  { %1316 = vst.msk [vmem:[#allocation6] sm:$0xff] %vm541_vm6, %v1314_v41 }
 0xbe2   :  { %v1618_v42 = vld [vmem:[#allocation6] sm:$0xff] }
 0xbe3   :  { %1923 = vmatmul.msk.f32.vlgmr.msra.gmra.mxu2 %vm210_vm0, %v1618_v42  ;;  %v1757_v42 = vld [vmem:[%s2948_s17 + $0x18] sm:$0xff] }
 0xbe4   :  { %1786 = vmatpush.msrb.mxu3 %v1757_v42 }
 0xbeb   :  { %v1463_v43 = vpop.permute.xlu2 %1462 }
 0xbec   :  { %1465 = vst.msk [vmem:[#allocation6 + $0x8] sm:$0xff] %vm389_vm4, %v1463_v43 }
 0xc19   :  { %v1615_v45 = vpop.permute.xlu1 %1614 }
 0xc26   :  { %v1539_v44 = vpop.permute.xlu0 %1538 }
 0xc27   :  { %1541 = vst.msk [vmem:[#allocation6 + $0x8] sm:$0xff] %vm465_vm5, %v1539_v44 }
 0xc28   :  { %1617 = vst.msk [vmem:[#allocation6 + $0x8] sm:$0xff] %vm541_vm6, %v1615_v45 }
 0xc2f   :  { %v1619_v46 = vld [vmem:[#allocation6 + $0x8] sm:$0xff] }
 0xc30   :  { %1924 = vmatmul.msk.f32.gmra.mxu2 %vm210_vm0, %v1619_v46 }
 0xc66   :  { %v1651_v48 = vpop.f32.mrf.mxu2 }
 0xc67   :  { %v1652_v49 = vadd.f32 %v1961_v47, %v1651_v48  ;;  %v1756_v48 = vld [vmem:[%s2948_s17 + $0x10] sm:$0xff] }
 0xc68   :  { %1787 = vmatpush.msrb.mxu3 %v1756_v48 }
 0xc69   :  { %v1657_v50 = vadd.f32 %v1652_v49, %v2682_v3  ;;  %v1755_v49 = vld [vmem:[%s2948_s17 + $0x8] sm:$0xff] }
 0xc6a   :  { %1788 = vmatpush.msrb.mxu3 %v1755_v49 }
 0xc6b   :  { %v1661_v51 = vsel %vm210_vm0, %v1657_v50, 0.0 }
 0xc6c   :  { %1662 = vadd.xlane.f32.xlu2 %v1661_v51  ;;  %v1964_v51 = vld [vmem:[#allocation17] ss:$0 sm:$0xff] }
 0xcb3   :  { %v1654_v52 = vpop.f32.mrf.mxu2 }
 0xcb4   :  { %v1655_v53 = vadd.f32 %v1961_v47, %v1654_v52 }
 0xcb6   :  { %v1658_v54 = vadd.f32 %v1655_v53, %v2687_v19 }
 0xcb8   :  { %v1664_v55 = vsel %vm210_vm0, %v1658_v54, 0.0 }
 0xcb9   :  { %1665 = vadd.xlane.f32.xlu0 %v1664_v55 }
 0xcdf   :  { %v1663_v36 = vpop.xlane.xlu2 %1662 }
 0xce0   :  { %v1667_v56 = vmul.f32 %v1663_v36, %v2643_v35 }
 0xce2   :  { %v1669_v57 = vsub.f32 %v1657_v50, %v1667_v56  ;;  %v1754_v50 = vld [vmem:[%s2948_s17] sm:$0xff] }
 0xce3   :  { %1789 = vmatpush.msrb.mxu3 %v1754_v50 }
 0xce4   :  { %v1671_v58 = vmul.f32 %v1669_v57, %v1669_v57 }
 0xce6   :  { %v1673_v59 = vsel %vm210_vm0, %v1671_v58, 0.0 }
 0xce7   :  { %1674 = vadd.xlane.f32.xlu1 %v1673_v59 }
 0xd2c   :  { %v1666_v60 = vpop.xlane.xlu0 %1665 }
 0xd2d   :  { %v1668_v3 = vmul.f32 %v1666_v60, %v2643_v35 }
 0xd2f   :  { %v2841_v61 = vsub.f32 %v1658_v54, %v1668_v3 }
 0xd31   :  { %v1672_v62 = vmul.f32 %v2841_v61, %v2841_v61 }
 0xd33   :  { %v1676_v19 = vsel %vm210_vm0, %v1672_v62, 0.0 }
 0xd34   :  { %1677 = vadd.xlane.f32.xlu2 %v1676_v19 }
 0xd5a   :  { %v1675_v5 = vpop.xlane.xlu1 %1674 }
 0xd5b   :  { %v1679_v7 = vmul.f32 %v1675_v5, %v2643_v35 }
 0xd5d   :  { %v1681_v8 = vadd.f32 1e-05, %v1679_v7 }
 0xd5f   :  { %2038 = vrsqrt.f32 %v1681_v8  ;;  %vm1689_vm4 = vweird.f32 %v1681_v8 }
 0xd65   :  { %v2039_v9 = vpop.eup %2038 }
 0xd66   :  { %v1684_v10 = vmul.f32 %v2039_v9, %v1681_v8  ;;  %vm1690_vm2 = vweird.f32 %v2039_v9 }
 0xd67   :  { %vm1691_vm5 = vmor %vm1689_vm4, %vm1690_vm2 }
 0xd68   :  { %v1685_v11 = vmul.f32 %v2039_v9, %v1684_v10 }
 0xd6a   :  { %v1686_v24 = vmul.f32 0.5, %v1685_v11 }
 0xd6c   :  { %v1687_v12 = vsub.f32 1.5, %v1686_v24 }
 0xd6e   :  { %v1688_v14 = vmul.f32 %v2039_v9, %v1687_v12 }
 0xd70   :  { %v1692_v16 = vsel %vm1691_vm5, %v2039_v9, %v1688_v14 }
 0xd71   :  { %v1703_v17 = vmul.f32 %v1692_v16, %v1669_v57  ;;  %v1965_v57 = vld [vmem:[#allocation18] ss:$0 sm:$0xff] }
 0xd73   :  { %v1708_v20 = vmul.f32 %v1962_v15, %v1703_v17 }
 0xd75   :  { %v2859_v22 = vadd.f32 %v1963_v18, %v1708_v20 }
 0xd77   :  { %1925 = vmatmul.msk.f32.vlgmr.msra.gmra.mxu1 %vm210_vm0, %v2859_v22 }
 0xda7   :  { %v1678_v28 = vpop.xlane.xlu2 %1677 }
 0xda8   :  { %v1680_v29 = vmul.f32 %v1678_v28, %v2643_v35  ;;  %v1967_v28 = vld [vmem:[#allocation21] ss:$0 sm:$0xff] }
 0xdaa   :  { %v1682_v31 = vadd.f32 1e-05, %v1680_v29 }
 0xdac   :  { %2040 = vrsqrt.f32 %v1682_v31  ;;  %vm1699_vm8 = vweird.f32 %v1682_v31 }
 0xdb2   :  { %v2041_v4 = vpop.eup %2040 }
 0xdb3   :  { %v1694_v37 = vmul.f32 %v2041_v4, %v1682_v31  ;;  %vm1700_vm6 = vweird.f32 %v2041_v4 }
 0xdb4   :  { %vm1701_vm9 = vmor %vm1699_vm8, %vm1700_vm6 }
 0xdb5   :  { %v1695_v39 = vmul.f32 %v2041_v4, %v1694_v37 }
 0xdb7   :  { %v1696_v6 = vmul.f32 0.5, %v1695_v39 }
 0xdb9   :  { %v1697_v41 = vsub.f32 1.5, %v1696_v6 }
 0xdbb   :  { %v1698_v43 = vmul.f32 %v2041_v4, %v1697_v41 }
 0xdbd   :  { %v1702_v44 = vsel %vm1701_vm9, %v2041_v4, %v1698_v43 }
 0xdbe   :  { %v1704_v45 = vmul.f32 %v1702_v44, %v2841_v61 }
 0xdc0   :  { %v1709_v46 = vmul.f32 %v1962_v15, %v1704_v45 }
 0xdc2   :  { %v1714_v47 = vadd.f32 %v1963_v18, %v1709_v46 }
 0xdc4   :  { %1926 = vmatmul.msk.f32.gmra.mxu1 %vm210_vm0, %v1714_v47 }
 0xdf4   :  { %v1746_v52 = vpop.f32.mrf.mxu1 }
 0xdf5   :  { %v1747_v53 = vadd.f32 %v1964_v51, %v1746_v52 }
 0xdf7   :  { %v1752_v54 = vmax.f32 %v1747_v53, 0.0 }
 0xdf9   :  { %1790 = vmatmul.f32.vlgmr.msrb.gmra.mxu3 %v1752_v54 }
 0xe41   :  { %v1749_v55 = vpop.f32.mrf.mxu1 }
 0xe42   :  { %v1750_v36 = vadd.f32 %v1964_v51, %v1749_v55 }
 0xe44   :  { %v1753_v56 = vmax.f32 %v1750_v36, 0.0 }
 0xe46   :  { %1793 = vmatmul.f32.gmra.mxu3 %v1753_v56 }
 0xe7c   :  { %v1791_v58 = vpop.f32.mrf.mxu3 }
 0xe7d   :  { %v1792_v59 = vadd.f32 %v1965_v57, %v1791_v58 }
 0xe7f   :  { %v1797_v60 = vadd.f32 %v1792_v59, %v2859_v22 }
 0xe81   :  { %v1801_v3 = vsel %vm210_vm0, %v1797_v60, 0.0 }
 0xe82   :  { %1802 = vadd.xlane.f32.xlu0 %v1801_v3 }
 0xec9   :  { %v1794_v61 = vpop.f32.mrf.mxu3 }
 0xeca   :  { %v1795_v62 = vadd.f32 %v1965_v57, %v1794_v61 }
 0xecc   :  { %v1798_v19 = vadd.f32 %v1795_v62, %v1714_v47 }
 0xece   :  { %v1804_v63 = vsel %vm210_vm0, %v1798_v19, 0.0 }
 0xecf   :  { %1805 = vadd.xlane.f32.xlu1 %v1804_v63 }
 0xef5   :  { %v1803_v0 = vpop.xlane.xlu0 %1802 }
 0xef6   :  { %v1807_v1 = vmul.f32 %v1803_v0, %v2643_v35 }
 0xef8   :  { %v1809_v2 = vsub.f32 %v1797_v60, %v1807_v1 }
 0xefa   :  { %v1811_v5 = vmul.f32 %v1809_v2, %v1809_v2 }
 0xefc   :  { %v1813_v7 = vsel %vm210_vm0, %v1811_v5, 0.0 }
 0xefd   :  { %1814 = vadd.xlane.f32.xlu2 %v1813_v7 }
 0xf42   :  { %v1806_v8 = vpop.xlane.xlu1 %1805 }
 0xf43   :  { %v1808_v9 = vmul.f32 %v1806_v8, %v2643_v35 }
 0xf45   :  { %v1810_v10 = vsub.f32 %v1798_v19, %v1808_v9 }
 0xf47   :  { %v1812_v11 = vmul.f32 %v1810_v10, %v1810_v10 }
 0xf49   :  { %v1816_v24 = vsel %vm210_vm0, %v1812_v11, 0.0 }
 0xf4a   :  { %1817 = vadd.xlane.f32.xlu0 %v1816_v24 }
 0xf70   :  { %v1815_v12 = vpop.xlane.xlu2 %1814 }
 0xf71   :  { %v1819_v14 = vmul.f32 %v1815_v12, %v2643_v35 }
 0xf73   :  { %v1821_v15 = vadd.f32 1e-05, %v1819_v14 }
 0xf75   :  { %2042 = vrsqrt.f32 %v1821_v15  ;;  %vm1829_vm11 = vweird.f32 %v1821_v15 }
 0xf7b   :  { %v2043_v16 = vpop.eup %2042 }
 0xf7c   :  { %v1824_v17 = vmul.f32 %v2043_v16, %v1821_v15  ;;  %vm1830_vm10 = vweird.f32 %v2043_v16 }
 0xf7d   :  { %vm1831_vm12 = vmor %vm1829_vm11, %vm1830_vm10 }
 0xf7e   :  { %v1825_v18 = vmul.f32 %v2043_v16, %v1824_v17 }
 0xf80   :  { %v1826_v20 = vmul.f32 0.5, %v1825_v18 }
 0xf82   :  { %v1827_v22 = vsub.f32 1.5, %v1826_v20 }
 0xf84   :  { %v1828_v25 = vmul.f32 %v2043_v16, %v1827_v22 }
 0xf86   :  { %v1832_v27 = vsel %vm1831_vm12, %v2043_v16, %v1828_v25 }
 0xf87   :  { %v1843_v29 = vmul.f32 %v1832_v27, %v1809_v2 }
 0xf89   :  { %v1848_v30 = vmul.f32 %v1966_v26, %v1843_v29 }
 0xf8b   :  { %v1853_v31 = vadd.f32 %v1967_v28, %v1848_v30 }
 0xf8d   :  { %1855 = vst.msk [vmem:[%s2952_s21] sm:$0xff] %vm210_vm0, %v1853_v31 }
 0xfbd   :  { %v1818_v13 = vpop.xlane.xlu0 %1817 }
 0xfbe   :  { %v1820_v32 = vmul.f32 %v1818_v13, %v2643_v35 }
 0xfc0   :  { %v1822_v33 = vadd.f32 1e-05, %v1820_v32 }
 0xfc2   :  { %2044 = vrsqrt.f32 %v1822_v33  ;;  %vm1839_vm14 = vweird.f32 %v1822_v33 }
 0xfc8   :  { %v2045_v34 = vpop.eup %2044 }
 0xfc9   :  { %v1834_v4 = vmul.f32 %v2045_v34, %v1822_v33  ;;  %vm1840_vm13 = vweird.f32 %v2045_v34 }
 0xfca   :  { %vm1841_vm15 = vmor %vm1839_vm14, %vm1840_vm13 }
 0xfcb   :  { %v1835_v21 = vmul.f32 %v2045_v34, %v1834_v4 }
 0xfcd   :  { %v1836_v37 = vmul.f32 0.5, %v1835_v21 }
 0xfcf   :  { %v1837_v38 = vsub.f32 1.5, %v1836_v37 }
 0xfd1   :  { %v1838_v39 = vmul.f32 %v2045_v34, %v1837_v38 }
 0xfd3   :  { %v1842_v23 = vsel %vm1841_vm15, %v2045_v34, %v1838_v39 }
 0xfd4   :  { %v1844_v6 = vmul.f32 %v1842_v23, %v1810_v10 }
 0xfd6   :  { %v1849_v40 = vmul.f32 %v1966_v26, %v1844_v6 }
 0xfd8   :  { %v1854_v41 = vadd.f32 %v1967_v28, %v1849_v40 }
 0xfda   :  { %1856 = vst.msk [vmem:[%s2952_s21 + $0x8] sm:$0xff] %vm210_vm0, %v1854_v41 }
 0xfdb   :  { %1861 = vsyncpa [#allocation8], 1 }
 0xfdc   :  { %1862 = vsyncpa [#allocation10], 1 }
 0xfdd   :  { %1863 = vsyncpa [#allocation13], 1 }
 0xfde   :  { %1864 = vsyncpa [#allocation16], 1 }
 0xfdf   :  { %1865 = vsyncpa [#allocation19], 1 }
 0xfe0   :  { %1866 = vsyncpa [#allocation22], 1 }

</bundles_post_ra>
